<compile_context>
chip_gen: v7x
topology: tpu7x:2x2x1
jax: 0.10.0
libtpu: 0.0.40
codegen_flags: <defaults>
</compile_context>

<pallas_src>
import functools

import jax
import jax.numpy as jnp
from jax.experimental import pallas as pl
from jax.experimental.pallas import tpu as pltpu

H1 = 128          # lstm_1 hidden per direction
H2 = 64           # lstm_2 hidden per direction
HP = 128          # padded per-direction hidden used inside kernels (lane tile)


# ----------------------------------------------------------------------------
# Fused bidirectional LSTM layer kernel: one invocation runs BOTH directions,
# interleaved per timestep.
# ----------------------------------------------------------------------------
def _bilstm_kernel(x_ref, wih_ref, whh_ref, b_ref, out_ref,
                   gxf_scr, gxr_scr, hf_scr, hr_scr, cf_scr, cr_scr,
                   outf_scr, outr_scr, *, seq_len, bpad, hp):
    g4 = 4 * hp

    # ---- hoisted input projection, both directions, ONE MXU matmul ----------
    # (rows, Din) @ (Din, 8*hp) -> f32, plus folded (b_ih + b_hh) per direction.
    g_all = jnp.dot(x_ref[...], wih_ref[...],
                    preferred_element_type=jnp.float32) + b_ref[...]
    gxf_scr[...] = g_all[:, :g4]
    gxr_scr[...] = g_all[:, g4:]

    hf_scr[...] = jnp.zeros_like(hf_scr)
    hr_scr[...] = jnp.zeros_like(hr_scr)
    cf_scr[...] = jnp.zeros_like(cf_scr)
    cr_scr[...] = jnp.zeros_like(cr_scr)

    whh_f = whh_ref[0]                    # (hp, 4*hp) bf16, loop-invariant
    whh_r = whh_ref[1]

    def gates(g, c_old):
        # PyTorch gate order i, f, g, o; slices are 128-lane aligned (hp=128).
        i_g = jax.nn.sigmoid(g[:, 0 * hp:1 * hp])
        f_g = jax.nn.sigmoid(g[:, 1 * hp:2 * hp])
        g_g = jnp.tanh(g[:, 2 * hp:3 * hp])
        o_g = jax.nn.sigmoid(g[:, 3 * hp:4 * hp])
        c_new = f_g * c_old + i_g * g_g
        h_new = o_g * jnp.tanh(c_new)
        return h_new, c_new

    def step(s, carry):
        # forward walks t = s; reverse walks t = T-1-s and writes its output
        # back at the original time index (PyTorch semantics).
        row_f = pl.multiple_of(s * bpad, bpad)
        row_r = pl.multiple_of((seq_len - 1 - s) * bpad, bpad)

        # Two independent recurrences: the scheduler overlaps one direction's
        # MXU pushes with the other direction's VPU/EUP gate math.
        gm_f = jnp.dot(hf_scr[...], whh_f, preferred_element_type=jnp.float32)
        gm_r = jnp.dot(hr_scr[...], whh_r, preferred_element_type=jnp.float32)

        g_f = gxf_scr[pl.ds(row_f, bpad), :] + gm_f
        g_r = gxr_scr[pl.ds(row_r, bpad), :] + gm_r

        h_f, c_f = gates(g_f, cf_scr[...])
        h_r, c_r = gates(g_r, cr_scr[...])

        cf_scr[...] = c_f
        cr_scr[...] = c_r
        hf_scr[...] = h_f.astype(jnp.bfloat16)   # bf16 state feeds next matmul
        hr_scr[...] = h_r.astype(jnp.bfloat16)

        outf_scr[pl.ds(row_f, bpad), :] = h_f
        outr_scr[pl.ds(row_r, bpad), :] = h_r
        return carry

    jax.lax.fori_loop(0, seq_len, step, 0, unroll=min(8, seq_len))

    # Single aligned bf16 writeback of each 128-lane half.
    out_ref[:, 0:hp] = outf_scr[...].astype(out_ref.dtype)
    out_ref[:, hp:2 * hp] = outr_scr[...].astype(out_ref.dtype)


def _vmem_bytes(rows, din, hp, bpad):
    est = 0
    est += 2 * rows * din * 2             # x block (bf16), double-buffered
    est += 2 * din * 8 * hp * 2           # W_ih (bf16)
    est += 2 * 2 * hp * 4 * hp * 2        # W_hh (bf16)
    est += 2 * 8 * hp * 4                 # bias (f32)
    est += 2 * rows * 2 * hp * 2          # out block (bf16)
    est += 2 * rows * 4 * hp * 4          # gx fwd + rev scratch (f32)
    est += 2 * rows * hp * 4              # out fwd + rev scratch (f32)
    est += 2 * bpad * hp * (2 + 4)        # h (bf16) + c (f32), both dirs
    return est


def bilstm_layer(x_rows_bf16, layer_p, *, seq_len, bpad, hp):
    """x_rows_bf16: (seq_len*bpad, Din) bf16, time-major rows (t major, batch minor).

    Returns (seq_len*bpad, 2*hp) bf16 with the forward hidden in lanes [0, hp)
    and the reverse hidden in lanes [hp, 2*hp) (zero-padded beyond the real
    hidden size)."""
    rows, din = x_rows_bf16.shape
    kern = functools.partial(_bilstm_kernel, seq_len=seq_len, bpad=bpad, hp=hp)
    vmem_limit = min(100 * 2**20,
                     max(32 * 2**20, int(_vmem_bytes(rows, din, hp, bpad) * 1.5)))
    return pl.pallas_call(
        kern,
        out_shape=jax.ShapeDtypeStruct((rows, 2 * hp), jnp.bfloat16),
        grid_spec=pltpu.PrefetchScalarGridSpec(
            num_scalar_prefetch=0,
            grid=(1,),
            in_specs=[
                pl.BlockSpec((rows, din), lambda i: (0, 0)),
                pl.BlockSpec((din, 8 * hp), lambda i: (0, 0)),
                pl.BlockSpec((2, hp, 4 * hp), lambda i: (0, 0, 0)),
                pl.BlockSpec((1, 8 * hp), lambda i: (0, 0)),
            ],
            out_specs=pl.BlockSpec((rows, 2 * hp), lambda i: (0, 0)),
            scratch_shapes=[
                pltpu.VMEM((rows, 4 * hp), jnp.float32),   # gx forward
                pltpu.VMEM((rows, 4 * hp), jnp.float32),   # gx reverse
                pltpu.VMEM((bpad, hp), jnp.bfloat16),      # h forward (bf16)
                pltpu.VMEM((bpad, hp), jnp.bfloat16),      # h reverse (bf16)
                pltpu.VMEM((bpad, hp), jnp.float32),       # c forward
                pltpu.VMEM((bpad, hp), jnp.float32),       # c reverse
                pltpu.VMEM((rows, hp), jnp.float32),       # out forward
                pltpu.VMEM((rows, hp), jnp.float32),       # out reverse
            ],
        ),
        compiler_params=pltpu.CompilerParams(
            dimension_semantics=("arbitrary",),
            vmem_limit_bytes=vmem_limit),
    )(x_rows_bf16, layer_p["wih"], layer_p["whh"], layer_p["b"])


# ----------------------------------------------------------------------------
# Encoder forward (eval mode: dropout = identity).
# ----------------------------------------------------------------------------
def encoder_forward(packed_params, x_btd):
    B, T, din = x_btd.shape
    bpad = max(8, ((B + 7) // 8) * 8)

    # time-major, batch padded to a sublane tile, flattened to rows.
    x = jnp.transpose(x_btd, (1, 0, 2)).astype(jnp.float32)       # (T, B, Din)
    x = jnp.pad(x, ((0, 0), (0, bpad - B), (0, 0)))
    x_rows = x.reshape(T * bpad, din).astype(jnp.bfloat16)

    o1 = bilstm_layer(x_rows, packed_params["l1"],
                      seq_len=T, bpad=bpad, hp=HP)                # (T*bpad, 256) bf16
    # dropout -> identity (eval); o1 is already bf16, feeds layer 2 directly.
    o2 = bilstm_layer(o1, packed_params["l2"],
                      seq_len=T, bpad=bpad, hp=HP)                # (T*bpad, 256) bf16

    o2 = o2.reshape(T, bpad, 2 * HP)[:, :B].astype(jnp.float32)
    out = jnp.concatenate([o2[..., :H2], o2[..., HP:HP + H2]], axis=-1)  # (T,B,128)
    return jnp.transpose(out, (1, 0, 2))                          # (B, T, 128)


# ----------------------------------------------------------------------------
# Parameter init (raw PyTorch-shaped, pre-transposed for x @ W) and packing
# into the padded / concatenated / bf16 layout the kernel consumes.
# ----------------------------------------------------------------------------
def init_raw_params(key, input_dim):
    keys = iter(jax.random.split(key, 16))

    def rnd(shape, scale=0.08):
        return scale * jax.random.normal(next(keys), shape, dtype=jnp.float32)

    def layer(din, h):
        return dict(wih_f=rnd((din, 4 * h)), whh_f=rnd((h, 4 * h)), b_f=rnd((1, 4 * h)),
                    wih_r=rnd((din, 4 * h)), whh_r=rnd((h, 4 * h)), b_r=rnd((1, 4 * h)))

    return dict(l1=layer(input_dim, H1), l2=layer(2 * H1, H2))


def _pack_gate_cols(w, h, hp):
    """(rows, 4*h) -> (rows, 4*hp); gate k occupies cols [k*hp, k*hp+h), rest 0."""
    if h == hp:
        return w
    rows = w.shape[0]
    out = jnp.zeros((rows, 4 * hp), w.dtype)
    for k in range(4):
        out = out.at[:, k * hp:k * hp + h].set(w[:, k * h:(k + 1) * h])
    return out


def _pack_layer(lp, h, hp):
    wih_f = _pack_gate_cols(lp["wih_f"], h, hp)
    wih_r = _pack_gate_cols(lp["wih_r"], h, hp)
    wih = jnp.concatenate([wih_f, wih_r], axis=1).astype(jnp.bfloat16)  # (din, 8hp)

    whh_f = _pack_gate_cols(lp["whh_f"], h, hp)
    whh_r = _pack_gate_cols(lp["whh_r"], h, hp)
    if h != hp:
        whh_f = jnp.pad(whh_f, ((0, hp - h), (0, 0)))
        whh_r = jnp.pad(whh_r, ((0, hp - h), (0, 0)))
    whh = jnp.stack([whh_f, whh_r]).astype(jnp.bfloat16)                # (2, hp, 4hp)

    b_f = _pack_gate_cols(lp["b_f"], h, hp)
    b_r = _pack_gate_cols(lp["b_r"], h, hp)
    b = jnp.concatenate([b_f, b_r], axis=1).astype(jnp.float32)         # (1, 8hp)
    return dict(wih=wih, whh=whh, b=b)


def pack_params(raw):
    return dict(l1=_pack_layer(raw["l1"], H1, HP),
                l2=_pack_layer(raw["l2"], H2, HP))


# ----------------------------------------------------------------------------
# Pure-JAX f32 reference (PyTorch bidirectional-LSTM semantics) for sanity.
# ----------------------------------------------------------------------------
def _lstm_dir_ref(x_tbd, wih, whh, b, reverse):
    T, B, _ = x_tbd.shape
    h = whh.shape[0]
    xs = x_tbd[::-1] if reverse else x_tbd

    def step(carry, x_t):
        hh, cc = carry
        g = x_t @ wih + hh @ whh + b
        i = jax.nn.sigmoid(g[:, :h])
        f = jax.nn.sigmoid(g[:, h:2 * h])
        gg = jnp.tanh(g[:, 2 * h:3 * h])
        o = jax.nn.sigmoid(g[:, 3 * h:])
        cc = f * cc + i * gg
        hh = o * jnp.tanh(cc)
        return (hh, cc), hh

    init = (jnp.zeros((B, h), jnp.float32), jnp.zeros((B, h), jnp.float32))
    _, hs = jax.lax.scan(step, init, xs)
    return hs[::-1] if reverse else hs


def encoder_ref(raw, x_btd):
    x = jnp.transpose(x_btd, (1, 0, 2)).astype(jnp.float32)

    def bil(xin, lp):
        f = _lstm_dir_ref(xin, lp["wih_f"], lp["whh_f"], lp["b_f"], False)
        r = _lstm_dir_ref(xin, lp["wih_r"], lp["whh_r"], lp["b_r"], True)
        return jnp.concatenate([f, r], axis=-1)

    return jnp.transpose(bil(bil(x, raw["l1"]), raw["l2"]), (1, 0, 2))


if __name__ == "__main__":
    key = jax.random.PRNGKey(0)
    k_p, k_x = jax.random.split(key)

    B, T, INPUT_DIM = 2, 8, 6
    x = jax.random.normal(k_x, (B, T, INPUT_DIM), dtype=jnp.float32)

    raw = init_raw_params(k_p, INPUT_DIM)
    packed = pack_params(raw)

    out = jax.jit(encoder_forward)(packed, x)
    out = jax.block_until_ready(out)

    assert out.shape == (B, T, 2 * H2), out.shape
    assert bool(jnp.all(jnp.isfinite(out)))

    ref = encoder_ref(raw, x)
    err = float(jnp.max(jnp.abs(out - ref)))
    # bf16 MXU operands + bf16 recurrent state + bf16 inter-layer/output
    # storage: quantization noise well below this bound for tanh-bounded outputs.
    assert err < 4e-2, f"max abs error vs f32 reference: {err}"

    print("KERNEL_OK")
</pallas_src>

<mosaic_0001>
module attributes {stable_mosaic.version = 11 : i64} {
  func.func @_bilstm_kernel(%arg0: i32, %arg1: memref<64x6xbf16, #tpu.memory_space<vmem>>, %arg2: memref<6x1024xbf16, #tpu.memory_space<vmem>>, %arg3: memref<2x128x512xbf16, #tpu.memory_space<vmem>>, %arg4: memref<1x1024xf32, #tpu.memory_space<vmem>>, %arg5: memref<64x256xbf16, #tpu.memory_space<vmem>>, %arg6: memref<64x512xf32, #tpu.memory_space<vmem>>, %arg7: memref<64x512xf32, #tpu.memory_space<vmem>>, %arg8: memref<8x128xbf16, #tpu.memory_space<vmem>>, %arg9: memref<8x128xbf16, #tpu.memory_space<vmem>>, %arg10: memref<8x128xf32, #tpu.memory_space<vmem>>, %arg11: memref<8x128xf32, #tpu.memory_space<vmem>>, %arg12: memref<64x128xf32, #tpu.memory_space<vmem>>, %arg13: memref<64x128xf32, #tpu.memory_space<vmem>>) attributes {dimension_semantics = [#tpu.dimension_semantics<arbitrary>], iteration_bounds = array<i64: 1>, scalar_prefetch = 0 : i64, scratch_operands = 8 : i64, tpu.core_type = #tpu.core_type<tc>, window_params = [{pipeline_mode = #tpu.pipeline_mode<synchronous>, transform_indices = @transform_0, window_bounds = array<i64: 64, 6>}, {pipeline_mode = #tpu.pipeline_mode<synchronous>, transform_indices = @transform_1, window_bounds = array<i64: 6, 1024>}, {pipeline_mode = #tpu.pipeline_mode<synchronous>, transform_indices = @transform_2, window_bounds = array<i64: 2, 128, 512>}, {pipeline_mode = #tpu.pipeline_mode<synchronous>, transform_indices = @transform_3, window_bounds = array<i64: 1, 1024>}, {pipeline_mode = #tpu.pipeline_mode<synchronous>, transform_indices = @transform_4, window_bounds = array<i64: 64, 256>}]} {
    %c0 = arith.constant 0 : index
    %c0_0 = arith.constant 0 : index
    %0 = vector.load %arg1[%c0, %c0_0] : memref<64x6xbf16, #tpu.memory_space<vmem>>, vector<64x6xbf16>
    %c0_1 = arith.constant 0 : index
    %c0_2 = arith.constant 0 : index
    %1 = vector.load %arg2[%c0_1, %c0_2] : memref<6x1024xbf16, #tpu.memory_space<vmem>>, vector<6x1024xbf16>
    %cst = arith.constant dense<0.000000e+00> : vector<64x1024xf32>
    %2 = tpu.matmul %0, %1, %cst {dimension_numbers = #tpu.dot_dimension_numbers<[1], [0], [0], [1], [0, 0, 1, 1], [], []>} : vector<64x6xbf16>, vector<6x1024xbf16>, vector<64x1024xf32> -> vector<64x1024xf32>
    %c0_3 = arith.constant 0 : index
    %c0_4 = arith.constant 0 : index
    %3 = vector.load %arg4[%c0_3, %c0_4] : memref<1x1024xf32, #tpu.memory_space<vmem>>, vector<1x1024xf32>
    %4 = vector.broadcast %3 : vector<1x1024xf32> to vector<64x1024xf32>
    %5 = arith.addf %2, %4 : vector<64x1024xf32>
    %6 = vector.extract_strided_slice %5 {offsets = [0, 0], sizes = [64, 512], strides = [1, 1]} : vector<64x1024xf32> to vector<64x512xf32>
    %c0_5 = arith.constant 0 : index
    %c0_6 = arith.constant 0 : index
    %7 = vector.load %arg6[%c0_5, %c0_6] : memref<64x512xf32, #tpu.memory_space<vmem>>, vector<64x512xf32>
    tpu.vector_store %arg6[%c0_5, %c0_6], %6 {strides = array<i32>} : memref<64x512xf32, #tpu.memory_space<vmem>>, vector<64x512xf32>,
    %8 = vector.extract_strided_slice %5 {offsets = [0, 512], sizes = [64, 512], strides = [1, 1]} : vector<64x1024xf32> to vector<64x512xf32>
    %c0_7 = arith.constant 0 : index
    %c0_8 = arith.constant 0 : index
    %9 = vector.load %arg7[%c0_7, %c0_8] : memref<64x512xf32, #tpu.memory_space<vmem>>, vector<64x512xf32>
    tpu.vector_store %arg7[%c0_7, %c0_8], %8 {strides = array<i32>} : memref<64x512xf32, #tpu.memory_space<vmem>>, vector<64x512xf32>,
    %cst_9 = arith.constant 0.000000e+00 : bf16
    %10 = vector.broadcast %cst_9 : bf16 to vector<8x128xbf16>
    %c0_10 = arith.constant 0 : index
    %c0_11 = arith.constant 0 : index
    %11 = vector.load %arg8[%c0_10, %c0_11] : memref<8x128xbf16, #tpu.memory_space<vmem>>, vector<8x128xbf16>
    tpu.vector_store %arg8[%c0_10, %c0_11], %10 {strides = array<i32>} : memref<8x128xbf16, #tpu.memory_space<vmem>>, vector<8x128xbf16>,
    %cst_12 = arith.constant 0.000000e+00 : bf16
    %12 = vector.broadcast %cst_12 : bf16 to vector<8x128xbf16>
    %c0_13 = arith.constant 0 : index
    %c0_14 = arith.constant 0 : index
    %13 = vector.load %arg9[%c0_13, %c0_14] : memref<8x128xbf16, #tpu.memory_space<vmem>>, vector<8x128xbf16>
    tpu.vector_store %arg9[%c0_13, %c0_14], %12 {strides = array<i32>} : memref<8x128xbf16, #tpu.memory_space<vmem>>, vector<8x128xbf16>,
    %cst_15 = arith.constant 0.000000e+00 : f32
    %14 = vector.broadcast %cst_15 : f32 to vector<8x128xf32>
    %c0_16 = arith.constant 0 : index
    %c0_17 = arith.constant 0 : index
    %15 = vector.load %arg10[%c0_16, %c0_17] : memref<8x128xf32, #tpu.memory_space<vmem>>, vector<8x128xf32>
    tpu.vector_store %arg10[%c0_16, %c0_17], %14 {strides = array<i32>} : memref<8x128xf32, #tpu.memory_space<vmem>>, vector<8x128xf32>,
    %cst_18 = arith.constant 0.000000e+00 : f32
    %16 = vector.broadcast %cst_18 : f32 to vector<8x128xf32>
    %c0_19 = arith.constant 0 : index
    %c0_20 = arith.constant 0 : index
    %17 = vector.load %arg11[%c0_19, %c0_20] : memref<8x128xf32, #tpu.memory_space<vmem>>, vector<8x128xf32>
    tpu.vector_store %arg11[%c0_19, %c0_20], %16 {strides = array<i32>} : memref<8x128xf32, #tpu.memory_space<vmem>>, vector<8x128xf32>,
    %c0_21 = arith.constant 0 : index
    %c0_22 = arith.constant 0 : index
    %c0_23 = arith.constant 0 : index
    %18 = vector.load %arg3[%c0_21, %c0_22, %c0_23] : memref<2x128x512xbf16, #tpu.memory_space<vmem>>, vector<1x128x512xbf16>
    %19 = vector.shape_cast %18 : vector<1x128x512xbf16> to vector<128x512xbf16>
    %c1 = arith.constant 1 : index
    %c0_24 = arith.constant 0 : index
    %c0_25 = arith.constant 0 : index
    %20 = vector.load %arg3[%c1, %c0_24, %c0_25] : memref<2x128x512xbf16, #tpu.memory_space<vmem>>, vector<1x128x512xbf16>
    %21 = vector.shape_cast %20 : vector<1x128x512xbf16> to vector<128x512xbf16>
    %c0_i32 = arith.constant 0 : i32
    %c8_i32 = arith.constant 8 : i32
    %22 = arith.muli %c0_i32, %c8_i32 : i32
    %23 = tpu.assume_multiple %22, 8 : i32
    %c7_i32 = arith.constant 7 : i32
    %24 = arith.subi %c7_i32, %c0_i32 : i32
    %c8_i32_26 = arith.constant 8 : i32
    %25 = arith.muli %24, %c8_i32_26 : i32
    %26 = tpu.assume_multiple %25, 8 : i32
    %c0_27 = arith.constant 0 : index
    %c0_28 = arith.constant 0 : index
    %27 = vector.load %arg8[%c0_27, %c0_28] : memref<8x128xbf16, #tpu.memory_space<vmem>>, vector<8x128xbf16>
    %cst_29 = arith.constant dense<0.000000e+00> : vector<8x512xf32>
    %28 = tpu.matmul %27, %19, %cst_29 {dimension_numbers = #tpu.dot_dimension_numbers<[1], [0], [0], [1], [0, 0, 1, 1], [], []>} : vector<8x128xbf16>, vector<128x512xbf16>, vector<8x512xf32> -> vector<8x512xf32>
    %c0_30 = arith.constant 0 : index
    %c0_31 = arith.constant 0 : index
    %29 = vector.load %arg9[%c0_30, %c0_31] : memref<8x128xbf16, #tpu.memory_space<vmem>>, vector<8x128xbf16>
    %cst_32 = arith.constant dense<0.000000e+00> : vector<8x512xf32>
    %30 = tpu.matmul %29, %21, %cst_32 {dimension_numbers = #tpu.dot_dimension_numbers<[1], [0], [0], [1], [0, 0, 1, 1], [], []>} : vector<8x128xbf16>, vector<128x512xbf16>, vector<8x512xf32> -> vector<8x512xf32>
    %31 = arith.index_cast %23 : i32 to index
    %c0_33 = arith.constant 0 : index
    %32 = vector.load %arg6[%31, %c0_33] : memref<64x512xf32, #tpu.memory_space<vmem>>, vector<8x512xf32>
    %33 = arith.addf %32, %28 : vector<8x512xf32>
    %34 = arith.index_cast %26 : i32 to index
    %c0_34 = arith.constant 0 : index
    %35 = vector.load %arg7[%34, %c0_34] : memref<64x512xf32, #tpu.memory_space<vmem>>, vector<8x512xf32>
    %36 = arith.addf %35, %30 : vector<8x512xf32>
    %c0_35 = arith.constant 0 : index
    %c0_36 = arith.constant 0 : index
    %37 = vector.load %arg10[%c0_35, %c0_36] : memref<8x128xf32, #tpu.memory_space<vmem>>, vector<8x128xf32>
    %38 = vector.extract_strided_slice %33 {offsets = [0, 0], sizes = [8, 128], strides = [1, 1]} : vector<8x512xf32> to vector<8x128xf32>
    %39 = arith.negf %38 : vector<8x128xf32>
    %40 = math.exp %39 : vector<8x128xf32>
    %cst_37 = arith.constant 1.000000e+00 : f32
    %41 = vector.broadcast %cst_37 : f32 to vector<8x128xf32>
    %42 = arith.addf %41, %40 : vector<8x128xf32>
    %43 = arith.divf %41, %42 : vector<8x128xf32>
    %44 = vector.extract_strided_slice %33 {offsets = [0, 128], sizes = [8, 128], strides = [1, 1]} : vector<8x512xf32> to vector<8x128xf32>
    %45 = arith.negf %44 : vector<8x128xf32>
    %46 = math.exp %45 : vector<8x128xf32>
    %cst_38 = arith.constant 1.000000e+00 : f32
    %47 = vector.broadcast %cst_38 : f32 to vector<8x128xf32>
    %48 = arith.addf %47, %46 : vector<8x128xf32>
    %49 = arith.divf %47, %48 : vector<8x128xf32>
    %50 = vector.extract_strided_slice %33 {offsets = [0, 256], sizes = [8, 128], strides = [1, 1]} : vector<8x512xf32> to vector<8x128xf32>
    %51 = math.tanh %50 : vector<8x128xf32>
    %52 = vector.extract_strided_slice %33 {offsets = [0, 384], sizes = [8, 128], strides = [1, 1]} : vector<8x512xf32> to vector<8x128xf32>
    %53 = arith.negf %52 : vector<8x128xf32>
    %54 = math.exp %53 : vector<8x128xf32>
    %cst_39 = arith.constant 1.000000e+00 : f32
    %55 = vector.broadcast %cst_39 : f32 to vector<8x128xf32>
    %56 = arith.addf %55, %54 : vector<8x128xf32>
    %57 = arith.divf %55, %56 : vector<8x128xf32>
    %58 = arith.mulf %49, %37 : vector<8x128xf32>
    %59 = arith.mulf %43, %51 : vector<8x128xf32>
    %60 = arith.addf %58, %59 : vector<8x128xf32>
    %61 = math.tanh %60 : vector<8x128xf32>
    %62 = arith.mulf %57, %61 : vector<8x128xf32>
    %c0_40 = arith.constant 0 : index
    %c0_41 = arith.constant 0 : index
    %63 = vector.load %arg11[%c0_40, %c0_41] : memref<8x128xf32, #tpu.memory_space<vmem>>, vector<8x128xf32>
    %64 = vector.extract_strided_slice %36 {offsets = [0, 0], sizes = [8, 128], strides = [1, 1]} : vector<8x512xf32> to vector<8x128xf32>
    %65 = arith.negf %64 : vector<8x128xf32>
    %66 = math.exp %65 : vector<8x128xf32>
    %cst_42 = arith.constant 1.000000e+00 : f32
    %67 = vector.broadcast %cst_42 : f32 to vector<8x128xf32>
    %68 = arith.addf %67, %66 : vector<8x128xf32>
    %69 = arith.divf %67, %68 : vector<8x128xf32>
    %70 = vector.extract_strided_slice %36 {offsets = [0, 128], sizes = [8, 128], strides = [1, 1]} : vector<8x512xf32> to vector<8x128xf32>
    %71 = arith.negf %70 : vector<8x128xf32>
    %72 = math.exp %71 : vector<8x128xf32>
    %cst_43 = arith.constant 1.000000e+00 : f32
    %73 = vector.broadcast %cst_43 : f32 to vector<8x128xf32>
    %74 = arith.addf %73, %72 : vector<8x128xf32>
    %75 = arith.divf %73, %74 : vector<8x128xf32>
    %76 = vector.extract_strided_slice %36 {offsets = [0, 256], sizes = [8, 128], strides = [1, 1]} : vector<8x512xf32> to vector<8x128xf32>
    %77 = math.tanh %76 : vector<8x128xf32>
    %78 = vector.extract_strided_slice %36 {offsets = [0, 384], sizes = [8, 128], strides = [1, 1]} : vector<8x512xf32> to vector<8x128xf32>
    %79 = arith.negf %78 : vector<8x128xf32>
    %80 = math.exp %79 : vector<8x128xf32>
    %cst_44 = arith.constant 1.000000e+00 : f32
    %81 = vector.broadcast %cst_44 : f32 to vector<8x128xf32>
    %82 = arith.addf %81, %80 : vector<8x128xf32>
    %83 = arith.divf %81, %82 : vector<8x128xf32>
    %84 = arith.mulf %75, %63 : vector<8x128xf32>
    %85 = arith.mulf %69, %77 : vector<8x128xf32>
    %86 = arith.addf %84, %85 : vector<8x128xf32>
    %87 = math.tanh %86 : vector<8x128xf32>
    %88 = arith.mulf %83, %87 : vector<8x128xf32>
    %c0_45 = arith.constant 0 : index
    %c0_46 = arith.constant 0 : index
    %89 = vector.load %arg10[%c0_45, %c0_46] : memref<8x128xf32, #tpu.memory_space<vmem>>, vector<8x128xf32>
    tpu.vector_store %arg10[%c0_45, %c0_46], %60 {strides = array<i32>} : memref<8x128xf32, #tpu.memory_space<vmem>>, vector<8x128xf32>,
    %c0_47 = arith.constant 0 : index
    %c0_48 = arith.constant 0 : index
    %90 = vector.load %arg11[%c0_47, %c0_48] : memref<8x128xf32, #tpu.memory_space<vmem>>, vector<8x128xf32>
    tpu.vector_store %arg11[%c0_47, %c0_48], %86 {strides = array<i32>} : memref<8x128xf32, #tpu.memory_space<vmem>>, vector<8x128xf32>,
    %91 = arith.truncf %62 : vector<8x128xf32> to vector<8x128xbf16>
    %c0_49 = arith.constant 0 : index
    %c0_50 = arith.constant 0 : index
    %92 = vector.load %arg8[%c0_49, %c0_50] : memref<8x128xbf16, #tpu.memory_space<vmem>>, vector<8x128xbf16>
    tpu.vector_store %arg8[%c0_49, %c0_50], %91 {strides = array<i32>} : memref<8x128xbf16, #tpu.memory_space<vmem>>, vector<8x128xbf16>,
    %93 = arith.truncf %88 : vector<8x128xf32> to vector<8x128xbf16>
    %c0_51 = arith.constant 0 : index
    %c0_52 = arith.constant 0 : index
    %94 = vector.load %arg9[%c0_51, %c0_52] : memref<8x128xbf16, #tpu.memory_space<vmem>>, vector<8x128xbf16>
    tpu.vector_store %arg9[%c0_51, %c0_52], %93 {strides = array<i32>} : memref<8x128xbf16, #tpu.memory_space<vmem>>, vector<8x128xbf16>,
    %95 = arith.index_cast %23 : i32 to index
    %c0_53 = arith.constant 0 : index
    %96 = vector.load %arg12[%95, %c0_53] : memref<64x128xf32, #tpu.memory_space<vmem>>, vector<8x128xf32>
    tpu.vector_store %arg12[%95, %c0_53], %62 {strides = array<i32>} : memref<64x128xf32, #tpu.memory_space<vmem>>, vector<8x128xf32>,
    %97 = arith.index_cast %26 : i32 to index
    %c0_54 = arith.constant 0 : index
    %98 = vector.load %arg13[%97, %c0_54] : memref<64x128xf32, #tpu.memory_space<vmem>>, vector<8x128xf32>
    tpu.vector_store %arg13[%97, %c0_54], %88 {strides = array<i32>} : memref<64x128xf32, #tpu.memory_space<vmem>>, vector<8x128xf32>,
    %c1_i32 = arith.constant 1 : i32
    %c8_i32_55 = arith.constant 8 : i32
    %99 = arith.muli %c1_i32, %c8_i32_55 : i32
    %100 = tpu.assume_multiple %99, 8 : i32
    %c7_i32_56 = arith.constant 7 : i32
    %101 = arith.subi %c7_i32_56, %c1_i32 : i32
    %c8_i32_57 = arith.constant 8 : i32
    %102 = arith.muli %101, %c8_i32_57 : i32
    %103 = tpu.assume_multiple %102, 8 : i32
    %c0_58 = arith.constant 0 : index
    %c0_59 = arith.constant 0 : index
    %104 = vector.load %arg8[%c0_58, %c0_59] : memref<8x128xbf16, #tpu.memory_space<vmem>>, vector<8x128xbf16>
    %cst_60 = arith.constant dense<0.000000e+00> : vector<8x512xf32>
    %105 = tpu.matmul %104, %19, %cst_60 {dimension_numbers = #tpu.dot_dimension_numbers<[1], [0], [0], [1], [0, 0, 1, 1], [], []>} : vector<8x128xbf16>, vector<128x512xbf16>, vector<8x512xf32> -> vector<8x512xf32>
    %c0_61 = arith.constant 0 : index
    %c0_62 = arith.constant 0 : index
    %106 = vector.load %arg9[%c0_61, %c0_62] : memref<8x128xbf16, #tpu.memory_space<vmem>>, vector<8x128xbf16>
    %cst_63 = arith.constant dense<0.000000e+00> : vector<8x512xf32>
    %107 = tpu.matmul %106, %21, %cst_63 {dimension_numbers = #tpu.dot_dimension_numbers<[1], [0], [0], [1], [0, 0, 1, 1], [], []>} : vector<8x128xbf16>, vector<128x512xbf16>, vector<8x512xf32> -> vector<8x512xf32>
    %108 = arith.index_cast %100 : i32 to index
    %c0_64 = arith.constant 0 : index
    %109 = vector.load %arg6[%108, %c0_64] : memref<64x512xf32, #tpu.memory_space<vmem>>, vector<8x512xf32>
    %110 = arith.addf %109, %105 : vector<8x512xf32>
    %111 = arith.index_cast %103 : i32 to index
    %c0_65 = arith.constant 0 : index
    %112 = vector.load %arg7[%111, %c0_65] : memref<64x512xf32, #tpu.memory_space<vmem>>, vector<8x512xf32>
    %113 = arith.addf %112, %107 : vector<8x512xf32>
    %c0_66 = arith.constant 0 : index
    %c0_67 = arith.constant 0 : index
    %114 = vector.load %arg10[%c0_66, %c0_67] : memref<8x128xf32, #tpu.memory_space<vmem>>, vector<8x128xf32>
    %115 = vector.extract_strided_slice %110 {offsets = [0, 0], sizes = [8, 128], strides = [1, 1]} : vector<8x512xf32> to vector<8x128xf32>
    %116 = arith.negf %115 : vector<8x128xf32>
    %117 = math.exp %116 : vector<8x128xf32>
    %cst_68 = arith.constant 1.000000e+00 : f32
    %118 = vector.broadcast %cst_68 : f32 to vector<8x128xf32>
    %119 = arith.addf %118, %117 : vector<8x128xf32>
    %120 = arith.divf %118, %119 : vector<8x128xf32>
    %121 = vector.extract_strided_slice %110 {offsets = [0, 128], sizes = [8, 128], strides = [1, 1]} : vector<8x512xf32> to vector<8x128xf32>
    %122 = arith.negf %121 : vector<8x128xf32>
    %123 = math.exp %122 : vector<8x128xf32>
    %cst_69 = arith.constant 1.000000e+00 : f32
    %124 = vector.broadcast %cst_69 : f32 to vector<8x128xf32>
    %125 = arith.addf %124, %123 : vector<8x128xf32>
    %126 = arith.divf %124, %125 : vector<8x128xf32>
    %127 = vector.extract_strided_slice %110 {offsets = [0, 256], sizes = [8, 128], strides = [1, 1]} : vector<8x512xf32> to vector<8x128xf32>
    %128 = math.tanh %127 : vector<8x128xf32>
    %129 = vector.extract_strided_slice %110 {offsets = [0, 384], sizes = [8, 128], strides = [1, 1]} : vector<8x512xf32> to vector<8x128xf32>
    %130 = arith.negf %129 : vector<8x128xf32>
    %131 = math.exp %130 : vector<8x128xf32>
    %cst_70 = arith.constant 1.000000e+00 : f32
    %132 = vector.broadcast %cst_70 : f32 to vector<8x128xf32>
    %133 = arith.addf %132, %131 : vector<8x128xf32>
    %134 = arith.divf %132, %133 : vector<8x128xf32>
    %135 = arith.mulf %126, %114 : vector<8x128xf32>
    %136 = arith.mulf %120, %128 : vector<8x128xf32>
    %137 = arith.addf %135, %136 : vector<8x128xf32>
    %138 = math.tanh %137 : vector<8x128xf32>
    %139 = arith.mulf %134, %138 : vector<8x128xf32>
    %c0_71 = arith.constant 0 : index
    %c0_72 = arith.constant 0 : index
    %140 = vector.load %arg11[%c0_71, %c0_72] : memref<8x128xf32, #tpu.memory_space<vmem>>, vector<8x128xf32>
    %141 = vector.extract_strided_slice %113 {offsets = [0, 0], sizes = [8, 128], strides = [1, 1]} : vector<8x512xf32> to vector<8x128xf32>
    %142 = arith.negf %141 : vector<8x128xf32>
    %143 = math.exp %142 : vector<8x128xf32>
    %cst_73 = arith.constant 1.000000e+00 : f32
    %144 = vector.broadcast %cst_73 : f32 to vector<8x128xf32>
    %145 = arith.addf %144, %143 : vector<8x128xf32>
    %146 = arith.divf %144, %145 : vector<8x128xf32>
    %147 = vector.extract_strided_slice %113 {offsets = [0, 128], sizes = [8, 128], strides = [1, 1]} : vector<8x512xf32> to vector<8x128xf32>
    %148 = arith.negf %147 : vector<8x128xf32>
    %149 = math.exp %148 : vector<8x128xf32>
    %cst_74 = arith.constant 1.000000e+00 : f32
    %150 = vector.broadcast %cst_74 : f32 to vector<8x128xf32>
    %151 = arith.addf %150, %149 : vector<8x128xf32>
    %152 = arith.divf %150, %151 : vector<8x128xf32>
    %153 = vector.extract_strided_slice %113 {offsets = [0, 256], sizes = [8, 128], strides = [1, 1]} : vector<8x512xf32> to vector<8x128xf32>
    %154 = math.tanh %153 : vector<8x128xf32>
    %155 = vector.extract_strided_slice %113 {offsets = [0, 384], sizes = [8, 128], strides = [1, 1]} : vector<8x512xf32> to vector<8x128xf32>
    %156 = arith.negf %155 : vector<8x128xf32>
    %157 = math.exp %156 : vector<8x128xf32>
    %cst_75 = arith.constant 1.000000e+00 : f32
    %158 = vector.broadcast %cst_75 : f32 to vector<8x128xf32>
    %159 = arith.addf %158, %157 : vector<8x128xf32>
    %160 = arith.divf %158, %159 : vector<8x128xf32>
    %161 = arith.mulf %152, %140 : vector<8x128xf32>
    %162 = arith.mulf %146, %154 : vector<8x128xf32>
    %163 = arith.addf %161, %162 : vector<8x128xf32>
    %164 = math.tanh %163 : vector<8x128xf32>
    %165 = arith.mulf %160, %164 : vector<8x128xf32>
    %c0_76 = arith.constant 0 : index
    %c0_77 = arith.constant 0 : index
    %166 = vector.load %arg10[%c0_76, %c0_77] : memref<8x128xf32, #tpu.memory_space<vmem>>, vector<8x128xf32>
    tpu.vector_store %arg10[%c0_76, %c0_77], %137 {strides = array<i32>} : memref<8x128xf32, #tpu.memory_space<vmem>>, vector<8x128xf32>,
    %c0_78 = arith.constant 0 : index
    %c0_79 = arith.constant 0 : index
    %167 = vector.load %arg11[%c0_78, %c0_79] : memref<8x128xf32, #tpu.memory_space<vmem>>, vector<8x128xf32>
    tpu.vector_store %arg11[%c0_78, %c0_79], %163 {strides = array<i32>} : memref<8x128xf32, #tpu.memory_space<vmem>>, vector<8x128xf32>,
    %168 = arith.truncf %139 : vector<8x128xf32> to vector<8x128xbf16>
    %c0_80 = arith.constant 0 : index
    %c0_81 = arith.constant 0 : index
    %169 = vector.load %arg8[%c0_80, %c0_81] : memref<8x128xbf16, #tpu.memory_space<vmem>>, vector<8x128xbf16>
    tpu.vector_store %arg8[%c0_80, %c0_81], %168 {strides = array<i32>} : memref<8x128xbf16, #tpu.memory_space<vmem>>, vector<8x128xbf16>,
    %170 = arith.truncf %165 : vector<8x128xf32> to vector<8x128xbf16>
    %c0_82 = arith.constant 0 : index
    %c0_83 = arith.constant 0 : index
    %171 = vector.load %arg9[%c0_82, %c0_83] : memref<8x128xbf16, #tpu.memory_space<vmem>>, vector<8x128xbf16>
    tpu.vector_store %arg9[%c0_82, %c0_83], %170 {strides = array<i32>} : memref<8x128xbf16, #tpu.memory_space<vmem>>, vector<8x128xbf16>,
    %172 = arith.index_cast %100 : i32 to index
    %c0_84 = arith.constant 0 : index
    %173 = vector.load %arg12[%172, %c0_84] : memref<64x128xf32, #tpu.memory_space<vmem>>, vector<8x128xf32>
    tpu.vector_store %arg12[%172, %c0_84], %139 {strides = array<i32>} : memref<64x128xf32, #tpu.memory_space<vmem>>, vector<8x128xf32>,
    %174 = arith.index_cast %103 : i32 to index
    %c0_85 = arith.constant 0 : index
    %175 = vector.load %arg13[%174, %c0_85] : memref<64x128xf32, #tpu.memory_space<vmem>>, vector<8x128xf32>
    tpu.vector_store %arg13[%174, %c0_85], %165 {strides = array<i32>} : memref<64x128xf32, #tpu.memory_space<vmem>>, vector<8x128xf32>,
    %c2_i32 = arith.constant 2 : i32
    %c8_i32_86 = arith.constant 8 : i32
    %176 = arith.muli %c2_i32, %c8_i32_86 : i32
    %177 = tpu.assume_multiple %176, 8 : i32
    %c7_i32_87 = arith.constant 7 : i32
    %178 = arith.subi %c7_i32_87, %c2_i32 : i32
    %c8_i32_88 = arith.constant 8 : i32
    %179 = arith.muli %178, %c8_i32_88 : i32
    %180 = tpu.assume_multiple %179, 8 : i32
    %c0_89 = arith.constant 0 : index
    %c0_90 = arith.constant 0 : index
    %181 = vector.load %arg8[%c0_89, %c0_90] : memref<8x128xbf16, #tpu.memory_space<vmem>>, vector<8x128xbf16>
    %cst_91 = arith.constant dense<0.000000e+00> : vector<8x512xf32>
    %182 = tpu.matmul %181, %19, %cst_91 {dimension_numbers = #tpu.dot_dimension_numbers<[1], [0], [0], [1], [0, 0, 1, 1], [], []>} : vector<8x128xbf16>, vector<128x512xbf16>, vector<8x512xf32> -> vector<8x512xf32>
    %c0_92 = arith.constant 0 : index
    %c0_93 = arith.constant 0 : index
    %183 = vector.load %arg9[%c0_92, %c0_93] : memref<8x128xbf16, #tpu.memory_space<vmem>>, vector<8x128xbf16>
    %cst_94 = arith.constant dense<0.000000e+00> : vector<8x512xf32>
    %184 = tpu.matmul %183, %21, %cst_94 {dimension_numbers = #tpu.dot_dimension_numbers<[1], [0], [0], [1], [0, 0, 1, 1], [], []>} : vector<8x128xbf16>, vector<128x512xbf16>, vector<8x512xf32> -> vector<8x512xf32>
    %185 = arith.index_cast %177 : i32 to index
    %c0_95 = arith.constant 0 : index
    %186 = vector.load %arg6[%185, %c0_95] : memref<64x512xf32, #tpu.memory_space<vmem>>, vector<8x512xf32>
    %187 = arith.addf %186, %182 : vector<8x512xf32>
    %188 = arith.index_cast %180 : i32 to index
    %c0_96 = arith.constant 0 : index
    %189 = vector.load %arg7[%188, %c0_96] : memref<64x512xf32, #tpu.memory_space<vmem>>, vector<8x512xf32>
    %190 = arith.addf %189, %184 : vector<8x512xf32>
    %c0_97 = arith.constant 0 : index
    %c0_98 = arith.constant 0 : index
    %191 = vector.load %arg10[%c0_97, %c0_98] : memref<8x128xf32, #tpu.memory_space<vmem>>, vector<8x128xf32>
    %192 = vector.extract_strided_slice %187 {offsets = [0, 0], sizes = [8, 128], strides = [1, 1]} : vector<8x512xf32> to vector<8x128xf32>
    %193 = arith.negf %192 : vector<8x128xf32>
    %194 = math.exp %193 : vector<8x128xf32>
    %cst_99 = arith.constant 1.000000e+00 : f32
    %195 = vector.broadcast %cst_99 : f32 to vector<8x128xf32>
    %196 = arith.addf %195, %194 : vector<8x128xf32>
    %197 = arith.divf %195, %196 : vector<8x128xf32>
    %198 = vector.extract_strided_slice %187 {offsets = [0, 128], sizes = [8, 128], strides = [1, 1]} : vector<8x512xf32> to vector<8x128xf32>
    %199 = arith.negf %198 : vector<8x128xf32>
    %200 = math.exp %199 : vector<8x128xf32>
    %cst_100 = arith.constant 1.000000e+00 : f32
    %201 = vector.broadcast %cst_100 : f32 to vector<8x128xf32>
    %202 = arith.addf %201, %200 : vector<8x128xf32>
    %203 = arith.divf %201, %202 : vector<8x128xf32>
    %204 = vector.extract_strided_slice %187 {offsets = [0, 256], sizes = [8, 128], strides = [1, 1]} : vector<8x512xf32> to vector<8x128xf32>
    %205 = math.tanh %204 : vector<8x128xf32>
    %206 = vector.extract_strided_slice %187 {offsets = [0, 384], sizes = [8, 128], strides = [1, 1]} : vector<8x512xf32> to vector<8x128xf32>
    %207 = arith.negf %206 : vector<8x128xf32>
    %208 = math.exp %207 : vector<8x128xf32>
    %cst_101 = arith.constant 1.000000e+00 : f32
    %209 = vector.broadcast %cst_101 : f32 to vector<8x128xf32>
    %210 = arith.addf %209, %208 : vector<8x128xf32>
    %211 = arith.divf %209, %210 : vector<8x128xf32>
    %212 = arith.mulf %203, %191 : vector<8x128xf32>
    %213 = arith.mulf %197, %205 : vector<8x128xf32>
    %214 = arith.addf %212, %213 : vector<8x128xf32>
    %215 = math.tanh %214 : vector<8x128xf32>
    %216 = arith.mulf %211, %215 : vector<8x128xf32>
    %c0_102 = arith.constant 0 : index
    %c0_103 = arith.constant 0 : index
    %217 = vector.load %arg11[%c0_102, %c0_103] : memref<8x128xf32, #tpu.memory_space<vmem>>, vector<8x128xf32>
    %218 = vector.extract_strided_slice %190 {offsets = [0, 0], sizes = [8, 128], strides = [1, 1]} : vector<8x512xf32> to vector<8x128xf32>
    %219 = arith.negf %218 : vector<8x128xf32>
    %220 = math.exp %219 : vector<8x128xf32>
    %cst_104 = arith.constant 1.000000e+00 : f32
    %221 = vector.broadcast %cst_104 : f32 to vector<8x128xf32>
    %222 = arith.addf %221, %220 : vector<8x128xf32>
    %223 = arith.divf %221, %222 : vector<8x128xf32>
    %224 = vector.extract_strided_slice %190 {offsets = [0, 128], sizes = [8, 128], strides = [1, 1]} : vector<8x512xf32> to vector<8x128xf32>
    %225 = arith.negf %224 : vector<8x128xf32>
    %226 = math.exp %225 : vector<8x128xf32>
    %cst_105 = arith.constant 1.000000e+00 : f32
    %227 = vector.broadcast %cst_105 : f32 to vector<8x128xf32>
    %228 = arith.addf %227, %226 : vector<8x128xf32>
    %229 = arith.divf %227, %228 : vector<8x128xf32>
    %230 = vector.extract_strided_slice %190 {offsets = [0, 256], sizes = [8, 128], strides = [1, 1]} : vector<8x512xf32> to vector<8x128xf32>
    %231 = math.tanh %230 : vector<8x128xf32>
    %232 = vector.extract_strided_slice %190 {offsets = [0, 384], sizes = [8, 128], strides = [1, 1]} : vector<8x512xf32> to vector<8x128xf32>
    %233 = arith.negf %232 : vector<8x128xf32>
    %234 = math.exp %233 : vector<8x128xf32>
    %cst_106 = arith.constant 1.000000e+00 : f32
    %235 = vector.broadcast %cst_106 : f32 to vector<8x128xf32>
    %236 = arith.addf %235, %234 : vector<8x128xf32>
    %237 = arith.divf %235, %236 : vector<8x128xf32>
    %238 = arith.mulf %229, %217 : vector<8x128xf32>
    %239 = arith.mulf %223, %231 : vector<8x128xf32>
    %240 = arith.addf %238, %239 : vector<8x128xf32>
    %241 = math.tanh %240 : vector<8x128xf32>
    %242 = arith.mulf %237, %241 : vector<8x128xf32>
    %c0_107 = arith.constant 0 : index
    %c0_108 = arith.constant 0 : index
    %243 = vector.load %arg10[%c0_107, %c0_108] : memref<8x128xf32, #tpu.memory_space<vmem>>, vector<8x128xf32>
    tpu.vector_store %arg10[%c0_107, %c0_108], %214 {strides = array<i32>} : memref<8x128xf32, #tpu.memory_space<vmem>>, vector<8x128xf32>,
    %c0_109 = arith.constant 0 : index
    %c0_110 = arith.constant 0 : index
    %244 = vector.load %arg11[%c0_109, %c0_110] : memref<8x128xf32, #tpu.memory_space<vmem>>, vector<8x128xf32>
    tpu.vector_store %arg11[%c0_109, %c0_110], %240 {strides = array<i32>} : memref<8x128xf32, #tpu.memory_space<vmem>>, vector<8x128xf32>,
    %245 = arith.truncf %216 : vector<8x128xf32> to vector<8x128xbf16>
    %c0_111 = arith.constant 0 : index
    %c0_112 = arith.constant 0 : index
    %246 = vector.load %arg8[%c0_111, %c0_112] : memref<8x128xbf16, #tpu.memory_space<vmem>>, vector<8x128xbf16>
    tpu.vector_store %arg8[%c0_111, %c0_112], %245 {strides = array<i32>} : memref<8x128xbf16, #tpu.memory_space<vmem>>, vector<8x128xbf16>,
    %247 = arith.truncf %242 : vector<8x128xf32> to vector<8x128xbf16>
    %c0_113 = arith.constant 0 : index
    %c0_114 = arith.constant 0 : index
    %248 = vector.load %arg9[%c0_113, %c0_114] : memref<8x128xbf16, #tpu.memory_space<vmem>>, vector<8x128xbf16>
    tpu.vector_store %arg9[%c0_113, %c0_114], %247 {strides = array<i32>} : memref<8x128xbf16, #tpu.memory_space<vmem>>, vector<8x128xbf16>,
    %249 = arith.index_cast %177 : i32 to index
    %c0_115 = arith.constant 0 : index
    %250 = vector.load %arg12[%249, %c0_115] : memref<64x128xf32, #tpu.memory_space<vmem>>, vector<8x128xf32>
    tpu.vector_store %arg12[%249, %c0_115], %216 {strides = array<i32>} : memref<64x128xf32, #tpu.memory_space<vmem>>, vector<8x128xf32>,
    %251 = arith.index_cast %180 : i32 to index
    %c0_116 = arith.constant 0 : index
    %252 = vector.load %arg13[%251, %c0_116] : memref<64x128xf32, #tpu.memory_space<vmem>>, vector<8x128xf32>
    tpu.vector_store %arg13[%251, %c0_116], %242 {strides = array<i32>} : memref<64x128xf32, #tpu.memory_space<vmem>>, vector<8x128xf32>,
    %c3_i32 = arith.constant 3 : i32
    %c8_i32_117 = arith.constant 8 : i32
    %253 = arith.muli %c3_i32, %c8_i32_117 : i32
    %254 = tpu.assume_multiple %253, 8 : i32
    %c7_i32_118 = arith.constant 7 : i32
    %255 = arith.subi %c7_i32_118, %c3_i32 : i32
    %c8_i32_119 = arith.constant 8 : i32
    %256 = arith.muli %255, %c8_i32_119 : i32
    %257 = tpu.assume_multiple %256, 8 : i32
    %c0_120 = arith.constant 0 : index
    %c0_121 = arith.constant 0 : index
    %258 = vector.load %arg8[%c0_120, %c0_121] : memref<8x128xbf16, #tpu.memory_space<vmem>>, vector<8x128xbf16>
    %cst_122 = arith.constant dense<0.000000e+00> : vector<8x512xf32>
    %259 = tpu.matmul %258, %19, %cst_122 {dimension_numbers = #tpu.dot_dimension_numbers<[1], [0], [0], [1], [0, 0, 1, 1], [], []>} : vector<8x128xbf16>, vector<128x512xbf16>, vector<8x512xf32> -> vector<8x512xf32>
    %c0_123 = arith.constant 0 : index
    %c0_124 = arith.constant 0 : index
    %260 = vector.load %arg9[%c0_123, %c0_124] : memref<8x128xbf16, #tpu.memory_space<vmem>>, vector<8x128xbf16>
    %cst_125 = arith.constant dense<0.000000e+00> : vector<8x512xf32>
    %261 = tpu.matmul %260, %21, %cst_125 {dimension_numbers = #tpu.dot_dimension_numbers<[1], [0], [0], [1], [0, 0, 1, 1], [], []>} : vector<8x128xbf16>, vector<128x512xbf16>, vector<8x512xf32> -> vector<8x512xf32>
    %262 = arith.index_cast %254 : i32 to index
    %c0_126 = arith.constant 0 : index
    %263 = vector.load %arg6[%262, %c0_126] : memref<64x512xf32, #tpu.memory_space<vmem>>, vector<8x512xf32>
    %264 = arith.addf %263, %259 : vector<8x512xf32>
    %265 = arith.index_cast %257 : i32 to index
    %c0_127 = arith.constant 0 : index
    %266 = vector.load %arg7[%265, %c0_127] : memref<64x512xf32, #tpu.memory_space<vmem>>, vector<8x512xf32>
    %267 = arith.addf %266, %261 : vector<8x512xf32>
    %c0_128 = arith.constant 0 : index
    %c0_129 = arith.constant 0 : index
    %268 = vector.load %arg10[%c0_128, %c0_129] : memref<8x128xf32, #tpu.memory_space<vmem>>, vector<8x128xf32>
    %269 = vector.extract_strided_slice %264 {offsets = [0, 0], sizes = [8, 128], strides = [1, 1]} : vector<8x512xf32> to vector<8x128xf32>
    %270 = arith.negf %269 : vector<8x128xf32>
    %271 = math.exp %270 : vector<8x128xf32>
    %cst_130 = arith.constant 1.000000e+00 : f32
    %272 = vector.broadcast %cst_130 : f32 to vector<8x128xf32>
    %273 = arith.addf %272, %271 : vector<8x128xf32>
    %274 = arith.divf %272, %273 : vector<8x128xf32>
    %275 = vector.extract_strided_slice %264 {offsets = [0, 128], sizes = [8, 128], strides = [1, 1]} : vector<8x512xf32> to vector<8x128xf32>
    %276 = arith.negf %275 : vector<8x128xf32>
    %277 = math.exp %276 : vector<8x128xf32>
    %cst_131 = arith.constant 1.000000e+00 : f32
    %278 = vector.broadcast %cst_131 : f32 to vector<8x128xf32>
    %279 = arith.addf %278, %277 : vector<8x128xf32>
    %280 = arith.divf %278, %279 : vector<8x128xf32>
    %281 = vector.extract_strided_slice %264 {offsets = [0, 256], sizes = [8, 128], strides = [1, 1]} : vector<8x512xf32> to vector<8x128xf32>
    %282 = math.tanh %281 : vector<8x128xf32>
    %283 = vector.extract_strided_slice %264 {offsets = [0, 384], sizes = [8, 128], strides = [1, 1]} : vector<8x512xf32> to vector<8x128xf32>
    %284 = arith.negf %283 : vector<8x128xf32>
    %285 = math.exp %284 : vector<8x128xf32>
    %cst_132 = arith.constant 1.000000e+00 : f32
    %286 = vector.broadcast %cst_132 : f32 to vector<8x128xf32>
    %287 = arith.addf %286, %285 : vector<8x128xf32>
    %288 = arith.divf %286, %287 : vector<8x128xf32>
    %289 = arith.mulf %280, %268 : vector<8x128xf32>
    %290 = arith.mulf %274, %282 : vector<8x128xf32>
    %291 = arith.addf %289, %290 : vector<8x128xf32>
    %292 = math.tanh %291 : vector<8x128xf32>
    %293 = arith.mulf %288, %292 : vector<8x128xf32>
    %c0_133 = arith.constant 0 : index
    %c0_134 = arith.constant 0 : index
    %294 = vector.load %arg11[%c0_133, %c0_134] : memref<8x128xf32, #tpu.memory_space<vmem>>, vector<8x128xf32>
    %295 = vector.extract_strided_slice %267 {offsets = [0, 0], sizes = [8, 128], strides = [1, 1]} : vector<8x512xf32> to vector<8x128xf32>
    %296 = arith.negf %295 : vector<8x128xf32>
    %297 = math.exp %296 : vector<8x128xf32>
    %cst_135 = arith.constant 1.000000e+00 : f32
    %298 = vector.broadcast %cst_135 : f32 to vector<8x128xf32>
    %299 = arith.addf %298, %297 : vector<8x128xf32>
    %300 = arith.divf %298, %299 : vector<8x128xf32>
    %301 = vector.extract_strided_slice %267 {offsets = [0, 128], sizes = [8, 128], strides = [1, 1]} : vector<8x512xf32> to vector<8x128xf32>
    %302 = arith.negf %301 : vector<8x128xf32>
    %303 = math.exp %302 : vector<8x128xf32>
    %cst_136 = arith.constant 1.000000e+00 : f32
    %304 = vector.broadcast %cst_136 : f32 to vector<8x128xf32>
    %305 = arith.addf %304, %303 : vector<8x128xf32>
    %306 = arith.divf %304, %305 : vector<8x128xf32>
    %307 = vector.extract_strided_slice %267 {offsets = [0, 256], sizes = [8, 128], strides = [1, 1]} : vector<8x512xf32> to vector<8x128xf32>
    %308 = math.tanh %307 : vector<8x128xf32>
    %309 = vector.extract_strided_slice %267 {offsets = [0, 384], sizes = [8, 128], strides = [1, 1]} : vector<8x512xf32> to vector<8x128xf32>
    %310 = arith.negf %309 : vector<8x128xf32>
    %311 = math.exp %310 : vector<8x128xf32>
    %cst_137 = arith.constant 1.000000e+00 : f32
    %312 = vector.broadcast %cst_137 : f32 to vector<8x128xf32>
    %313 = arith.addf %312, %311 : vector<8x128xf32>
    %314 = arith.divf %312, %313 : vector<8x128xf32>
    %315 = arith.mulf %306, %294 : vector<8x128xf32>
    %316 = arith.mulf %300, %308 : vector<8x128xf32>
    %317 = arith.addf %315, %316 : vector<8x128xf32>
    %318 = math.tanh %317 : vector<8x128xf32>
    %319 = arith.mulf %314, %318 : vector<8x128xf32>
    %c0_138 = arith.constant 0 : index
    %c0_139 = arith.constant 0 : index
    %320 = vector.load %arg10[%c0_138, %c0_139] : memref<8x128xf32, #tpu.memory_space<vmem>>, vector<8x128xf32>
    tpu.vector_store %arg10[%c0_138, %c0_139], %291 {strides = array<i32>} : memref<8x128xf32, #tpu.memory_space<vmem>>, vector<8x128xf32>,
    %c0_140 = arith.constant 0 : index
    %c0_141 = arith.constant 0 : index
    %321 = vector.load %arg11[%c0_140, %c0_141] : memref<8x128xf32, #tpu.memory_space<vmem>>, vector<8x128xf32>
    tpu.vector_store %arg11[%c0_140, %c0_141], %317 {strides = array<i32>} : memref<8x128xf32, #tpu.memory_space<vmem>>, vector<8x128xf32>,
    %322 = arith.truncf %293 : vector<8x128xf32> to vector<8x128xbf16>
    %c0_142 = arith.constant 0 : index
    %c0_143 = arith.constant 0 : index
    %323 = vector.load %arg8[%c0_142, %c0_143] : memref<8x128xbf16, #tpu.memory_space<vmem>>, vector<8x128xbf16>
    tpu.vector_store %arg8[%c0_142, %c0_143], %322 {strides = array<i32>} : memref<8x128xbf16, #tpu.memory_space<vmem>>, vector<8x128xbf16>,
    %324 = arith.truncf %319 : vector<8x128xf32> to vector<8x128xbf16>
    %c0_144 = arith.constant 0 : index
    %c0_145 = arith.constant 0 : index
    %325 = vector.load %arg9[%c0_144, %c0_145] : memref<8x128xbf16, #tpu.memory_space<vmem>>, vector<8x128xbf16>
    tpu.vector_store %arg9[%c0_144, %c0_145], %324 {strides = array<i32>} : memref<8x128xbf16, #tpu.memory_space<vmem>>, vector<8x128xbf16>,
    %326 = arith.index_cast %254 : i32 to index
    %c0_146 = arith.constant 0 : index
    %327 = vector.load %arg12[%326, %c0_146] : memref<64x128xf32, #tpu.memory_space<vmem>>, vector<8x128xf32>
    tpu.vector_store %arg12[%326, %c0_146], %293 {strides = array<i32>} : memref<64x128xf32, #tpu.memory_space<vmem>>, vector<8x128xf32>,
    %328 = arith.index_cast %257 : i32 to index
    %c0_147 = arith.constant 0 : index
    %329 = vector.load %arg13[%328, %c0_147] : memref<64x128xf32, #tpu.memory_space<vmem>>, vector<8x128xf32>
    tpu.vector_store %arg13[%328, %c0_147], %319 {strides = array<i32>} : memref<64x128xf32, #tpu.memory_space<vmem>>, vector<8x128xf32>,
    %c4_i32 = arith.constant 4 : i32
    %c8_i32_148 = arith.constant 8 : i32
    %330 = arith.muli %c4_i32, %c8_i32_148 : i32
    %331 = tpu.assume_multiple %330, 8 : i32
    %c7_i32_149 = arith.constant 7 : i32
    %332 = arith.subi %c7_i32_149, %c4_i32 : i32
    %c8_i32_150 = arith.constant 8 : i32
    %333 = arith.muli %332, %c8_i32_150 : i32
    %334 = tpu.assume_multiple %333, 8 : i32
    %c0_151 = arith.constant 0 : index
    %c0_152 = arith.constant 0 : index
    %335 = vector.load %arg8[%c0_151, %c0_152] : memref<8x128xbf16, #tpu.memory_space<vmem>>, vector<8x128xbf16>
    %cst_153 = arith.constant dense<0.000000e+00> : vector<8x512xf32>
    %336 = tpu.matmul %335, %19, %cst_153 {dimension_numbers = #tpu.dot_dimension_numbers<[1], [0], [0], [1], [0, 0, 1, 1], [], []>} : vector<8x128xbf16>, vector<128x512xbf16>, vector<8x512xf32> -> vector<8x512xf32>
    %c0_154 = arith.constant 0 : index
    %c0_155 = arith.constant 0 : index
    %337 = vector.load %arg9[%c0_154, %c0_155] : memref<8x128xbf16, #tpu.memory_space<vmem>>, vector<8x128xbf16>
    %cst_156 = arith.constant dense<0.000000e+00> : vector<8x512xf32>
    %338 = tpu.matmul %337, %21, %cst_156 {dimension_numbers = #tpu.dot_dimension_numbers<[1], [0], [0], [1], [0, 0, 1, 1], [], []>} : vector<8x128xbf16>, vector<128x512xbf16>, vector<8x512xf32> -> vector<8x512xf32>
    %339 = arith.index_cast %331 : i32 to index
    %c0_157 = arith.constant 0 : index
    %340 = vector.load %arg6[%339, %c0_157] : memref<64x512xf32, #tpu.memory_space<vmem>>, vector<8x512xf32>
    %341 = arith.addf %340, %336 : vector<8x512xf32>
    %342 = arith.index_cast %334 : i32 to index
    %c0_158 = arith.constant 0 : index
    %343 = vector.load %arg7[%342, %c0_158] : memref<64x512xf32, #tpu.memory_space<vmem>>, vector<8x512xf32>
    %344 = arith.addf %343, %338 : vector<8x512xf32>
    %c0_159 = arith.constant 0 : index
    %c0_160 = arith.constant 0 : index
    %345 = vector.load %arg10[%c0_159, %c0_160] : memref<8x128xf32, #tpu.memory_space<vmem>>, vector<8x128xf32>
    %346 = vector.extract_strided_slice %341 {offsets = [0, 0], sizes = [8, 128], strides = [1, 1]} : vector<8x512xf32> to vector<8x128xf32>
    %347 = arith.negf %346 : vector<8x128xf32>
    %348 = math.exp %347 : vector<8x128xf32>
    %cst_161 = arith.constant 1.000000e+00 : f32
    %349 = vector.broadcast %cst_161 : f32 to vector<8x128xf32>
    %350 = arith.addf %349, %348 : vector<8x128xf32>
    %351 = arith.divf %349, %350 : vector<8x128xf32>
    %352 = vector.extract_strided_slice %341 {offsets = [0, 128], sizes = [8, 128], strides = [1, 1]} : vector<8x512xf32> to vector<8x128xf32>
    %353 = arith.negf %352 : vector<8x128xf32>
    %354 = math.exp %353 : vector<8x128xf32>
    %cst_162 = arith.constant 1.000000e+00 : f32
    %355 = vector.broadcast %cst_162 : f32 to vector<8x128xf32>
    %356 = arith.addf %355, %354 : vector<8x128xf32>
    %357 = arith.divf %355, %356 : vector<8x128xf32>
    %358 = vector.extract_strided_slice %341 {offsets = [0, 256], sizes = [8, 128], strides = [1, 1]} : vector<8x512xf32> to vector<8x128xf32>
    %359 = math.tanh %358 : vector<8x128xf32>
    %360 = vector.extract_strided_slice %341 {offsets = [0, 384], sizes = [8, 128], strides = [1, 1]} : vector<8x512xf32> to vector<8x128xf32>
    %361 = arith.negf %360 : vector<8x128xf32>
    %362 = math.exp %361 : vector<8x128xf32>
    %cst_163 = arith.constant 1.000000e+00 : f32
    %363 = vector.broadcast %cst_163 : f32 to vector<8x128xf32>
    %364 = arith.addf %363, %362 : vector<8x128xf32>
    %365 = arith.divf %363, %364 : vector<8x128xf32>
    %366 = arith.mulf %357, %345 : vector<8x128xf32>
    %367 = arith.mulf %351, %359 : vector<8x128xf32>
    %368 = arith.addf %366, %367 : vector<8x128xf32>
    %369 = math.tanh %368 : vector<8x128xf32>
    %370 = arith.mulf %365, %369 : vector<8x128xf32>
    %c0_164 = arith.constant 0 : index
    %c0_165 = arith.constant 0 : index
    %371 = vector.load %arg11[%c0_164, %c0_165] : memref<8x128xf32, #tpu.memory_space<vmem>>, vector<8x128xf32>
    %372 = vector.extract_strided_slice %344 {offsets = [0, 0], sizes = [8, 128], strides = [1, 1]} : vector<8x512xf32> to vector<8x128xf32>
    %373 = arith.negf %372 : vector<8x128xf32>
    %374 = math.exp %373 : vector<8x128xf32>
    %cst_166 = arith.constant 1.000000e+00 : f32
    %375 = vector.broadcast %cst_166 : f32 to vector<8x128xf32>
    %376 = arith.addf %375, %374 : vector<8x128xf32>
    %377 = arith.divf %375, %376 : vector<8x128xf32>
    %378 = vector.extract_strided_slice %344 {offsets = [0, 128], sizes = [8, 128], strides = [1, 1]} : vector<8x512xf32> to vector<8x128xf32>
    %379 = arith.negf %378 : vector<8x128xf32>
    %380 = math.exp %379 : vector<8x128xf32>
    %cst_167 = arith.constant 1.000000e+00 : f32
    %381 = vector.broadcast %cst_167 : f32 to vector<8x128xf32>
    %382 = arith.addf %381, %380 : vector<8x128xf32>
    %383 = arith.divf %381, %382 : vector<8x128xf32>
    %384 = vector.extract_strided_slice %344 {offsets = [0, 256], sizes = [8, 128], strides = [1, 1]} : vector<8x512xf32> to vector<8x128xf32>
    %385 = math.tanh %384 : vector<8x128xf32>
    %386 = vector.extract_strided_slice %344 {offsets = [0, 384], sizes = [8, 128], strides = [1, 1]} : vector<8x512xf32> to vector<8x128xf32>
    %387 = arith.negf %386 : vector<8x128xf32>
    %388 = math.exp %387 : vector<8x128xf32>
    %cst_168 = arith.constant 1.000000e+00 : f32
    %389 = vector.broadcast %cst_168 : f32 to vector<8x128xf32>
    %390 = arith.addf %389, %388 : vector<8x128xf32>
    %391 = arith.divf %389, %390 : vector<8x128xf32>
    %392 = arith.mulf %383, %371 : vector<8x128xf32>
    %393 = arith.mulf %377, %385 : vector<8x128xf32>
    %394 = arith.addf %392, %393 : vector<8x128xf32>
    %395 = math.tanh %394 : vector<8x128xf32>
    %396 = arith.mulf %391, %395 : vector<8x128xf32>
    %c0_169 = arith.constant 0 : index
    %c0_170 = arith.constant 0 : index
    %397 = vector.load %arg10[%c0_169, %c0_170] : memref<8x128xf32, #tpu.memory_space<vmem>>, vector<8x128xf32>
    tpu.vector_store %arg10[%c0_169, %c0_170], %368 {strides = array<i32>} : memref<8x128xf32, #tpu.memory_space<vmem>>, vector<8x128xf32>,
    %c0_171 = arith.constant 0 : index
    %c0_172 = arith.constant 0 : index
    %398 = vector.load %arg11[%c0_171, %c0_172] : memref<8x128xf32, #tpu.memory_space<vmem>>, vector<8x128xf32>
    tpu.vector_store %arg11[%c0_171, %c0_172], %394 {strides = array<i32>} : memref<8x128xf32, #tpu.memory_space<vmem>>, vector<8x128xf32>,
    %399 = arith.truncf %370 : vector<8x128xf32> to vector<8x128xbf16>
    %c0_173 = arith.constant 0 : index
    %c0_174 = arith.constant 0 : index
    %400 = vector.load %arg8[%c0_173, %c0_174] : memref<8x128xbf16, #tpu.memory_space<vmem>>, vector<8x128xbf16>
    tpu.vector_store %arg8[%c0_173, %c0_174], %399 {strides = array<i32>} : memref<8x128xbf16, #tpu.memory_space<vmem>>, vector<8x128xbf16>,
    %401 = arith.truncf %396 : vector<8x128xf32> to vector<8x128xbf16>
    %c0_175 = arith.constant 0 : index
    %c0_176 = arith.constant 0 : index
    %402 = vector.load %arg9[%c0_175, %c0_176] : memref<8x128xbf16, #tpu.memory_space<vmem>>, vector<8x128xbf16>
    tpu.vector_store %arg9[%c0_175, %c0_176], %401 {strides = array<i32>} : memref<8x128xbf16, #tpu.memory_space<vmem>>, vector<8x128xbf16>,
    %403 = arith.index_cast %331 : i32 to index
    %c0_177 = arith.constant 0 : index
    %404 = vector.load %arg12[%403, %c0_177] : memref<64x128xf32, #tpu.memory_space<vmem>>, vector<8x128xf32>
    tpu.vector_store %arg12[%403, %c0_177], %370 {strides = array<i32>} : memref<64x128xf32, #tpu.memory_space<vmem>>, vector<8x128xf32>,
    %405 = arith.index_cast %334 : i32 to index
    %c0_178 = arith.constant 0 : index
    %406 = vector.load %arg13[%405, %c0_178] : memref<64x128xf32, #tpu.memory_space<vmem>>, vector<8x128xf32>
    tpu.vector_store %arg13[%405, %c0_178], %396 {strides = array<i32>} : memref<64x128xf32, #tpu.memory_space<vmem>>, vector<8x128xf32>,
    %c5_i32 = arith.constant 5 : i32
    %c8_i32_179 = arith.constant 8 : i32
    %407 = arith.muli %c5_i32, %c8_i32_179 : i32
    %408 = tpu.assume_multiple %407, 8 : i32
    %c7_i32_180 = arith.constant 7 : i32
    %409 = arith.subi %c7_i32_180, %c5_i32 : i32
    %c8_i32_181 = arith.constant 8 : i32
    %410 = arith.muli %409, %c8_i32_181 : i32
    %411 = tpu.assume_multiple %410, 8 : i32
    %c0_182 = arith.constant 0 : index
    %c0_183 = arith.constant 0 : index
    %412 = vector.load %arg8[%c0_182, %c0_183] : memref<8x128xbf16, #tpu.memory_space<vmem>>, vector<8x128xbf16>
    %cst_184 = arith.constant dense<0.000000e+00> : vector<8x512xf32>
    %413 = tpu.matmul %412, %19, %cst_184 {dimension_numbers = #tpu.dot_dimension_numbers<[1], [0], [0], [1], [0, 0, 1, 1], [], []>} : vector<8x128xbf16>, vector<128x512xbf16>, vector<8x512xf32> -> vector<8x512xf32>
    %c0_185 = arith.constant 0 : index
    %c0_186 = arith.constant 0 : index
    %414 = vector.load %arg9[%c0_185, %c0_186] : memref<8x128xbf16, #tpu.memory_space<vmem>>, vector<8x128xbf16>
    %cst_187 = arith.constant dense<0.000000e+00> : vector<8x512xf32>
    %415 = tpu.matmul %414, %21, %cst_187 {dimension_numbers = #tpu.dot_dimension_numbers<[1], [0], [0], [1], [0, 0, 1, 1], [], []>} : vector<8x128xbf16>, vector<128x512xbf16>, vector<8x512xf32> -> vector<8x512xf32>
    %416 = arith.index_cast %408 : i32 to index
    %c0_188 = arith.constant 0 : index
    %417 = vector.load %arg6[%416, %c0_188] : memref<64x512xf32, #tpu.memory_space<vmem>>, vector<8x512xf32>
    %418 = arith.addf %417, %413 : vector<8x512xf32>
    %419 = arith.index_cast %411 : i32 to index
    %c0_189 = arith.constant 0 : index
    %420 = vector.load %arg7[%419, %c0_189] : memref<64x512xf32, #tpu.memory_space<vmem>>, vector<8x512xf32>
    %421 = arith.addf %420, %415 : vector<8x512xf32>
    %c0_190 = arith.constant 0 : index
    %c0_191 = arith.constant 0 : index
    %422 = vector.load %arg10[%c0_190, %c0_191] : memref<8x128xf32, #tpu.memory_space<vmem>>, vector<8x128xf32>
    %423 = vector.extract_strided_slice %418 {offsets = [0, 0], sizes = [8, 128], strides = [1, 1]} : vector<8x512xf32> to vector<8x128xf32>
    %424 = arith.negf %423 : vector<8x128xf32>
    %425 = math.exp %424 : vector<8x128xf32>
    %cst_192 = arith.constant 1.000000e+00 : f32
    %426 = vector.broadcast %cst_192 : f32 to vector<8x128xf32>
    %427 = arith.addf %426, %425 : vector<8x128xf32>
    %428 = arith.divf %426, %427 : vector<8x128xf32>
    %429 = vector.extract_strided_slice %418 {offsets = [0, 128], sizes = [8, 128], strides = [1, 1]} : vector<8x512xf32> to vector<8x128xf32>
    %430 = arith.negf %429 : vector<8x128xf32>
    %431 = math.exp %430 : vector<8x128xf32>
    %cst_193 = arith.constant 1.000000e+00 : f32
    %432 = vector.broadcast %cst_193 : f32 to vector<8x128xf32>
    %433 = arith.addf %432, %431 : vector<8x128xf32>
    %434 = arith.divf %432, %433 : vector<8x128xf32>
    %435 = vector.extract_strided_slice %418 {offsets = [0, 256], sizes = [8, 128], strides = [1, 1]} : vector<8x512xf32> to vector<8x128xf32>
    %436 = math.tanh %435 : vector<8x128xf32>
    %437 = vector.extract_strided_slice %418 {offsets = [0, 384], sizes = [8, 128], strides = [1, 1]} : vector<8x512xf32> to vector<8x128xf32>
    %438 = arith.negf %437 : vector<8x128xf32>
    %439 = math.exp %438 : vector<8x128xf32>
    %cst_194 = arith.constant 1.000000e+00 : f32
    %440 = vector.broadcast %cst_194 : f32 to vector<8x128xf32>
    %441 = arith.addf %440, %439 : vector<8x128xf32>
    %442 = arith.divf %440, %441 : vector<8x128xf32>
    %443 = arith.mulf %434, %422 : vector<8x128xf32>
    %444 = arith.mulf %428, %436 : vector<8x128xf32>
    %445 = arith.addf %443, %444 : vector<8x128xf32>
    %446 = math.tanh %445 : vector<8x128xf32>
    %447 = arith.mulf %442, %446 : vector<8x128xf32>
    %c0_195 = arith.constant 0 : index
    %c0_196 = arith.constant 0 : index
    %448 = vector.load %arg11[%c0_195, %c0_196] : memref<8x128xf32, #tpu.memory_space<vmem>>, vector<8x128xf32>
    %449 = vector.extract_strided_slice %421 {offsets = [0, 0], sizes = [8, 128], strides = [1, 1]} : vector<8x512xf32> to vector<8x128xf32>
    %450 = arith.negf %449 : vector<8x128xf32>
    %451 = math.exp %450 : vector<8x128xf32>
    %cst_197 = arith.constant 1.000000e+00 : f32
    %452 = vector.broadcast %cst_197 : f32 to vector<8x128xf32>
    %453 = arith.addf %452, %451 : vector<8x128xf32>
    %454 = arith.divf %452, %453 : vector<8x128xf32>
    %455 = vector.extract_strided_slice %421 {offsets = [0, 128], sizes = [8, 128], strides = [1, 1]} : vector<8x512xf32> to vector<8x128xf32>
    %456 = arith.negf %455 : vector<8x128xf32>
    %457 = math.exp %456 : vector<8x128xf32>
    %cst_198 = arith.constant 1.000000e+00 : f32
    %458 = vector.broadcast %cst_198 : f32 to vector<8x128xf32>
    %459 = arith.addf %458, %457 : vector<8x128xf32>
    %460 = arith.divf %458, %459 : vector<8x128xf32>
    %461 = vector.extract_strided_slice %421 {offsets = [0, 256], sizes = [8, 128], strides = [1, 1]} : vector<8x512xf32> to vector<8x128xf32>
    %462 = math.tanh %461 : vector<8x128xf32>
    %463 = vector.extract_strided_slice %421 {offsets = [0, 384], sizes = [8, 128], strides = [1, 1]} : vector<8x512xf32> to vector<8x128xf32>
    %464 = arith.negf %463 : vector<8x128xf32>
    %465 = math.exp %464 : vector<8x128xf32>
    %cst_199 = arith.constant 1.000000e+00 : f32
    %466 = vector.broadcast %cst_199 : f32 to vector<8x128xf32>
    %467 = arith.addf %466, %465 : vector<8x128xf32>
    %468 = arith.divf %466, %467 : vector<8x128xf32>
    %469 = arith.mulf %460, %448 : vector<8x128xf32>
    %470 = arith.mulf %454, %462 : vector<8x128xf32>
    %471 = arith.addf %469, %470 : vector<8x128xf32>
    %472 = math.tanh %471 : vector<8x128xf32>
    %473 = arith.mulf %468, %472 : vector<8x128xf32>
    %c0_200 = arith.constant 0 : index
    %c0_201 = arith.constant 0 : index
    %474 = vector.load %arg10[%c0_200, %c0_201] : memref<8x128xf32, #tpu.memory_space<vmem>>, vector<8x128xf32>
    tpu.vector_store %arg10[%c0_200, %c0_201], %445 {strides = array<i32>} : memref<8x128xf32, #tpu.memory_space<vmem>>, vector<8x128xf32>,
    %c0_202 = arith.constant 0 : index
    %c0_203 = arith.constant 0 : index
    %475 = vector.load %arg11[%c0_202, %c0_203] : memref<8x128xf32, #tpu.memory_space<vmem>>, vector<8x128xf32>
    tpu.vector_store %arg11[%c0_202, %c0_203], %471 {strides = array<i32>} : memref<8x128xf32, #tpu.memory_space<vmem>>, vector<8x128xf32>,
    %476 = arith.truncf %447 : vector<8x128xf32> to vector<8x128xbf16>
    %c0_204 = arith.constant 0 : index
    %c0_205 = arith.constant 0 : index
    %477 = vector.load %arg8[%c0_204, %c0_205] : memref<8x128xbf16, #tpu.memory_space<vmem>>, vector<8x128xbf16>
    tpu.vector_store %arg8[%c0_204, %c0_205], %476 {strides = array<i32>} : memref<8x128xbf16, #tpu.memory_space<vmem>>, vector<8x128xbf16>,
    %478 = arith.truncf %473 : vector<8x128xf32> to vector<8x128xbf16>
    %c0_206 = arith.constant 0 : index
    %c0_207 = arith.constant 0 : index
    %479 = vector.load %arg9[%c0_206, %c0_207] : memref<8x128xbf16, #tpu.memory_space<vmem>>, vector<8x128xbf16>
    tpu.vector_store %arg9[%c0_206, %c0_207], %478 {strides = array<i32>} : memref<8x128xbf16, #tpu.memory_space<vmem>>, vector<8x128xbf16>,
    %480 = arith.index_cast %408 : i32 to index
    %c0_208 = arith.constant 0 : index
    %481 = vector.load %arg12[%480, %c0_208] : memref<64x128xf32, #tpu.memory_space<vmem>>, vector<8x128xf32>
    tpu.vector_store %arg12[%480, %c0_208], %447 {strides = array<i32>} : memref<64x128xf32, #tpu.memory_space<vmem>>, vector<8x128xf32>,
    %482 = arith.index_cast %411 : i32 to index
    %c0_209 = arith.constant 0 : index
    %483 = vector.load %arg13[%482, %c0_209] : memref<64x128xf32, #tpu.memory_space<vmem>>, vector<8x128xf32>
    tpu.vector_store %arg13[%482, %c0_209], %473 {strides = array<i32>} : memref<64x128xf32, #tpu.memory_space<vmem>>, vector<8x128xf32>,
    %c6_i32 = arith.constant 6 : i32
    %c8_i32_210 = arith.constant 8 : i32
    %484 = arith.muli %c6_i32, %c8_i32_210 : i32
    %485 = tpu.assume_multiple %484, 8 : i32
    %c7_i32_211 = arith.constant 7 : i32
    %486 = arith.subi %c7_i32_211, %c6_i32 : i32
    %c8_i32_212 = arith.constant 8 : i32
    %487 = arith.muli %486, %c8_i32_212 : i32
    %488 = tpu.assume_multiple %487, 8 : i32
    %c0_213 = arith.constant 0 : index
    %c0_214 = arith.constant 0 : index
    %489 = vector.load %arg8[%c0_213, %c0_214] : memref<8x128xbf16, #tpu.memory_space<vmem>>, vector<8x128xbf16>
    %cst_215 = arith.constant dense<0.000000e+00> : vector<8x512xf32>
    %490 = tpu.matmul %489, %19, %cst_215 {dimension_numbers = #tpu.dot_dimension_numbers<[1], [0], [0], [1], [0, 0, 1, 1], [], []>} : vector<8x128xbf16>, vector<128x512xbf16>, vector<8x512xf32> -> vector<8x512xf32>
    %c0_216 = arith.constant 0 : index
    %c0_217 = arith.constant 0 : index
    %491 = vector.load %arg9[%c0_216, %c0_217] : memref<8x128xbf16, #tpu.memory_space<vmem>>, vector<8x128xbf16>
    %cst_218 = arith.constant dense<0.000000e+00> : vector<8x512xf32>
    %492 = tpu.matmul %491, %21, %cst_218 {dimension_numbers = #tpu.dot_dimension_numbers<[1], [0], [0], [1], [0, 0, 1, 1], [], []>} : vector<8x128xbf16>, vector<128x512xbf16>, vector<8x512xf32> -> vector<8x512xf32>
    %493 = arith.index_cast %485 : i32 to index
    %c0_219 = arith.constant 0 : index
    %494 = vector.load %arg6[%493, %c0_219] : memref<64x512xf32, #tpu.memory_space<vmem>>, vector<8x512xf32>
    %495 = arith.addf %494, %490 : vector<8x512xf32>
    %496 = arith.index_cast %488 : i32 to index
    %c0_220 = arith.constant 0 : index
    %497 = vector.load %arg7[%496, %c0_220] : memref<64x512xf32, #tpu.memory_space<vmem>>, vector<8x512xf32>
    %498 = arith.addf %497, %492 : vector<8x512xf32>
    %c0_221 = arith.constant 0 : index
    %c0_222 = arith.constant 0 : index
    %499 = vector.load %arg10[%c0_221, %c0_222] : memref<8x128xf32, #tpu.memory_space<vmem>>, vector<8x128xf32>
    %500 = vector.extract_strided_slice %495 {offsets = [0, 0], sizes = [8, 128], strides = [1, 1]} : vector<8x512xf32> to vector<8x128xf32>
    %501 = arith.negf %500 : vector<8x128xf32>
    %502 = math.exp %501 : vector<8x128xf32>
    %cst_223 = arith.constant 1.000000e+00 : f32
    %503 = vector.broadcast %cst_223 : f32 to vector<8x128xf32>
    %504 = arith.addf %503, %502 : vector<8x128xf32>
    %505 = arith.divf %503, %504 : vector<8x128xf32>
    %506 = vector.extract_strided_slice %495 {offsets = [0, 128], sizes = [8, 128], strides = [1, 1]} : vector<8x512xf32> to vector<8x128xf32>
    %507 = arith.negf %506 : vector<8x128xf32>
    %508 = math.exp %507 : vector<8x128xf32>
    %cst_224 = arith.constant 1.000000e+00 : f32
    %509 = vector.broadcast %cst_224 : f32 to vector<8x128xf32>
    %510 = arith.addf %509, %508 : vector<8x128xf32>
    %511 = arith.divf %509, %510 : vector<8x128xf32>
    %512 = vector.extract_strided_slice %495 {offsets = [0, 256], sizes = [8, 128], strides = [1, 1]} : vector<8x512xf32> to vector<8x128xf32>
    %513 = math.tanh %512 : vector<8x128xf32>
    %514 = vector.extract_strided_slice %495 {offsets = [0, 384], sizes = [8, 128], strides = [1, 1]} : vector<8x512xf32> to vector<8x128xf32>
    %515 = arith.negf %514 : vector<8x128xf32>
    %516 = math.exp %515 : vector<8x128xf32>
    %cst_225 = arith.constant 1.000000e+00 : f32
    %517 = vector.broadcast %cst_225 : f32 to vector<8x128xf32>
    %518 = arith.addf %517, %516 : vector<8x128xf32>
    %519 = arith.divf %517, %518 : vector<8x128xf32>
    %520 = arith.mulf %511, %499 : vector<8x128xf32>
    %521 = arith.mulf %505, %513 : vector<8x128xf32>
    %522 = arith.addf %520, %521 : vector<8x128xf32>
    %523 = math.tanh %522 : vector<8x128xf32>
    %524 = arith.mulf %519, %523 : vector<8x128xf32>
    %c0_226 = arith.constant 0 : index
    %c0_227 = arith.constant 0 : index
    %525 = vector.load %arg11[%c0_226, %c0_227] : memref<8x128xf32, #tpu.memory_space<vmem>>, vector<8x128xf32>
    %526 = vector.extract_strided_slice %498 {offsets = [0, 0], sizes = [8, 128], strides = [1, 1]} : vector<8x512xf32> to vector<8x128xf32>
    %527 = arith.negf %526 : vector<8x128xf32>
    %528 = math.exp %527 : vector<8x128xf32>
    %cst_228 = arith.constant 1.000000e+00 : f32
    %529 = vector.broadcast %cst_228 : f32 to vector<8x128xf32>
    %530 = arith.addf %529, %528 : vector<8x128xf32>
    %531 = arith.divf %529, %530 : vector<8x128xf32>
    %532 = vector.extract_strided_slice %498 {offsets = [0, 128], sizes = [8, 128], strides = [1, 1]} : vector<8x512xf32> to vector<8x128xf32>
    %533 = arith.negf %532 : vector<8x128xf32>
    %534 = math.exp %533 : vector<8x128xf32>
    %cst_229 = arith.constant 1.000000e+00 : f32
    %535 = vector.broadcast %cst_229 : f32 to vector<8x128xf32>
    %536 = arith.addf %535, %534 : vector<8x128xf32>
    %537 = arith.divf %535, %536 : vector<8x128xf32>
    %538 = vector.extract_strided_slice %498 {offsets = [0, 256], sizes = [8, 128], strides = [1, 1]} : vector<8x512xf32> to vector<8x128xf32>
    %539 = math.tanh %538 : vector<8x128xf32>
    %540 = vector.extract_strided_slice %498 {offsets = [0, 384], sizes = [8, 128], strides = [1, 1]} : vector<8x512xf32> to vector<8x128xf32>
    %541 = arith.negf %540 : vector<8x128xf32>
    %542 = math.exp %541 : vector<8x128xf32>
    %cst_230 = arith.constant 1.000000e+00 : f32
    %543 = vector.broadcast %cst_230 : f32 to vector<8x128xf32>
    %544 = arith.addf %543, %542 : vector<8x128xf32>
    %545 = arith.divf %543, %544 : vector<8x128xf32>
    %546 = arith.mulf %537, %525 : vector<8x128xf32>
    %547 = arith.mulf %531, %539 : vector<8x128xf32>
    %548 = arith.addf %546, %547 : vector<8x128xf32>
    %549 = math.tanh %548 : vector<8x128xf32>
    %550 = arith.mulf %545, %549 : vector<8x128xf32>
    %c0_231 = arith.constant 0 : index
    %c0_232 = arith.constant 0 : index
    %551 = vector.load %arg10[%c0_231, %c0_232] : memref<8x128xf32, #tpu.memory_space<vmem>>, vector<8x128xf32>
    tpu.vector_store %arg10[%c0_231, %c0_232], %522 {strides = array<i32>} : memref<8x128xf32, #tpu.memory_space<vmem>>, vector<8x128xf32>,
    %c0_233 = arith.constant 0 : index
    %c0_234 = arith.constant 0 : index
    %552 = vector.load %arg11[%c0_233, %c0_234] : memref<8x128xf32, #tpu.memory_space<vmem>>, vector<8x128xf32>
    tpu.vector_store %arg11[%c0_233, %c0_234], %548 {strides = array<i32>} : memref<8x128xf32, #tpu.memory_space<vmem>>, vector<8x128xf32>,
    %553 = arith.truncf %524 : vector<8x128xf32> to vector<8x128xbf16>
    %c0_235 = arith.constant 0 : index
    %c0_236 = arith.constant 0 : index
    %554 = vector.load %arg8[%c0_235, %c0_236] : memref<8x128xbf16, #tpu.memory_space<vmem>>, vector<8x128xbf16>
    tpu.vector_store %arg8[%c0_235, %c0_236], %553 {strides = array<i32>} : memref<8x128xbf16, #tpu.memory_space<vmem>>, vector<8x128xbf16>,
    %555 = arith.truncf %550 : vector<8x128xf32> to vector<8x128xbf16>
    %c0_237 = arith.constant 0 : index
    %c0_238 = arith.constant 0 : index
    %556 = vector.load %arg9[%c0_237, %c0_238] : memref<8x128xbf16, #tpu.memory_space<vmem>>, vector<8x128xbf16>
    tpu.vector_store %arg9[%c0_237, %c0_238], %555 {strides = array<i32>} : memref<8x128xbf16, #tpu.memory_space<vmem>>, vector<8x128xbf16>,
    %557 = arith.index_cast %485 : i32 to index
    %c0_239 = arith.constant 0 : index
    %558 = vector.load %arg12[%557, %c0_239] : memref<64x128xf32, #tpu.memory_space<vmem>>, vector<8x128xf32>
    tpu.vector_store %arg12[%557, %c0_239], %524 {strides = array<i32>} : memref<64x128xf32, #tpu.memory_space<vmem>>, vector<8x128xf32>,
    %559 = arith.index_cast %488 : i32 to index
    %c0_240 = arith.constant 0 : index
    %560 = vector.load %arg13[%559, %c0_240] : memref<64x128xf32, #tpu.memory_space<vmem>>, vector<8x128xf32>
    tpu.vector_store %arg13[%559, %c0_240], %550 {strides = array<i32>} : memref<64x128xf32, #tpu.memory_space<vmem>>, vector<8x128xf32>,
    %c7_i32_241 = arith.constant 7 : i32
    %c8_i32_242 = arith.constant 8 : i32
    %561 = arith.muli %c7_i32_241, %c8_i32_242 : i32
    %562 = tpu.assume_multiple %561, 8 : i32
    %c7_i32_243 = arith.constant 7 : i32
    %563 = arith.subi %c7_i32_243, %c7_i32_241 : i32
    %c8_i32_244 = arith.constant 8 : i32
    %564 = arith.muli %563, %c8_i32_244 : i32
    %565 = tpu.assume_multiple %564, 8 : i32
    %c0_245 = arith.constant 0 : index
    %c0_246 = arith.constant 0 : index
    %566 = vector.load %arg8[%c0_245, %c0_246] : memref<8x128xbf16, #tpu.memory_space<vmem>>, vector<8x128xbf16>
    %cst_247 = arith.constant dense<0.000000e+00> : vector<8x512xf32>
    %567 = tpu.matmul %566, %19, %cst_247 {dimension_numbers = #tpu.dot_dimension_numbers<[1], [0], [0], [1], [0, 0, 1, 1], [], []>} : vector<8x128xbf16>, vector<128x512xbf16>, vector<8x512xf32> -> vector<8x512xf32>
    %c0_248 = arith.constant 0 : index
    %c0_249 = arith.constant 0 : index
    %568 = vector.load %arg9[%c0_248, %c0_249] : memref<8x128xbf16, #tpu.memory_space<vmem>>, vector<8x128xbf16>
    %cst_250 = arith.constant dense<0.000000e+00> : vector<8x512xf32>
    %569 = tpu.matmul %568, %21, %cst_250 {dimension_numbers = #tpu.dot_dimension_numbers<[1], [0], [0], [1], [0, 0, 1, 1], [], []>} : vector<8x128xbf16>, vector<128x512xbf16>, vector<8x512xf32> -> vector<8x512xf32>
    %570 = arith.index_cast %562 : i32 to index
    %c0_251 = arith.constant 0 : index
    %571 = vector.load %arg6[%570, %c0_251] : memref<64x512xf32, #tpu.memory_space<vmem>>, vector<8x512xf32>
    %572 = arith.addf %571, %567 : vector<8x512xf32>
    %573 = arith.index_cast %565 : i32 to index
    %c0_252 = arith.constant 0 : index
    %574 = vector.load %arg7[%573, %c0_252] : memref<64x512xf32, #tpu.memory_space<vmem>>, vector<8x512xf32>
    %575 = arith.addf %574, %569 : vector<8x512xf32>
    %c0_253 = arith.constant 0 : index
    %c0_254 = arith.constant 0 : index
    %576 = vector.load %arg10[%c0_253, %c0_254] : memref<8x128xf32, #tpu.memory_space<vmem>>, vector<8x128xf32>
    %577 = vector.extract_strided_slice %572 {offsets = [0, 0], sizes = [8, 128], strides = [1, 1]} : vector<8x512xf32> to vector<8x128xf32>
    %578 = arith.negf %577 : vector<8x128xf32>
    %579 = math.exp %578 : vector<8x128xf32>
    %cst_255 = arith.constant 1.000000e+00 : f32
    %580 = vector.broadcast %cst_255 : f32 to vector<8x128xf32>
    %581 = arith.addf %580, %579 : vector<8x128xf32>
    %582 = arith.divf %580, %581 : vector<8x128xf32>
    %583 = vector.extract_strided_slice %572 {offsets = [0, 128], sizes = [8, 128], strides = [1, 1]} : vector<8x512xf32> to vector<8x128xf32>
    %584 = arith.negf %583 : vector<8x128xf32>
    %585 = math.exp %584 : vector<8x128xf32>
    %cst_256 = arith.constant 1.000000e+00 : f32
    %586 = vector.broadcast %cst_256 : f32 to vector<8x128xf32>
    %587 = arith.addf %586, %585 : vector<8x128xf32>
    %588 = arith.divf %586, %587 : vector<8x128xf32>
    %589 = vector.extract_strided_slice %572 {offsets = [0, 256], sizes = [8, 128], strides = [1, 1]} : vector<8x512xf32> to vector<8x128xf32>
    %590 = math.tanh %589 : vector<8x128xf32>
    %591 = vector.extract_strided_slice %572 {offsets = [0, 384], sizes = [8, 128], strides = [1, 1]} : vector<8x512xf32> to vector<8x128xf32>
    %592 = arith.negf %591 : vector<8x128xf32>
    %593 = math.exp %592 : vector<8x128xf32>
    %cst_257 = arith.constant 1.000000e+00 : f32
    %594 = vector.broadcast %cst_257 : f32 to vector<8x128xf32>
    %595 = arith.addf %594, %593 : vector<8x128xf32>
    %596 = arith.divf %594, %595 : vector<8x128xf32>
    %597 = arith.mulf %588, %576 : vector<8x128xf32>
    %598 = arith.mulf %582, %590 : vector<8x128xf32>
    %599 = arith.addf %597, %598 : vector<8x128xf32>
    %600 = math.tanh %599 : vector<8x128xf32>
    %601 = arith.mulf %596, %600 : vector<8x128xf32>
    %c0_258 = arith.constant 0 : index
    %c0_259 = arith.constant 0 : index
    %602 = vector.load %arg11[%c0_258, %c0_259] : memref<8x128xf32, #tpu.memory_space<vmem>>, vector<8x128xf32>
    %603 = vector.extract_strided_slice %575 {offsets = [0, 0], sizes = [8, 128], strides = [1, 1]} : vector<8x512xf32> to vector<8x128xf32>
    %604 = arith.negf %603 : vector<8x128xf32>
    %605 = math.exp %604 : vector<8x128xf32>
    %cst_260 = arith.constant 1.000000e+00 : f32
    %606 = vector.broadcast %cst_260 : f32 to vector<8x128xf32>
    %607 = arith.addf %606, %605 : vector<8x128xf32>
    %608 = arith.divf %606, %607 : vector<8x128xf32>
    %609 = vector.extract_strided_slice %575 {offsets = [0, 128], sizes = [8, 128], strides = [1, 1]} : vector<8x512xf32> to vector<8x128xf32>
    %610 = arith.negf %609 : vector<8x128xf32>
    %611 = math.exp %610 : vector<8x128xf32>
    %cst_261 = arith.constant 1.000000e+00 : f32
    %612 = vector.broadcast %cst_261 : f32 to vector<8x128xf32>
    %613 = arith.addf %612, %611 : vector<8x128xf32>
    %614 = arith.divf %612, %613 : vector<8x128xf32>
    %615 = vector.extract_strided_slice %575 {offsets = [0, 256], sizes = [8, 128], strides = [1, 1]} : vector<8x512xf32> to vector<8x128xf32>
    %616 = math.tanh %615 : vector<8x128xf32>
    %617 = vector.extract_strided_slice %575 {offsets = [0, 384], sizes = [8, 128], strides = [1, 1]} : vector<8x512xf32> to vector<8x128xf32>
    %618 = arith.negf %617 : vector<8x128xf32>
    %619 = math.exp %618 : vector<8x128xf32>
    %cst_262 = arith.constant 1.000000e+00 : f32
    %620 = vector.broadcast %cst_262 : f32 to vector<8x128xf32>
    %621 = arith.addf %620, %619 : vector<8x128xf32>
    %622 = arith.divf %620, %621 : vector<8x128xf32>
    %623 = arith.mulf %614, %602 : vector<8x128xf32>
    %624 = arith.mulf %608, %616 : vector<8x128xf32>
    %625 = arith.addf %623, %624 : vector<8x128xf32>
    %626 = math.tanh %625 : vector<8x128xf32>
    %627 = arith.mulf %622, %626 : vector<8x128xf32>
    %c0_263 = arith.constant 0 : index
    %c0_264 = arith.constant 0 : index
    %628 = vector.load %arg10[%c0_263, %c0_264] : memref<8x128xf32, #tpu.memory_space<vmem>>, vector<8x128xf32>
    tpu.vector_store %arg10[%c0_263, %c0_264], %599 {strides = array<i32>} : memref<8x128xf32, #tpu.memory_space<vmem>>, vector<8x128xf32>,
    %c0_265 = arith.constant 0 : index
    %c0_266 = arith.constant 0 : index
    %629 = vector.load %arg11[%c0_265, %c0_266] : memref<8x128xf32, #tpu.memory_space<vmem>>, vector<8x128xf32>
    tpu.vector_store %arg11[%c0_265, %c0_266], %625 {strides = array<i32>} : memref<8x128xf32, #tpu.memory_space<vmem>>, vector<8x128xf32>,
    %630 = arith.truncf %601 : vector<8x128xf32> to vector<8x128xbf16>
    %c0_267 = arith.constant 0 : index
    %c0_268 = arith.constant 0 : index
    %631 = vector.load %arg8[%c0_267, %c0_268] : memref<8x128xbf16, #tpu.memory_space<vmem>>, vector<8x128xbf16>
    tpu.vector_store %arg8[%c0_267, %c0_268], %630 {strides = array<i32>} : memref<8x128xbf16, #tpu.memory_space<vmem>>, vector<8x128xbf16>,
    %632 = arith.truncf %627 : vector<8x128xf32> to vector<8x128xbf16>
    %c0_269 = arith.constant 0 : index
    %c0_270 = arith.constant 0 : index
    %633 = vector.load %arg9[%c0_269, %c0_270] : memref<8x128xbf16, #tpu.memory_space<vmem>>, vector<8x128xbf16>
    tpu.vector_store %arg9[%c0_269, %c0_270], %632 {strides = array<i32>} : memref<8x128xbf16, #tpu.memory_space<vmem>>, vector<8x128xbf16>,
    %634 = arith.index_cast %562 : i32 to index
    %c0_271 = arith.constant 0 : index
    %635 = vector.load %arg12[%634, %c0_271] : memref<64x128xf32, #tpu.memory_space<vmem>>, vector<8x128xf32>
    tpu.vector_store %arg12[%634, %c0_271], %601 {strides = array<i32>} : memref<64x128xf32, #tpu.memory_space<vmem>>, vector<8x128xf32>,
    %636 = arith.index_cast %565 : i32 to index
    %c0_272 = arith.constant 0 : index
    %637 = vector.load %arg13[%636, %c0_272] : memref<64x128xf32, #tpu.memory_space<vmem>>, vector<8x128xf32>
    tpu.vector_store %arg13[%636, %c0_272], %627 {strides = array<i32>} : memref<64x128xf32, #tpu.memory_space<vmem>>, vector<8x128xf32>,
    %c8_i32_273 = arith.constant 8 : i32
    %c0_274 = arith.constant 0 : index
    %c0_275 = arith.constant 0 : index
    %638 = vector.load %arg12[%c0_274, %c0_275] : memref<64x128xf32, #tpu.memory_space<vmem>>, vector<64x128xf32>
    %639 = arith.truncf %638 : vector<64x128xf32> to vector<64x128xbf16>
    %c0_276 = arith.constant 0 : index
    %c0_277 = arith.constant 0 : index
    %640 = vector.load %arg5[%c0_276, %c0_277] : memref<64x256xbf16, #tpu.memory_space<vmem>>, vector<64x128xbf16>
    tpu.vector_store %arg5[%c0_276, %c0_277], %639 {strides = array<i32>} : memref<64x256xbf16, #tpu.memory_space<vmem>>, vector<64x128xbf16>,
    %c0_278 = arith.constant 0 : index
    %c0_279 = arith.constant 0 : index
    %641 = vector.load %arg13[%c0_278, %c0_279] : memref<64x128xf32, #tpu.memory_space<vmem>>, vector<64x128xf32>
    %642 = arith.truncf %641 : vector<64x128xf32> to vector<64x128xbf16>
    %c0_280 = arith.constant 0 : index
    %c128 = arith.constant 128 : index
    %643 = vector.load %arg5[%c0_280, %c128] : memref<64x256xbf16, #tpu.memory_space<vmem>>, vector<64x128xbf16>
    tpu.vector_store %arg5[%c0_280, %c128], %642 {strides = array<i32>} : memref<64x256xbf16, #tpu.memory_space<vmem>>, vector<64x128xbf16>,
    return
  }
  func.func @transform_0(%arg0: i32) -> (i32, i32) {
    %c0_i32 = arith.constant 0 : i32
    %c0_i32_0 = arith.constant 0 : i32
    %c0_i32_1 = arith.constant 0 : i32
    return %c0_i32, %c0_i32_0 : i32, i32
  }
  func.func @transform_1(%arg0: i32) -> (i32, i32) {
    %c0_i32 = arith.constant 0 : i32
    %c0_i32_0 = arith.constant 0 : i32
    %c0_i32_1 = arith.constant 0 : i32
    return %c0_i32, %c0_i32_0 : i32, i32
  }
  func.func @transform_2(%arg0: i32) -> (i32, i32, i32) {
    %c0_i32 = arith.constant 0 : i32
    %c0_i32_0 = arith.constant 0 : i32
    %c0_i32_1 = arith.constant 0 : i32
    %c0_i32_2 = arith.constant 0 : i32
    return %c0_i32, %c0_i32_0, %c0_i32_1 : i32, i32, i32
  }
  func.func @transform_3(%arg0: i32) -> (i32, i32) {
    %c0_i32 = arith.constant 0 : i32
    %c0_i32_0 = arith.constant 0 : i32
    %c0_i32_1 = arith.constant 0 : i32
    return %c0_i32, %c0_i32_0 : i32, i32
  }
  func.func @transform_4(%arg0: i32) -> (i32, i32) {
    %c0_i32 = arith.constant 0 : i32
    %c0_i32_0 = arith.constant 0 : i32
    %c0_i32_1 = arith.constant 0 : i32
    return %c0_i32, %c0_i32_0 : i32, i32
  }
}

module attributes {stable_mosaic.version = 11 : i64} {
  func.func @_bilstm_kernel(%arg0: i32, %arg1: memref<64x256xbf16, #tpu.memory_space<vmem>>, %arg2: memref<256x1024xbf16, #tpu.memory_space<vmem>>, %arg3: memref<2x128x512xbf16, #tpu.memory_space<vmem>>, %arg4: memref<1x1024xf32, #tpu.memory_space<vmem>>, %arg5: memref<64x256xbf16, #tpu.memory_space<vmem>>, %arg6: memref<64x512xf32, #tpu.memory_space<vmem>>, %arg7: memref<64x512xf32, #tpu.memory_space<vmem>>, %arg8: memref<8x128xbf16, #tpu.memory_space<vmem>>, %arg9: memref<8x128xbf16, #tpu.memory_space<vmem>>, %arg10: memref<8x128xf32, #tpu.memory_space<vmem>>, %arg11: memref<8x128xf32, #tpu.memory_space<vmem>>, %arg12: memref<64x128xf32, #tpu.memory_space<vmem>>, %arg13: memref<64x128xf32, #tpu.memory_space<vmem>>) attributes {dimension_semantics = [#tpu.dimension_semantics<arbitrary>], iteration_bounds = array<i64: 1>, scalar_prefetch = 0 : i64, scratch_operands = 8 : i64, tpu.core_type = #tpu.core_type<tc>, window_params = [{pipeline_mode = #tpu.pipeline_mode<synchronous>, transform_indices = @transform_0, window_bounds = array<i64: 64, 256>}, {pipeline_mode = #tpu.pipeline_mode<synchronous>, transform_indices = @transform_1, window_bounds = array<i64: 256, 1024>}, {pipeline_mode = #tpu.pipeline_mode<synchronous>, transform_indices = @transform_2, window_bounds = array<i64: 2, 128, 512>}, {pipeline_mode = #tpu.pipeline_mode<synchronous>, transform_indices = @transform_3, window_bounds = array<i64: 1, 1024>}, {pipeline_mode = #tpu.pipeline_mode<synchronous>, transform_indices = @transform_4, window_bounds = array<i64: 64, 256>}]} {
    %c0 = arith.constant 0 : index
    %c0_0 = arith.constant 0 : index
    %0 = vector.load %arg1[%c0, %c0_0] : memref<64x256xbf16, #tpu.memory_space<vmem>>, vector<64x256xbf16>
    %c0_1 = arith.constant 0 : index
    %c0_2 = arith.constant 0 : index
    %1 = vector.load %arg2[%c0_1, %c0_2] : memref<256x1024xbf16, #tpu.memory_space<vmem>>, vector<256x1024xbf16>
    %cst = arith.constant dense<0.000000e+00> : vector<64x1024xf32>
    %2 = tpu.matmul %0, %1, %cst {dimension_numbers = #tpu.dot_dimension_numbers<[1], [0], [0], [1], [0, 0, 1, 1], [], []>} : vector<64x256xbf16>, vector<256x1024xbf16>, vector<64x1024xf32> -> vector<64x1024xf32>
    %c0_3 = arith.constant 0 : index
    %c0_4 = arith.constant 0 : index
    %3 = vector.load %arg4[%c0_3, %c0_4] : memref<1x1024xf32, #tpu.memory_space<vmem>>, vector<1x1024xf32>
    %4 = vector.broadcast %3 : vector<1x1024xf32> to vector<64x1024xf32>
    %5 = arith.addf %2, %4 : vector<64x1024xf32>
    %6 = vector.extract_strided_slice %5 {offsets = [0, 0], sizes = [64, 512], strides = [1, 1]} : vector<64x1024xf32> to vector<64x512xf32>
    %c0_5 = arith.constant 0 : index
    %c0_6 = arith.constant 0 : index
    %7 = vector.load %arg6[%c0_5, %c0_6] : memref<64x512xf32, #tpu.memory_space<vmem>>, vector<64x512xf32>
    tpu.vector_store %arg6[%c0_5, %c0_6], %6 {strides = array<i32>} : memref<64x512xf32, #tpu.memory_space<vmem>>, vector<64x512xf32>,
    %8 = vector.extract_strided_slice %5 {offsets = [0, 512], sizes = [64, 512], strides = [1, 1]} : vector<64x1024xf32> to vector<64x512xf32>
    %c0_7 = arith.constant 0 : index
    %c0_8 = arith.constant 0 : index
    %9 = vector.load %arg7[%c0_7, %c0_8] : memref<64x512xf32, #tpu.memory_space<vmem>>, vector<64x512xf32>
    tpu.vector_store %arg7[%c0_7, %c0_8], %8 {strides = array<i32>} : memref<64x512xf32, #tpu.memory_space<vmem>>, vector<64x512xf32>,
    %cst_9 = arith.constant 0.000000e+00 : bf16
    %10 = vector.broadcast %cst_9 : bf16 to vector<8x128xbf16>
    %c0_10 = arith.constant 0 : index
    %c0_11 = arith.constant 0 : index
    %11 = vector.load %arg8[%c0_10, %c0_11] : memref<8x128xbf16, #tpu.memory_space<vmem>>, vector<8x128xbf16>
    tpu.vector_store %arg8[%c0_10, %c0_11], %10 {strides = array<i32>} : memref<8x128xbf16, #tpu.memory_space<vmem>>, vector<8x128xbf16>,
    %cst_12 = arith.constant 0.000000e+00 : bf16
    %12 = vector.broadcast %cst_12 : bf16 to vector<8x128xbf16>
    %c0_13 = arith.constant 0 : index
    %c0_14 = arith.constant 0 : index
    %13 = vector.load %arg9[%c0_13, %c0_14] : memref<8x128xbf16, #tpu.memory_space<vmem>>, vector<8x128xbf16>
    tpu.vector_store %arg9[%c0_13, %c0_14], %12 {strides = array<i32>} : memref<8x128xbf16, #tpu.memory_space<vmem>>, vector<8x128xbf16>,
    %cst_15 = arith.constant 0.000000e+00 : f32
    %14 = vector.broadcast %cst_15 : f32 to vector<8x128xf32>
    %c0_16 = arith.constant 0 : index
    %c0_17 = arith.constant 0 : index
    %15 = vector.load %arg10[%c0_16, %c0_17] : memref<8x128xf32, #tpu.memory_space<vmem>>, vector<8x128xf32>
    tpu.vector_store %arg10[%c0_16, %c0_17], %14 {strides = array<i32>} : memref<8x128xf32, #tpu.memory_space<vmem>>, vector<8x128xf32>,
    %cst_18 = arith.constant 0.000000e+00 : f32
    %16 = vector.broadcast %cst_18 : f32 to vector<8x128xf32>
    %c0_19 = arith.constant 0 : index
    %c0_20 = arith.constant 0 : index
    %17 = vector.load %arg11[%c0_19, %c0_20] : memref<8x128xf32, #tpu.memory_space<vmem>>, vector<8x128xf32>
    tpu.vector_store %arg11[%c0_19, %c0_20], %16 {strides = array<i32>} : memref<8x128xf32, #tpu.memory_space<vmem>>, vector<8x128xf32>,
    %c0_21 = arith.constant 0 : index
    %c0_22 = arith.constant 0 : index
    %c0_23 = arith.constant 0 : index
    %18 = vector.load %arg3[%c0_21, %c0_22, %c0_23] : memref<2x128x512xbf16, #tpu.memory_space<vmem>>, vector<1x128x512xbf16>
    %19 = vector.shape_cast %18 : vector<1x128x512xbf16> to vector<128x512xbf16>
    %c1 = arith.constant 1 : index
    %c0_24 = arith.constant 0 : index
    %c0_25 = arith.constant 0 : index
    %20 = vector.load %arg3[%c1, %c0_24, %c0_25] : memref<2x128x512xbf16, #tpu.memory_space<vmem>>, vector<1x128x512xbf16>
    %21 = vector.shape_cast %20 : vector<1x128x512xbf16> to vector<128x512xbf16>
    %c0_i32 = arith.constant 0 : i32
    %c8_i32 = arith.constant 8 : i32
    %22 = arith.muli %c0_i32, %c8_i32 : i32
    %23 = tpu.assume_multiple %22, 8 : i32
    %c7_i32 = arith.constant 7 : i32
    %24 = arith.subi %c7_i32, %c0_i32 : i32
    %c8_i32_26 = arith.constant 8 : i32
    %25 = arith.muli %24, %c8_i32_26 : i32
    %26 = tpu.assume_multiple %25, 8 : i32
    %c0_27 = arith.constant 0 : index
    %c0_28 = arith.constant 0 : index
    %27 = vector.load %arg8[%c0_27, %c0_28] : memref<8x128xbf16, #tpu.memory_space<vmem>>, vector<8x128xbf16>
    %cst_29 = arith.constant dense<0.000000e+00> : vector<8x512xf32>
    %28 = tpu.matmul %27, %19, %cst_29 {dimension_numbers = #tpu.dot_dimension_numbers<[1], [0], [0], [1], [0, 0, 1, 1], [], []>} : vector<8x128xbf16>, vector<128x512xbf16>, vector<8x512xf32> -> vector<8x512xf32>
    %c0_30 = arith.constant 0 : index
    %c0_31 = arith.constant 0 : index
    %29 = vector.load %arg9[%c0_30, %c0_31] : memref<8x128xbf16, #tpu.memory_space<vmem>>, vector<8x128xbf16>
    %cst_32 = arith.constant dense<0.000000e+00> : vector<8x512xf32>
    %30 = tpu.matmul %29, %21, %cst_32 {dimension_numbers = #tpu.dot_dimension_numbers<[1], [0], [0], [1], [0, 0, 1, 1], [], []>} : vector<8x128xbf16>, vector<128x512xbf16>, vector<8x512xf32> -> vector<8x512xf32>
    %31 = arith.index_cast %23 : i32 to index
    %c0_33 = arith.constant 0 : index
    %32 = vector.load %arg6[%31, %c0_33] : memref<64x512xf32, #tpu.memory_space<vmem>>, vector<8x512xf32>
    %33 = arith.addf %32, %28 : vector<8x512xf32>
    %34 = arith.index_cast %26 : i32 to index
    %c0_34 = arith.constant 0 : index
    %35 = vector.load %arg7[%34, %c0_34] : memref<64x512xf32, #tpu.memory_space<vmem>>, vector<8x512xf32>
    %36 = arith.addf %35, %30 : vector<8x512xf32>
    %c0_35 = arith.constant 0 : index
    %c0_36 = arith.constant 0 : index
    %37 = vector.load %arg10[%c0_35, %c0_36] : memref<8x128xf32, #tpu.memory_space<vmem>>, vector<8x128xf32>
    %38 = vector.extract_strided_slice %33 {offsets = [0, 0], sizes = [8, 128], strides = [1, 1]} : vector<8x512xf32> to vector<8x128xf32>
    %39 = arith.negf %38 : vector<8x128xf32>
    %40 = math.exp %39 : vector<8x128xf32>
    %cst_37 = arith.constant 1.000000e+00 : f32
    %41 = vector.broadcast %cst_37 : f32 to vector<8x128xf32>
    %42 = arith.addf %41, %40 : vector<8x128xf32>
    %43 = arith.divf %41, %42 : vector<8x128xf32>
    %44 = vector.extract_strided_slice %33 {offsets = [0, 128], sizes = [8, 128], strides = [1, 1]} : vector<8x512xf32> to vector<8x128xf32>
    %45 = arith.negf %44 : vector<8x128xf32>
    %46 = math.exp %45 : vector<8x128xf32>
    %cst_38 = arith.constant 1.000000e+00 : f32
    %47 = vector.broadcast %cst_38 : f32 to vector<8x128xf32>
    %48 = arith.addf %47, %46 : vector<8x128xf32>
    %49 = arith.divf %47, %48 : vector<8x128xf32>
    %50 = vector.extract_strided_slice %33 {offsets = [0, 256], sizes = [8, 128], strides = [1, 1]} : vector<8x512xf32> to vector<8x128xf32>
    %51 = math.tanh %50 : vector<8x128xf32>
    %52 = vector.extract_strided_slice %33 {offsets = [0, 384], sizes = [8, 128], strides = [1, 1]} : vector<8x512xf32> to vector<8x128xf32>
    %53 = arith.negf %52 : vector<8x128xf32>
    %54 = math.exp %53 : vector<8x128xf32>
    %cst_39 = arith.constant 1.000000e+00 : f32
    %55 = vector.broadcast %cst_39 : f32 to vector<8x128xf32>
    %56 = arith.addf %55, %54 : vector<8x128xf32>
    %57 = arith.divf %55, %56 : vector<8x128xf32>
    %58 = arith.mulf %49, %37 : vector<8x128xf32>
    %59 = arith.mulf %43, %51 : vector<8x128xf32>
    %60 = arith.addf %58, %59 : vector<8x128xf32>
    %61 = math.tanh %60 : vector<8x128xf32>
    %62 = arith.mulf %57, %61 : vector<8x128xf32>
    %c0_40 = arith.constant 0 : index
    %c0_41 = arith.constant 0 : index
    %63 = vector.load %arg11[%c0_40, %c0_41] : memref<8x128xf32, #tpu.memory_space<vmem>>, vector<8x128xf32>
    %64 = vector.extract_strided_slice %36 {offsets = [0, 0], sizes = [8, 128], strides = [1, 1]} : vector<8x512xf32> to vector<8x128xf32>
    %65 = arith.negf %64 : vector<8x128xf32>
    %66 = math.exp %65 : vector<8x128xf32>
    %cst_42 = arith.constant 1.000000e+00 : f32
    %67 = vector.broadcast %cst_42 : f32 to vector<8x128xf32>
    %68 = arith.addf %67, %66 : vector<8x128xf32>
    %69 = arith.divf %67, %68 : vector<8x128xf32>
    %70 = vector.extract_strided_slice %36 {offsets = [0, 128], sizes = [8, 128], strides = [1, 1]} : vector<8x512xf32> to vector<8x128xf32>
    %71 = arith.negf %70 : vector<8x128xf32>
    %72 = math.exp %71 : vector<8x128xf32>
    %cst_43 = arith.constant 1.000000e+00 : f32
    %73 = vector.broadcast %cst_43 : f32 to vector<8x128xf32>
    %74 = arith.addf %73, %72 : vector<8x128xf32>
    %75 = arith.divf %73, %74 : vector<8x128xf32>
    %76 = vector.extract_strided_slice %36 {offsets = [0, 256], sizes = [8, 128], strides = [1, 1]} : vector<8x512xf32> to vector<8x128xf32>
    %77 = math.tanh %76 : vector<8x128xf32>
    %78 = vector.extract_strided_slice %36 {offsets = [0, 384], sizes = [8, 128], strides = [1, 1]} : vector<8x512xf32> to vector<8x128xf32>
    %79 = arith.negf %78 : vector<8x128xf32>
    %80 = math.exp %79 : vector<8x128xf32>
    %cst_44 = arith.constant 1.000000e+00 : f32
    %81 = vector.broadcast %cst_44 : f32 to vector<8x128xf32>
    %82 = arith.addf %81, %80 : vector<8x128xf32>
    %83 = arith.divf %81, %82 : vector<8x128xf32>
    %84 = arith.mulf %75, %63 : vector<8x128xf32>
    %85 = arith.mulf %69, %77 : vector<8x128xf32>
    %86 = arith.addf %84, %85 : vector<8x128xf32>
    %87 = math.tanh %86 : vector<8x128xf32>
    %88 = arith.mulf %83, %87 : vector<8x128xf32>
    %c0_45 = arith.constant 0 : index
    %c0_46 = arith.constant 0 : index
    %89 = vector.load %arg10[%c0_45, %c0_46] : memref<8x128xf32, #tpu.memory_space<vmem>>, vector<8x128xf32>
    tpu.vector_store %arg10[%c0_45, %c0_46], %60 {strides = array<i32>} : memref<8x128xf32, #tpu.memory_space<vmem>>, vector<8x128xf32>,
    %c0_47 = arith.constant 0 : index
    %c0_48 = arith.constant 0 : index
    %90 = vector.load %arg11[%c0_47, %c0_48] : memref<8x128xf32, #tpu.memory_space<vmem>>, vector<8x128xf32>
    tpu.vector_store %arg11[%c0_47, %c0_48], %86 {strides = array<i32>} : memref<8x128xf32, #tpu.memory_space<vmem>>, vector<8x128xf32>,
    %91 = arith.truncf %62 : vector<8x128xf32> to vector<8x128xbf16>
    %c0_49 = arith.constant 0 : index
    %c0_50 = arith.constant 0 : index
    %92 = vector.load %arg8[%c0_49, %c0_50] : memref<8x128xbf16, #tpu.memory_space<vmem>>, vector<8x128xbf16>
    tpu.vector_store %arg8[%c0_49, %c0_50], %91 {strides = array<i32>} : memref<8x128xbf16, #tpu.memory_space<vmem>>, vector<8x128xbf16>,
    %93 = arith.truncf %88 : vector<8x128xf32> to vector<8x128xbf16>
    %c0_51 = arith.constant 0 : index
    %c0_52 = arith.constant 0 : index
    %94 = vector.load %arg9[%c0_51, %c0_52] : memref<8x128xbf16, #tpu.memory_space<vmem>>, vector<8x128xbf16>
    tpu.vector_store %arg9[%c0_51, %c0_52], %93 {strides = array<i32>} : memref<8x128xbf16, #tpu.memory_space<vmem>>, vector<8x128xbf16>,
    %95 = arith.index_cast %23 : i32 to index
    %c0_53 = arith.constant 0 : index
    %96 = vector.load %arg12[%95, %c0_53] : memref<64x128xf32, #tpu.memory_space<vmem>>, vector<8x128xf32>
    tpu.vector_store %arg12[%95, %c0_53], %62 {strides = array<i32>} : memref<64x128xf32, #tpu.memory_space<vmem>>, vector<8x128xf32>,
    %97 = arith.index_cast %26 : i32 to index
    %c0_54 = arith.constant 0 : index
    %98 = vector.load %arg13[%97, %c0_54] : memref<64x128xf32, #tpu.memory_space<vmem>>, vector<8x128xf32>
    tpu.vector_store %arg13[%97, %c0_54], %88 {strides = array<i32>} : memref<64x128xf32, #tpu.memory_space<vmem>>, vector<8x128xf32>,
    %c1_i32 = arith.constant 1 : i32
    %c8_i32_55 = arith.constant 8 : i32
    %99 = arith.muli %c1_i32, %c8_i32_55 : i32
    %100 = tpu.assume_multiple %99, 8 : i32
    %c7_i32_56 = arith.constant 7 : i32
    %101 = arith.subi %c7_i32_56, %c1_i32 : i32
    %c8_i32_57 = arith.constant 8 : i32
    %102 = arith.muli %101, %c8_i32_57 : i32
    %103 = tpu.assume_multiple %102, 8 : i32
    %c0_58 = arith.constant 0 : index
    %c0_59 = arith.constant 0 : index
    %104 = vector.load %arg8[%c0_58, %c0_59] : memref<8x128xbf16, #tpu.memory_space<vmem>>, vector<8x128xbf16>
    %cst_60 = arith.constant dense<0.000000e+00> : vector<8x512xf32>
    %105 = tpu.matmul %104, %19, %cst_60 {dimension_numbers = #tpu.dot_dimension_numbers<[1], [0], [0], [1], [0, 0, 1, 1], [], []>} : vector<8x128xbf16>, vector<128x512xbf16>, vector<8x512xf32> -> vector<8x512xf32>
    %c0_61 = arith.constant 0 : index
    %c0_62 = arith.constant 0 : index
    %106 = vector.load %arg9[%c0_61, %c0_62] : memref<8x128xbf16, #tpu.memory_space<vmem>>, vector<8x128xbf16>
    %cst_63 = arith.constant dense<0.000000e+00> : vector<8x512xf32>
    %107 = tpu.matmul %106, %21, %cst_63 {dimension_numbers = #tpu.dot_dimension_numbers<[1], [0], [0], [1], [0, 0, 1, 1], [], []>} : vector<8x128xbf16>, vector<128x512xbf16>, vector<8x512xf32> -> vector<8x512xf32>
    %108 = arith.index_cast %100 : i32 to index
    %c0_64 = arith.constant 0 : index
    %109 = vector.load %arg6[%108, %c0_64] : memref<64x512xf32, #tpu.memory_space<vmem>>, vector<8x512xf32>
    %110 = arith.addf %109, %105 : vector<8x512xf32>
    %111 = arith.index_cast %103 : i32 to index
    %c0_65 = arith.constant 0 : index
    %112 = vector.load %arg7[%111, %c0_65] : memref<64x512xf32, #tpu.memory_space<vmem>>, vector<8x512xf32>
    %113 = arith.addf %112, %107 : vector<8x512xf32>
    %c0_66 = arith.constant 0 : index
    %c0_67 = arith.constant 0 : index
    %114 = vector.load %arg10[%c0_66, %c0_67] : memref<8x128xf32, #tpu.memory_space<vmem>>, vector<8x128xf32>
    %115 = vector.extract_strided_slice %110 {offsets = [0, 0], sizes = [8, 128], strides = [1, 1]} : vector<8x512xf32> to vector<8x128xf32>
    %116 = arith.negf %115 : vector<8x128xf32>
    %117 = math.exp %116 : vector<8x128xf32>
    %cst_68 = arith.constant 1.000000e+00 : f32
    %118 = vector.broadcast %cst_68 : f32 to vector<8x128xf32>
    %119 = arith.addf %118, %117 : vector<8x128xf32>
    %120 = arith.divf %118, %119 : vector<8x128xf32>
    %121 = vector.extract_strided_slice %110 {offsets = [0, 128], sizes = [8, 128], strides = [1, 1]} : vector<8x512xf32> to vector<8x128xf32>
    %122 = arith.negf %121 : vector<8x128xf32>
    %123 = math.exp %122 : vector<8x128xf32>
    %cst_69 = arith.constant 1.000000e+00 : f32
    %124 = vector.broadcast %cst_69 : f32 to vector<8x128xf32>
    %125 = arith.addf %124, %123 : vector<8x128xf32>
    %126 = arith.divf %124, %125 : vector<8x128xf32>
    %127 = vector.extract_strided_slice %110 {offsets = [0, 256], sizes = [8, 128], strides = [1, 1]} : vector<8x512xf32> to vector<8x128xf32>
    %128 = math.tanh %127 : vector<8x128xf32>
    %129 = vector.extract_strided_slice %110 {offsets = [0, 384], sizes = [8, 128], strides = [1, 1]} : vector<8x512xf32> to vector<8x128xf32>
    %130 = arith.negf %129 : vector<8x128xf32>
    %131 = math.exp %130 : vector<8x128xf32>
    %cst_70 = arith.constant 1.000000e+00 : f32
    %132 = vector.broadcast %cst_70 : f32 to vector<8x128xf32>
    %133 = arith.addf %132, %131 : vector<8x128xf32>
    %134 = arith.divf %132, %133 : vector<8x128xf32>
    %135 = arith.mulf %126, %114 : vector<8x128xf32>
    %136 = arith.mulf %120, %128 : vector<8x128xf32>
    %137 = arith.addf %135, %136 : vector<8x128xf32>
    %138 = math.tanh %137 : vector<8x128xf32>
    %139 = arith.mulf %134, %138 : vector<8x128xf32>
    %c0_71 = arith.constant 0 : index
    %c0_72 = arith.constant 0 : index
    %140 = vector.load %arg11[%c0_71, %c0_72] : memref<8x128xf32, #tpu.memory_space<vmem>>, vector<8x128xf32>
    %141 = vector.extract_strided_slice %113 {offsets = [0, 0], sizes = [8, 128], strides = [1, 1]} : vector<8x512xf32> to vector<8x128xf32>
    %142 = arith.negf %141 : vector<8x128xf32>
    %143 = math.exp %142 : vector<8x128xf32>
    %cst_73 = arith.constant 1.000000e+00 : f32
    %144 = vector.broadcast %cst_73 : f32 to vector<8x128xf32>
    %145 = arith.addf %144, %143 : vector<8x128xf32>
    %146 = arith.divf %144, %145 : vector<8x128xf32>
    %147 = vector.extract_strided_slice %113 {offsets = [0, 128], sizes = [8, 128], strides = [1, 1]} : vector<8x512xf32> to vector<8x128xf32>
    %148 = arith.negf %147 : vector<8x128xf32>
    %149 = math.exp %148 : vector<8x128xf32>
    %cst_74 = arith.constant 1.000000e+00 : f32
    %150 = vector.broadcast %cst_74 : f32 to vector<8x128xf32>
    %151 = arith.addf %150, %149 : vector<8x128xf32>
    %152 = arith.divf %150, %151 : vector<8x128xf32>
    %153 = vector.extract_strided_slice %113 {offsets = [0, 256], sizes = [8, 128], strides = [1, 1]} : vector<8x512xf32> to vector<8x128xf32>
    %154 = math.tanh %153 : vector<8x128xf32>
    %155 = vector.extract_strided_slice %113 {offsets = [0, 384], sizes = [8, 128], strides = [1, 1]} : vector<8x512xf32> to vector<8x128xf32>
    %156 = arith.negf %155 : vector<8x128xf32>
    %157 = math.exp %156 : vector<8x128xf32>
    %cst_75 = arith.constant 1.000000e+00 : f32
    %158 = vector.broadcast %cst_75 : f32 to vector<8x128xf32>
    %159 = arith.addf %158, %157 : vector<8x128xf32>
    %160 = arith.divf %158, %159 : vector<8x128xf32>
    %161 = arith.mulf %152, %140 : vector<8x128xf32>
    %162 = arith.mulf %146, %154 : vector<8x128xf32>
    %163 = arith.addf %161, %162 : vector<8x128xf32>
    %164 = math.tanh %163 : vector<8x128xf32>
    %165 = arith.mulf %160, %164 : vector<8x128xf32>
    %c0_76 = arith.constant 0 : index
    %c0_77 = arith.constant 0 : index
    %166 = vector.load %arg10[%c0_76, %c0_77] : memref<8x128xf32, #tpu.memory_space<vmem>>, vector<8x128xf32>
    tpu.vector_store %arg10[%c0_76, %c0_77], %137 {strides = array<i32>} : memref<8x128xf32, #tpu.memory_space<vmem>>, vector<8x128xf32>,
    %c0_78 = arith.constant 0 : index
    %c0_79 = arith.constant 0 : index
    %167 = vector.load %arg11[%c0_78, %c0_79] : memref<8x128xf32, #tpu.memory_space<vmem>>, vector<8x128xf32>
    tpu.vector_store %arg11[%c0_78, %c0_79], %163 {strides = array<i32>} : memref<8x128xf32, #tpu.memory_space<vmem>>, vector<8x128xf32>,
    %168 = arith.truncf %139 : vector<8x128xf32> to vector<8x128xbf16>
    %c0_80 = arith.constant 0 : index
    %c0_81 = arith.constant 0 : index
    %169 = vector.load %arg8[%c0_80, %c0_81] : memref<8x128xbf16, #tpu.memory_space<vmem>>, vector<8x128xbf16>
    tpu.vector_store %arg8[%c0_80, %c0_81], %168 {strides = array<i32>} : memref<8x128xbf16, #tpu.memory_space<vmem>>, vector<8x128xbf16>,
    %170 = arith.truncf %165 : vector<8x128xf32> to vector<8x128xbf16>
    %c0_82 = arith.constant 0 : index
    %c0_83 = arith.constant 0 : index
    %171 = vector.load %arg9[%c0_82, %c0_83] : memref<8x128xbf16, #tpu.memory_space<vmem>>, vector<8x128xbf16>
    tpu.vector_store %arg9[%c0_82, %c0_83], %170 {strides = array<i32>} : memref<8x128xbf16, #tpu.memory_space<vmem>>, vector<8x128xbf16>,
    %172 = arith.index_cast %100 : i32 to index
    %c0_84 = arith.constant 0 : index
    %173 = vector.load %arg12[%172, %c0_84] : memref<64x128xf32, #tpu.memory_space<vmem>>, vector<8x128xf32>
    tpu.vector_store %arg12[%172, %c0_84], %139 {strides = array<i32>} : memref<64x128xf32, #tpu.memory_space<vmem>>, vector<8x128xf32>,
    %174 = arith.index_cast %103 : i32 to index
    %c0_85 = arith.constant 0 : index
    %175 = vector.load %arg13[%174, %c0_85] : memref<64x128xf32, #tpu.memory_space<vmem>>, vector<8x128xf32>
    tpu.vector_store %arg13[%174, %c0_85], %165 {strides = array<i32>} : memref<64x128xf32, #tpu.memory_space<vmem>>, vector<8x128xf32>,
    %c2_i32 = arith.constant 2 : i32
    %c8_i32_86 = arith.constant 8 : i32
    %176 = arith.muli %c2_i32, %c8_i32_86 : i32
    %177 = tpu.assume_multiple %176, 8 : i32
    %c7_i32_87 = arith.constant 7 : i32
    %178 = arith.subi %c7_i32_87, %c2_i32 : i32
    %c8_i32_88 = arith.constant 8 : i32
    %179 = arith.muli %178, %c8_i32_88 : i32
    %180 = tpu.assume_multiple %179, 8 : i32
    %c0_89 = arith.constant 0 : index
    %c0_90 = arith.constant 0 : index
    %181 = vector.load %arg8[%c0_89, %c0_90] : memref<8x128xbf16, #tpu.memory_space<vmem>>, vector<8x128xbf16>
    %cst_91 = arith.constant dense<0.000000e+00> : vector<8x512xf32>
    %182 = tpu.matmul %181, %19, %cst_91 {dimension_numbers = #tpu.dot_dimension_numbers<[1], [0], [0], [1], [0, 0, 1, 1], [], []>} : vector<8x128xbf16>, vector<128x512xbf16>, vector<8x512xf32> -> vector<8x512xf32>
    %c0_92 = arith.constant 0 : index
    %c0_93 = arith.constant 0 : index
    %183 = vector.load %arg9[%c0_92, %c0_93] : memref<8x128xbf16, #tpu.memory_space<vmem>>, vector<8x128xbf16>
    %cst_94 = arith.constant dense<0.000000e+00> : vector<8x512xf32>
    %184 = tpu.matmul %183, %21, %cst_94 {dimension_numbers = #tpu.dot_dimension_numbers<[1], [0], [0], [1], [0, 0, 1, 1], [], []>} : vector<8x128xbf16>, vector<128x512xbf16>, vector<8x512xf32> -> vector<8x512xf32>
    %185 = arith.index_cast %177 : i32 to index
    %c0_95 = arith.constant 0 : index
    %186 = vector.load %arg6[%185, %c0_95] : memref<64x512xf32, #tpu.memory_space<vmem>>, vector<8x512xf32>
    %187 = arith.addf %186, %182 : vector<8x512xf32>
    %188 = arith.index_cast %180 : i32 to index
    %c0_96 = arith.constant 0 : index
    %189 = vector.load %arg7[%188, %c0_96] : memref<64x512xf32, #tpu.memory_space<vmem>>, vector<8x512xf32>
    %190 = arith.addf %189, %184 : vector<8x512xf32>
    %c0_97 = arith.constant 0 : index
    %c0_98 = arith.constant 0 : index
    %191 = vector.load %arg10[%c0_97, %c0_98] : memref<8x128xf32, #tpu.memory_space<vmem>>, vector<8x128xf32>
    %192 = vector.extract_strided_slice %187 {offsets = [0, 0], sizes = [8, 128], strides = [1, 1]} : vector<8x512xf32> to vector<8x128xf32>
    %193 = arith.negf %192 : vector<8x128xf32>
    %194 = math.exp %193 : vector<8x128xf32>
    %cst_99 = arith.constant 1.000000e+00 : f32
    %195 = vector.broadcast %cst_99 : f32 to vector<8x128xf32>
    %196 = arith.addf %195, %194 : vector<8x128xf32>
    %197 = arith.divf %195, %196 : vector<8x128xf32>
    %198 = vector.extract_strided_slice %187 {offsets = [0, 128], sizes = [8, 128], strides = [1, 1]} : vector<8x512xf32> to vector<8x128xf32>
    %199 = arith.negf %198 : vector<8x128xf32>
    %200 = math.exp %199 : vector<8x128xf32>
    %cst_100 = arith.constant 1.000000e+00 : f32
    %201 = vector.broadcast %cst_100 : f32 to vector<8x128xf32>
    %202 = arith.addf %201, %200 : vector<8x128xf32>
    %203 = arith.divf %201, %202 : vector<8x128xf32>
    %204 = vector.extract_strided_slice %187 {offsets = [0, 256], sizes = [8, 128], strides = [1, 1]} : vector<8x512xf32> to vector<8x128xf32>
    %205 = math.tanh %204 : vector<8x128xf32>
    %206 = vector.extract_strided_slice %187 {offsets = [0, 384], sizes = [8, 128], strides = [1, 1]} : vector<8x512xf32> to vector<8x128xf32>
    %207 = arith.negf %206 : vector<8x128xf32>
    %208 = math.exp %207 : vector<8x128xf32>
    %cst_101 = arith.constant 1.000000e+00 : f32
    %209 = vector.broadcast %cst_101 : f32 to vector<8x128xf32>
    %210 = arith.addf %209, %208 : vector<8x128xf32>
    %211 = arith.divf %209, %210 : vector<8x128xf32>
    %212 = arith.mulf %203, %191 : vector<8x128xf32>
    %213 = arith.mulf %197, %205 : vector<8x128xf32>
    %214 = arith.addf %212, %213 : vector<8x128xf32>
    %215 = math.tanh %214 : vector<8x128xf32>
    %216 = arith.mulf %211, %215 : vector<8x128xf32>
    %c0_102 = arith.constant 0 : index
    %c0_103 = arith.constant 0 : index
    %217 = vector.load %arg11[%c0_102, %c0_103] : memref<8x128xf32, #tpu.memory_space<vmem>>, vector<8x128xf32>
    %218 = vector.extract_strided_slice %190 {offsets = [0, 0], sizes = [8, 128], strides = [1, 1]} : vector<8x512xf32> to vector<8x128xf32>
    %219 = arith.negf %218 : vector<8x128xf32>
    %220 = math.exp %219 : vector<8x128xf32>
    %cst_104 = arith.constant 1.000000e+00 : f32
    %221 = vector.broadcast %cst_104 : f32 to vector<8x128xf32>
    %222 = arith.addf %221, %220 : vector<8x128xf32>
    %223 = arith.divf %221, %222 : vector<8x128xf32>
    %224 = vector.extract_strided_slice %190 {offsets = [0, 128], sizes = [8, 128], strides = [1, 1]} : vector<8x512xf32> to vector<8x128xf32>
    %225 = arith.negf %224 : vector<8x128xf32>
    %226 = math.exp %225 : vector<8x128xf32>
    %cst_105 = arith.constant 1.000000e+00 : f32
    %227 = vector.broadcast %cst_105 : f32 to vector<8x128xf32>
    %228 = arith.addf %227, %226 : vector<8x128xf32>
    %229 = arith.divf %227, %228 : vector<8x128xf32>
    %230 = vector.extract_strided_slice %190 {offsets = [0, 256], sizes = [8, 128], strides = [1, 1]} : vector<8x512xf32> to vector<8x128xf32>
    %231 = math.tanh %230 : vector<8x128xf32>
    %232 = vector.extract_strided_slice %190 {offsets = [0, 384], sizes = [8, 128], strides = [1, 1]} : vector<8x512xf32> to vector<8x128xf32>
    %233 = arith.negf %232 : vector<8x128xf32>
    %234 = math.exp %233 : vector<8x128xf32>
    %cst_106 = arith.constant 1.000000e+00 : f32
    %235 = vector.broadcast %cst_106 : f32 to vector<8x128xf32>
    %236 = arith.addf %235, %234 : vector<8x128xf32>
    %237 = arith.divf %235, %236 : vector<8x128xf32>
    %238 = arith.mulf %229, %217 : vector<8x128xf32>
    %239 = arith.mulf %223, %231 : vector<8x128xf32>
    %240 = arith.addf %238, %239 : vector<8x128xf32>
    %241 = math.tanh %240 : vector<8x128xf32>
    %242 = arith.mulf %237, %241 : vector<8x128xf32>
    %c0_107 = arith.constant 0 : index
    %c0_108 = arith.constant 0 : index
    %243 = vector.load %arg10[%c0_107, %c0_108] : memref<8x128xf32, #tpu.memory_space<vmem>>, vector<8x128xf32>
    tpu.vector_store %arg10[%c0_107, %c0_108], %214 {strides = array<i32>} : memref<8x128xf32, #tpu.memory_space<vmem>>, vector<8x128xf32>,
    %c0_109 = arith.constant 0 : index
    %c0_110 = arith.constant 0 : index
    %244 = vector.load %arg11[%c0_109, %c0_110] : memref<8x128xf32, #tpu.memory_space<vmem>>, vector<8x128xf32>
    tpu.vector_store %arg11[%c0_109, %c0_110], %240 {strides = array<i32>} : memref<8x128xf32, #tpu.memory_space<vmem>>, vector<8x128xf32>,
    %245 = arith.truncf %216 : vector<8x128xf32> to vector<8x128xbf16>
    %c0_111 = arith.constant 0 : index
    %c0_112 = arith.constant 0 : index
    %246 = vector.load %arg8[%c0_111, %c0_112] : memref<8x128xbf16, #tpu.memory_space<vmem>>, vector<8x128xbf16>
    tpu.vector_store %arg8[%c0_111, %c0_112], %245 {strides = array<i32>} : memref<8x128xbf16, #tpu.memory_space<vmem>>, vector<8x128xbf16>,
    %247 = arith.truncf %242 : vector<8x128xf32> to vector<8x128xbf16>
    %c0_113 = arith.constant 0 : index
    %c0_114 = arith.constant 0 : index
    %248 = vector.load %arg9[%c0_113, %c0_114] : memref<8x128xbf16, #tpu.memory_space<vmem>>, vector<8x128xbf16>
    tpu.vector_store %arg9[%c0_113, %c0_114], %247 {strides = array<i32>} : memref<8x128xbf16, #tpu.memory_space<vmem>>, vector<8x128xbf16>,
    %249 = arith.index_cast %177 : i32 to index
    %c0_115 = arith.constant 0 : index
    %250 = vector.load %arg12[%249, %c0_115] : memref<64x128xf32, #tpu.memory_space<vmem>>, vector<8x128xf32>
    tpu.vector_store %arg12[%249, %c0_115], %216 {strides = array<i32>} : memref<64x128xf32, #tpu.memory_space<vmem>>, vector<8x128xf32>,
    %251 = arith.index_cast %180 : i32 to index
    %c0_116 = arith.constant 0 : index
    %252 = vector.load %arg13[%251, %c0_116] : memref<64x128xf32, #tpu.memory_space<vmem>>, vector<8x128xf32>
    tpu.vector_store %arg13[%251, %c0_116], %242 {strides = array<i32>} : memref<64x128xf32, #tpu.memory_space<vmem>>, vector<8x128xf32>,
    %c3_i32 = arith.constant 3 : i32
    %c8_i32_117 = arith.constant 8 : i32
    %253 = arith.muli %c3_i32, %c8_i32_117 : i32
    %254 = tpu.assume_multiple %253, 8 : i32
    %c7_i32_118 = arith.constant 7 : i32
    %255 = arith.subi %c7_i32_118, %c3_i32 : i32
    %c8_i32_119 = arith.constant 8 : i32
    %256 = arith.muli %255, %c8_i32_119 : i32
    %257 = tpu.assume_multiple %256, 8 : i32
    %c0_120 = arith.constant 0 : index
    %c0_121 = arith.constant 0 : index
    %258 = vector.load %arg8[%c0_120, %c0_121] : memref<8x128xbf16, #tpu.memory_space<vmem>>, vector<8x128xbf16>
    %cst_122 = arith.constant dense<0.000000e+00> : vector<8x512xf32>
    %259 = tpu.matmul %258, %19, %cst_122 {dimension_numbers = #tpu.dot_dimension_numbers<[1], [0], [0], [1], [0, 0, 1, 1], [], []>} : vector<8x128xbf16>, vector<128x512xbf16>, vector<8x512xf32> -> vector<8x512xf32>
    %c0_123 = arith.constant 0 : index
    %c0_124 = arith.constant 0 : index
    %260 = vector.load %arg9[%c0_123, %c0_124] : memref<8x128xbf16, #tpu.memory_space<vmem>>, vector<8x128xbf16>
    %cst_125 = arith.constant dense<0.000000e+00> : vector<8x512xf32>
    %261 = tpu.matmul %260, %21, %cst_125 {dimension_numbers = #tpu.dot_dimension_numbers<[1], [0], [0], [1], [0, 0, 1, 1], [], []>} : vector<8x128xbf16>, vector<128x512xbf16>, vector<8x512xf32> -> vector<8x512xf32>
    %262 = arith.index_cast %254 : i32 to index
    %c0_126 = arith.constant 0 : index
    %263 = vector.load %arg6[%262, %c0_126] : memref<64x512xf32, #tpu.memory_space<vmem>>, vector<8x512xf32>
    %264 = arith.addf %263, %259 : vector<8x512xf32>
    %265 = arith.index_cast %257 : i32 to index
    %c0_127 = arith.constant 0 : index
    %266 = vector.load %arg7[%265, %c0_127] : memref<64x512xf32, #tpu.memory_space<vmem>>, vector<8x512xf32>
    %267 = arith.addf %266, %261 : vector<8x512xf32>
    %c0_128 = arith.constant 0 : index
    %c0_129 = arith.constant 0 : index
    %268 = vector.load %arg10[%c0_128, %c0_129] : memref<8x128xf32, #tpu.memory_space<vmem>>, vector<8x128xf32>
    %269 = vector.extract_strided_slice %264 {offsets = [0, 0], sizes = [8, 128], strides = [1, 1]} : vector<8x512xf32> to vector<8x128xf32>
    %270 = arith.negf %269 : vector<8x128xf32>
    %271 = math.exp %270 : vector<8x128xf32>
    %cst_130 = arith.constant 1.000000e+00 : f32
    %272 = vector.broadcast %cst_130 : f32 to vector<8x128xf32>
    %273 = arith.addf %272, %271 : vector<8x128xf32>
    %274 = arith.divf %272, %273 : vector<8x128xf32>
    %275 = vector.extract_strided_slice %264 {offsets = [0, 128], sizes = [8, 128], strides = [1, 1]} : vector<8x512xf32> to vector<8x128xf32>
    %276 = arith.negf %275 : vector<8x128xf32>
    %277 = math.exp %276 : vector<8x128xf32>
    %cst_131 = arith.constant 1.000000e+00 : f32
    %278 = vector.broadcast %cst_131 : f32 to vector<8x128xf32>
    %279 = arith.addf %278, %277 : vector<8x128xf32>
    %280 = arith.divf %278, %279 : vector<8x128xf32>
    %281 = vector.extract_strided_slice %264 {offsets = [0, 256], sizes = [8, 128], strides = [1, 1]} : vector<8x512xf32> to vector<8x128xf32>
    %282 = math.tanh %281 : vector<8x128xf32>
    %283 = vector.extract_strided_slice %264 {offsets = [0, 384], sizes = [8, 128], strides = [1, 1]} : vector<8x512xf32> to vector<8x128xf32>
    %284 = arith.negf %283 : vector<8x128xf32>
    %285 = math.exp %284 : vector<8x128xf32>
    %cst_132 = arith.constant 1.000000e+00 : f32
    %286 = vector.broadcast %cst_132 : f32 to vector<8x128xf32>
    %287 = arith.addf %286, %285 : vector<8x128xf32>
    %288 = arith.divf %286, %287 : vector<8x128xf32>
    %289 = arith.mulf %280, %268 : vector<8x128xf32>
    %290 = arith.mulf %274, %282 : vector<8x128xf32>
    %291 = arith.addf %289, %290 : vector<8x128xf32>
    %292 = math.tanh %291 : vector<8x128xf32>
    %293 = arith.mulf %288, %292 : vector<8x128xf32>
    %c0_133 = arith.constant 0 : index
    %c0_134 = arith.constant 0 : index
    %294 = vector.load %arg11[%c0_133, %c0_134] : memref<8x128xf32, #tpu.memory_space<vmem>>, vector<8x128xf32>
    %295 = vector.extract_strided_slice %267 {offsets = [0, 0], sizes = [8, 128], strides = [1, 1]} : vector<8x512xf32> to vector<8x128xf32>
    %296 = arith.negf %295 : vector<8x128xf32>
    %297 = math.exp %296 : vector<8x128xf32>
    %cst_135 = arith.constant 1.000000e+00 : f32
    %298 = vector.broadcast %cst_135 : f32 to vector<8x128xf32>
    %299 = arith.addf %298, %297 : vector<8x128xf32>
    %300 = arith.divf %298, %299 : vector<8x128xf32>
    %301 = vector.extract_strided_slice %267 {offsets = [0, 128], sizes = [8, 128], strides = [1, 1]} : vector<8x512xf32> to vector<8x128xf32>
    %302 = arith.negf %301 : vector<8x128xf32>
    %303 = math.exp %302 : vector<8x128xf32>
    %cst_136 = arith.constant 1.000000e+00 : f32
    %304 = vector.broadcast %cst_136 : f32 to vector<8x128xf32>
    %305 = arith.addf %304, %303 : vector<8x128xf32>
    %306 = arith.divf %304, %305 : vector<8x128xf32>
    %307 = vector.extract_strided_slice %267 {offsets = [0, 256], sizes = [8, 128], strides = [1, 1]} : vector<8x512xf32> to vector<8x128xf32>
    %308 = math.tanh %307 : vector<8x128xf32>
    %309 = vector.extract_strided_slice %267 {offsets = [0, 384], sizes = [8, 128], strides = [1, 1]} : vector<8x512xf32> to vector<8x128xf32>
    %310 = arith.negf %309 : vector<8x128xf32>
    %311 = math.exp %310 : vector<8x128xf32>
    %cst_137 = arith.constant 1.000000e+00 : f32
    %312 = vector.broadcast %cst_137 : f32 to vector<8x128xf32>
    %313 = arith.addf %312, %311 : vector<8x128xf32>
    %314 = arith.divf %312, %313 : vector<8x128xf32>
    %315 = arith.mulf %306, %294 : vector<8x128xf32>
    %316 = arith.mulf %300, %308 : vector<8x128xf32>
    %317 = arith.addf %315, %316 : vector<8x128xf32>
    %318 = math.tanh %317 : vector<8x128xf32>
    %319 = arith.mulf %314, %318 : vector<8x128xf32>
    %c0_138 = arith.constant 0 : index
    %c0_139 = arith.constant 0 : index
    %320 = vector.load %arg10[%c0_138, %c0_139] : memref<8x128xf32, #tpu.memory_space<vmem>>, vector<8x128xf32>
    tpu.vector_store %arg10[%c0_138, %c0_139], %291 {strides = array<i32>} : memref<8x128xf32, #tpu.memory_space<vmem>>, vector<8x128xf32>,
    %c0_140 = arith.constant 0 : index
    %c0_141 = arith.constant 0 : index
    %321 = vector.load %arg11[%c0_140, %c0_141] : memref<8x128xf32, #tpu.memory_space<vmem>>, vector<8x128xf32>
    tpu.vector_store %arg11[%c0_140, %c0_141], %317 {strides = array<i32>} : memref<8x128xf32, #tpu.memory_space<vmem>>, vector<8x128xf32>,
    %322 = arith.truncf %293 : vector<8x128xf32> to vector<8x128xbf16>
    %c0_142 = arith.constant 0 : index
    %c0_143 = arith.constant 0 : index
    %323 = vector.load %arg8[%c0_142, %c0_143] : memref<8x128xbf16, #tpu.memory_space<vmem>>, vector<8x128xbf16>
    tpu.vector_store %arg8[%c0_142, %c0_143], %322 {strides = array<i32>} : memref<8x128xbf16, #tpu.memory_space<vmem>>, vector<8x128xbf16>,
    %324 = arith.truncf %319 : vector<8x128xf32> to vector<8x128xbf16>
    %c0_144 = arith.constant 0 : index
    %c0_145 = arith.constant 0 : index
    %325 = vector.load %arg9[%c0_144, %c0_145] : memref<8x128xbf16, #tpu.memory_space<vmem>>, vector<8x128xbf16>
    tpu.vector_store %arg9[%c0_144, %c0_145], %324 {strides = array<i32>} : memref<8x128xbf16, #tpu.memory_space<vmem>>, vector<8x128xbf16>,
    %326 = arith.index_cast %254 : i32 to index
    %c0_146 = arith.constant 0 : index
    %327 = vector.load %arg12[%326, %c0_146] : memref<64x128xf32, #tpu.memory_space<vmem>>, vector<8x128xf32>
    tpu.vector_store %arg12[%326, %c0_146], %293 {strides = array<i32>} : memref<64x128xf32, #tpu.memory_space<vmem>>, vector<8x128xf32>,
    %328 = arith.index_cast %257 : i32 to index
    %c0_147 = arith.constant 0 : index
    %329 = vector.load %arg13[%328, %c0_147] : memref<64x128xf32, #tpu.memory_space<vmem>>, vector<8x128xf32>
    tpu.vector_store %arg13[%328, %c0_147], %319 {strides = array<i32>} : memref<64x128xf32, #tpu.memory_space<vmem>>, vector<8x128xf32>,
    %c4_i32 = arith.constant 4 : i32
    %c8_i32_148 = arith.constant 8 : i32
    %330 = arith.muli %c4_i32, %c8_i32_148 : i32
    %331 = tpu.assume_multiple %330, 8 : i32
    %c7_i32_149 = arith.constant 7 : i32
    %332 = arith.subi %c7_i32_149, %c4_i32 : i32
    %c8_i32_150 = arith.constant 8 : i32
    %333 = arith.muli %332, %c8_i32_150 : i32
    %334 = tpu.assume_multiple %333, 8 : i32
    %c0_151 = arith.constant 0 : index
    %c0_152 = arith.constant 0 : index
    %335 = vector.load %arg8[%c0_151, %c0_152] : memref<8x128xbf16, #tpu.memory_space<vmem>>, vector<8x128xbf16>
    %cst_153 = arith.constant dense<0.000000e+00> : vector<8x512xf32>
    %336 = tpu.matmul %335, %19, %cst_153 {dimension_numbers = #tpu.dot_dimension_numbers<[1], [0], [0], [1], [0, 0, 1, 1], [], []>} : vector<8x128xbf16>, vector<128x512xbf16>, vector<8x512xf32> -> vector<8x512xf32>
    %c0_154 = arith.constant 0 : index
    %c0_155 = arith.constant 0 : index
    %337 = vector.load %arg9[%c0_154, %c0_155] : memref<8x128xbf16, #tpu.memory_space<vmem>>, vector<8x128xbf16>
    %cst_156 = arith.constant dense<0.000000e+00> : vector<8x512xf32>
    %338 = tpu.matmul %337, %21, %cst_156 {dimension_numbers = #tpu.dot_dimension_numbers<[1], [0], [0], [1], [0, 0, 1, 1], [], []>} : vector<8x128xbf16>, vector<128x512xbf16>, vector<8x512xf32> -> vector<8x512xf32>
    %339 = arith.index_cast %331 : i32 to index
    %c0_157 = arith.constant 0 : index
    %340 = vector.load %arg6[%339, %c0_157] : memref<64x512xf32, #tpu.memory_space<vmem>>, vector<8x512xf32>
    %341 = arith.addf %340, %336 : vector<8x512xf32>
    %342 = arith.index_cast %334 : i32 to index
    %c0_158 = arith.constant 0 : index
    %343 = vector.load %arg7[%342, %c0_158] : memref<64x512xf32, #tpu.memory_space<vmem>>, vector<8x512xf32>
    %344 = arith.addf %343, %338 : vector<8x512xf32>
    %c0_159 = arith.constant 0 : index
    %c0_160 = arith.constant 0 : index
    %345 = vector.load %arg10[%c0_159, %c0_160] : memref<8x128xf32, #tpu.memory_space<vmem>>, vector<8x128xf32>
    %346 = vector.extract_strided_slice %341 {offsets = [0, 0], sizes = [8, 128], strides = [1, 1]} : vector<8x512xf32> to vector<8x128xf32>
    %347 = arith.negf %346 : vector<8x128xf32>
    %348 = math.exp %347 : vector<8x128xf32>
    %cst_161 = arith.constant 1.000000e+00 : f32
    %349 = vector.broadcast %cst_161 : f32 to vector<8x128xf32>
    %350 = arith.addf %349, %348 : vector<8x128xf32>
    %351 = arith.divf %349, %350 : vector<8x128xf32>
    %352 = vector.extract_strided_slice %341 {offsets = [0, 128], sizes = [8, 128], strides = [1, 1]} : vector<8x512xf32> to vector<8x128xf32>
    %353 = arith.negf %352 : vector<8x128xf32>
    %354 = math.exp %353 : vector<8x128xf32>
    %cst_162 = arith.constant 1.000000e+00 : f32
    %355 = vector.broadcast %cst_162 : f32 to vector<8x128xf32>
    %356 = arith.addf %355, %354 : vector<8x128xf32>
    %357 = arith.divf %355, %356 : vector<8x128xf32>
    %358 = vector.extract_strided_slice %341 {offsets = [0, 256], sizes = [8, 128], strides = [1, 1]} : vector<8x512xf32> to vector<8x128xf32>
    %359 = math.tanh %358 : vector<8x128xf32>
    %360 = vector.extract_strided_slice %341 {offsets = [0, 384], sizes = [8, 128], strides = [1, 1]} : vector<8x512xf32> to vector<8x128xf32>
    %361 = arith.negf %360 : vector<8x128xf32>
    %362 = math.exp %361 : vector<8x128xf32>
    %cst_163 = arith.constant 1.000000e+00 : f32
    %363 = vector.broadcast %cst_163 : f32 to vector<8x128xf32>
    %364 = arith.addf %363, %362 : vector<8x128xf32>
    %365 = arith.divf %363, %364 : vector<8x128xf32>
    %366 = arith.mulf %357, %345 : vector<8x128xf32>
    %367 = arith.mulf %351, %359 : vector<8x128xf32>
    %368 = arith.addf %366, %367 : vector<8x128xf32>
    %369 = math.tanh %368 : vector<8x128xf32>
    %370 = arith.mulf %365, %369 : vector<8x128xf32>
    %c0_164 = arith.constant 0 : index
    %c0_165 = arith.constant 0 : index
    %371 = vector.load %arg11[%c0_164, %c0_165] : memref<8x128xf32, #tpu.memory_space<vmem>>, vector<8x128xf32>
    %372 = vector.extract_strided_slice %344 {offsets = [0, 0], sizes = [8, 128], strides = [1, 1]} : vector<8x512xf32> to vector<8x128xf32>
    %373 = arith.negf %372 : vector<8x128xf32>
    %374 = math.exp %373 : vector<8x128xf32>
    %cst_166 = arith.constant 1.000000e+00 : f32
    %375 = vector.broadcast %cst_166 : f32 to vector<8x128xf32>
    %376 = arith.addf %375, %374 : vector<8x128xf32>
    %377 = arith.divf %375, %376 : vector<8x128xf32>
    %378 = vector.extract_strided_slice %344 {offsets = [0, 128], sizes = [8, 128], strides = [1, 1]} : vector<8x512xf32> to vector<8x128xf32>
    %379 = arith.negf %378 : vector<8x128xf32>
    %380 = math.exp %379 : vector<8x128xf32>
    %cst_167 = arith.constant 1.000000e+00 : f32
    %381 = vector.broadcast %cst_167 : f32 to vector<8x128xf32>
    %382 = arith.addf %381, %380 : vector<8x128xf32>
    %383 = arith.divf %381, %382 : vector<8x128xf32>
    %384 = vector.extract_strided_slice %344 {offsets = [0, 256], sizes = [8, 128], strides = [1, 1]} : vector<8x512xf32> to vector<8x128xf32>
    %385 = math.tanh %384 : vector<8x128xf32>
    %386 = vector.extract_strided_slice %344 {offsets = [0, 384], sizes = [8, 128], strides = [1, 1]} : vector<8x512xf32> to vector<8x128xf32>
    %387 = arith.negf %386 : vector<8x128xf32>
    %388 = math.exp %387 : vector<8x128xf32>
    %cst_168 = arith.constant 1.000000e+00 : f32
    %389 = vector.broadcast %cst_168 : f32 to vector<8x128xf32>
    %390 = arith.addf %389, %388 : vector<8x128xf32>
    %391 = arith.divf %389, %390 : vector<8x128xf32>
    %392 = arith.mulf %383, %371 : vector<8x128xf32>
    %393 = arith.mulf %377, %385 : vector<8x128xf32>
    %394 = arith.addf %392, %393 : vector<8x128xf32>
    %395 = math.tanh %394 : vector<8x128xf32>
    %396 = arith.mulf %391, %395 : vector<8x128xf32>
    %c0_169 = arith.constant 0 : index
    %c0_170 = arith.constant 0 : index
    %397 = vector.load %arg10[%c0_169, %c0_170] : memref<8x128xf32, #tpu.memory_space<vmem>>, vector<8x128xf32>
    tpu.vector_store %arg10[%c0_169, %c0_170], %368 {strides = array<i32>} : memref<8x128xf32, #tpu.memory_space<vmem>>, vector<8x128xf32>,
    %c0_171 = arith.constant 0 : index
    %c0_172 = arith.constant 0 : index
    %398 = vector.load %arg11[%c0_171, %c0_172] : memref<8x128xf32, #tpu.memory_space<vmem>>, vector<8x128xf32>
    tpu.vector_store %arg11[%c0_171, %c0_172], %394 {strides = array<i32>} : memref<8x128xf32, #tpu.memory_space<vmem>>, vector<8x128xf32>,
    %399 = arith.truncf %370 : vector<8x128xf32> to vector<8x128xbf16>
    %c0_173 = arith.constant 0 : index
    %c0_174 = arith.constant 0 : index
    %400 = vector.load %arg8[%c0_173, %c0_174] : memref<8x128xbf16, #tpu.memory_space<vmem>>, vector<8x128xbf16>
    tpu.vector_store %arg8[%c0_173, %c0_174], %399 {strides = array<i32>} : memref<8x128xbf16, #tpu.memory_space<vmem>>, vector<8x128xbf16>,
    %401 = arith.truncf %396 : vector<8x128xf32> to vector<8x128xbf16>
    %c0_175 = arith.constant 0 : index
    %c0_176 = arith.constant 0 : index
    %402 = vector.load %arg9[%c0_175, %c0_176] : memref<8x128xbf16, #tpu.memory_space<vmem>>, vector<8x128xbf16>
    tpu.vector_store %arg9[%c0_175, %c0_176], %401 {strides = array<i32>} : memref<8x128xbf16, #tpu.memory_space<vmem>>, vector<8x128xbf16>,
    %403 = arith.index_cast %331 : i32 to index
    %c0_177 = arith.constant 0 : index
    %404 = vector.load %arg12[%403, %c0_177] : memref<64x128xf32, #tpu.memory_space<vmem>>, vector<8x128xf32>
    tpu.vector_store %arg12[%403, %c0_177], %370 {strides = array<i32>} : memref<64x128xf32, #tpu.memory_space<vmem>>, vector<8x128xf32>,
    %405 = arith.index_cast %334 : i32 to index
    %c0_178 = arith.constant 0 : index
    %406 = vector.load %arg13[%405, %c0_178] : memref<64x128xf32, #tpu.memory_space<vmem>>, vector<8x128xf32>
    tpu.vector_store %arg13[%405, %c0_178], %396 {strides = array<i32>} : memref<64x128xf32, #tpu.memory_space<vmem>>, vector<8x128xf32>,
    %c5_i32 = arith.constant 5 : i32
    %c8_i32_179 = arith.constant 8 : i32
    %407 = arith.muli %c5_i32, %c8_i32_179 : i32
    %408 = tpu.assume_multiple %407, 8 : i32
    %c7_i32_180 = arith.constant 7 : i32
    %409 = arith.subi %c7_i32_180, %c5_i32 : i32
    %c8_i32_181 = arith.constant 8 : i32
    %410 = arith.muli %409, %c8_i32_181 : i32
    %411 = tpu.assume_multiple %410, 8 : i32
    %c0_182 = arith.constant 0 : index
    %c0_183 = arith.constant 0 : index
    %412 = vector.load %arg8[%c0_182, %c0_183] : memref<8x128xbf16, #tpu.memory_space<vmem>>, vector<8x128xbf16>
    %cst_184 = arith.constant dense<0.000000e+00> : vector<8x512xf32>
    %413 = tpu.matmul %412, %19, %cst_184 {dimension_numbers = #tpu.dot_dimension_numbers<[1], [0], [0], [1], [0, 0, 1, 1], [], []>} : vector<8x128xbf16>, vector<128x512xbf16>, vector<8x512xf32> -> vector<8x512xf32>
    %c0_185 = arith.constant 0 : index
    %c0_186 = arith.constant 0 : index
    %414 = vector.load %arg9[%c0_185, %c0_186] : memref<8x128xbf16, #tpu.memory_space<vmem>>, vector<8x128xbf16>
    %cst_187 = arith.constant dense<0.000000e+00> : vector<8x512xf32>
    %415 = tpu.matmul %414, %21, %cst_187 {dimension_numbers = #tpu.dot_dimension_numbers<[1], [0], [0], [1], [0, 0, 1, 1], [], []>} : vector<8x128xbf16>, vector<128x512xbf16>, vector<8x512xf32> -> vector<8x512xf32>
    %416 = arith.index_cast %408 : i32 to index
    %c0_188 = arith.constant 0 : index
    %417 = vector.load %arg6[%416, %c0_188] : memref<64x512xf32, #tpu.memory_space<vmem>>, vector<8x512xf32>
    %418 = arith.addf %417, %413 : vector<8x512xf32>
    %419 = arith.index_cast %411 : i32 to index
    %c0_189 = arith.constant 0 : index
    %420 = vector.load %arg7[%419, %c0_189] : memref<64x512xf32, #tpu.memory_space<vmem>>, vector<8x512xf32>
    %421 = arith.addf %420, %415 : vector<8x512xf32>
    %c0_190 = arith.constant 0 : index
    %c0_191 = arith.constant 0 : index
    %422 = vector.load %arg10[%c0_190, %c0_191] : memref<8x128xf32, #tpu.memory_space<vmem>>, vector<8x128xf32>
    %423 = vector.extract_strided_slice %418 {offsets = [0, 0], sizes = [8, 128], strides = [1, 1]} : vector<8x512xf32> to vector<8x128xf32>
    %424 = arith.negf %423 : vector<8x128xf32>
    %425 = math.exp %424 : vector<8x128xf32>
    %cst_192 = arith.constant 1.000000e+00 : f32
    %426 = vector.broadcast %cst_192 : f32 to vector<8x128xf32>
    %427 = arith.addf %426, %425 : vector<8x128xf32>
    %428 = arith.divf %426, %427 : vector<8x128xf32>
    %429 = vector.extract_strided_slice %418 {offsets = [0, 128], sizes = [8, 128], strides = [1, 1]} : vector<8x512xf32> to vector<8x128xf32>
    %430 = arith.negf %429 : vector<8x128xf32>
    %431 = math.exp %430 : vector<8x128xf32>
    %cst_193 = arith.constant 1.000000e+00 : f32
    %432 = vector.broadcast %cst_193 : f32 to vector<8x128xf32>
    %433 = arith.addf %432, %431 : vector<8x128xf32>
    %434 = arith.divf %432, %433 : vector<8x128xf32>
    %435 = vector.extract_strided_slice %418 {offsets = [0, 256], sizes = [8, 128], strides = [1, 1]} : vector<8x512xf32> to vector<8x128xf32>
    %436 = math.tanh %435 : vector<8x128xf32>
    %437 = vector.extract_strided_slice %418 {offsets = [0, 384], sizes = [8, 128], strides = [1, 1]} : vector<8x512xf32> to vector<8x128xf32>
    %438 = arith.negf %437 : vector<8x128xf32>
    %439 = math.exp %438 : vector<8x128xf32>
    %cst_194 = arith.constant 1.000000e+00 : f32
    %440 = vector.broadcast %cst_194 : f32 to vector<8x128xf32>
    %441 = arith.addf %440, %439 : vector<8x128xf32>
    %442 = arith.divf %440, %441 : vector<8x128xf32>
    %443 = arith.mulf %434, %422 : vector<8x128xf32>
    %444 = arith.mulf %428, %436 : vector<8x128xf32>
    %445 = arith.addf %443, %444 : vector<8x128xf32>
    %446 = math.tanh %445 : vector<8x128xf32>
    %447 = arith.mulf %442, %446 : vector<8x128xf32>
    %c0_195 = arith.constant 0 : index
    %c0_196 = arith.constant 0 : index
    %448 = vector.load %arg11[%c0_195, %c0_196] : memref<8x128xf32, #tpu.memory_space<vmem>>, vector<8x128xf32>
    %449 = vector.extract_strided_slice %421 {offsets = [0, 0], sizes = [8, 128], strides = [1, 1]} : vector<8x512xf32> to vector<8x128xf32>
    %450 = arith.negf %449 : vector<8x128xf32>
    %451 = math.exp %450 : vector<8x128xf32>
    %cst_197 = arith.constant 1.000000e+00 : f32
    %452 = vector.broadcast %cst_197 : f32 to vector<8x128xf32>
    %453 = arith.addf %452, %451 : vector<8x128xf32>
    %454 = arith.divf %452, %453 : vector<8x128xf32>
    %455 = vector.extract_strided_slice %421 {offsets = [0, 128], sizes = [8, 128], strides = [1, 1]} : vector<8x512xf32> to vector<8x128xf32>
    %456 = arith.negf %455 : vector<8x128xf32>
    %457 = math.exp %456 : vector<8x128xf32>
    %cst_198 = arith.constant 1.000000e+00 : f32
    %458 = vector.broadcast %cst_198 : f32 to vector<8x128xf32>
    %459 = arith.addf %458, %457 : vector<8x128xf32>
    %460 = arith.divf %458, %459 : vector<8x128xf32>
    %461 = vector.extract_strided_slice %421 {offsets = [0, 256], sizes = [8, 128], strides = [1, 1]} : vector<8x512xf32> to vector<8x128xf32>
    %462 = math.tanh %461 : vector<8x128xf32>
    %463 = vector.extract_strided_slice %421 {offsets = [0, 384], sizes = [8, 128], strides = [1, 1]} : vector<8x512xf32> to vector<8x128xf32>
    %464 = arith.negf %463 : vector<8x128xf32>
    %465 = math.exp %464 : vector<8x128xf32>
    %cst_199 = arith.constant 1.000000e+00 : f32
    %466 = vector.broadcast %cst_199 : f32 to vector<8x128xf32>
    %467 = arith.addf %466, %465 : vector<8x128xf32>
    %468 = arith.divf %466, %467 : vector<8x128xf32>
    %469 = arith.mulf %460, %448 : vector<8x128xf32>
    %470 = arith.mulf %454, %462 : vector<8x128xf32>
    %471 = arith.addf %469, %470 : vector<8x128xf32>
    %472 = math.tanh %471 : vector<8x128xf32>
    %473 = arith.mulf %468, %472 : vector<8x128xf32>
    %c0_200 = arith.constant 0 : index
    %c0_201 = arith.constant 0 : index
    %474 = vector.load %arg10[%c0_200, %c0_201] : memref<8x128xf32, #tpu.memory_space<vmem>>, vector<8x128xf32>
    tpu.vector_store %arg10[%c0_200, %c0_201], %445 {strides = array<i32>} : memref<8x128xf32, #tpu.memory_space<vmem>>, vector<8x128xf32>,
    %c0_202 = arith.constant 0 : index
    %c0_203 = arith.constant 0 : index
    %475 = vector.load %arg11[%c0_202, %c0_203] : memref<8x128xf32, #tpu.memory_space<vmem>>, vector<8x128xf32>
    tpu.vector_store %arg11[%c0_202, %c0_203], %471 {strides = array<i32>} : memref<8x128xf32, #tpu.memory_space<vmem>>, vector<8x128xf32>,
    %476 = arith.truncf %447 : vector<8x128xf32> to vector<8x128xbf16>
    %c0_204 = arith.constant 0 : index
    %c0_205 = arith.constant 0 : index
    %477 = vector.load %arg8[%c0_204, %c0_205] : memref<8x128xbf16, #tpu.memory_space<vmem>>, vector<8x128xbf16>
    tpu.vector_store %arg8[%c0_204, %c0_205], %476 {strides = array<i32>} : memref<8x128xbf16, #tpu.memory_space<vmem>>, vector<8x128xbf16>,
    %478 = arith.truncf %473 : vector<8x128xf32> to vector<8x128xbf16>
    %c0_206 = arith.constant 0 : index
    %c0_207 = arith.constant 0 : index
    %479 = vector.load %arg9[%c0_206, %c0_207] : memref<8x128xbf16, #tpu.memory_space<vmem>>, vector<8x128xbf16>
    tpu.vector_store %arg9[%c0_206, %c0_207], %478 {strides = array<i32>} : memref<8x128xbf16, #tpu.memory_space<vmem>>, vector<8x128xbf16>,
    %480 = arith.index_cast %408 : i32 to index
    %c0_208 = arith.constant 0 : index
    %481 = vector.load %arg12[%480, %c0_208] : memref<64x128xf32, #tpu.memory_space<vmem>>, vector<8x128xf32>
    tpu.vector_store %arg12[%480, %c0_208], %447 {strides = array<i32>} : memref<64x128xf32, #tpu.memory_space<vmem>>, vector<8x128xf32>,
    %482 = arith.index_cast %411 : i32 to index
    %c0_209 = arith.constant 0 : index
    %483 = vector.load %arg13[%482, %c0_209] : memref<64x128xf32, #tpu.memory_space<vmem>>, vector<8x128xf32>
    tpu.vector_store %arg13[%482, %c0_209], %473 {strides = array<i32>} : memref<64x128xf32, #tpu.memory_space<vmem>>, vector<8x128xf32>,
    %c6_i32 = arith.constant 6 : i32
    %c8_i32_210 = arith.constant 8 : i32
    %484 = arith.muli %c6_i32, %c8_i32_210 : i32
    %485 = tpu.assume_multiple %484, 8 : i32
    %c7_i32_211 = arith.constant 7 : i32
    %486 = arith.subi %c7_i32_211, %c6_i32 : i32
    %c8_i32_212 = arith.constant 8 : i32
    %487 = arith.muli %486, %c8_i32_212 : i32
    %488 = tpu.assume_multiple %487, 8 : i32
    %c0_213 = arith.constant 0 : index
    %c0_214 = arith.constant 0 : index
    %489 = vector.load %arg8[%c0_213, %c0_214] : memref<8x128xbf16, #tpu.memory_space<vmem>>, vector<8x128xbf16>
    %cst_215 = arith.constant dense<0.000000e+00> : vector<8x512xf32>
    %490 = tpu.matmul %489, %19, %cst_215 {dimension_numbers = #tpu.dot_dimension_numbers<[1], [0], [0], [1], [0, 0, 1, 1], [], []>} : vector<8x128xbf16>, vector<128x512xbf16>, vector<8x512xf32> -> vector<8x512xf32>
    %c0_216 = arith.constant 0 : index
    %c0_217 = arith.constant 0 : index
    %491 = vector.load %arg9[%c0_216, %c0_217] : memref<8x128xbf16, #tpu.memory_space<vmem>>, vector<8x128xbf16>
    %cst_218 = arith.constant dense<0.000000e+00> : vector<8x512xf32>
    %492 = tpu.matmul %491, %21, %cst_218 {dimension_numbers = #tpu.dot_dimension_numbers<[1], [0], [0], [1], [0, 0, 1, 1], [], []>} : vector<8x128xbf16>, vector<128x512xbf16>, vector<8x512xf32> -> vector<8x512xf32>
    %493 = arith.index_cast %485 : i32 to index
    %c0_219 = arith.constant 0 : index
    %494 = vector.load %arg6[%493, %c0_219] : memref<64x512xf32, #tpu.memory_space<vmem>>, vector<8x512xf32>
    %495 = arith.addf %494, %490 : vector<8x512xf32>
    %496 = arith.index_cast %488 : i32 to index
    %c0_220 = arith.constant 0 : index
    %497 = vector.load %arg7[%496, %c0_220] : memref<64x512xf32, #tpu.memory_space<vmem>>, vector<8x512xf32>
    %498 = arith.addf %497, %492 : vector<8x512xf32>
    %c0_221 = arith.constant 0 : index
    %c0_222 = arith.constant 0 : index
    %499 = vector.load %arg10[%c0_221, %c0_222] : memref<8x128xf32, #tpu.memory_space<vmem>>, vector<8x128xf32>
    %500 = vector.extract_strided_slice %495 {offsets = [0, 0], sizes = [8, 128], strides = [1, 1]} : vector<8x512xf32> to vector<8x128xf32>
    %501 = arith.negf %500 : vector<8x128xf32>
    %502 = math.exp %501 : vector<8x128xf32>
    %cst_223 = arith.constant 1.000000e+00 : f32
    %503 = vector.broadcast %cst_223 : f32 to vector<8x128xf32>
    %504 = arith.addf %503, %502 : vector<8x128xf32>
    %505 = arith.divf %503, %504 : vector<8x128xf32>
    %506 = vector.extract_strided_slice %495 {offsets = [0, 128], sizes = [8, 128], strides = [1, 1]} : vector<8x512xf32> to vector<8x128xf32>
    %507 = arith.negf %506 : vector<8x128xf32>
    %508 = math.exp %507 : vector<8x128xf32>
    %cst_224 = arith.constant 1.000000e+00 : f32
    %509 = vector.broadcast %cst_224 : f32 to vector<8x128xf32>
    %510 = arith.addf %509, %508 : vector<8x128xf32>
    %511 = arith.divf %509, %510 : vector<8x128xf32>
    %512 = vector.extract_strided_slice %495 {offsets = [0, 256], sizes = [8, 128], strides = [1, 1]} : vector<8x512xf32> to vector<8x128xf32>
    %513 = math.tanh %512 : vector<8x128xf32>
    %514 = vector.extract_strided_slice %495 {offsets = [0, 384], sizes = [8, 128], strides = [1, 1]} : vector<8x512xf32> to vector<8x128xf32>
    %515 = arith.negf %514 : vector<8x128xf32>
    %516 = math.exp %515 : vector<8x128xf32>
    %cst_225 = arith.constant 1.000000e+00 : f32
    %517 = vector.broadcast %cst_225 : f32 to vector<8x128xf32>
    %518 = arith.addf %517, %516 : vector<8x128xf32>
    %519 = arith.divf %517, %518 : vector<8x128xf32>
    %520 = arith.mulf %511, %499 : vector<8x128xf32>
    %521 = arith.mulf %505, %513 : vector<8x128xf32>
    %522 = arith.addf %520, %521 : vector<8x128xf32>
    %523 = math.tanh %522 : vector<8x128xf32>
    %524 = arith.mulf %519, %523 : vector<8x128xf32>
    %c0_226 = arith.constant 0 : index
    %c0_227 = arith.constant 0 : index
    %525 = vector.load %arg11[%c0_226, %c0_227] : memref<8x128xf32, #tpu.memory_space<vmem>>, vector<8x128xf32>
    %526 = vector.extract_strided_slice %498 {offsets = [0, 0], sizes = [8, 128], strides = [1, 1]} : vector<8x512xf32> to vector<8x128xf32>
    %527 = arith.negf %526 : vector<8x128xf32>
    %528 = math.exp %527 : vector<8x128xf32>
    %cst_228 = arith.constant 1.000000e+00 : f32
    %529 = vector.broadcast %cst_228 : f32 to vector<8x128xf32>
    %530 = arith.addf %529, %528 : vector<8x128xf32>
    %531 = arith.divf %529, %530 : vector<8x128xf32>
    %532 = vector.extract_strided_slice %498 {offsets = [0, 128], sizes = [8, 128], strides = [1, 1]} : vector<8x512xf32> to vector<8x128xf32>
    %533 = arith.negf %532 : vector<8x128xf32>
    %534 = math.exp %533 : vector<8x128xf32>
    %cst_229 = arith.constant 1.000000e+00 : f32
    %535 = vector.broadcast %cst_229 : f32 to vector<8x128xf32>
    %536 = arith.addf %535, %534 : vector<8x128xf32>
    %537 = arith.divf %535, %536 : vector<8x128xf32>
    %538 = vector.extract_strided_slice %498 {offsets = [0, 256], sizes = [8, 128], strides = [1, 1]} : vector<8x512xf32> to vector<8x128xf32>
    %539 = math.tanh %538 : vector<8x128xf32>
    %540 = vector.extract_strided_slice %498 {offsets = [0, 384], sizes = [8, 128], strides = [1, 1]} : vector<8x512xf32> to vector<8x128xf32>
    %541 = arith.negf %540 : vector<8x128xf32>
    %542 = math.exp %541 : vector<8x128xf32>
    %cst_230 = arith.constant 1.000000e+00 : f32
    %543 = vector.broadcast %cst_230 : f32 to vector<8x128xf32>
    %544 = arith.addf %543, %542 : vector<8x128xf32>
    %545 = arith.divf %543, %544 : vector<8x128xf32>
    %546 = arith.mulf %537, %525 : vector<8x128xf32>
    %547 = arith.mulf %531, %539 : vector<8x128xf32>
    %548 = arith.addf %546, %547 : vector<8x128xf32>
    %549 = math.tanh %548 : vector<8x128xf32>
    %550 = arith.mulf %545, %549 : vector<8x128xf32>
    %c0_231 = arith.constant 0 : index
    %c0_232 = arith.constant 0 : index
    %551 = vector.load %arg10[%c0_231, %c0_232] : memref<8x128xf32, #tpu.memory_space<vmem>>, vector<8x128xf32>
    tpu.vector_store %arg10[%c0_231, %c0_232], %522 {strides = array<i32>} : memref<8x128xf32, #tpu.memory_space<vmem>>, vector<8x128xf32>,
    %c0_233 = arith.constant 0 : index
    %c0_234 = arith.constant 0 : index
    %552 = vector.load %arg11[%c0_233, %c0_234] : memref<8x128xf32, #tpu.memory_space<vmem>>, vector<8x128xf32>
    tpu.vector_store %arg11[%c0_233, %c0_234], %548 {strides = array<i32>} : memref<8x128xf32, #tpu.memory_space<vmem>>, vector<8x128xf32>,
    %553 = arith.truncf %524 : vector<8x128xf32> to vector<8x128xbf16>
    %c0_235 = arith.constant 0 : index
    %c0_236 = arith.constant 0 : index
    %554 = vector.load %arg8[%c0_235, %c0_236] : memref<8x128xbf16, #tpu.memory_space<vmem>>, vector<8x128xbf16>
    tpu.vector_store %arg8[%c0_235, %c0_236], %553 {strides = array<i32>} : memref<8x128xbf16, #tpu.memory_space<vmem>>, vector<8x128xbf16>,
    %555 = arith.truncf %550 : vector<8x128xf32> to vector<8x128xbf16>
    %c0_237 = arith.constant 0 : index
    %c0_238 = arith.constant 0 : index
    %556 = vector.load %arg9[%c0_237, %c0_238] : memref<8x128xbf16, #tpu.memory_space<vmem>>, vector<8x128xbf16>
    tpu.vector_store %arg9[%c0_237, %c0_238], %555 {strides = array<i32>} : memref<8x128xbf16, #tpu.memory_space<vmem>>, vector<8x128xbf16>,
    %557 = arith.index_cast %485 : i32 to index
    %c0_239 = arith.constant 0 : index
    %558 = vector.load %arg12[%557, %c0_239] : memref<64x128xf32, #tpu.memory_space<vmem>>, vector<8x128xf32>
    tpu.vector_store %arg12[%557, %c0_239], %524 {strides = array<i32>} : memref<64x128xf32, #tpu.memory_space<vmem>>, vector<8x128xf32>,
    %559 = arith.index_cast %488 : i32 to index
    %c0_240 = arith.constant 0 : index
    %560 = vector.load %arg13[%559, %c0_240] : memref<64x128xf32, #tpu.memory_space<vmem>>, vector<8x128xf32>
    tpu.vector_store %arg13[%559, %c0_240], %550 {strides = array<i32>} : memref<64x128xf32, #tpu.memory_space<vmem>>, vector<8x128xf32>,
    %c7_i32_241 = arith.constant 7 : i32
    %c8_i32_242 = arith.constant 8 : i32
    %561 = arith.muli %c7_i32_241, %c8_i32_242 : i32
    %562 = tpu.assume_multiple %561, 8 : i32
    %c7_i32_243 = arith.constant 7 : i32
    %563 = arith.subi %c7_i32_243, %c7_i32_241 : i32
    %c8_i32_244 = arith.constant 8 : i32
    %564 = arith.muli %563, %c8_i32_244 : i32
    %565 = tpu.assume_multiple %564, 8 : i32
    %c0_245 = arith.constant 0 : index
    %c0_246 = arith.constant 0 : index
    %566 = vector.load %arg8[%c0_245, %c0_246] : memref<8x128xbf16, #tpu.memory_space<vmem>>, vector<8x128xbf16>
    %cst_247 = arith.constant dense<0.000000e+00> : vector<8x512xf32>
    %567 = tpu.matmul %566, %19, %cst_247 {dimension_numbers = #tpu.dot_dimension_numbers<[1], [0], [0], [1], [0, 0, 1, 1], [], []>} : vector<8x128xbf16>, vector<128x512xbf16>, vector<8x512xf32> -> vector<8x512xf32>
    %c0_248 = arith.constant 0 : index
    %c0_249 = arith.constant 0 : index
    %568 = vector.load %arg9[%c0_248, %c0_249] : memref<8x128xbf16, #tpu.memory_space<vmem>>, vector<8x128xbf16>
    %cst_250 = arith.constant dense<0.000000e+00> : vector<8x512xf32>
    %569 = tpu.matmul %568, %21, %cst_250 {dimension_numbers = #tpu.dot_dimension_numbers<[1], [0], [0], [1], [0, 0, 1, 1], [], []>} : vector<8x128xbf16>, vector<128x512xbf16>, vector<8x512xf32> -> vector<8x512xf32>
    %570 = arith.index_cast %562 : i32 to index
    %c0_251 = arith.constant 0 : index
    %571 = vector.load %arg6[%570, %c0_251] : memref<64x512xf32, #tpu.memory_space<vmem>>, vector<8x512xf32>
    %572 = arith.addf %571, %567 : vector<8x512xf32>
    %573 = arith.index_cast %565 : i32 to index
    %c0_252 = arith.constant 0 : index
    %574 = vector.load %arg7[%573, %c0_252] : memref<64x512xf32, #tpu.memory_space<vmem>>, vector<8x512xf32>
    %575 = arith.addf %574, %569 : vector<8x512xf32>
    %c0_253 = arith.constant 0 : index
    %c0_254 = arith.constant 0 : index
    %576 = vector.load %arg10[%c0_253, %c0_254] : memref<8x128xf32, #tpu.memory_space<vmem>>, vector<8x128xf32>
    %577 = vector.extract_strided_slice %572 {offsets = [0, 0], sizes = [8, 128], strides = [1, 1]} : vector<8x512xf32> to vector<8x128xf32>
    %578 = arith.negf %577 : vector<8x128xf32>
    %579 = math.exp %578 : vector<8x128xf32>
    %cst_255 = arith.constant 1.000000e+00 : f32
    %580 = vector.broadcast %cst_255 : f32 to vector<8x128xf32>
    %581 = arith.addf %580, %579 : vector<8x128xf32>
    %582 = arith.divf %580, %581 : vector<8x128xf32>
    %583 = vector.extract_strided_slice %572 {offsets = [0, 128], sizes = [8, 128], strides = [1, 1]} : vector<8x512xf32> to vector<8x128xf32>
    %584 = arith.negf %583 : vector<8x128xf32>
    %585 = math.exp %584 : vector<8x128xf32>
    %cst_256 = arith.constant 1.000000e+00 : f32
    %586 = vector.broadcast %cst_256 : f32 to vector<8x128xf32>
    %587 = arith.addf %586, %585 : vector<8x128xf32>
    %588 = arith.divf %586, %587 : vector<8x128xf32>
    %589 = vector.extract_strided_slice %572 {offsets = [0, 256], sizes = [8, 128], strides = [1, 1]} : vector<8x512xf32> to vector<8x128xf32>
    %590 = math.tanh %589 : vector<8x128xf32>
    %591 = vector.extract_strided_slice %572 {offsets = [0, 384], sizes = [8, 128], strides = [1, 1]} : vector<8x512xf32> to vector<8x128xf32>
    %592 = arith.negf %591 : vector<8x128xf32>
    %593 = math.exp %592 : vector<8x128xf32>
    %cst_257 = arith.constant 1.000000e+00 : f32
    %594 = vector.broadcast %cst_257 : f32 to vector<8x128xf32>
    %595 = arith.addf %594, %593 : vector<8x128xf32>
    %596 = arith.divf %594, %595 : vector<8x128xf32>
    %597 = arith.mulf %588, %576 : vector<8x128xf32>
    %598 = arith.mulf %582, %590 : vector<8x128xf32>
    %599 = arith.addf %597, %598 : vector<8x128xf32>
    %600 = math.tanh %599 : vector<8x128xf32>
    %601 = arith.mulf %596, %600 : vector<8x128xf32>
    %c0_258 = arith.constant 0 : index
    %c0_259 = arith.constant 0 : index
    %602 = vector.load %arg11[%c0_258, %c0_259] : memref<8x128xf32, #tpu.memory_space<vmem>>, vector<8x128xf32>
    %603 = vector.extract_strided_slice %575 {offsets = [0, 0], sizes = [8, 128], strides = [1, 1]} : vector<8x512xf32> to vector<8x128xf32>
    %604 = arith.negf %603 : vector<8x128xf32>
    %605 = math.exp %604 : vector<8x128xf32>
    %cst_260 = arith.constant 1.000000e+00 : f32
    %606 = vector.broadcast %cst_260 : f32 to vector<8x128xf32>
    %607 = arith.addf %606, %605 : vector<8x128xf32>
    %608 = arith.divf %606, %607 : vector<8x128xf32>
    %609 = vector.extract_strided_slice %575 {offsets = [0, 128], sizes = [8, 128], strides = [1, 1]} : vector<8x512xf32> to vector<8x128xf32>
    %610 = arith.negf %609 : vector<8x128xf32>
    %611 = math.exp %610 : vector<8x128xf32>
    %cst_261 = arith.constant 1.000000e+00 : f32
    %612 = vector.broadcast %cst_261 : f32 to vector<8x128xf32>
    %613 = arith.addf %612, %611 : vector<8x128xf32>
    %614 = arith.divf %612, %613 : vector<8x128xf32>
    %615 = vector.extract_strided_slice %575 {offsets = [0, 256], sizes = [8, 128], strides = [1, 1]} : vector<8x512xf32> to vector<8x128xf32>
    %616 = math.tanh %615 : vector<8x128xf32>
    %617 = vector.extract_strided_slice %575 {offsets = [0, 384], sizes = [8, 128], strides = [1, 1]} : vector<8x512xf32> to vector<8x128xf32>
    %618 = arith.negf %617 : vector<8x128xf32>
    %619 = math.exp %618 : vector<8x128xf32>
    %cst_262 = arith.constant 1.000000e+00 : f32
    %620 = vector.broadcast %cst_262 : f32 to vector<8x128xf32>
    %621 = arith.addf %620, %619 : vector<8x128xf32>
    %622 = arith.divf %620, %621 : vector<8x128xf32>
    %623 = arith.mulf %614, %602 : vector<8x128xf32>
    %624 = arith.mulf %608, %616 : vector<8x128xf32>
    %625 = arith.addf %623, %624 : vector<8x128xf32>
    %626 = math.tanh %625 : vector<8x128xf32>
    %627 = arith.mulf %622, %626 : vector<8x128xf32>
    %c0_263 = arith.constant 0 : index
    %c0_264 = arith.constant 0 : index
    %628 = vector.load %arg10[%c0_263, %c0_264] : memref<8x128xf32, #tpu.memory_space<vmem>>, vector<8x128xf32>
    tpu.vector_store %arg10[%c0_263, %c0_264], %599 {strides = array<i32>} : memref<8x128xf32, #tpu.memory_space<vmem>>, vector<8x128xf32>,
    %c0_265 = arith.constant 0 : index
    %c0_266 = arith.constant 0 : index
    %629 = vector.load %arg11[%c0_265, %c0_266] : memref<8x128xf32, #tpu.memory_space<vmem>>, vector<8x128xf32>
    tpu.vector_store %arg11[%c0_265, %c0_266], %625 {strides = array<i32>} : memref<8x128xf32, #tpu.memory_space<vmem>>, vector<8x128xf32>,
    %630 = arith.truncf %601 : vector<8x128xf32> to vector<8x128xbf16>
    %c0_267 = arith.constant 0 : index
    %c0_268 = arith.constant 0 : index
    %631 = vector.load %arg8[%c0_267, %c0_268] : memref<8x128xbf16, #tpu.memory_space<vmem>>, vector<8x128xbf16>
    tpu.vector_store %arg8[%c0_267, %c0_268], %630 {strides = array<i32>} : memref<8x128xbf16, #tpu.memory_space<vmem>>, vector<8x128xbf16>,
    %632 = arith.truncf %627 : vector<8x128xf32> to vector<8x128xbf16>
    %c0_269 = arith.constant 0 : index
    %c0_270 = arith.constant 0 : index
    %633 = vector.load %arg9[%c0_269, %c0_270] : memref<8x128xbf16, #tpu.memory_space<vmem>>, vector<8x128xbf16>
    tpu.vector_store %arg9[%c0_269, %c0_270], %632 {strides = array<i32>} : memref<8x128xbf16, #tpu.memory_space<vmem>>, vector<8x128xbf16>,
    %634 = arith.index_cast %562 : i32 to index
    %c0_271 = arith.constant 0 : index
    %635 = vector.load %arg12[%634, %c0_271] : memref<64x128xf32, #tpu.memory_space<vmem>>, vector<8x128xf32>
    tpu.vector_store %arg12[%634, %c0_271], %601 {strides = array<i32>} : memref<64x128xf32, #tpu.memory_space<vmem>>, vector<8x128xf32>,
    %636 = arith.index_cast %565 : i32 to index
    %c0_272 = arith.constant 0 : index
    %637 = vector.load %arg13[%636, %c0_272] : memref<64x128xf32, #tpu.memory_space<vmem>>, vector<8x128xf32>
    tpu.vector_store %arg13[%636, %c0_272], %627 {strides = array<i32>} : memref<64x128xf32, #tpu.memory_space<vmem>>, vector<8x128xf32>,
    %c8_i32_273 = arith.constant 8 : i32
    %c0_274 = arith.constant 0 : index
    %c0_275 = arith.constant 0 : index
    %638 = vector.load %arg12[%c0_274, %c0_275] : memref<64x128xf32, #tpu.memory_space<vmem>>, vector<64x128xf32>
    %639 = arith.truncf %638 : vector<64x128xf32> to vector<64x128xbf16>
    %c0_276 = arith.constant 0 : index
    %c0_277 = arith.constant 0 : index
    %640 = vector.load %arg5[%c0_276, %c0_277] : memref<64x256xbf16, #tpu.memory_space<vmem>>, vector<64x128xbf16>
    tpu.vector_store %arg5[%c0_276, %c0_277], %639 {strides = array<i32>} : memref<64x256xbf16, #tpu.memory_space<vmem>>, vector<64x128xbf16>,
    %c0_278 = arith.constant 0 : index
    %c0_279 = arith.constant 0 : index
    %641 = vector.load %arg13[%c0_278, %c0_279] : memref<64x128xf32, #tpu.memory_space<vmem>>, vector<64x128xf32>
    %642 = arith.truncf %641 : vector<64x128xf32> to vector<64x128xbf16>
    %c0_280 = arith.constant 0 : index
    %c128 = arith.constant 128 : index
    %643 = vector.load %arg5[%c0_280, %c128] : memref<64x256xbf16, #tpu.memory_space<vmem>>, vector<64x128xbf16>
    tpu.vector_store %arg5[%c0_280, %c128], %642 {strides = array<i32>} : memref<64x256xbf16, #tpu.memory_space<vmem>>, vector<64x128xbf16>,
    return
  }
  func.func @transform_0(%arg0: i32) -> (i32, i32) {
    %c0_i32 = arith.constant 0 : i32
    %c0_i32_0 = arith.constant 0 : i32
    %c0_i32_1 = arith.constant 0 : i32
    return %c0_i32, %c0_i32_0 : i32, i32
  }
  func.func @transform_1(%arg0: i32) -> (i32, i32) {
    %c0_i32 = arith.constant 0 : i32
    %c0_i32_0 = arith.constant 0 : i32
    %c0_i32_1 = arith.constant 0 : i32
    return %c0_i32, %c0_i32_0 : i32, i32
  }
  func.func @transform_2(%arg0: i32) -> (i32, i32, i32) {
    %c0_i32 = arith.constant 0 : i32
    %c0_i32_0 = arith.constant 0 : i32
    %c0_i32_1 = arith.constant 0 : i32
    %c0_i32_2 = arith.constant 0 : i32
    return %c0_i32, %c0_i32_0, %c0_i32_1 : i32, i32, i32
  }
  func.func @transform_3(%arg0: i32) -> (i32, i32) {
    %c0_i32 = arith.constant 0 : i32
    %c0_i32_0 = arith.constant 0 : i32
    %c0_i32_1 = arith.constant 0 : i32
    return %c0_i32, %c0_i32_0 : i32, i32
  }
  func.func @transform_4(%arg0: i32) -> (i32, i32) {
    %c0_i32 = arith.constant 0 : i32
    %c0_i32_0 = arith.constant 0 : i32
    %c0_i32_1 = arith.constant 0 : i32
    return %c0_i32, %c0_i32_0 : i32, i32
  }
}

</mosaic_0001>

<bundles_post_ra>
// kernel: encoder_forward.2
= control target key start
LH: loop header
LB: loop body
LE: loop exit
PB: predicated region body
PF: predicated region fallthrough
CT: control target
= control target key end

     0   :  { %9 = vsyncpa [#allocation11], 0  ;;  %s5019_s0 = inlined_call_operand.vmem [shape: bf16[64,6], index: 0, kind: input, shape index: {}]   ;;  %s5020_s1 = inlined_call_operand.hbm [shape: bf16[6,1024], index: 1, kind: input, shape index: {}]   ;;  %s5021_s2 = inlined_call_operand.hbm [shape: bf16[2,128,512], index: 2, kind: input, shape index: {}]   ;;  %s5022_s3 = inlined_call_operand.hbm [shape: f32[1,1024], index: 3, kind: input, shape index: {}]   ;;  %s5023_s4 = inlined_call_operand.vmem [shape: bf16[64,256], index: 4, kind: output, shape index: {}]  }
   0x1   :  { %10 = vsyncpa [#allocation13], 0  ;;  %s3766_s15 = smov [#allocation12]   ;;  %s3696_s19 = scalar_lea.hbm %s5021_s2, 8192 }
   0x2   :  { %s28_s16 = sshll.u32 %s3766_s15, 4  ;;  %p3697_p0 = scmp.ne.s32.totalorder %s5021_s2, %s3696_s19  ;;  %s29_s16 = int_to_ptr.vmem [resolvable:$true] %s28_s16 }
   0x3   :  { %p3700_p1 = scmp.lt.u32.totalorder %s3696_s19, %s5021_s2 }
   0x5   :  { %p3702_p2 = pnand %p3700_p1, %p3697_p0 }
   0x7   :  { %3705 = shalt.err (!%p3702_p2)
}
   0x8   :  { %s3706_s24 = scalar_lea.vmem %s29_s16, 8192  ;;  %p3711_p4 = scmp.lt.s32.totalorder %s29_s16, %s29_s16 }
   0x9   :  { %p3707_p3 = scmp.ne.s32.totalorder %s29_s16, %s3706_s24  ;;  %p3712_p5 = scmp.lt.s32.totalorder %s3706_s24, %s3706_s24 }
   0xb   :  { %p3713_p6 = por %p3712_p5, %p3711_p4 }
   0xd   :  { %p3714_p7 = pnand %p3713_p6, %p3707_p3 }
   0xf   :  { %3717 = shalt.err (!%p3714_p7)
}
  0x10   :  { %s3767_s25 = smov 256   ;;  %s3768_s26 = smov 16  }
  0x11   :  { %34 = dma.hbm_to_vmem [thread:$0]  %s5021_s2, 8192, %s29_s16, [#allocation13], %s3767_s25, %s3767_s25, %s3768_s26  }
  0x12   :  { %s3769_s29 = smov [#allocation10]   ;;  %s3770_s5 = smov [#allocation14]  }
  0x13   :  { %s19_s30 = sshll.u32 %s3769_s29, 4  ;;  %s41_s6 = sshll.u32 %s3770_s5, 4  ;;  %s20_s30 = int_to_ptr.vmem [resolvable:$true] %s19_s30  ;;  %s42_s6 = int_to_ptr.vmem [resolvable:$true] %s41_s6 }
  0x14   :  { %s3718_s9 = scalar_lea.hbm %s5020_s1, 512 }
  0x15   :  { %p3719_p8 = scmp.ne.s32.totalorder %s5020_s1, %s3718_s9  ;;  %p3722_p9 = scmp.lt.u32.totalorder %s3718_s9, %s5020_s1 }
  0x17   :  { %p3724_p10 = pnand %p3722_p9, %p3719_p8 }
  0x19   :  { %3727 = shalt.err (!%p3724_p10)
}
  0x1a   :  { %s3728_s2 = scalar_lea.vmem %s20_s30, 512  ;;  %p3733_p12 = scmp.lt.s32.totalorder %s20_s30, %s20_s30 }
  0x1b   :  { %p3729_p11 = scmp.ne.s32.totalorder %s20_s30, %s3728_s2  ;;  %p3734_p13 = scmp.lt.s32.totalorder %s3728_s2, %s3728_s2 }
  0x1d   :  { %p3735_p0 = por %p3734_p13, %p3733_p12 }
  0x1f   :  { %p3736_p1 = pnand %p3735_p0, %p3729_p11 }
  0x21   :  { %3739 = shalt.err (!%p3736_p1)
}
  0x22   :  { %22 = dma.hbm_to_vmem [thread:$0]  %s5020_s1, 512, %s20_s30, [#allocation11]  }
  0x23   :  { %s3740_s18 = scalar_lea.hbm %s5022_s3, 128 }
  0x24   :  { %p3741_p2 = scmp.ne.s32.totalorder %s5022_s3, %s3740_s18  ;;  %p3744_p3 = scmp.lt.u32.totalorder %s3740_s18, %s5022_s3 }
  0x26   :  { %p3746_p4 = pnand %p3744_p3, %p3741_p2 }
  0x28   :  { %3749 = shalt.err (!%p3746_p4)
}
  0x29   :  { %s3750_s23 = scalar_lea.vmem %s42_s6, 128  ;;  %p3755_p6 = scmp.lt.s32.totalorder %s42_s6, %s42_s6 }
  0x2a   :  { %p3751_p5 = scmp.ne.s32.totalorder %s42_s6, %s3750_s23  ;;  %p3756_p7 = scmp.lt.s32.totalorder %s3750_s23, %s3750_s23 }
  0x2c   :  { %p3757_p8 = por %p3756_p7, %p3755_p6 }
  0x2e   :  { %p3758_p9 = pnand %p3757_p8, %p3751_p5 }
  0x30   :  { %3761 = shalt.err (!%p3758_p9)
}
  0x31   :  { %44 = dma.hbm_to_vmem [thread:$0]  %s5022_s3, 128, %s42_s6, [#allocation13]  }
  0x32   :  { %3762 = dma.done.wait [#allocation11], 512  }
  0x33   :  { %3763 = vsyncadd [#allocation11], 4294966784 }
  0x34   :  { %3764 = dma.done.wait [#allocation13], 8320  }
  0x35   :  { %3765 = vsyncadd [#allocation13], 4294958976  ;;  %v5024_v0 = vmov 0   ;;  %vm162_vm0 = vcmask 1042432   ;;  %v63_v1 = vld [vmem:[#allocation10] sm:$0x77] }
  0x36   :  { %219 = vmatprep.mubr.bf16.mxu0 %v5024_v0  ;;  %543 = vst [vmem:[#allocation4] sm:$0xf] %v5024_v0  ;;  %544 = vst [vmem:[#allocation5] sm:$0xf] %v5024_v0  ;;  %292 = vmatprep.mubr.bf16.mxu1 %v5024_v0  ;;  %v64_v2 = vld [vmem:[#allocation10 + $0x8] sm:$0x77]  ;;  %v3027_v3 = vcombine.high %v63_v1, %v63_v1  ;;  %v3026_v5 = vcombine.low %v63_v1, %v63_v1 }
  0x37   :  { %v3029_v4 = vcombine.high %v64_v2, %v64_v2  ;;  %v3028_v6 = vcombine.low %v64_v2, %v64_v2  ;;  %v65_v7 = vld [vmem:[#allocation10 + $0x10] sm:$0x77]  ;;  %v3208_v8 = vld [vmem:[%s5019_s0] sm:$0xff]   ;;  %vm149_vm1 = vcmask 48128   ;;  %v3211_v20 = vld [vmem:[%s5019_s0 + $0x8] sm:$0xff]  }
  0x38   :  { %v3031_v9 = vcombine.high %v65_v7, %v65_v7  ;;  %v3030_v10 = vcombine.low %v65_v7, %v65_v7  ;;  %3034 = vmatprep.subr.msk.bf16.mxu0 %vm162_vm0, %v3027_v3  ;;  %v164_v11 = vsel %vm162_vm0, %v3026_v5, 0  ;;  %v66_v13 = vld [vmem:[#allocation10 + $0x18] sm:$0x77]  ;;  %v3848_v18 = vld [vmem:[#allocation12 + $0x4] ss:$16 sps:$4 sm:$0xff]   ;;  %v3213_v21 = vld [vmem:[%s5019_s0 + $0x10] sm:$0xff]  }
  0x39   :  { %3039 = vmatprep.subr.msk.bf16.mxu1 %vm162_vm0, %v3029_v4  ;;  %v170_v12 = vsel %vm162_vm0, %v3028_v6, 0  ;;  %188 = vmatpush1.bf16.msra.mxu0 %v164_v11  ;;  %v3033_v14 = vcombine.high %v66_v13, %v66_v13  ;;  %v3032_v15 = vcombine.low %v66_v13, %v66_v13  ;;  %v3852_v19 = vld [vmem:[#allocation12 + $0xc] ss:$16 sps:$4 sm:$0xff]   ;;  %v3875_v22 = vld [vmem:[%s5019_s0 + $0x18] sm:$0xff]   ;;  %v3885_v24 = vld [vmem:[#allocation12 + $0x8] ss:$16 sps:$4 sm:$0xff]  }
  0x3a   :  { %261 = vmatpush1.bf16.msra.mxu1 %v170_v12  ;;  %3044 = vmatprep.subr.msk.bf16.mxu0 %vm162_vm0, %v3031_v9  ;;  %v176_v16 = vsel %vm162_vm0, %v3030_v10, 0  ;;  %v3883_v23 = vld [vmem:[#allocation12] ss:$16 sps:$4 sm:$0xff]   ;;  %v3887_v25 = vld [vmem:[#allocation12 + $0x24] ss:$16 sps:$4 sm:$0xff]  }
  0x3b   :  { %3049 = vmatprep.subr.msk.bf16.mxu1 %vm162_vm0, %v3033_v14  ;;  %v182_v17 = vsel %vm162_vm0, %v3032_v15, 0  ;;  %v3889_v26 = vld [vmem:[#allocation12 + $0x2c] ss:$16 sps:$4 sm:$0xff]   ;;  %v3893_v27 = vld [vmem:[#allocation12 + $0x20] ss:$16 sps:$4 sm:$0xff]  }
  0x3c   :  { %3035 = vmatmul.mubr.msk.bf16.vlgmr.msra.gmra.mrb[0].mxu0 %vm149_vm1, %v3208_v8  ;;  %5110 = vst [vmem:[#allocation17_spill] sm:$0xff] %v3893_v27  ;;  %v3897_v28 = vld [vmem:[#allocation12 + $0x28] ss:$16 sps:$4 sm:$0xff]   ;;  %v3899_v29 = vld [vmem:[#allocation12 + $0x44] ss:$16 sps:$4 sm:$0xff]  }
  0x3d   :  { %3040 = vmatmul.mubr.msk.bf16.vlgmr.msra.gmra.mrb[0].mxu1 %vm149_vm1, %v3208_v8  ;;  %334 = vmatpush1.bf16.msra.mxu0 %v176_v16  ;;  %5111 = vst [vmem:[#allocation18_spill] sm:$0xff] %v3897_v28  ;;  %5112 = vst [vmem:[#allocation19_spill] sm:$0xff] %v3899_v29  ;;  %v3903_v30 = vld [vmem:[#allocation12 + $0x4c] ss:$16 sps:$4 sm:$0xff]   ;;  %v3907_v31 = vld [vmem:[#allocation12 + $0x40] ss:$16 sps:$4 sm:$0xff]  }
  0x3e   :  { %229 = vmatprep.mubr.bf16.mxu0 %v5024_v0  ;;  %302 = vmatprep.mubr.bf16.mxu1 %v5024_v0  ;;  %5113 = vst [vmem:[#allocation20_spill] sm:$0xff] %v3903_v30  ;;  %5114 = vst [vmem:[#allocation21_spill] sm:$0xff] %v3907_v31  ;;  %v3911_v32 = vld [vmem:[#allocation12 + $0x48] ss:$16 sps:$4 sm:$0xff]   ;;  %v3915_v33 = vld [vmem:[#allocation12 + $0x64] ss:$16 sps:$4 sm:$0xff]  }
  0x3f   :  { %407 = vmatpush1.bf16.msra.mxu1 %v182_v17  ;;  %773 = vmatprep.subr.bf16.mxu0 %v3848_v18  ;;  %5115 = vst [vmem:[#allocation22_spill] sm:$0xff] %v3911_v32  ;;  %5116 = vst [vmem:[#allocation23_spill] sm:$0xff] %v3915_v33  ;;  %v3917_v34 = vld [vmem:[#allocation12 + $0x6c] ss:$16 sps:$4 sm:$0xff]   ;;  %v3923_v35 = vld [vmem:[#allocation12 + $0x60] ss:$16 sps:$4 sm:$0xff]  }
  0x40   :  { %814 = vmatprep.subr.bf16.mxu1 %v3852_v19  ;;  %5117 = vst [vmem:[#allocation24_spill] sm:$0xff] %v3917_v34  ;;  %5118 = vst [vmem:[#allocation25_spill] sm:$0xff] %v3923_v35  ;;  %v3925_v36 = vld [vmem:[#allocation12 + $0x68] ss:$16 sps:$4 sm:$0xff]   ;;  %v3929_v37 = vld [vmem:[#allocation12 + $0x84] ss:$16 sps:$4 sm:$0xff]  }
  0x41   :  { %5119 = vst [vmem:[#allocation26_spill] sm:$0xff] %v3925_v36  ;;  %5120 = vst [vmem:[#allocation27_spill] sm:$0xff] %v3929_v37  ;;  %v3931_v38 = vld [vmem:[#allocation12 + $0x8c] ss:$16 sps:$4 sm:$0xff]   ;;  %v3937_v39 = vld [vmem:[#allocation12 + $0x80] ss:$16 sps:$4 sm:$0xff]  }
  0x42   :  { %5121 = vst [vmem:[#allocation28_spill] sm:$0xff] %v3931_v38  ;;  %5122 = vst [vmem:[#allocation29_spill] sm:$0xff] %v3937_v39  ;;  %v3939_v40 = vld [vmem:[#allocation12 + $0x88] ss:$16 sps:$4 sm:$0xff]   ;;  %v3943_v41 = vld [vmem:[#allocation12 + $0xa4] ss:$16 sps:$4 sm:$0xff]  }
  0x43   :  { %5123 = vst [vmem:[#allocation30_spill] sm:$0xff] %v3939_v40  ;;  %5124 = vst [vmem:[#allocation31_spill] sm:$0xff] %v3943_v41  ;;  %v3945_v42 = vld [vmem:[#allocation12 + $0xac] ss:$16 sps:$4 sm:$0xff]   ;;  %v3951_v43 = vld [vmem:[#allocation12 + $0xa0] ss:$16 sps:$4 sm:$0xff]  }
  0x44   :  { %3036 = vmatmul.mubr.msk.bf16.gmra.mrb[4].mxu0 %vm149_vm1, %v3211_v20  ;;  %5125 = vst [vmem:[#allocation32_spill] sm:$0xff] %v3945_v42  ;;  %5126 = vst [vmem:[#allocation33_spill] sm:$0xff] %v3951_v43  ;;  %v3953_v44 = vld [vmem:[#allocation12 + $0xa8] ss:$16 sps:$4 sm:$0xff]   ;;  %v3957_v45 = vld [vmem:[#allocation12 + $0xc4] ss:$16 sps:$4 sm:$0xff]  }
  0x45   :  { %3041 = vmatmul.mubr.msk.bf16.gmra.mrb[4].mxu1 %vm149_vm1, %v3211_v20  ;;  %239 = vmatprep.mubr.bf16.mxu0 %v5024_v0  ;;  %5127 = vst [vmem:[#allocation34_spill] sm:$0xff] %v3953_v44  ;;  %5128 = vst [vmem:[#allocation35_spill] sm:$0xff] %v3957_v45  ;;  %v3959_v46 = vld [vmem:[#allocation12 + $0xcc] ss:$16 sps:$4 sm:$0xff]   ;;  %v3965_v47 = vld [vmem:[#allocation12 + $0xc0] ss:$16 sps:$4 sm:$0xff]  }
  0x46   :  { %312 = vmatprep.mubr.bf16.mxu1 %v5024_v0  ;;  %5129 = vst [vmem:[#allocation36_spill] sm:$0xff] %v3959_v46  ;;  %5130 = vst [vmem:[#allocation37_spill] sm:$0xff] %v3965_v47  ;;  %v3967_v48 = vld [vmem:[#allocation12 + $0xc8] ss:$16 sps:$4 sm:$0xff]   ;;  %v3971_v49 = vld [vmem:[#allocation12 + $0xe4] ss:$16 sps:$4 sm:$0xff]  }
  0x47   :  { %5131 = vst [vmem:[#allocation38_spill] sm:$0xff] %v3967_v48  ;;  %5132 = vst [vmem:[#allocation39_spill] sm:$0xff] %v3971_v49  ;;  %v3973_v50 = vld [vmem:[#allocation12 + $0xec] ss:$16 sps:$4 sm:$0xff]   ;;  %v3981_v51 = vld [vmem:[#allocation12 + $0xe0] ss:$16 sps:$4 sm:$0xff]  }
  0x48   :  { %5133 = vst [vmem:[#allocation40_spill] sm:$0xff] %v3973_v50  ;;  %5134 = vst [vmem:[#allocation41_spill] sm:$0xff] %v3981_v51  ;;  %v3983_v52 = vld [vmem:[#allocation12 + $0xe8] ss:$16 sps:$4 sm:$0xff]   ;;  %v3987_v53 = vld [vmem:[#allocation12 + $0x104] ss:$16 sps:$4 sm:$0xff]  }
  0x49   :  { %5135 = vst [vmem:[#allocation42_spill] sm:$0xff] %v3983_v52  ;;  %5136 = vst [vmem:[#allocation43_spill] sm:$0xff] %v3987_v53  ;;  %v3989_v54 = vld [vmem:[#allocation12 + $0x10c] ss:$16 sps:$4 sm:$0xff]   ;;  %v612_v55 = vld [vmem:[#allocation4] sm:$0xf] }
  0x4a   :  { %5137 = vst [vmem:[#allocation44_spill] sm:$0xff] %v3989_v54  ;;  %v3995_v56 = vld [vmem:[#allocation12 + $0x100] ss:$16 sps:$4 sm:$0xff]   ;;  %v3997_v57 = vld [vmem:[#allocation12 + $0x108] ss:$16 sps:$4 sm:$0xff]  }
  0x4b   :  { %v4001_v58 = vld [vmem:[#allocation12 + $0x124] ss:$16 sps:$4 sm:$0xff]   ;;  %v4003_v59 = vld [vmem:[#allocation12 + $0x12c] ss:$16 sps:$4 sm:$0xff]   ;;  %v4007_v60 = vld [vmem:[#allocation12 + $0x120] ss:$16 sps:$4 sm:$0xff]  }
  0x4c   :  { %3037 = vmatmul.mubr.msk.bf16.gmra.mrb[8].mxu0 %vm149_vm1, %v3213_v21  ;;  %v4009_v61 = vld [vmem:[#allocation12 + $0x128] ss:$16 sps:$4 sm:$0xff]   ;;  %v4013_v62 = vld [vmem:[#allocation12 + $0x144] ss:$16 sps:$4 sm:$0xff]   ;;  %v4015_v63 = vld [vmem:[#allocation12 + $0x14c] ss:$16 sps:$4 sm:$0xff]  }
  0x4d   :  { %3042 = vmatmul.mubr.msk.bf16.gmra.mrb[8].mxu1 %vm149_vm1, %v3213_v21  ;;  %249 = vmatprep.mubr.bf16.mxu0 %v5024_v0  ;;  %v4021_v1 = vld [vmem:[#allocation12 + $0x140] ss:$16 sps:$4 sm:$0xff]   ;;  %v4023_v2 = vld [vmem:[#allocation12 + $0x148] ss:$16 sps:$4 sm:$0xff]   ;;  %v4027_v3 = vld [vmem:[#allocation12 + $0x164] ss:$16 sps:$4 sm:$0xff]  }
  0x4e   :  { %322 = vmatprep.mubr.bf16.mxu1 %v5024_v0  ;;  %v4029_v4 = vld [vmem:[#allocation12 + $0x16c] ss:$16 sps:$4 sm:$0xff]   ;;  %v4033_v5 = vld [vmem:[#allocation12 + $0x160] ss:$16 sps:$4 sm:$0xff]   ;;  %v4035_v6 = vld [vmem:[#allocation12 + $0x168] ss:$16 sps:$4 sm:$0xff]  }
  0x4f   :  { %v4039_v7 = vld [vmem:[#allocation12 + $0x184] ss:$16 sps:$4 sm:$0xff]   ;;  %v4045_v9 = vld [vmem:[#allocation12 + $0x180] ss:$16 sps:$4 sm:$0xff]   ;;  %v4047_v10 = vld [vmem:[#allocation12 + $0x188] ss:$16 sps:$4 sm:$0xff]  }
  0x50   :  { %v4051_v11 = vld [vmem:[#allocation12 + $0x1a4] ss:$16 sps:$4 sm:$0xff]   ;;  %v4053_v12 = vld [vmem:[#allocation12 + $0x1ac] ss:$16 sps:$4 sm:$0xff]   ;;  %v4057_v13 = vld [vmem:[#allocation12 + $0x1a0] ss:$16 sps:$4 sm:$0xff]  }
  0x51   :  { %v4059_v14 = vld [vmem:[#allocation12 + $0x1a8] ss:$16 sps:$4 sm:$0xff]   ;;  %v4063_v15 = vld [vmem:[#allocation12 + $0x1c4] ss:$16 sps:$4 sm:$0xff]   ;;  %v4065_v16 = vld [vmem:[#allocation12 + $0x1cc] ss:$16 sps:$4 sm:$0xff]  }
  0x52   :  { %5138 = vst [vmem:[#allocation45_spill] sm:$0xff] %v4065_v16  ;;  %v4069_v17 = vld [vmem:[#allocation12 + $0x1c0] ss:$16 sps:$4 sm:$0xff]  }
  0x54   :  { %3038 = vmatmul.mubr.msk.bf16.gmra.mrb[12].mxu0 %vm149_vm1, %v3875_v22 }
  0x55   :  { %3043 = vmatmul.mubr.msk.bf16.gmra.mrb[12].mxu1 %vm149_vm1, %v3875_v22  ;;  %365 = vmatprep.mubr.bf16.mxu0 %v5024_v0 }
  0x56   :  { %438 = vmatprep.mubr.bf16.mxu1 %v5024_v0 }
  0x5c   :  { %3045 = vmatmul.mubr.msk.bf16.vlgmr.msra.gmra.mrb[16].mxu0 %vm149_vm1, %v3208_v8 }
  0x5d   :  { %3050 = vmatmul.mubr.msk.bf16.vlgmr.msra.gmra.mrb[16].mxu1 %vm149_vm1, %v3208_v8  ;;  %774 = vmatpush1.bf16.msra.mxu0 %v3883_v23  ;;  %v4041_v8 = vld [vmem:[#allocation12 + $0x18c] ss:$16 sps:$4 sm:$0xff]  }
  0x5e   :  { %815 = vmatpush1.bf16.msra.mxu1 %v3885_v24  ;;  %775 = vmatprep.subr.bf16.mxu0 %v3887_v25 }
  0x5f   :  { %816 = vmatprep.subr.bf16.mxu1 %v3889_v26  ;;  %375 = vmatprep.mubr.bf16.mxu0 %v5024_v0 }
  0x60   :  { %448 = vmatprep.mubr.bf16.mxu1 %v5024_v0 }
  0x61   :  { %776 = vmatpush1.bf16.msra.mxu0 %v3893_v27 }
  0x62   :  { %817 = vmatpush1.bf16.msra.mxu1 %v3897_v28  ;;  %777 = vmatprep.subr.bf16.mxu0 %v3899_v29 }
  0x63   :  { %818 = vmatprep.subr.bf16.mxu1 %v3903_v30 }
  0x64   :  { %3046 = vmatmul.mubr.msk.bf16.gmra.mrb[20].mxu0 %vm149_vm1, %v3211_v20 }
  0x65   :  { %3051 = vmatmul.mubr.msk.bf16.gmra.mrb[20].mxu1 %vm149_vm1, %v3211_v20  ;;  %778 = vmatpush1.bf16.msra.mxu0 %v3907_v31  ;;  %v4071_v20 = vld [vmem:[#allocation12 + $0x1c8] ss:$16 sps:$4 sm:$0xff]  }
  0x66   :  { %819 = vmatpush1.bf16.msra.mxu1 %v3911_v32  ;;  %779 = vmatprep.subr.bf16.mxu0 %v3915_v33 }
  0x67   :  { %820 = vmatprep.subr.bf16.mxu1 %v3917_v34  ;;  %385 = vmatprep.mubr.bf16.mxu0 %v5024_v0 }
  0x68   :  { %458 = vmatprep.mubr.bf16.mxu1 %v5024_v0 }
  0x69   :  { %780 = vmatpush1.bf16.msra.mxu0 %v3923_v35 }
  0x6a   :  { %821 = vmatpush1.bf16.msra.mxu1 %v3925_v36  ;;  %781 = vmatprep.subr.bf16.mxu0 %v3929_v37 }
  0x6b   :  { %822 = vmatprep.subr.bf16.mxu1 %v3931_v38 }
  0x6c   :  { %3047 = vmatmul.mubr.msk.bf16.gmra.mrb[24].mxu0 %vm149_vm1, %v3213_v21 }
  0x6d   :  { %3052 = vmatmul.mubr.msk.bf16.gmra.mrb[24].mxu1 %vm149_vm1, %v3213_v21  ;;  %782 = vmatpush1.bf16.msra.mxu0 %v3937_v39  ;;  %v4075_v21 = vld [vmem:[#allocation12 + $0x1e4] ss:$16 sps:$4 sm:$0xff]  }
  0x6e   :  { %823 = vmatpush1.bf16.msra.mxu1 %v3939_v40  ;;  %783 = vmatprep.subr.bf16.mxu0 %v3943_v41 }
  0x6f   :  { %824 = vmatprep.subr.bf16.mxu1 %v3945_v42  ;;  %395 = vmatprep.mubr.bf16.mxu0 %v5024_v0 }
  0x70   :  { %468 = vmatprep.mubr.bf16.mxu1 %v5024_v0 }
  0x71   :  { %784 = vmatpush1.bf16.msra.mxu0 %v3951_v43 }
  0x72   :  { %825 = vmatpush1.bf16.msra.mxu1 %v3953_v44  ;;  %785 = vmatprep.subr.bf16.mxu0 %v3957_v45 }
  0x73   :  { %826 = vmatprep.subr.bf16.mxu1 %v3959_v46 }
  0x74   :  { %3048 = vmatmul.mubr.msk.bf16.gmra.mrb[28].mxu0 %vm149_vm1, %v3875_v22 }
  0x75   :  { %3053 = vmatmul.mubr.msk.bf16.gmra.mrb[28].mxu1 %vm149_vm1, %v3875_v22  ;;  %786 = vmatpush1.bf16.msra.mxu0 %v3965_v47  ;;  %v4077_v22 = vld [vmem:[#allocation12 + $0x1ec] ss:$16 sps:$4 sm:$0xff]  }
  0x76   :  { %827 = vmatpush1.bf16.msra.mxu1 %v3967_v48  ;;  %787 = vmatprep.subr.bf16.mxu0 %v3971_v49  ;;  %5139 = vst [vmem:[#allocation46_spill] sm:$0xff] %v4077_v22 }
  0x77   :  { %828 = vmatprep.subr.bf16.mxu1 %v3973_v50  ;;  %805 = vmatprep.mubr.bf16.mxu0 %v5024_v0 }
  0x78   :  { %846 = vmatprep.mubr.bf16.mxu1 %v5024_v0 }
  0x79   :  { %788 = vmatpush1.bf16.msra.mxu0 %v3981_v51 }
  0x7a   :  { %829 = vmatpush1.bf16.msra.mxu1 %v3983_v52  ;;  %1016 = vmatprep.subr.bf16.mxu0 %v3987_v53 }
  0x7b   :  { %1057 = vmatprep.subr.bf16.mxu1 %v3989_v54 }
  0x7c   :  { %806 = vmatmul.mubr.bf16.vlgmr.msra.gmra.mrb[32].mxu0 %v612_v55 }
  0x7d   :  { %847 = vmatmul.mubr.bf16.vlgmr.msra.gmra.mrb[32].mxu1 %v612_v55  ;;  %1017 = vmatpush1.bf16.msra.mxu0 %v3995_v56  ;;  %v4081_v55 = vld [vmem:[#allocation12 + $0x1e0] ss:$16 sps:$4 sm:$0xff]  }
  0x7e   :  { %1058 = vmatpush1.bf16.msra.mxu1 %v3997_v57  ;;  %1018 = vmatprep.subr.bf16.mxu0 %v4001_v58 }
  0x7f   :  { %1059 = vmatprep.subr.bf16.mxu1 %v4003_v59  ;;  %1048 = vmatprep.mubr.bf16.mxu0 %v5024_v0 }
  0x80   :  { %1089 = vmatprep.mubr.bf16.mxu1 %v5024_v0  ;;  %v4083_v0 = vld [vmem:[#allocation12 + $0x1e8] ss:$16 sps:$4 sm:$0xff]  }
  0x81   :  { %1019 = vmatpush1.bf16.msra.mxu0 %v4007_v60 }
  0x82   :  { %1060 = vmatpush1.bf16.msra.mxu1 %v4009_v61  ;;  %1020 = vmatprep.subr.bf16.mxu0 %v4013_v62 }
  0x83   :  { %1061 = vmatprep.subr.bf16.mxu1 %v4015_v63 }
  0x85   :  { %1021 = vmatpush1.bf16.msra.mxu0 %v4021_v1 }
  0x86   :  { %1062 = vmatpush1.bf16.msra.mxu1 %v4023_v2  ;;  %1022 = vmatprep.subr.bf16.mxu0 %v4027_v3 }
  0x87   :  { %1063 = vmatprep.subr.bf16.mxu1 %v4029_v4 }
  0x89   :  { %1023 = vmatpush1.bf16.msra.mxu0 %v4033_v5 }
  0x8a   :  { %1064 = vmatpush1.bf16.msra.mxu1 %v4035_v6  ;;  %1024 = vmatprep.subr.bf16.mxu0 %v4039_v7 }
  0x8b   :  { %1065 = vmatprep.subr.bf16.mxu1 %v4041_v8 }
  0x8d   :  { %1025 = vmatpush1.bf16.msra.mxu0 %v4045_v9 }
  0x8e   :  { %1066 = vmatpush1.bf16.msra.mxu1 %v4047_v10  ;;  %1026 = vmatprep.subr.bf16.mxu0 %v4051_v11 }
  0x8f   :  { %1067 = vmatprep.subr.bf16.mxu1 %v4053_v12 }
  0x91   :  { %1027 = vmatpush1.bf16.msra.mxu0 %v4057_v13 }
  0x92   :  { %1068 = vmatpush1.bf16.msra.mxu1 %v4059_v14  ;;  %1028 = vmatprep.subr.bf16.mxu0 %v4063_v15 }
  0x93   :  { %1069 = vmatprep.subr.bf16.mxu1 %v4065_v16  ;;  %v855_v16 = vld [vmem:[#allocation5] sm:$0xf] }
  0x95   :  { %1029 = vmatpush1.bf16.msra.mxu0 %v4069_v17 }
  0x96   :  { %1070 = vmatpush1.bf16.msra.mxu1 %v4071_v20  ;;  %1030 = vmatprep.subr.bf16.mxu0 %v4075_v21 }
  0x97   :  { %1071 = vmatprep.subr.bf16.mxu1 %v4077_v22  ;;  %v5140_v22 = vmov 0  }
  0x99   :  { %1031 = vmatpush1.bf16.msra.mxu0 %v4081_v55 }
  0x9a   :  { %1072 = vmatpush1.bf16.msra.mxu1 %v4083_v0  ;;  %1180 = vmatprep.subr.bf16.mxu0 %v3848_v18  ;;  %v69_v18 = vlaneseq }
  0x9b   :  { %1221 = vmatprep.subr.bf16.mxu1 %v3852_v19 }
  0x9c   :  { %1049 = vmatmul.mubr.bf16.vlgmr.msra.gmra.mrb[36].mxu0 %v855_v16  ;;  %v4125_v19 = vshrl.u32 %v69_v18, 7 }
  0x9d   :  { %1090 = vmatmul.mubr.bf16.vlgmr.msra.gmra.mrb[36].mxu1 %v855_v16  ;;  %1181 = vmatpush1.bf16.msra.mxu0 %v3883_v23 }
  0x9e   :  { %1222 = vmatpush1.bf16.msra.mxu1 %v3885_v24  ;;  %1182 = vmatprep.subr.bf16.mxu0 %v3887_v25  ;;  %v79_v16 = vsub.s32 2, %v4125_v19 }
  0x9f   :  { %1223 = vmatprep.subr.bf16.mxu1 %v3889_v26  ;;  %1212 = vmatprep.mubr.bf16.mxu0 %v5140_v22 }
  0xa0   :  { %1253 = vmatprep.mubr.bf16.mxu1 %v5140_v22 }
  0xa1   :  { %1183 = vmatpush1.bf16.msra.mxu0 %v3893_v27 }
  0xa2   :  { %1224 = vmatpush1.bf16.msra.mxu1 %v3897_v28  ;;  %1184 = vmatprep.subr.bf16.mxu0 %v3899_v29 }
  0xa3   :  { %1225 = vmatprep.subr.bf16.mxu1 %v3903_v30 }
  0xa5   :  { %1185 = vmatpush1.bf16.msra.mxu0 %v3907_v31 }
  0xa6   :  { %1226 = vmatpush1.bf16.msra.mxu1 %v3911_v32  ;;  %1186 = vmatprep.subr.bf16.mxu0 %v3915_v33 }
  0xa7   :  { %1227 = vmatprep.subr.bf16.mxu1 %v3917_v34 }
  0xa9   :  { %1187 = vmatpush1.bf16.msra.mxu0 %v3923_v35 }
  0xaa   :  { %1228 = vmatpush1.bf16.msra.mxu1 %v3925_v36  ;;  %1188 = vmatprep.subr.bf16.mxu0 %v3929_v37 }
  0xab   :  { %1229 = vmatprep.subr.bf16.mxu1 %v3931_v38 }
  0xad   :  { %1189 = vmatpush1.bf16.msra.mxu0 %v3937_v39 }
  0xae   :  { %1230 = vmatpush1.bf16.msra.mxu1 %v3939_v40  ;;  %1190 = vmatprep.subr.bf16.mxu0 %v3943_v41 }
  0xaf   :  { %1231 = vmatprep.subr.bf16.mxu1 %v3945_v42 }
  0xb1   :  { %1191 = vmatpush1.bf16.msra.mxu0 %v3951_v43 }
  0xb2   :  { %1232 = vmatpush1.bf16.msra.mxu1 %v3953_v44  ;;  %1192 = vmatprep.subr.bf16.mxu0 %v3957_v45 }
  0xb3   :  { %1233 = vmatprep.subr.bf16.mxu1 %v3959_v46 }
  0xb5   :  { %1193 = vmatpush1.bf16.msra.mxu0 %v3965_v47  ;;  %v83_v47 = vsub.s32 3, %v4125_v19 }
  0xb6   :  { %1234 = vmatpush1.bf16.msra.mxu1 %v3967_v48  ;;  %1194 = vmatprep.subr.bf16.mxu0 %v3971_v49  ;;  %v71_v48 = vsub.s32 0, %v4125_v19  ;;  %v4130_v49 = vld [vmem:[#allocation14] sm:$0xff] }
  0xb7   :  { %1235 = vmatprep.subr.bf16.mxu1 %v3973_v50  ;;  %v75_v50 = vsub.s32 1, %v4125_v19  ;;  %v4141_v18 = vrot.slane %v4130_v49, %v83_v47 }
  0xb9   :  { %1195 = vmatpush1.bf16.msra.mxu0 %v3981_v51  ;;  %v4134_v51 = vrot.slane %v4130_v49, %v79_v16  ;;  %v4151_v44 = vrot.slane %v4130_v49, %v75_v50 }
  0xba   :  { %1236 = vmatpush1.bf16.msra.mxu1 %v3983_v52  ;;  %1263 = vmatprep.subr.bf16.mxu0 %v3987_v53 }
  0xbb   :  { %1304 = vmatprep.subr.bf16.mxu1 %v3989_v54  ;;  %v4144_v54 = vrot.slane %v4130_v49, %v71_v48 }
 0x10f   :  { %v4136_v52 = vpop.f32.mrb[0].mxu0 }
 0x110   :  { %v4138_v53 = vpop.f32.mrb[0].mxu1  ;;  %v4146_v46 = vpop.f32.mrb[1].mxu0  ;;  %v222_v33 = vadd.f32 %v4136_v52, %v4144_v54 }
 0x111   :  { %v4148_v45 = vpop.f32.mrb[1].mxu1  ;;  %v225_v43 = vpop.f32.mrb[2].mxu0 }
 0x112   :  { %v298_v16 = vpop.f32.mrb[2].mxu1  ;;  %v4154_v42 = vadd.f32 %v225_v43, %v4144_v54  ;;  %v227_v41 = vpop.f32.mrb[3].mxu0 }
 0x113   :  { %v4157_v40 = vadd.f32 %v298_v16, %v4134_v51  ;;  %v300_v47 = vpop.f32.mrb[3].mxu1  ;;  %v4160_v48 = vadd.f32 %v227_v41, %v4151_v44 }
 0x114   :  { %5141 = vst [vmem:[#allocation47_spill] sm:$0xff] %v4154_v42  ;;  %v4163_v39 = vadd.f32 %v300_v47, %v4141_v18 }
 0x115   :  { %5142 = vst [vmem:[#allocation48_spill] sm:$0xff] %v4157_v40  ;;  %5143 = vst [vmem:[#allocation49_spill] sm:$0xff] %v4160_v48 }
 0x116   :  { %5144 = vst [vmem:[#allocation50_spill] sm:$0xff] %v4163_v39 }
 0x117   :  { %v231_v38 = vpop.f32.mrb[4].mxu0 }
 0x118   :  { %v304_v37 = vpop.f32.mrb[4].mxu1  ;;  %v4166_v50 = vadd.f32 %v231_v38, %v4144_v54  ;;  %v233_v36 = vpop.f32.mrb[5].mxu0 }
 0x119   :  { %v4169_v43 = vadd.f32 %v304_v37, %v4134_v51  ;;  %v306_v42 = vpop.f32.mrb[5].mxu1  ;;  %v4172_v16 = vadd.f32 %v233_v36, %v4151_v44  ;;  %v235_v40 = vpop.f32.mrb[6].mxu0 }
 0x11a   :  { %5145 = vst [vmem:[#allocation51_spill] sm:$0xff] %v4166_v50  ;;  %v4175_v41 = vadd.f32 %v306_v42, %v4141_v18  ;;  %v308_v48 = vpop.f32.mrb[6].mxu1  ;;  %v4178_v47 = vadd.f32 %v235_v40, %v4144_v54  ;;  %v237_v39 = vpop.f32.mrb[7].mxu0 }
 0x11b   :  { %5146 = vst [vmem:[#allocation52_spill] sm:$0xff] %v4169_v43  ;;  %5147 = vst [vmem:[#allocation53_spill] sm:$0xff] %v4172_v16  ;;  %v4181_v38 = vadd.f32 %v308_v48, %v4134_v51  ;;  %v310_v50 = vpop.f32.mrb[7].mxu1  ;;  %v4184_v37 = vadd.f32 %v237_v39, %v4151_v44 }
 0x11c   :  { %5148 = vst [vmem:[#allocation54_spill] sm:$0xff] %v4175_v41  ;;  %5149 = vst [vmem:[#allocation55_spill] sm:$0xff] %v4178_v47  ;;  %v4187_v43 = vadd.f32 %v310_v50, %v4141_v18 }
 0x11d   :  { %5150 = vst [vmem:[#allocation56_spill] sm:$0xff] %v4181_v38  ;;  %5151 = vst [vmem:[#allocation57_spill] sm:$0xff] %v4184_v37 }
 0x11e   :  { %5152 = vst [vmem:[#allocation58_spill] sm:$0xff] %v4187_v43 }
 0x11f   :  { %v241_v36 = vpop.f32.mrb[8].mxu0 }
 0x120   :  { %v314_v16 = vpop.f32.mrb[8].mxu1  ;;  %v4190_v42 = vadd.f32 %v241_v36, %v4144_v54  ;;  %v243_v41 = vpop.f32.mrb[9].mxu0 }
 0x121   :  { %v4193_v40 = vadd.f32 %v314_v16, %v4134_v51  ;;  %v316_v47 = vpop.f32.mrb[9].mxu1  ;;  %v4196_v48 = vadd.f32 %v243_v41, %v4151_v44  ;;  %v245_v38 = vpop.f32.mrb[10].mxu0 }
 0x122   :  { %5153 = vst [vmem:[#allocation59_spill] sm:$0xff] %v4190_v42  ;;  %v4199_v39 = vadd.f32 %v316_v47, %v4141_v18  ;;  %v318_v37 = vpop.f32.mrb[10].mxu1  ;;  %v4202_v50 = vadd.f32 %v245_v38, %v4144_v54  ;;  %v247_v43 = vpop.f32.mrb[11].mxu0  ;;  %v87_v38 = vsub.s32 4, %v4125_v19 }
 0x123   :  { %5154 = vst [vmem:[#allocation60_spill] sm:$0xff] %v4193_v40  ;;  %5155 = vst [vmem:[#allocation61_spill] sm:$0xff] %v4196_v48  ;;  %v4205_v36 = vadd.f32 %v318_v37, %v4134_v51  ;;  %v320_v42 = vpop.f32.mrb[11].mxu1  ;;  %v4208_v16 = vadd.f32 %v247_v43, %v4151_v44 }
 0x124   :  { %5156 = vst [vmem:[#allocation62_spill] sm:$0xff] %v4199_v39  ;;  %5157 = vst [vmem:[#allocation63_spill] sm:$0xff] %v4202_v50  ;;  %v4211_v40 = vadd.f32 %v320_v42, %v4141_v18  ;;  %v91_v42 = vsub.s32 5, %v4125_v19 }
 0x125   :  { %5158 = vst [vmem:[#allocation64_spill] sm:$0xff] %v4205_v36  ;;  %5159 = vst [vmem:[#allocation65_spill] sm:$0xff] %v4208_v16  ;;  %v95_v36 = vsub.s32 6, %v4125_v19 }
 0x126   :  { %5160 = vst [vmem:[#allocation66_spill] sm:$0xff] %v4211_v40 }
 0x127   :  { %v251_v41 = vpop.f32.mrb[12].mxu0 }
 0x128   :  { %v324_v48 = vpop.f32.mrb[12].mxu1  ;;  %v4214_v47 = vadd.f32 %v251_v41, %v4144_v54  ;;  %v253_v39 = vpop.f32.mrb[13].mxu0 }
 0x129   :  { %v4218_v50 = vadd.f32 %v324_v48, %v4134_v51  ;;  %v326_v37 = vpop.f32.mrb[13].mxu1  ;;  %v4222_v43 = vadd.f32 %v253_v39, %v4151_v44  ;;  %v255_v16 = vpop.f32.mrb[14].mxu0 }
 0x12a   :  { %5161 = vst [vmem:[#allocation67_spill] sm:$0xff] %v4214_v47  ;;  %v4226_v40 = vadd.f32 %v326_v37, %v4141_v18  ;;  %v328_v41 = vpop.f32.mrb[14].mxu1  ;;  %v99_v47 = vsub.s32 7, %v4125_v19  ;;  %v4230_v35 = vadd.f32 %v255_v16, %v4144_v54  ;;  %v257_v48 = vpop.f32.mrb[15].mxu0  ;;  %v4242_v37 = vrot.slane %v4130_v49, %v87_v38 }
 0x12b   :  { %5162 = vst [vmem:[#allocation68_spill] sm:$0xff] %v4218_v50  ;;  %5163 = vst [vmem:[#allocation69_spill] sm:$0xff] %v4222_v43  ;;  %v4233_v50 = vadd.f32 %v328_v41, %v4134_v51  ;;  %v330_v34 = vpop.f32.mrb[15].mxu1  ;;  %v4236_v39 = vadd.f32 %v257_v48, %v4151_v44  ;;  %v4248_v19 = vrot.slane %v4130_v49, %v91_v42 }
 0x12c   :  { %5164 = vst [vmem:[#allocation70_spill] sm:$0xff] %v4226_v40  ;;  %5165 = vst [vmem:[#allocation71_spill] sm:$0xff] %v4230_v35  ;;  %v4239_v43 = vadd.f32 %v330_v34, %v4141_v18  ;;  %v4245_v40 = vrot.slane %v4130_v49, %v95_v36  ;;  %v4251_v16 = vrot.slane %v4130_v49, %v99_v47 }
 0x12d   :  { %5166 = vst [vmem:[#allocation72_spill] sm:$0xff] %v4233_v50  ;;  %5167 = vst [vmem:[#allocation73_spill] sm:$0xff] %v4236_v39 }
 0x12e   :  { %5168 = vst [vmem:[#allocation74_spill] sm:$0xff] %v4239_v43 }
 0x12f   :  { %v367_v41 = vpop.f32.mrb[16].mxu0 }
 0x130   :  { %v440_v50 = vpop.f32.mrb[16].mxu1  ;;  %v4254_v48 = vadd.f32 %v367_v41, %v4242_v37  ;;  %v369_v39 = vpop.f32.mrb[17].mxu0 }
 0x131   :  { %v4257_v34 = vadd.f32 %v440_v50, %v4245_v40  ;;  %v442_v38 = vpop.f32.mrb[17].mxu1  ;;  %v4260_v43 = vadd.f32 %v369_v39, %v4248_v19  ;;  %v371_v36 = vpop.f32.mrb[18].mxu0 }
 0x132   :  { %5169 = vst [vmem:[#allocation75_spill] sm:$0xff] %v4254_v48  ;;  %v4263_v42 = vadd.f32 %v442_v38, %v4251_v16  ;;  %v444_v35 = vpop.f32.mrb[18].mxu1  ;;  %v4266_v49 = vadd.f32 %v371_v36, %v4242_v37  ;;  %v373_v47 = vpop.f32.mrb[19].mxu0 }
 0x133   :  { %5170 = vst [vmem:[#allocation76_spill] sm:$0xff] %v4257_v34  ;;  %5171 = vst [vmem:[#allocation77_spill] sm:$0xff] %v4260_v43  ;;  %v4269_v41 = vadd.f32 %v444_v35, %v4245_v40  ;;  %v446_v48 = vpop.f32.mrb[19].mxu1  ;;  %v4272_v50 = vadd.f32 %v373_v47, %v4248_v19 }
 0x134   :  { %5172 = vst [vmem:[#allocation78_spill] sm:$0xff] %v4263_v42  ;;  %5173 = vst [vmem:[#allocation79_spill] sm:$0xff] %v4266_v49  ;;  %v4275_v34 = vadd.f32 %v446_v48, %v4251_v16 }
 0x135   :  { %5174 = vst [vmem:[#allocation80_spill] sm:$0xff] %v4269_v41  ;;  %5175 = vst [vmem:[#allocation81_spill] sm:$0xff] %v4272_v50 }
 0x136   :  { %5176 = vst [vmem:[#allocation82_spill] sm:$0xff] %v4275_v34 }
 0x137   :  { %v377_v39 = vpop.f32.mrb[20].mxu0 }
 0x138   :  { %v450_v43 = vpop.f32.mrb[20].mxu1  ;;  %v4278_v38 = vadd.f32 %v377_v39, %v4242_v37  ;;  %v379_v42 = vpop.f32.mrb[21].mxu0 }
 0x139   :  { %v4281_v36 = vadd.f32 %v450_v43, %v4245_v40  ;;  %v452_v49 = vpop.f32.mrb[21].mxu1  ;;  %v4284_v35 = vadd.f32 %v379_v42, %v4248_v19  ;;  %v381_v41 = vpop.f32.mrb[22].mxu0 }
 0x13a   :  { %5177 = vst [vmem:[#allocation83_spill] sm:$0xff] %v4278_v38  ;;  %v4287_v47 = vadd.f32 %v452_v49, %v4251_v16  ;;  %v454_v50 = vpop.f32.mrb[22].mxu1  ;;  %v4290_v48 = vadd.f32 %v381_v41, %v4242_v37  ;;  %v383_v34 = vpop.f32.mrb[23].mxu0 }
 0x13b   :  { %5178 = vst [vmem:[#allocation84_spill] sm:$0xff] %v4281_v36  ;;  %5179 = vst [vmem:[#allocation85_spill] sm:$0xff] %v4284_v35  ;;  %v4293_v39 = vadd.f32 %v454_v50, %v4245_v40  ;;  %v456_v38 = vpop.f32.mrb[23].mxu1  ;;  %v4296_v43 = vadd.f32 %v383_v34, %v4248_v19 }
 0x13c   :  { %5180 = vst [vmem:[#allocation86_spill] sm:$0xff] %v4287_v47  ;;  %5181 = vst [vmem:[#allocation87_spill] sm:$0xff] %v4290_v48  ;;  %v4299_v36 = vadd.f32 %v456_v38, %v4251_v16 }
 0x13d   :  { %5182 = vst [vmem:[#allocation88_spill] sm:$0xff] %v4293_v39  ;;  %5183 = vst [vmem:[#allocation89_spill] sm:$0xff] %v4296_v43 }
 0x13e   :  { %5184 = vst [vmem:[#allocation90_spill] sm:$0xff] %v4299_v36 }
 0x13f   :  { %v387_v42 = vpop.f32.mrb[24].mxu0 }
 0x140   :  { %v460_v35 = vpop.f32.mrb[24].mxu1  ;;  %v4302_v49 = vadd.f32 %v387_v42, %v4242_v37  ;;  %v389_v47 = vpop.f32.mrb[25].mxu0 }
 0x141   :  { %v4305_v41 = vadd.f32 %v460_v35, %v4245_v40  ;;  %v462_v48 = vpop.f32.mrb[25].mxu1  ;;  %v4308_v50 = vadd.f32 %v389_v47, %v4248_v19  ;;  %v391_v39 = vpop.f32.mrb[26].mxu0 }
 0x142   :  { %5185 = vst [vmem:[#allocation91_spill] sm:$0xff] %v4302_v49  ;;  %v4311_v34 = vadd.f32 %v462_v48, %v4251_v16  ;;  %v464_v43 = vpop.f32.mrb[26].mxu1  ;;  %v4314_v38 = vadd.f32 %v391_v39, %v4242_v37  ;;  %v393_v36 = vpop.f32.mrb[27].mxu0 }
 0x143   :  { %5186 = vst [vmem:[#allocation92_spill] sm:$0xff] %v4305_v41  ;;  %5187 = vst [vmem:[#allocation93_spill] sm:$0xff] %v4308_v50  ;;  %v4317_v42 = vadd.f32 %v464_v43, %v4245_v40  ;;  %v466_v49 = vpop.f32.mrb[27].mxu1  ;;  %v4320_v35 = vadd.f32 %v393_v36, %v4248_v19 }
 0x144   :  { %5188 = vst [vmem:[#allocation94_spill] sm:$0xff] %v4311_v34  ;;  %5189 = vst [vmem:[#allocation95_spill] sm:$0xff] %v4314_v38  ;;  %v4323_v41 = vadd.f32 %v466_v49, %v4251_v16 }
 0x145   :  { %5190 = vst [vmem:[#allocation96_spill] sm:$0xff] %v4317_v42  ;;  %5191 = vst [vmem:[#allocation97_spill] sm:$0xff] %v4320_v35 }
 0x146   :  { %5192 = vst [vmem:[#allocation98_spill] sm:$0xff] %v4323_v41 }
 0x147   :  { %v397_v47 = vpop.f32.mrb[28].mxu0 }
 0x148   :  { %v470_v50 = vpop.f32.mrb[28].mxu1  ;;  %v4326_v48 = vadd.f32 %v397_v47, %v4242_v37  ;;  %v399_v34 = vpop.f32.mrb[29].mxu0  ;;  %v295_v47 = vadd.f32 %v4138_v53, %v4134_v51 }
 0x149   :  { %v4329_v39 = vadd.f32 %v470_v50, %v4245_v40  ;;  %v472_v38 = vpop.f32.mrb[29].mxu1  ;;  %v4332_v43 = vadd.f32 %v399_v34, %v4248_v19  ;;  %v401_v42 = vpop.f32.mrb[30].mxu0  ;;  %v224_v50 = vadd.f32 %v4146_v46, %v4151_v44  ;;  %v297_v34 = vadd.f32 %v4148_v45, %v4141_v18 }
 0x14a   :  { %5193 = vst [vmem:[#allocation99_spill] sm:$0xff] %v4326_v48  ;;  %v4335_v36 = vadd.f32 %v472_v38, %v4251_v16  ;;  %v474_v35 = vpop.f32.mrb[30].mxu1  ;;  %v403_v49 = vpop.f32.mrb[31].mxu0 }
 0x14b   :  { %5194 = vst [vmem:[#allocation100_spill] sm:$0xff] %v4329_v39  ;;  %5195 = vst [vmem:[#allocation101_spill] sm:$0xff] %v4332_v43  ;;  %v476_v41 = vpop.f32.mrb[31].mxu1 }
 0x14c   :  { %5196 = vst [vmem:[#allocation102_spill] sm:$0xff] %v4335_v36 }
 0x14f   :  { %v807_v43 = vpop.f32.mrb[32].mxu0 }
 0x150   :  { %v848_v39 = vpop.f32.mrb[32].mxu1  ;;  %v1105_v48 = vadd.f32 %v807_v43, %v222_v33  ;;  %v809_v36 = vpop.f32.mrb[33].mxu0 }
 0x151   :  { %v1107_v38 = vadd.f32 %v848_v39, %v295_v47  ;;  %v850_v32 = vpop.f32.mrb[33].mxu1  ;;  %v1106_v31 = vadd.f32 %v809_v36, %v224_v50  ;;  %v811_v29 = vpop.f32.mrb[34].mxu0  ;;  %v477_v36 = vadd.f32 %v476_v41, %v4251_v16 }
 0x152   :  { %v1108_v30 = vadd.f32 %v850_v32, %v297_v34  ;;  %v852_v28 = vpop.f32.mrb[34].mxu1  ;;  %v3118_v52 = vmul.f32 -1.442695, %v1105_v48  ;;  %v812_v54 = vpop.f32.mrb[35].mxu0 }
 0x153   :  { %v853_v27 = vpop.f32.mrb[35].mxu1  ;;  %v3119_v51 = vmul.f32 -1.442695, %v1106_v31  ;;  %v475_v31 = vadd.f32 %v474_v35, %v4245_v40 }
 0x154   :  { %3312 = vpow2.f32 %v3118_v52  ;;  %v3120_v44 = vmul.f32 -1.442695, %v1108_v30  ;;  %v402_v27 = vadd.f32 %v401_v42, %v4242_v37  ;;  %v404_v30 = vadd.f32 %v403_v49, %v4248_v19 }
 0x155   :  { %3314 = vpow2.f32 %v3119_v51 }
 0x156   :  { %3316 = vpow2.f32 %v3120_v44 }
 0x157   :  { %3318 = vtanh.f32 %v1107_v38 }
 0x15e   :  { %v3313_v46 = vpop.eup %3312 }
 0x15f   :  { %v3315_v53 = vpop.eup %3314  ;;  %v1124_v45 = vadd.f32 1.0, %v3313_v46 }
 0x160   :  { %v1130_v33 = vadd.f32 1.0, %v3315_v53  ;;  %v3317_v18 = vpop.eup %3316 }
 0x161   :  { %3320 = vrcp.f32 %v1124_v45  ;;  %v3319_v39 = vpop.eup %3318  ;;  %v1137_v48 = vadd.f32 1.0, %v3317_v18 }
 0x162   :  { %3322 = vrcp.f32 %v1130_v33 }
 0x163   :  { %3324 = vrcp.f32 %v1137_v48 }
 0x16b   :  { %v3321_v32 = vpop.eup %3320 }
 0x16c   :  { %v3323_v29 = vpop.eup %3322  ;;  %v1141_v28 = vmul.f32 %v3321_v32, %v3319_v39 }
 0x16d   :  { %v1140_v43 = vmul.f32 0.0, %v3323_v29  ;;  %v3325_v16 = vpop.eup %3324 }
 0x16f   :  { %v4349_v47 = vadd.f32 %v1141_v28, %v1140_v43  ;;  %v1050_v50 = vpop.f32.mrb[36].mxu0 }
 0x170   :  { %v1091_v34 = vpop.f32.mrb[36].mxu1  ;;  %v1116_v38 = vadd.f32 %v1050_v50, %v402_v27  ;;  %v1052_v54 = vpop.f32.mrb[37].mxu0 }
 0x171   :  { %v1118_v52 = vadd.f32 %v1091_v34, %v475_v31  ;;  %v1093_v51 = vpop.f32.mrb[37].mxu1  ;;  %3326 = vtanh.f32 %v4349_v47  ;;  %v1117_v44 = vadd.f32 %v1052_v54, %v404_v30  ;;  %v1054_v37 = vpop.f32.mrb[38].mxu0 }
 0x172   :  { %v1119_v46 = vadd.f32 %v1093_v51, %v477_v36  ;;  %v1095_v42 = vpop.f32.mrb[38].mxu1  ;;  %v3121_v40 = vmul.f32 -1.442695, %v1116_v38  ;;  %v1055_v35 = vpop.f32.mrb[39].mxu0  ;;  %v4393_v37 = vld [vmem:[#allocation12 + $0x4] ss:$16 sps:$4 sm:$0xff]  }
 0x173   :  { %v1096_v19 = vpop.f32.mrb[39].mxu1  ;;  %v3122_v49 = vmul.f32 -1.442695, %v1117_v44  ;;  %v5197_v44 = vld [vmem:[#allocation45_spill] sm:$0xff] }
 0x174   :  { %3328 = vpow2.f32 %v3121_v40  ;;  %v3123_v53 = vmul.f32 -1.442695, %v1119_v46  ;;  %v5198_v46 = vld [vmem:[#allocation46_spill] sm:$0xff]  ;;  %v4396_v42 = vld [vmem:[#allocation12 + $0xc] ss:$16 sps:$4 sm:$0xff]  }
 0x175   :  { %3330 = vpow2.f32 %v3122_v49  ;;  %v5199_v35 = vld [vmem:[#allocation17_spill] sm:$0xff]  ;;  %v5200_v19 = vld [vmem:[#allocation18_spill] sm:$0xff]  ;;  %v5201_v49 = vld [vmem:[#allocation19_spill] sm:$0xff] }
 0x176   :  { %3332 = vpow2.f32 %v3123_v53  ;;  %v5208_v53 = vld [vmem:[#allocation26_spill] sm:$0xff] }
 0x177   :  { %3334 = vtanh.f32 %v1118_v52 }
 0x17b   :  { %v3327_v41 = vpop.eup %3326 }
 0x17c   :  { %v1144_v45 = vmul.f32 %v3327_v41, %v3325_v16  ;;  %v5202_v16 = vld [vmem:[#allocation20_spill] sm:$0xff]  ;;  %v5203_v41 = vld [vmem:[#allocation21_spill] sm:$0xff] }
 0x17e   :  { %v3329_v33 = vpop.eup %3328  ;;  %v1172_v18 = vpack.c.bf16 %v1144_v45, %v1144_v45  ;;  %v5209_v45 = vld [vmem:[#allocation27_spill] sm:$0xff] }
 0x17f   :  { %v3331_v39 = vpop.eup %3330  ;;  %v1149_v32 = vadd.f32 1.0, %v3329_v33  ;;  %v5210_v33 = vld [vmem:[#allocation28_spill] sm:$0xff] }
 0x180   :  { %1173 = vst [vmem:[#allocation4] sm:$0xf] %v1172_v18  ;;  %2946 = vst [vmem:[%s5023_s4] sm:$0xf] %v1172_v18  ;;  %v1155_v29 = vadd.f32 1.0, %v3331_v39  ;;  %v3333_v48 = vpop.eup %3332  ;;  %v5211_v18 = vld [vmem:[#allocation29_spill] sm:$0xff]  ;;  %v5212_v39 = vld [vmem:[#allocation30_spill] sm:$0xff] }
 0x181   :  { %3336 = vrcp.f32 %v1149_v32  ;;  %v3335_v43 = vpop.eup %3334  ;;  %v1162_v36 = vadd.f32 1.0, %v3333_v48  ;;  %v5213_v32 = vld [vmem:[#allocation31_spill] sm:$0xff]  ;;  %v5216_v48 = vld [vmem:[#allocation34_spill] sm:$0xff] }
 0x182   :  { %3338 = vrcp.f32 %v1155_v29  ;;  %v5214_v29 = vld [vmem:[#allocation32_spill] sm:$0xff] }
 0x183   :  { %3340 = vrcp.f32 %v1162_v36  ;;  %v5221_v36 = vld [vmem:[#allocation39_spill] sm:$0xff] }
 0x187   :  { %v1179_v28 = vld [vmem:[#allocation4] sm:$0xf] }
 0x188   :  { %1213 = vmatmul.mubr.bf16.vlgmr.msra.gmra.mrb[40].mxu0 %v1179_v28  ;;  %1254 = vmatmul.mubr.bf16.vlgmr.msra.gmra.mrb[40].mxu1 %v1179_v28  ;;  %v5215_v28 = vld [vmem:[#allocation33_spill] sm:$0xff] }
 0x189   :  { %1264 = vmatpush1.bf16.msra.mxu0 %v3995_v56  ;;  %1305 = vmatpush1.bf16.msra.mxu1 %v3997_v57 }
 0x18a   :  { %1265 = vmatprep.subr.bf16.mxu0 %v4001_v58  ;;  %1306 = vmatprep.subr.bf16.mxu1 %v4003_v59 }
 0x18b   :  { %v3337_v27 = vpop.eup %3336  ;;  %1295 = vmatprep.mubr.bf16.mxu0 %v5140_v22  ;;  %1336 = vmatprep.mubr.bf16.mxu1 %v5140_v22 }
 0x18c   :  { %v3339_v31 = vpop.eup %3338  ;;  %v1166_v30 = vmul.f32 %v3337_v27, %v3335_v43  ;;  %v5217_v43 = vld [vmem:[#allocation35_spill] sm:$0xff]  ;;  %v5218_v27 = vld [vmem:[#allocation36_spill] sm:$0xff] }
 0x18d   :  { %v1165_v50 = vmul.f32 0.0, %v3339_v31  ;;  %1266 = vmatpush1.bf16.msra.mxu0 %v4007_v60  ;;  %1307 = vmatpush1.bf16.msra.mxu1 %v4009_v61  ;;  %v3341_v38 = vpop.eup %3340  ;;  %v5219_v31 = vld [vmem:[#allocation37_spill] sm:$0xff] }
 0x18e   :  { %1267 = vmatprep.subr.bf16.mxu0 %v4013_v62  ;;  %1308 = vmatprep.subr.bf16.mxu1 %v4015_v63 }
 0x18f   :  { %v4365_v34 = vadd.f32 %v1166_v30, %v1165_v50  ;;  %v5220_v30 = vld [vmem:[#allocation38_spill] sm:$0xff]  ;;  %v5222_v50 = vld [vmem:[#allocation40_spill] sm:$0xff] }
 0x191   :  { %3342 = vtanh.f32 %v4365_v34  ;;  %1268 = vmatpush1.bf16.msra.mxu0 %v4021_v1  ;;  %1309 = vmatpush1.bf16.msra.mxu1 %v4023_v2 }
 0x192   :  { %1269 = vmatprep.subr.bf16.mxu0 %v4027_v3  ;;  %1310 = vmatprep.subr.bf16.mxu1 %v4029_v4 }
 0x195   :  { %1270 = vmatpush1.bf16.msra.mxu0 %v4033_v5  ;;  %1311 = vmatpush1.bf16.msra.mxu1 %v4035_v6 }
 0x196   :  { %1271 = vmatprep.subr.bf16.mxu0 %v4039_v7  ;;  %1312 = vmatprep.subr.bf16.mxu1 %v4041_v8 }
 0x199   :  { %1272 = vmatpush1.bf16.msra.mxu0 %v4045_v9  ;;  %1313 = vmatpush1.bf16.msra.mxu1 %v4047_v10 }
 0x19a   :  { %1273 = vmatprep.subr.bf16.mxu0 %v4051_v11  ;;  %1314 = vmatprep.subr.bf16.mxu1 %v4053_v12 }
 0x19b   :  { %v3343_v52 = vpop.eup %3342 }
 0x19c   :  { %v1169_v54 = vmul.f32 %v3343_v52, %v3341_v38  ;;  %v5223_v38 = vld [vmem:[#allocation41_spill] sm:$0xff]  ;;  %v5224_v52 = vld [vmem:[#allocation42_spill] sm:$0xff] }
 0x19d   :  { %1274 = vmatpush1.bf16.msra.mxu0 %v4057_v13  ;;  %1315 = vmatpush1.bf16.msra.mxu1 %v4059_v14 }
 0x19e   :  { %v1174_v51 = vpack.c.bf16 %v1169_v54, %v1169_v54  ;;  %1275 = vmatprep.subr.bf16.mxu0 %v4063_v15  ;;  %1316 = vmatprep.subr.bf16.mxu1 %v5197_v44  ;;  %v5225_v54 = vld [vmem:[#allocation43_spill] sm:$0xff] }
 0x1a0   :  { %1175 = vst [vmem:[#allocation5] sm:$0xf] %v1174_v51  ;;  %3001 = vst [vmem:[%s5023_s4 + $0x3c] sm:$0xf] %v1174_v51  ;;  %v5226_v51 = vld [vmem:[#allocation44_spill] sm:$0xff] }
 0x1a1   :  { %1276 = vmatpush1.bf16.msra.mxu0 %v4069_v17  ;;  %1317 = vmatpush1.bf16.msra.mxu1 %v4071_v20 }
 0x1a2   :  { %1277 = vmatprep.subr.bf16.mxu0 %v4075_v21  ;;  %1318 = vmatprep.subr.bf16.mxu1 %v5198_v46 }
 0x1a5   :  { %1278 = vmatpush1.bf16.msra.mxu0 %v4081_v55  ;;  %1319 = vmatpush1.bf16.msra.mxu1 %v4083_v0 }
 0x1a6   :  { %1428 = vmatprep.subr.bf16.mxu0 %v4393_v37  ;;  %1469 = vmatprep.subr.bf16.mxu1 %v4396_v42 }
 0x1a7   :  { %v1262_v40 = vld [vmem:[#allocation5] sm:$0xf] }
 0x1a8   :  { %1296 = vmatmul.mubr.bf16.vlgmr.msra.gmra.mrb[44].mxu0 %v1262_v40  ;;  %1337 = vmatmul.mubr.bf16.vlgmr.msra.gmra.mrb[44].mxu1 %v1262_v40 }
 0x1a9   :  { %1429 = vmatpush1.bf16.msra.mxu0 %v3883_v23  ;;  %1470 = vmatpush1.bf16.msra.mxu1 %v3885_v24  ;;  %v5204_v23 = vld [vmem:[#allocation22_spill] sm:$0xff]  ;;  %v5205_v24 = vld [vmem:[#allocation23_spill] sm:$0xff] }
 0x1aa   :  { %1430 = vmatprep.subr.bf16.mxu0 %v3887_v25  ;;  %1471 = vmatprep.subr.bf16.mxu1 %v3889_v26  ;;  %v5206_v25 = vld [vmem:[#allocation24_spill] sm:$0xff]  ;;  %v5207_v26 = vld [vmem:[#allocation25_spill] sm:$0xff] }
 0x1ab   :  { %1460 = vmatprep.mubr.bf16.mxu0 %v5140_v22  ;;  %1501 = vmatprep.mubr.bf16.mxu1 %v5140_v22 }
 0x1ad   :  { %1431 = vmatpush1.bf16.msra.mxu0 %v5199_v35  ;;  %1472 = vmatpush1.bf16.msra.mxu1 %v5200_v19  ;;  %v5227_v19 = vld [vmem:[#allocation47_spill] sm:$0xff] }
 0x1ae   :  { %1432 = vmatprep.subr.bf16.mxu0 %v5201_v49  ;;  %1473 = vmatprep.subr.bf16.mxu1 %v5202_v16  ;;  %v5228_v16 = vld [vmem:[#allocation48_spill] sm:$0xff] }
 0x1b1   :  { %1433 = vmatpush1.bf16.msra.mxu0 %v5203_v41  ;;  %1474 = vmatpush1.bf16.msra.mxu1 %v5204_v23 }
 0x1b2   :  { %1434 = vmatprep.subr.bf16.mxu0 %v5205_v24  ;;  %1475 = vmatprep.subr.bf16.mxu1 %v5206_v25  ;;  %v5229_v25 = vld [vmem:[#allocation49_spill] sm:$0xff] }
 0x1b5   :  { %1435 = vmatpush1.bf16.msra.mxu0 %v5207_v26  ;;  %1476 = vmatpush1.bf16.msra.mxu1 %v5208_v53  ;;  %v5230_v53 = vld [vmem:[#allocation50_spill] sm:$0xff] }
 0x1b6   :  { %1436 = vmatprep.subr.bf16.mxu0 %v5209_v45  ;;  %1477 = vmatprep.subr.bf16.mxu1 %v5210_v33 }
 0x1b9   :  { %1437 = vmatpush1.bf16.msra.mxu0 %v5211_v18  ;;  %1478 = vmatpush1.bf16.msra.mxu1 %v5212_v39 }
 0x1ba   :  { %1438 = vmatprep.subr.bf16.mxu0 %v5213_v32  ;;  %1479 = vmatprep.subr.bf16.mxu1 %v5214_v29 }
 0x1bd   :  { %1439 = vmatpush1.bf16.msra.mxu0 %v5215_v28  ;;  %1480 = vmatpush1.bf16.msra.mxu1 %v5216_v48 }
 0x1be   :  { %1440 = vmatprep.subr.bf16.mxu0 %v5217_v43  ;;  %1481 = vmatprep.subr.bf16.mxu1 %v5218_v27 }
 0x1c1   :  { %1441 = vmatpush1.bf16.msra.mxu0 %v5219_v31  ;;  %1482 = vmatpush1.bf16.msra.mxu1 %v5220_v30 }
 0x1c2   :  { %1442 = vmatprep.subr.bf16.mxu0 %v5221_v36  ;;  %1483 = vmatprep.subr.bf16.mxu1 %v5222_v50 }
 0x1c5   :  { %1443 = vmatpush1.bf16.msra.mxu0 %v5223_v38  ;;  %1484 = vmatpush1.bf16.msra.mxu1 %v5224_v52 }
 0x1c6   :  { %1511 = vmatprep.subr.bf16.mxu0 %v5225_v54  ;;  %1552 = vmatprep.subr.bf16.mxu1 %v5226_v51 }
 0x25b   :  { %v1214_v40 = vpop.f32.mrb[40].mxu0  ;;  %v1255_v35 = vpop.f32.mrb[40].mxu1 }
 0x25c   :  { %v1352_v49 = vadd.f32 %v1214_v40, %v5227_v19  ;;  %v1354_v41 = vadd.f32 %v1255_v35, %v5228_v16  ;;  %v1216_v23 = vpop.f32.mrb[41].mxu0  ;;  %v1257_v24 = vpop.f32.mrb[41].mxu1  ;;  %v5231_v16 = vld [vmem:[#allocation99_spill] sm:$0xff] }
 0x25d   :  { %v1353_v26 = vadd.f32 %v1216_v23, %v5229_v25  ;;  %v1355_v45 = vadd.f32 %v1257_v24, %v5230_v53  ;;  %v1218_v33 = vpop.f32.mrb[42].mxu0  ;;  %v1259_v18 = vpop.f32.mrb[42].mxu1  ;;  %v5232_v24 = vld [vmem:[#allocation100_spill] sm:$0xff]  ;;  %v5233_v53 = vld [vmem:[#allocation101_spill] sm:$0xff] }
 0x25e   :  { %v3124_v39 = vmul.f32 -1.442695, %v1352_v49  ;;  %v1219_v32 = vpop.f32.mrb[43].mxu0  ;;  %v1260_v29 = vpop.f32.mrb[43].mxu1  ;;  %v5234_v33 = vld [vmem:[#allocation102_spill] sm:$0xff] }
 0x25f   :  { %v3125_v28 = vmul.f32 -1.442695, %v1353_v26  ;;  %v3126_v48 = vmul.f32 -1.442695, %v1355_v45 }
 0x260   :  { %3344 = vpow2.f32 %v3124_v39 }
 0x261   :  { %3346 = vpow2.f32 %v3125_v28 }
 0x262   :  { %3348 = vpow2.f32 %v3126_v48 }
 0x263   :  { %3350 = vtanh.f32 %v1354_v41 }
 0x26a   :  { %v3345_v43 = vpop.eup %3344 }
 0x26b   :  { %v3347_v27 = vpop.eup %3346  ;;  %v1371_v31 = vadd.f32 1.0, %v3345_v43 }
 0x26c   :  { %v1377_v30 = vadd.f32 1.0, %v3347_v27  ;;  %v3349_v36 = vpop.eup %3348 }
 0x26d   :  { %3352 = vrcp.f32 %v1371_v31  ;;  %v3351_v50 = vpop.eup %3350  ;;  %v1384_v51 = vadd.f32 1.0, %v3349_v36 }
 0x26e   :  { %3354 = vrcp.f32 %v1377_v30 }
 0x26f   :  { %3356 = vrcp.f32 %v1384_v51 }
 0x277   :  { %v3353_v38 = vpop.eup %3352 }
 0x278   :  { %v3355_v52 = vpop.eup %3354  ;;  %v1388_v54 = vmul.f32 %v3353_v38, %v3351_v50 }
 0x279   :  { %v1387_v40 = vmul.f32 %v3355_v52, %v4349_v47  ;;  %v3357_v43 = vpop.eup %3356 }
 0x27b   :  { %v4438_v35 = vadd.f32 %v1388_v54, %v1387_v40  ;;  %v1297_v19 = vpop.f32.mrb[44].mxu0  ;;  %v1338_v49 = vpop.f32.mrb[44].mxu1 }
 0x27c   :  { %v1363_v23 = vadd.f32 %v1297_v19, %v5231_v16  ;;  %v1365_v41 = vadd.f32 %v1338_v49, %v5232_v24  ;;  %v1299_v25 = vpop.f32.mrb[45].mxu0  ;;  %v1340_v26 = vpop.f32.mrb[45].mxu1 }
 0x27d   :  { %3358 = vtanh.f32 %v4438_v35  ;;  %v1364_v45 = vadd.f32 %v1299_v25, %v5233_v53  ;;  %v1366_v18 = vadd.f32 %v1340_v26, %v5234_v33  ;;  %v1301_v39 = vpop.f32.mrb[46].mxu0  ;;  %v1342_v32 = vpop.f32.mrb[46].mxu1  ;;  %v4566_v25 = vld [vmem:[#allocation12 + $0xc8] ss:$16 sps:$4 sm:$0xff]   ;;  %v4569_v26 = vld [vmem:[#allocation12 + $0xe4] ss:$16 sps:$4 sm:$0xff]  }
 0x27e   :  { %v3127_v47 = vmul.f32 -1.442695, %v1363_v23  ;;  %v1302_v29 = vpop.f32.mrb[47].mxu0  ;;  %v1343_v28 = vpop.f32.mrb[47].mxu1  ;;  %5250 = vst [vmem:[#allocation30_spill] sm:$0xff] %v4566_v25  ;;  %5251 = vst [vmem:[#allocation31_spill] sm:$0xff] %v4569_v26 }
 0x27f   :  { %v3128_v48 = vmul.f32 -1.442695, %v1364_v45  ;;  %v3129_v31 = vmul.f32 -1.442695, %v1366_v18  ;;  %v4572_v53 = vld [vmem:[#allocation12 + $0xec] ss:$16 sps:$4 sm:$0xff]  }
 0x280   :  { %3360 = vpow2.f32 %v3127_v47  ;;  %5252 = vst [vmem:[#allocation32_spill] sm:$0xff] %v4572_v53  ;;  %v4575_v45 = vld [vmem:[#allocation12 + $0xe0] ss:$16 sps:$4 sm:$0xff]   ;;  %v4578_v33 = vld [vmem:[#allocation12 + $0xe8] ss:$16 sps:$4 sm:$0xff]  }
 0x281   :  { %3362 = vpow2.f32 %v3128_v48  ;;  %5253 = vst [vmem:[#allocation33_spill] sm:$0xff] %v4575_v45  ;;  %5254 = vst [vmem:[#allocation34_spill] sm:$0xff] %v4578_v33  ;;  %v4581_v18 = vld [vmem:[#allocation12 + $0x104] ss:$16 sps:$4 sm:$0xff]   ;;  %v4584_v39 = vld [vmem:[#allocation12 + $0x10c] ss:$16 sps:$4 sm:$0xff]  }
 0x282   :  { %3364 = vpow2.f32 %v3129_v31  ;;  %5255 = vst [vmem:[#allocation35_spill] sm:$0xff] %v4581_v18  ;;  %5256 = vst [vmem:[#allocation36_spill] sm:$0xff] %v4584_v39  ;;  %v5257_v29 = vld [vmem:[#allocation51_spill] sm:$0xff]  ;;  %v5258_v48 = vld [vmem:[#allocation52_spill] sm:$0xff] }
 0x283   :  { %3366 = vtanh.f32 %v1365_v41 }
 0x287   :  { %v3359_v27 = vpop.eup %3358 }
 0x288   :  { %v1391_v30 = vmul.f32 %v3359_v27, %v3357_v43 }
 0x28a   :  { %v3361_v36 = vpop.eup %3360  ;;  %v1419_v50 = vpack.c.bf16 %v1391_v30, %v1391_v30  ;;  %v5259_v30 = vld [vmem:[#allocation53_spill] sm:$0xff] }
 0x28b   :  { %v3363_v38 = vpop.eup %3362  ;;  %v1396_v52 = vadd.f32 1.0, %v3361_v36 }
 0x28c   :  { %1420 = vst [vmem:[#allocation4] sm:$0xf] %v1419_v50  ;;  %2947 = vst [vmem:[%s5023_s4 + $0x8] sm:$0xf] %v1419_v50  ;;  %v1402_v54 = vadd.f32 1.0, %v3363_v38  ;;  %v3365_v40 = vpop.eup %3364  ;;  %v5260_v50 = vld [vmem:[#allocation54_spill] sm:$0xff] }
 0x28d   :  { %3368 = vrcp.f32 %v1396_v52  ;;  %v3367_v19 = vpop.eup %3366  ;;  %v1409_v24 = vadd.f32 1.0, %v3365_v40 }
 0x28e   :  { %3370 = vrcp.f32 %v1402_v54 }
 0x28f   :  { %3372 = vrcp.f32 %v1409_v24 }
 0x293   :  { %v1427_v51 = vld [vmem:[#allocation4] sm:$0xf] }
 0x294   :  { %1461 = vmatmul.mubr.bf16.vlgmr.msra.gmra.mrb[48].mxu0 %v1427_v51  ;;  %1502 = vmatmul.mubr.bf16.vlgmr.msra.gmra.mrb[48].mxu1 %v1427_v51 }
 0x295   :  { %1512 = vmatpush1.bf16.msra.mxu0 %v3995_v56  ;;  %1553 = vmatpush1.bf16.msra.mxu1 %v3997_v57 }
 0x296   :  { %1513 = vmatprep.subr.bf16.mxu0 %v4001_v58  ;;  %1554 = vmatprep.subr.bf16.mxu1 %v4003_v59 }
 0x297   :  { %v3369_v49 = vpop.eup %3368  ;;  %1543 = vmatprep.mubr.bf16.mxu0 %v5140_v22  ;;  %1584 = vmatprep.mubr.bf16.mxu1 %v5140_v22 }
 0x298   :  { %v3371_v16 = vpop.eup %3370  ;;  %v1413_v23 = vmul.f32 %v3369_v49, %v3367_v19 }
 0x299   :  { %v1412_v41 = vmul.f32 %v3371_v16, %v4365_v34  ;;  %1514 = vmatpush1.bf16.msra.mxu0 %v4007_v60  ;;  %1555 = vmatpush1.bf16.msra.mxu1 %v4009_v61  ;;  %v3373_v57 = vpop.eup %3372  ;;  %v4557_v34 = vld [vmem:[#allocation12 + $0xc4] ss:$16 sps:$4 sm:$0xff]  }
 0x29a   :  { %1515 = vmatprep.subr.bf16.mxu0 %v4013_v62  ;;  %1556 = vmatprep.subr.bf16.mxu1 %v4015_v63  ;;  %v4489_v62 = vld [vmem:[#allocation12] ss:$16 sps:$4 sm:$0xff]   ;;  %v4492_v63 = vld [vmem:[#allocation12 + $0x8] ss:$16 sps:$4 sm:$0xff]   ;;  %5247 = vst [vmem:[#allocation27_spill] sm:$0xff] %v4557_v34 }
 0x29b   :  { %v4459_v56 = vadd.f32 %v1413_v23, %v1412_v41 }
 0x29d   :  { %3374 = vtanh.f32 %v4459_v56  ;;  %1516 = vmatpush1.bf16.msra.mxu0 %v4021_v1  ;;  %1557 = vmatpush1.bf16.msra.mxu1 %v4023_v2  ;;  %v4495_v1 = vld [vmem:[#allocation12 + $0x24] ss:$16 sps:$4 sm:$0xff]   ;;  %v4503_v2 = vld [vmem:[#allocation12 + $0x20] ss:$16 sps:$4 sm:$0xff]  }
 0x29e   :  { %1517 = vmatprep.subr.bf16.mxu0 %v4027_v3  ;;  %1558 = vmatprep.subr.bf16.mxu1 %v4029_v4  ;;  %v4506_v3 = vld [vmem:[#allocation12 + $0x28] ss:$16 sps:$4 sm:$0xff]   ;;  %v4509_v4 = vld [vmem:[#allocation12 + $0x44] ss:$16 sps:$4 sm:$0xff]  }
 0x2a1   :  { %1518 = vmatpush1.bf16.msra.mxu0 %v4033_v5  ;;  %1559 = vmatpush1.bf16.msra.mxu1 %v4035_v6  ;;  %v4512_v5 = vld [vmem:[#allocation12 + $0x4c] ss:$16 sps:$4 sm:$0xff]   ;;  %v4515_v6 = vld [vmem:[#allocation12 + $0x40] ss:$16 sps:$4 sm:$0xff]  }
 0x2a2   :  { %1519 = vmatprep.subr.bf16.mxu0 %v4039_v7  ;;  %1560 = vmatprep.subr.bf16.mxu1 %v4041_v8  ;;  %v4518_v7 = vld [vmem:[#allocation12 + $0x48] ss:$16 sps:$4 sm:$0xff]   ;;  %v4521_v8 = vld [vmem:[#allocation12 + $0x64] ss:$16 sps:$4 sm:$0xff]  }
 0x2a3   :  { %5235 = vst [vmem:[#allocation45_spill] sm:$0xff] %v4521_v8 }
 0x2a5   :  { %1520 = vmatpush1.bf16.msra.mxu0 %v4045_v9  ;;  %1561 = vmatpush1.bf16.msra.mxu1 %v4047_v10  ;;  %v4524_v9 = vld [vmem:[#allocation12 + $0x6c] ss:$16 sps:$4 sm:$0xff]   ;;  %v4527_v10 = vld [vmem:[#allocation12 + $0x60] ss:$16 sps:$4 sm:$0xff]  }
 0x2a6   :  { %1521 = vmatprep.subr.bf16.mxu0 %v4051_v11  ;;  %1562 = vmatprep.subr.bf16.mxu1 %v4053_v12  ;;  %5236 = vst [vmem:[#allocation46_spill] sm:$0xff] %v4524_v9  ;;  %5237 = vst [vmem:[#allocation17_spill] sm:$0xff] %v4527_v10  ;;  %v4530_v11 = vld [vmem:[#allocation12 + $0x68] ss:$16 sps:$4 sm:$0xff]   ;;  %v4533_v12 = vld [vmem:[#allocation12 + $0x84] ss:$16 sps:$4 sm:$0xff]  }
 0x2a7   :  { %v3375_v58 = vpop.eup %3374  ;;  %5238 = vst [vmem:[#allocation18_spill] sm:$0xff] %v4530_v11  ;;  %5239 = vst [vmem:[#allocation19_spill] sm:$0xff] %v4533_v12 }
 0x2a8   :  { %v1416_v59 = vmul.f32 %v3375_v58, %v3373_v57 }
 0x2a9   :  { %1522 = vmatpush1.bf16.msra.mxu0 %v4057_v13  ;;  %1563 = vmatpush1.bf16.msra.mxu1 %v4059_v14  ;;  %v4536_v13 = vld [vmem:[#allocation12 + $0x8c] ss:$16 sps:$4 sm:$0xff]   ;;  %v4539_v14 = vld [vmem:[#allocation12 + $0x80] ss:$16 sps:$4 sm:$0xff]  }
 0x2aa   :  { %v1421_v60 = vpack.c.bf16 %v1416_v59, %v1416_v59  ;;  %1523 = vmatprep.subr.bf16.mxu0 %v4063_v15  ;;  %1564 = vmatprep.subr.bf16.mxu1 %v5197_v44  ;;  %5240 = vst [vmem:[#allocation20_spill] sm:$0xff] %v4536_v13  ;;  %5241 = vst [vmem:[#allocation21_spill] sm:$0xff] %v4539_v14  ;;  %v4542_v15 = vld [vmem:[#allocation12 + $0x88] ss:$16 sps:$4 sm:$0xff]   ;;  %v4560_v44 = vld [vmem:[#allocation12 + $0xcc] ss:$16 sps:$4 sm:$0xff]  }
 0x2ab   :  { %5242 = vst [vmem:[#allocation22_spill] sm:$0xff] %v4542_v15  ;;  %5248 = vst [vmem:[#allocation28_spill] sm:$0xff] %v4560_v44 }
 0x2ac   :  { %1422 = vst [vmem:[#allocation5] sm:$0xf] %v1421_v60  ;;  %3000 = vst [vmem:[%s5023_s4 + $0x34] sm:$0xf] %v1421_v60 }
 0x2ad   :  { %1524 = vmatpush1.bf16.msra.mxu0 %v4069_v17  ;;  %1565 = vmatpush1.bf16.msra.mxu1 %v4071_v20  ;;  %v4545_v17 = vld [vmem:[#allocation12 + $0xa4] ss:$16 sps:$4 sm:$0xff]   ;;  %v4548_v20 = vld [vmem:[#allocation12 + $0xac] ss:$16 sps:$4 sm:$0xff]  }
 0x2ae   :  { %1525 = vmatprep.subr.bf16.mxu0 %v4075_v21  ;;  %1566 = vmatprep.subr.bf16.mxu1 %v5198_v46  ;;  %5243 = vst [vmem:[#allocation23_spill] sm:$0xff] %v4545_v17  ;;  %5244 = vst [vmem:[#allocation24_spill] sm:$0xff] %v4548_v20  ;;  %v4551_v21 = vld [vmem:[#allocation12 + $0xa0] ss:$16 sps:$4 sm:$0xff]  }
 0x2af   :  { %5245 = vst [vmem:[#allocation25_spill] sm:$0xff] %v4551_v21  ;;  %v4563_v46 = vld [vmem:[#allocation12 + $0xc0] ss:$16 sps:$4 sm:$0xff]  }
 0x2b0   :  { %5249 = vst [vmem:[#allocation29_spill] sm:$0xff] %v4563_v46 }
 0x2b1   :  { %1526 = vmatpush1.bf16.msra.mxu0 %v4081_v55  ;;  %1567 = vmatpush1.bf16.msra.mxu1 %v4083_v0  ;;  %v4498_v0 = vld [vmem:[#allocation12 + $0x2c] ss:$16 sps:$4 sm:$0xff]   ;;  %v4554_v55 = vld [vmem:[#allocation12 + $0xa8] ss:$16 sps:$4 sm:$0xff]  }
 0x2b2   :  { %1676 = vmatprep.subr.bf16.mxu0 %v4393_v37  ;;  %1717 = vmatprep.subr.bf16.mxu1 %v4396_v42  ;;  %5246 = vst [vmem:[#allocation26_spill] sm:$0xff] %v4554_v55 }
 0x2b3   :  { %v1510_v61 = vld [vmem:[#allocation5] sm:$0xf] }
 0x2b4   :  { %1544 = vmatmul.mubr.bf16.vlgmr.msra.gmra.mrb[52].mxu0 %v1510_v61  ;;  %1585 = vmatmul.mubr.bf16.vlgmr.msra.gmra.mrb[52].mxu1 %v1510_v61 }
 0x2b5   :  { %1677 = vmatpush1.bf16.msra.mxu0 %v4489_v62  ;;  %1718 = vmatpush1.bf16.msra.mxu1 %v4492_v63 }
 0x2b6   :  { %1678 = vmatprep.subr.bf16.mxu0 %v4495_v1  ;;  %1719 = vmatprep.subr.bf16.mxu1 %v4498_v0 }
 0x2b7   :  { %1708 = vmatprep.mubr.bf16.mxu0 %v5140_v22  ;;  %1749 = vmatprep.mubr.bf16.mxu1 %v5140_v22 }
 0x2b9   :  { %1679 = vmatpush1.bf16.msra.mxu0 %v4503_v2  ;;  %1720 = vmatpush1.bf16.msra.mxu1 %v4506_v3 }
 0x2ba   :  { %1680 = vmatprep.subr.bf16.mxu0 %v4509_v4  ;;  %1721 = vmatprep.subr.bf16.mxu1 %v4512_v5 }
 0x2bd   :  { %1681 = vmatpush1.bf16.msra.mxu0 %v4515_v6  ;;  %1722 = vmatpush1.bf16.msra.mxu1 %v4518_v7 }
 0x2be   :  { %1682 = vmatprep.subr.bf16.mxu0 %v4521_v8  ;;  %1723 = vmatprep.subr.bf16.mxu1 %v4524_v9 }
 0x2c1   :  { %1683 = vmatpush1.bf16.msra.mxu0 %v4527_v10  ;;  %1724 = vmatpush1.bf16.msra.mxu1 %v4530_v11 }
 0x2c2   :  { %1684 = vmatprep.subr.bf16.mxu0 %v4533_v12  ;;  %1725 = vmatprep.subr.bf16.mxu1 %v4536_v13 }
 0x2c5   :  { %1685 = vmatpush1.bf16.msra.mxu0 %v4539_v14  ;;  %1726 = vmatpush1.bf16.msra.mxu1 %v4542_v15 }
 0x2c6   :  { %1686 = vmatprep.subr.bf16.mxu0 %v4545_v17  ;;  %1727 = vmatprep.subr.bf16.mxu1 %v4548_v20 }
 0x2c9   :  { %1687 = vmatpush1.bf16.msra.mxu0 %v4551_v21  ;;  %1728 = vmatpush1.bf16.msra.mxu1 %v4554_v55 }
 0x2ca   :  { %1688 = vmatprep.subr.bf16.mxu0 %v4557_v34  ;;  %1729 = vmatprep.subr.bf16.mxu1 %v4560_v44 }
 0x2cd   :  { %1689 = vmatpush1.bf16.msra.mxu0 %v4563_v46  ;;  %1730 = vmatpush1.bf16.msra.mxu1 %v4566_v25 }
 0x2ce   :  { %1690 = vmatprep.subr.bf16.mxu0 %v4569_v26  ;;  %1731 = vmatprep.subr.bf16.mxu1 %v4572_v53 }
 0x2d1   :  { %1691 = vmatpush1.bf16.msra.mxu0 %v4575_v45  ;;  %1732 = vmatpush1.bf16.msra.mxu1 %v4578_v33 }
 0x2d2   :  { %1759 = vmatprep.subr.bf16.mxu0 %v4581_v18  ;;  %1800 = vmatprep.subr.bf16.mxu1 %v4584_v39 }
 0x367   :  { %v1462_v32 = vpop.f32.mrb[48].mxu0  ;;  %v1503_v47 = vpop.f32.mrb[48].mxu1 }
 0x368   :  { %v1600_v28 = vadd.f32 %v1462_v32, %v5257_v29  ;;  %v1602_v43 = vadd.f32 %v1503_v47, %v5258_v48  ;;  %v1464_v27 = vpop.f32.mrb[49].mxu0  ;;  %v1505_v31 = vpop.f32.mrb[49].mxu1 }
 0x369   :  { %v1601_v36 = vadd.f32 %v1464_v27, %v5259_v30  ;;  %v1603_v38 = vadd.f32 %v1505_v31, %v5260_v50  ;;  %v1466_v52 = vpop.f32.mrb[50].mxu0  ;;  %v1507_v54 = vpop.f32.mrb[50].mxu1  ;;  %v5261_v31 = vld [vmem:[#allocation95_spill] sm:$0xff] }
 0x36a   :  { %v3130_v51 = vmul.f32 -1.442695, %v1600_v28  ;;  %v1467_v40 = vpop.f32.mrb[51].mxu0  ;;  %v1508_v19 = vpop.f32.mrb[51].mxu1  ;;  %v5263_v52 = vld [vmem:[#allocation97_spill] sm:$0xff] }
 0x36b   :  { %v3131_v49 = vmul.f32 -1.442695, %v1601_v36  ;;  %v3132_v16 = vmul.f32 -1.442695, %v1603_v38  ;;  %v5262_v36 = vld [vmem:[#allocation96_spill] sm:$0xff] }
 0x36c   :  { %3376 = vpow2.f32 %v3130_v51  ;;  %v5264_v51 = vld [vmem:[#allocation98_spill] sm:$0xff] }
 0x36d   :  { %3378 = vpow2.f32 %v3131_v49 }
 0x36e   :  { %3380 = vpow2.f32 %v3132_v16 }
 0x36f   :  { %3382 = vtanh.f32 %v1602_v43 }
 0x376   :  { %v3377_v23 = vpop.eup %3376 }
 0x377   :  { %v3379_v24 = vpop.eup %3378  ;;  %v1619_v41 = vadd.f32 1.0, %v3377_v23 }
 0x378   :  { %v1625_v57 = vadd.f32 1.0, %v3379_v24  ;;  %v3381_v58 = vpop.eup %3380 }
 0x379   :  { %3384 = vrcp.f32 %v1619_v41  ;;  %v3383_v59 = vpop.eup %3382  ;;  %v1632_v47 = vadd.f32 1.0, %v3381_v58 }
 0x37a   :  { %3386 = vrcp.f32 %v1625_v57 }
 0x37b   :  { %3388 = vrcp.f32 %v1632_v47 }
 0x383   :  { %v3385_v60 = vpop.eup %3384 }
 0x384   :  { %v3387_v61 = vpop.eup %3386  ;;  %v1636_v32 = vmul.f32 %v3385_v60, %v3383_v59 }
 0x385   :  { %v1635_v29 = vmul.f32 %v3387_v61, %v4438_v35  ;;  %v3389_v41 = vpop.eup %3388 }
 0x387   :  { %v4592_v28 = vadd.f32 %v1636_v32, %v1635_v29  ;;  %v1545_v48 = vpop.f32.mrb[52].mxu0  ;;  %v1586_v27 = vpop.f32.mrb[52].mxu1 }
 0x388   :  { %v1611_v30 = vadd.f32 %v1545_v48, %v5261_v31  ;;  %v1613_v43 = vadd.f32 %v1586_v27, %v5262_v36  ;;  %v1547_v50 = vpop.f32.mrb[53].mxu0  ;;  %v1588_v38 = vpop.f32.mrb[53].mxu1  ;;  %v4602_v31 = vld [vmem:[#allocation12 + $0x100] ss:$16 sps:$4 sm:$0xff]  }
 0x389   :  { %3390 = vtanh.f32 %v4592_v28  ;;  %v1612_v54 = vadd.f32 %v1547_v50, %v5263_v52  ;;  %v1614_v40 = vadd.f32 %v1588_v38, %v5264_v51  ;;  %v1549_v19 = vpop.f32.mrb[54].mxu0  ;;  %v1590_v49 = vpop.f32.mrb[54].mxu1  ;;  %v4608_v50 = vld [vmem:[#allocation12 + $0x124] ss:$16 sps:$4 sm:$0xff]  }
 0x38a   :  { %v3133_v35 = vmul.f32 -1.442695, %v1611_v30  ;;  %v1550_v16 = vpop.f32.mrb[55].mxu0  ;;  %v1591_v23 = vpop.f32.mrb[55].mxu1  ;;  %v4605_v30 = vld [vmem:[#allocation12 + $0x108] ss:$16 sps:$4 sm:$0xff]  }
 0x38b   :  { %v3134_v24 = vmul.f32 -1.442695, %v1612_v54  ;;  %v3135_v58 = vmul.f32 -1.442695, %v1614_v40  ;;  %v4617_v19 = vld [vmem:[#allocation12 + $0x120] ss:$16 sps:$4 sm:$0xff]  }
 0x38c   :  { %3392 = vpow2.f32 %v3133_v35  ;;  %v4620_v49 = vld [vmem:[#allocation12 + $0x128] ss:$16 sps:$4 sm:$0xff]   ;;  %v4623_v35 = vld [vmem:[#allocation12 + $0x144] ss:$16 sps:$4 sm:$0xff]   ;;  %v4626_v16 = vld [vmem:[#allocation12 + $0x14c] ss:$16 sps:$4 sm:$0xff]  }
 0x38d   :  { %3394 = vpow2.f32 %v3134_v24  ;;  %v4635_v24 = vld [vmem:[#allocation12 + $0x148] ss:$16 sps:$4 sm:$0xff]  }
 0x38e   :  { %3396 = vpow2.f32 %v3135_v58  ;;  %v4644_v58 = vld [vmem:[#allocation12 + $0x160] ss:$16 sps:$4 sm:$0xff]  }
 0x38f   :  { %3398 = vtanh.f32 %v1613_v43  ;;  %v4611_v43 = vld [vmem:[#allocation12 + $0x12c] ss:$16 sps:$4 sm:$0xff]  }
 0x393   :  { %v3391_v57 = vpop.eup %3390 }
 0x394   :  { %v1639_v59 = vmul.f32 %v3391_v57, %v3389_v41  ;;  %v4638_v41 = vld [vmem:[#allocation12 + $0x164] ss:$16 sps:$4 sm:$0xff]   ;;  %v4641_v57 = vld [vmem:[#allocation12 + $0x16c] ss:$16 sps:$4 sm:$0xff]  }
 0x396   :  { %v3393_v60 = vpop.eup %3392  ;;  %v1667_v61 = vpack.c.bf16 %v1639_v59, %v1639_v59  ;;  %v4647_v59 = vld [vmem:[#allocation12 + $0x168] ss:$16 sps:$4 sm:$0xff]  }
 0x397   :  { %v3395_v32 = vpop.eup %3394  ;;  %v1644_v47 = vadd.f32 1.0, %v3393_v60  ;;  %v4650_v60 = vld [vmem:[#allocation12 + $0x184] ss:$16 sps:$4 sm:$0xff]  }
 0x398   :  { %1668 = vst [vmem:[#allocation4] sm:$0xf] %v1667_v61  ;;  %2948 = vst [vmem:[%s5023_s4 + $0x10] sm:$0xf] %v1667_v61  ;;  %v1650_v29 = vadd.f32 1.0, %v3395_v32  ;;  %v3397_v27 = vpop.eup %3396 }
 0x399   :  { %3400 = vrcp.f32 %v1644_v47  ;;  %v3399_v36 = vpop.eup %3398  ;;  %v1657_v51 = vadd.f32 1.0, %v3397_v27  ;;  %v4653_v61 = vld [vmem:[#allocation12 + $0x18c] ss:$16 sps:$4 sm:$0xff]   ;;  %v4656_v32 = vld [vmem:[#allocation12 + $0x180] ss:$16 sps:$4 sm:$0xff]  }
 0x39a   :  { %3402 = vrcp.f32 %v1650_v29  ;;  %v4659_v47 = vld [vmem:[#allocation12 + $0x188] ss:$16 sps:$4 sm:$0xff]   ;;  %v4665_v27 = vld [vmem:[#allocation12 + $0x1ac] ss:$16 sps:$4 sm:$0xff]  }
 0x39b   :  { %3404 = vrcp.f32 %v1657_v51 }
 0x39f   :  { %v1675_v48 = vld [vmem:[#allocation4] sm:$0xf] }
 0x3a0   :  { %1709 = vmatmul.mubr.bf16.vlgmr.msra.gmra.mrb[56].mxu0 %v1675_v48  ;;  %1750 = vmatmul.mubr.bf16.vlgmr.msra.gmra.mrb[56].mxu1 %v1675_v48  ;;  %v4662_v48 = vld [vmem:[#allocation12 + $0x1a4] ss:$16 sps:$4 sm:$0xff]  }
 0x3a1   :  { %1760 = vmatpush1.bf16.msra.mxu0 %v4602_v31  ;;  %1801 = vmatpush1.bf16.msra.mxu1 %v4605_v30  ;;  %5265 = vst [vmem:[#allocation37_spill] sm:$0xff] %v4662_v48 }
 0x3a2   :  { %1761 = vmatprep.subr.bf16.mxu0 %v4608_v50  ;;  %1802 = vmatprep.subr.bf16.mxu1 %v4611_v43 }
 0x3a3   :  { %v3401_v38 = vpop.eup %3400  ;;  %1791 = vmatprep.mubr.bf16.mxu0 %v5140_v22  ;;  %1832 = vmatprep.mubr.bf16.mxu1 %v5140_v22 }
 0x3a4   :  { %v3403_v52 = vpop.eup %3402  ;;  %v1661_v54 = vmul.f32 %v3401_v38, %v3399_v36 }
 0x3a5   :  { %v1660_v40 = vmul.f32 %v3403_v52, %v4459_v56  ;;  %1762 = vmatpush1.bf16.msra.mxu0 %v4617_v19  ;;  %1803 = vmatpush1.bf16.msra.mxu1 %v4620_v49  ;;  %v4632_v56 = vld [vmem:[#allocation12 + $0x140] ss:$16 sps:$4 sm:$0xff]   ;;  %v3405_v29 = vpop.eup %3404 }
 0x3a6   :  { %1763 = vmatprep.subr.bf16.mxu0 %v4623_v35  ;;  %1804 = vmatprep.subr.bf16.mxu1 %v4626_v16  ;;  %v4668_v52 = vld [vmem:[#allocation12 + $0x1a0] ss:$16 sps:$4 sm:$0xff]  }
 0x3a7   :  { %v4629_v23 = vadd.f32 %v1661_v54, %v1660_v40  ;;  %v4671_v54 = vld [vmem:[#allocation12 + $0x1a8] ss:$16 sps:$4 sm:$0xff]   ;;  %v4674_v40 = vld [vmem:[#allocation12 + $0x1c4] ss:$16 sps:$4 sm:$0xff]  }
 0x3a8   :  { %5266 = vst [vmem:[#allocation38_spill] sm:$0xff] %v4674_v40 }
 0x3a9   :  { %3406 = vtanh.f32 %v4629_v23  ;;  %1764 = vmatpush1.bf16.msra.mxu0 %v4632_v56  ;;  %1805 = vmatpush1.bf16.msra.mxu1 %v4635_v24 }
 0x3aa   :  { %1765 = vmatprep.subr.bf16.mxu0 %v4638_v41  ;;  %1806 = vmatprep.subr.bf16.mxu1 %v4641_v57 }
 0x3ad   :  { %1766 = vmatpush1.bf16.msra.mxu0 %v4644_v58  ;;  %1807 = vmatpush1.bf16.msra.mxu1 %v4647_v59 }
 0x3ae   :  { %1767 = vmatprep.subr.bf16.mxu0 %v4650_v60  ;;  %1808 = vmatprep.subr.bf16.mxu1 %v4653_v61 }
 0x3b1   :  { %1768 = vmatpush1.bf16.msra.mxu0 %v4656_v32  ;;  %1809 = vmatpush1.bf16.msra.mxu1 %v4659_v47 }
 0x3b2   :  { %1769 = vmatprep.subr.bf16.mxu0 %v4662_v48  ;;  %1810 = vmatprep.subr.bf16.mxu1 %v4665_v27  ;;  %v4677_v48 = vld [vmem:[#allocation12 + $0x1cc] ss:$16 sps:$4 sm:$0xff]  }
 0x3b3   :  { %v3407_v36 = vpop.eup %3406  ;;  %5267 = vst [vmem:[#allocation39_spill] sm:$0xff] %v4677_v48 }
 0x3b4   :  { %v1664_v38 = vmul.f32 %v3407_v36, %v3405_v29  ;;  %v4683_v29 = vld [vmem:[#allocation12 + $0x1c0] ss:$16 sps:$4 sm:$0xff]   ;;  %v4686_v36 = vld [vmem:[#allocation12 + $0x1c8] ss:$16 sps:$4 sm:$0xff]  }
 0x3b5   :  { %1770 = vmatpush1.bf16.msra.mxu0 %v4668_v52  ;;  %1811 = vmatpush1.bf16.msra.mxu1 %v4671_v54  ;;  %5268 = vst [vmem:[#allocation40_spill] sm:$0xff] %v4686_v36 }
 0x3b6   :  { %v1669_v51 = vpack.c.bf16 %v1664_v38, %v1664_v38  ;;  %1771 = vmatprep.subr.bf16.mxu0 %v4674_v40  ;;  %1812 = vmatprep.subr.bf16.mxu1 %v4677_v48  ;;  %v4689_v38 = vld [vmem:[#allocation12 + $0x1e4] ss:$16 sps:$4 sm:$0xff]   ;;  %v4692_v40 = vld [vmem:[#allocation12 + $0x1ec] ss:$16 sps:$4 sm:$0xff]   ;;  %v4695_v48 = vld [vmem:[#allocation12 + $0x1e0] ss:$16 sps:$4 sm:$0xff]  }
 0x3b8   :  { %1670 = vst [vmem:[#allocation5] sm:$0xf] %v1669_v51  ;;  %2999 = vst [vmem:[%s5023_s4 + $0x2c] sm:$0xf] %v1669_v51  ;;  %v4698_v51 = vld [vmem:[#allocation12 + $0x1e8] ss:$16 sps:$4 sm:$0xff]  }
 0x3b9   :  { %1772 = vmatpush1.bf16.msra.mxu0 %v4683_v29  ;;  %1813 = vmatpush1.bf16.msra.mxu1 %v4686_v36 }
 0x3ba   :  { %1773 = vmatprep.subr.bf16.mxu0 %v4689_v38  ;;  %1814 = vmatprep.subr.bf16.mxu1 %v4692_v40 }
 0x3bd   :  { %1774 = vmatpush1.bf16.msra.mxu0 %v4695_v48  ;;  %1815 = vmatpush1.bf16.msra.mxu1 %v4698_v51 }
 0x3be   :  { %1924 = vmatprep.subr.bf16.mxu0 %v4393_v37  ;;  %1965 = vmatprep.subr.bf16.mxu1 %v4396_v42 }
 0x3bf   :  { %v1758_v36 = vld [vmem:[#allocation5] sm:$0xf] }
 0x3c0   :  { %1792 = vmatmul.mubr.bf16.vlgmr.msra.gmra.mrb[60].mxu0 %v1758_v36  ;;  %1833 = vmatmul.mubr.bf16.vlgmr.msra.gmra.mrb[60].mxu1 %v1758_v36 }
 0x3c1   :  { %1925 = vmatpush1.bf16.msra.mxu0 %v4489_v62  ;;  %1966 = vmatpush1.bf16.msra.mxu1 %v4492_v63 }
 0x3c2   :  { %1926 = vmatprep.subr.bf16.mxu0 %v4495_v1  ;;  %1967 = vmatprep.subr.bf16.mxu1 %v4498_v0 }
 0x3c3   :  { %1956 = vmatprep.mubr.bf16.mxu0 %v5140_v22  ;;  %1997 = vmatprep.mubr.bf16.mxu1 %v5140_v22 }
 0x3c5   :  { %1927 = vmatpush1.bf16.msra.mxu0 %v4503_v2  ;;  %1968 = vmatpush1.bf16.msra.mxu1 %v4506_v3 }
 0x3c6   :  { %1928 = vmatprep.subr.bf16.mxu0 %v4509_v4  ;;  %1969 = vmatprep.subr.bf16.mxu1 %v4512_v5 }
 0x3c9   :  { %1929 = vmatpush1.bf16.msra.mxu0 %v4515_v6  ;;  %1970 = vmatpush1.bf16.msra.mxu1 %v4518_v7 }
 0x3ca   :  { %1930 = vmatprep.subr.bf16.mxu0 %v4521_v8  ;;  %1971 = vmatprep.subr.bf16.mxu1 %v4524_v9 }
 0x3cd   :  { %1931 = vmatpush1.bf16.msra.mxu0 %v4527_v10  ;;  %1972 = vmatpush1.bf16.msra.mxu1 %v4530_v11 }
 0x3ce   :  { %1932 = vmatprep.subr.bf16.mxu0 %v4533_v12  ;;  %1973 = vmatprep.subr.bf16.mxu1 %v4536_v13 }
 0x3d1   :  { %1933 = vmatpush1.bf16.msra.mxu0 %v4539_v14  ;;  %1974 = vmatpush1.bf16.msra.mxu1 %v4542_v15  ;;  %v5272_v15 = vld [vmem:[#allocation58_spill] sm:$0xff] }
 0x3d2   :  { %1934 = vmatprep.subr.bf16.mxu0 %v4545_v17  ;;  %1975 = vmatprep.subr.bf16.mxu1 %v4548_v20  ;;  %v5271_v17 = vld [vmem:[#allocation57_spill] sm:$0xff] }
 0x3d5   :  { %1935 = vmatpush1.bf16.msra.mxu0 %v4551_v21  ;;  %1976 = vmatpush1.bf16.msra.mxu1 %v4554_v55  ;;  %v5269_v55 = vld [vmem:[#allocation55_spill] sm:$0xff]  ;;  %v5270_v21 = vld [vmem:[#allocation56_spill] sm:$0xff] }
 0x3d6   :  { %1936 = vmatprep.subr.bf16.mxu0 %v4557_v34  ;;  %1977 = vmatprep.subr.bf16.mxu1 %v4560_v44 }
 0x3d9   :  { %1937 = vmatpush1.bf16.msra.mxu0 %v4563_v46  ;;  %1978 = vmatpush1.bf16.msra.mxu1 %v4566_v25 }
 0x3da   :  { %1938 = vmatprep.subr.bf16.mxu0 %v4569_v26  ;;  %1979 = vmatprep.subr.bf16.mxu1 %v4572_v53 }
 0x3dd   :  { %1939 = vmatpush1.bf16.msra.mxu0 %v4575_v45  ;;  %1980 = vmatpush1.bf16.msra.mxu1 %v4578_v33 }
 0x3de   :  { %2007 = vmatprep.subr.bf16.mxu0 %v4581_v18  ;;  %2048 = vmatprep.subr.bf16.mxu1 %v4584_v39 }
 0x473   :  { %v1710_v36 = vpop.f32.mrb[56].mxu0  ;;  %v1751_v34 = vpop.f32.mrb[56].mxu1 }
 0x474   :  { %v1848_v44 = vadd.f32 %v1710_v36, %v5269_v55  ;;  %v1850_v46 = vadd.f32 %v1751_v34, %v5270_v21  ;;  %v1712_v20 = vpop.f32.mrb[57].mxu0  ;;  %v1753_v25 = vpop.f32.mrb[57].mxu1  ;;  %v5277_v36 = vld [vmem:[#allocation94_spill] sm:$0xff] }
 0x475   :  { %v1849_v26 = vadd.f32 %v1712_v20, %v5271_v17  ;;  %v1851_v53 = vadd.f32 %v1753_v25, %v5272_v15  ;;  %v1714_v14 = vpop.f32.mrb[58].mxu0  ;;  %v1755_v45 = vpop.f32.mrb[58].mxu1 }
 0x476   :  { %v3136_v13 = vmul.f32 -1.442695, %v1848_v44  ;;  %v1715_v33 = vpop.f32.mrb[59].mxu0  ;;  %v1756_v12 = vpop.f32.mrb[59].mxu1  ;;  %v5275_v45 = vld [vmem:[#allocation92_spill] sm:$0xff] }
 0x477   :  { %v3137_v18 = vmul.f32 -1.442695, %v1849_v26  ;;  %v3138_v39 = vmul.f32 -1.442695, %v1851_v53  ;;  %v5274_v53 = vld [vmem:[#allocation91_spill] sm:$0xff] }
 0x478   :  { %3408 = vpow2.f32 %v3136_v13 }
 0x479   :  { %3410 = vpow2.f32 %v3137_v18  ;;  %v5276_v18 = vld [vmem:[#allocation93_spill] sm:$0xff] }
 0x47a   :  { %3412 = vpow2.f32 %v3138_v39 }
 0x47b   :  { %3414 = vtanh.f32 %v1850_v46 }
 0x482   :  { %v3409_v11 = vpop.eup %3408 }
 0x483   :  { %v3411_v10 = vpop.eup %3410  ;;  %v1867_v55 = vadd.f32 1.0, %v3409_v11 }
 0x484   :  { %v1873_v21 = vadd.f32 1.0, %v3411_v10  ;;  %v3413_v17 = vpop.eup %3412 }
 0x485   :  { %3416 = vrcp.f32 %v1867_v55  ;;  %v3415_v20 = vpop.eup %3414  ;;  %v1880_v44 = vadd.f32 1.0, %v3413_v17 }
 0x486   :  { %3418 = vrcp.f32 %v1873_v21 }
 0x487   :  { %3420 = vrcp.f32 %v1880_v44 }
 0x48f   :  { %v3417_v15 = vpop.eup %3416 }
 0x490   :  { %v3419_v14 = vpop.eup %3418  ;;  %v1884_v34 = vmul.f32 %v3417_v15, %v3415_v20 }
 0x491   :  { %v1883_v12 = vmul.f32 %v3419_v14, %v4592_v28 }
 0x493   :  { %v4742_v25 = vadd.f32 %v1884_v34, %v1883_v12  ;;  %v1793_v13 = vpop.f32.mrb[60].mxu0  ;;  %v1834_v26 = vpop.f32.mrb[60].mxu1 }
 0x494   :  { %v1859_v11 = vadd.f32 %v1793_v13, %v5274_v53  ;;  %v1861_v46 = vadd.f32 %v1834_v26, %v5275_v45  ;;  %v1795_v10 = vpop.f32.mrb[61].mxu0  ;;  %v1836_v33 = vpop.f32.mrb[61].mxu1 }
 0x495   :  { %5273 = vst [vmem:[#allocation41_spill] sm:$0xff] %v4742_v25  ;;  %3422 = vtanh.f32 %v4742_v25  ;;  %v1860_v39 = vadd.f32 %v1795_v10, %v5276_v18  ;;  %v1862_v55 = vadd.f32 %v1836_v33, %v5277_v36  ;;  %v1797_v21 = vpop.f32.mrb[62].mxu0  ;;  %v1838_v17 = vpop.f32.mrb[62].mxu1 }
 0x496   :  { %v3139_v28 = vmul.f32 -1.442695, %v1859_v11  ;;  %v1798_v20 = vpop.f32.mrb[63].mxu0  ;;  %v1839_v15 = vpop.f32.mrb[63].mxu1  ;;  %v5278_v17 = vld [vmem:[#allocation37_spill] sm:$0xff] }
 0x497   :  { %v3140_v14 = vmul.f32 -1.442695, %v1860_v39  ;;  %v3421_v34 = vpop.eup %3420  ;;  %v3141_v12 = vmul.f32 -1.442695, %v1862_v55 }
 0x498   :  { %3424 = vpow2.f32 %v3139_v28 }
 0x499   :  { %3426 = vpow2.f32 %v3140_v14  ;;  %v5279_v14 = vld [vmem:[#allocation38_spill] sm:$0xff] }
 0x49a   :  { %3428 = vpow2.f32 %v3141_v12 }
 0x49b   :  { %3430 = vtanh.f32 %v1861_v46 }
 0x49f   :  { %v3423_v44 = vpop.eup %3422 }
 0x4a0   :  { %v1887_v13 = vmul.f32 %v3423_v44, %v3421_v34  ;;  %v5280_v34 = vld [vmem:[#allocation39_spill] sm:$0xff]  ;;  %v5281_v44 = vld [vmem:[#allocation40_spill] sm:$0xff] }
 0x4a2   :  { %v3425_v26 = vpop.eup %3424  ;;  %v1915_v53 = vpack.c.bf16 %v1887_v13, %v1887_v13  ;;  %v5284_v13 = vld [vmem:[#allocation19_spill] sm:$0xff] }
 0x4a3   :  { %v3427_v45 = vpop.eup %3426  ;;  %v1892_v25 = vadd.f32 1.0, %v3425_v26  ;;  %v5285_v26 = vld [vmem:[#allocation20_spill] sm:$0xff] }
 0x4a4   :  { %2949 = vst [vmem:[%s5023_s4 + $0x18] sm:$0xf] %v1915_v53  ;;  %1916 = vst [vmem:[#allocation4] sm:$0xf] %v1915_v53  ;;  %v1898_v11 = vadd.f32 1.0, %v3427_v45  ;;  %v3429_v33 = vpop.eup %3428  ;;  %v5286_v53 = vld [vmem:[#allocation21_spill] sm:$0xff] }
 0x4a5   :  { %3432 = vrcp.f32 %v1892_v25  ;;  %v3431_v18 = vpop.eup %3430  ;;  %v1905_v36 = vadd.f32 1.0, %v3429_v33  ;;  %v5287_v45 = vld [vmem:[#allocation22_spill] sm:$0xff]  ;;  %v5290_v33 = vld [vmem:[#allocation25_spill] sm:$0xff] }
 0x4a6   :  { %3434 = vrcp.f32 %v1898_v11  ;;  %v5288_v11 = vld [vmem:[#allocation23_spill] sm:$0xff] }
 0x4a7   :  { %3436 = vrcp.f32 %v1905_v36  ;;  %v5295_v36 = vld [vmem:[#allocation30_spill] sm:$0xff] }
 0x4ab   :  { %v1923_v10 = vld [vmem:[#allocation4] sm:$0xf] }
 0x4ac   :  { %1957 = vmatmul.mubr.bf16.vlgmr.msra.gmra.mrb[64].mxu0 %v1923_v10  ;;  %1998 = vmatmul.mubr.bf16.vlgmr.msra.gmra.mrb[64].mxu1 %v1923_v10  ;;  %v5289_v10 = vld [vmem:[#allocation24_spill] sm:$0xff] }
 0x4ad   :  { %2008 = vmatpush1.bf16.msra.mxu0 %v4602_v31  ;;  %2049 = vmatpush1.bf16.msra.mxu1 %v4605_v30 }
 0x4ae   :  { %2009 = vmatprep.subr.bf16.mxu0 %v4608_v50  ;;  %2050 = vmatprep.subr.bf16.mxu1 %v4611_v43 }
 0x4af   :  { %v3433_v39 = vpop.eup %3432  ;;  %2039 = vmatprep.mubr.bf16.mxu0 %v5140_v22  ;;  %2080 = vmatprep.mubr.bf16.mxu1 %v5140_v22 }
 0x4b0   :  { %v3435_v25 = vpop.eup %3434  ;;  %v1909_v46 = vmul.f32 %v3433_v39, %v3431_v18  ;;  %v5291_v18 = vld [vmem:[#allocation26_spill] sm:$0xff]  ;;  %v5292_v39 = vld [vmem:[#allocation27_spill] sm:$0xff] }
 0x4b1   :  { %v1908_v55 = vmul.f32 %v3435_v25, %v4629_v23  ;;  %2010 = vmatpush1.bf16.msra.mxu0 %v4617_v19  ;;  %2051 = vmatpush1.bf16.msra.mxu1 %v4620_v49  ;;  %v3437_v23 = vpop.eup %3436  ;;  %v5293_v25 = vld [vmem:[#allocation28_spill] sm:$0xff] }
 0x4b2   :  { %2011 = vmatprep.subr.bf16.mxu0 %v4623_v35  ;;  %2052 = vmatprep.subr.bf16.mxu1 %v4626_v16 }
 0x4b3   :  { %v4763_v21 = vadd.f32 %v1909_v46, %v1908_v55  ;;  %v5294_v46 = vld [vmem:[#allocation29_spill] sm:$0xff]  ;;  %v5296_v55 = vld [vmem:[#allocation31_spill] sm:$0xff] }
 0x4b5   :  { %3438 = vtanh.f32 %v4763_v21  ;;  %2012 = vmatpush1.bf16.msra.mxu0 %v4632_v56  ;;  %2053 = vmatpush1.bf16.msra.mxu1 %v4635_v24 }
 0x4b6   :  { %2013 = vmatprep.subr.bf16.mxu0 %v4638_v41  ;;  %2054 = vmatprep.subr.bf16.mxu1 %v4641_v57 }
 0x4b9   :  { %2014 = vmatpush1.bf16.msra.mxu0 %v4644_v58  ;;  %2055 = vmatpush1.bf16.msra.mxu1 %v4647_v59 }
 0x4ba   :  { %2015 = vmatprep.subr.bf16.mxu0 %v4650_v60  ;;  %2056 = vmatprep.subr.bf16.mxu1 %v4653_v61 }
 0x4bd   :  { %2016 = vmatpush1.bf16.msra.mxu0 %v4656_v32  ;;  %2057 = vmatpush1.bf16.msra.mxu1 %v4659_v47 }
 0x4be   :  { %2017 = vmatprep.subr.bf16.mxu0 %v5278_v17  ;;  %2058 = vmatprep.subr.bf16.mxu1 %v4665_v27 }
 0x4bf   :  { %v3439_v28 = vpop.eup %3438 }
 0x4c0   :  { %v1912_v20 = vmul.f32 %v3439_v28, %v3437_v23  ;;  %v5297_v23 = vld [vmem:[#allocation32_spill] sm:$0xff]  ;;  %v5298_v28 = vld [vmem:[#allocation33_spill] sm:$0xff] }
 0x4c1   :  { %2018 = vmatpush1.bf16.msra.mxu0 %v4668_v52  ;;  %2059 = vmatpush1.bf16.msra.mxu1 %v4671_v54 }
 0x4c2   :  { %v1917_v15 = vpack.c.bf16 %v1912_v20, %v1912_v20  ;;  %2019 = vmatprep.subr.bf16.mxu0 %v5279_v14  ;;  %2060 = vmatprep.subr.bf16.mxu1 %v5280_v34  ;;  %v5299_v20 = vld [vmem:[#allocation34_spill] sm:$0xff] }
 0x4c4   :  { %2998 = vst [vmem:[%s5023_s4 + $0x24] sm:$0xf] %v1917_v15  ;;  %1918 = vst [vmem:[#allocation5] sm:$0xf] %v1917_v15  ;;  %v5300_v15 = vld [vmem:[#allocation35_spill] sm:$0xff] }
 0x4c5   :  { %2020 = vmatpush1.bf16.msra.mxu0 %v4683_v29  ;;  %2061 = vmatpush1.bf16.msra.mxu1 %v5281_v44 }
 0x4c6   :  { %2021 = vmatprep.subr.bf16.mxu0 %v4689_v38  ;;  %2062 = vmatprep.subr.bf16.mxu1 %v4692_v40 }
 0x4c9   :  { %2022 = vmatpush1.bf16.msra.mxu0 %v4695_v48  ;;  %2063 = vmatpush1.bf16.msra.mxu1 %v4698_v51 }
 0x4ca   :  { %2170 = vmatprep.subr.bf16.mxu0 %v4393_v37  ;;  %2211 = vmatprep.subr.bf16.mxu1 %v4396_v42  ;;  %v5282_v37 = vld [vmem:[#allocation17_spill] sm:$0xff]  ;;  %v5283_v42 = vld [vmem:[#allocation18_spill] sm:$0xff] }
 0x4cb   :  { %v2006_v12 = vld [vmem:[#allocation5] sm:$0xf] }
 0x4cc   :  { %2040 = vmatmul.mubr.bf16.vlgmr.msra.gmra.mrb[68].mxu0 %v2006_v12  ;;  %2081 = vmatmul.mubr.bf16.vlgmr.msra.gmra.mrb[68].mxu1 %v2006_v12  ;;  %v5301_v12 = vld [vmem:[#allocation36_spill] sm:$0xff] }
 0x4cd   :  { %2171 = vmatpush1.bf16.msra.mxu0 %v4489_v62  ;;  %2212 = vmatpush1.bf16.msra.mxu1 %v4492_v63 }
 0x4ce   :  { %2172 = vmatprep.subr.bf16.mxu0 %v4495_v1  ;;  %2213 = vmatprep.subr.bf16.mxu1 %v4498_v0 }
 0x4cf   :  { %2202 = vmatprep.mubr.bf16.mxu0 %v5140_v22  ;;  %2243 = vmatprep.mubr.bf16.mxu1 %v5140_v22 }
 0x4d1   :  { %2173 = vmatpush1.bf16.msra.mxu0 %v4503_v2  ;;  %2214 = vmatpush1.bf16.msra.mxu1 %v4506_v3 }
 0x4d2   :  { %2174 = vmatprep.subr.bf16.mxu0 %v4509_v4  ;;  %2215 = vmatprep.subr.bf16.mxu1 %v4512_v5 }
 0x4d5   :  { %2175 = vmatpush1.bf16.msra.mxu0 %v4515_v6  ;;  %2216 = vmatpush1.bf16.msra.mxu1 %v4518_v7 }
 0x4d6   :  { %2176 = vmatprep.subr.bf16.mxu0 %v4521_v8  ;;  %2217 = vmatprep.subr.bf16.mxu1 %v4524_v9 }
 0x4d9   :  { %2177 = vmatpush1.bf16.msra.mxu0 %v5282_v37  ;;  %2218 = vmatpush1.bf16.msra.mxu1 %v5283_v42 }
 0x4da   :  { %2178 = vmatprep.subr.bf16.mxu0 %v5284_v13  ;;  %2219 = vmatprep.subr.bf16.mxu1 %v5285_v26 }
 0x4dd   :  { %2179 = vmatpush1.bf16.msra.mxu0 %v5286_v53  ;;  %2220 = vmatpush1.bf16.msra.mxu1 %v5287_v45  ;;  %v5304_v45 = vld [vmem:[#allocation61_spill] sm:$0xff]  ;;  %v5305_v53 = vld [vmem:[#allocation62_spill] sm:$0xff] }
 0x4de   :  { %2180 = vmatprep.subr.bf16.mxu0 %v5288_v11  ;;  %2221 = vmatprep.subr.bf16.mxu1 %v5289_v10  ;;  %v5303_v10 = vld [vmem:[#allocation60_spill] sm:$0xff] }
 0x4e1   :  { %2181 = vmatpush1.bf16.msra.mxu0 %v5290_v33  ;;  %2222 = vmatpush1.bf16.msra.mxu1 %v5291_v18  ;;  %v5302_v33 = vld [vmem:[#allocation59_spill] sm:$0xff] }
 0x4e2   :  { %2182 = vmatprep.subr.bf16.mxu0 %v5292_v39  ;;  %2223 = vmatprep.subr.bf16.mxu1 %v5293_v25 }
 0x4e5   :  { %2183 = vmatpush1.bf16.msra.mxu0 %v5294_v46  ;;  %2224 = vmatpush1.bf16.msra.mxu1 %v5295_v36 }
 0x4e6   :  { %2184 = vmatprep.subr.bf16.mxu0 %v5296_v55  ;;  %2225 = vmatprep.subr.bf16.mxu1 %v5297_v23 }
 0x4e9   :  { %2185 = vmatpush1.bf16.msra.mxu0 %v5298_v28  ;;  %2226 = vmatpush1.bf16.msra.mxu1 %v5299_v20 }
 0x4ea   :  { %2253 = vmatprep.subr.bf16.mxu0 %v5300_v15  ;;  %2294 = vmatprep.subr.bf16.mxu1 %v5301_v12 }
 0x57f   :  { %v1958_v18 = vpop.f32.mrb[64].mxu0  ;;  %v1999_v39 = vpop.f32.mrb[64].mxu1 }
 0x580   :  { %v2095_v25 = vadd.f32 %v1958_v18, %v5302_v33  ;;  %v2097_v46 = vadd.f32 %v1999_v39, %v5303_v10  ;;  %v1960_v11 = vpop.f32.mrb[65].mxu0  ;;  %v2001_v36 = vpop.f32.mrb[65].mxu1 }
 0x581   :  { %v2096_v55 = vadd.f32 %v1960_v11, %v5304_v45  ;;  %v2098_v23 = vadd.f32 %v2001_v36, %v5305_v53  ;;  %v1962_v26 = vpop.f32.mrb[66].mxu0  ;;  %v2003_v28 = vpop.f32.mrb[66].mxu1 }
 0x582   :  { %v3142_v13 = vmul.f32 -1.442695, %v2095_v25  ;;  %v1963_v20 = vpop.f32.mrb[67].mxu0  ;;  %v2004_v42 = vpop.f32.mrb[67].mxu1  ;;  %v5306_v25 = vld [vmem:[#allocation41_spill] sm:$0xff]  ;;  %v5309_v28 = vld [vmem:[#allocation88_spill] sm:$0xff] }
 0x583   :  { %v3143_v15 = vmul.f32 -1.442695, %v2096_v55  ;;  %v3144_v12 = vmul.f32 -1.442695, %v2098_v23  ;;  %v5308_v23 = vld [vmem:[#allocation87_spill] sm:$0xff] }
 0x584   :  { %3440 = vpow2.f32 %v3142_v13 }
 0x585   :  { %3442 = vpow2.f32 %v3143_v15  ;;  %v5310_v15 = vld [vmem:[#allocation89_spill] sm:$0xff] }
 0x586   :  { %3444 = vpow2.f32 %v3144_v12 }
 0x587   :  { %3446 = vtanh.f32 %v2097_v46 }
 0x58e   :  { %v3441_v37 = vpop.eup %3440 }
 0x58f   :  { %v3443_v9 = vpop.eup %3442  ;;  %v2113_v33 = vadd.f32 1.0, %v3441_v37 }
 0x590   :  { %v2119_v10 = vadd.f32 1.0, %v3443_v9  ;;  %v3445_v45 = vpop.eup %3444 }
 0x591   :  { %3448 = vrcp.f32 %v2113_v33  ;;  %v3447_v11 = vpop.eup %3446  ;;  %v2126_v39 = vadd.f32 1.0, %v3445_v45  ;;  %v5311_v33 = vld [vmem:[#allocation90_spill] sm:$0xff] }
 0x592   :  { %3450 = vrcp.f32 %v2119_v10 }
 0x593   :  { %3452 = vrcp.f32 %v2126_v39 }
 0x59b   :  { %v3449_v53 = vpop.eup %3448 }
 0x59c   :  { %v3451_v26 = vpop.eup %3450  ;;  %v2130_v18 = vmul.f32 %v3449_v53, %v3447_v11 }
 0x59d   :  { %v2129_v42 = vmul.f32 %v3451_v26, %v5306_v25  ;;  %v3453_v39 = vpop.eup %3452 }
 0x59f   :  { %v4832_v36 = vadd.f32 %v2130_v18, %v2129_v42  ;;  %v2041_v13 = vpop.f32.mrb[68].mxu0  ;;  %v2082_v55 = vpop.f32.mrb[68].mxu1 }
 0x5a0   :  { %v2105_v37 = vadd.f32 %v2041_v13, %v5308_v23  ;;  %v2107_v46 = vadd.f32 %v2082_v55, %v5309_v28  ;;  %v2043_v9 = vpop.f32.mrb[69].mxu0  ;;  %v2084_v20 = vpop.f32.mrb[69].mxu1 }
 0x5a1   :  { %5307 = vst [vmem:[#allocation42_spill] sm:$0xff] %v4832_v36  ;;  %3454 = vtanh.f32 %v4832_v36  ;;  %v2106_v12 = vadd.f32 %v2043_v9, %v5310_v15  ;;  %v2108_v10 = vadd.f32 %v2084_v20, %v5311_v33  ;;  %v2045_v45 = vpop.f32.mrb[70].mxu0  ;;  %v2086_v11 = vpop.f32.mrb[70].mxu1 }
 0x5a2   :  { %v3145_v53 = vmul.f32 -1.442695, %v2105_v37  ;;  %v2046_v26 = vpop.f32.mrb[71].mxu0  ;;  %v2087_v18 = vpop.f32.mrb[71].mxu1 }
 0x5a3   :  { %v3146_v25 = vmul.f32 -1.442695, %v2106_v12  ;;  %v3147_v13 = vmul.f32 -1.442695, %v2108_v10  ;;  %v4881_v26 = vld [vmem:[#allocation12 + $0x4] ss:$16 sps:$4 sm:$0xff]  }
 0x5a4   :  { %3456 = vpow2.f32 %v3145_v53  ;;  %v4884_v18 = vld [vmem:[#allocation12 + $0xc] ss:$16 sps:$4 sm:$0xff]  }
 0x5a5   :  { %3458 = vpow2.f32 %v3146_v25 }
 0x5a6   :  { %3460 = vpow2.f32 %v3147_v13  ;;  %v5324_v13 = vld [vmem:[#allocation27_spill] sm:$0xff] }
 0x5a7   :  { %3462 = vtanh.f32 %v2107_v46 }
 0x5ab   :  { %v3455_v42 = vpop.eup %3454 }
 0x5ac   :  { %v2133_v55 = vmul.f32 %v3455_v42, %v3453_v39  ;;  %v5316_v39 = vld [vmem:[#allocation19_spill] sm:$0xff]  ;;  %v5323_v42 = vld [vmem:[#allocation26_spill] sm:$0xff] }
 0x5ae   :  { %v3457_v23 = vpop.eup %3456  ;;  %v2161_v28 = vpack.c.bf16 %v2133_v55, %v2133_v55  ;;  %v5325_v55 = vld [vmem:[#allocation28_spill] sm:$0xff] }
 0x5af   :  { %v3459_v8 = vpop.eup %3458  ;;  %v2138_v36 = vadd.f32 1.0, %v3457_v23  ;;  %v5326_v23 = vld [vmem:[#allocation29_spill] sm:$0xff] }
 0x5b0   :  { %2950 = vst [vmem:[%s5023_s4 + $0x20] sm:$0xf] %v2161_v28  ;;  %2162 = vst [vmem:[#allocation4] sm:$0xf] %v2161_v28  ;;  %v2144_v37 = vadd.f32 1.0, %v3459_v8  ;;  %v3461_v20 = vpop.eup %3460  ;;  %v5327_v28 = vld [vmem:[#allocation30_spill] sm:$0xff] }
 0x5b1   :  { %3464 = vrcp.f32 %v2138_v36  ;;  %v3463_v15 = vpop.eup %3462  ;;  %v2151_v46 = vadd.f32 1.0, %v3461_v20  ;;  %v5330_v20 = vld [vmem:[#allocation33_spill] sm:$0xff] }
 0x5b2   :  { %3466 = vrcp.f32 %v2144_v37  ;;  %v5328_v37 = vld [vmem:[#allocation31_spill] sm:$0xff] }
 0x5b3   :  { %3468 = vrcp.f32 %v2151_v46 }
 0x5b7   :  { %v2169_v9 = vld [vmem:[#allocation4] sm:$0xf] }
 0x5b8   :  { %2203 = vmatmul.mubr.bf16.vlgmr.msra.gmra.mrb[72].mxu0 %v2169_v9  ;;  %2244 = vmatmul.mubr.bf16.vlgmr.msra.gmra.mrb[72].mxu1 %v2169_v9  ;;  %v5329_v9 = vld [vmem:[#allocation32_spill] sm:$0xff] }
 0x5b9   :  { %2254 = vmatpush1.bf16.msra.mxu0 %v4602_v31  ;;  %2295 = vmatpush1.bf16.msra.mxu1 %v4605_v30 }
 0x5ba   :  { %2255 = vmatprep.subr.bf16.mxu0 %v4608_v50  ;;  %2296 = vmatprep.subr.bf16.mxu1 %v4611_v43 }
 0x5bb   :  { %v3465_v12 = vpop.eup %3464  ;;  %2285 = vmatprep.mubr.bf16.mxu0 %v5140_v22  ;;  %2326 = vmatprep.mubr.bf16.mxu1 %v5140_v22 }
 0x5bc   :  { %v3467_v8 = vpop.eup %3466  ;;  %v2155_v36 = vmul.f32 %v3465_v12, %v3463_v15  ;;  %v5331_v15 = vld [vmem:[#allocation34_spill] sm:$0xff]  ;;  %v5332_v12 = vld [vmem:[#allocation35_spill] sm:$0xff] }
 0x5bd   :  { %v2154_v33 = vmul.f32 %v3467_v8, %v4763_v21  ;;  %2256 = vmatpush1.bf16.msra.mxu0 %v4617_v19  ;;  %2297 = vmatpush1.bf16.msra.mxu1 %v4620_v49  ;;  %v3469_v21 = vpop.eup %3468  ;;  %v5333_v8 = vld [vmem:[#allocation36_spill] sm:$0xff] }
 0x5be   :  { %2257 = vmatprep.subr.bf16.mxu0 %v4623_v35  ;;  %2298 = vmatprep.subr.bf16.mxu1 %v4626_v16 }
 0x5bf   :  { %v4853_v10 = vadd.f32 %v2155_v36, %v2154_v33  ;;  %v5334_v33 = vld [vmem:[#allocation63_spill] sm:$0xff] }
 0x5c1   :  { %3470 = vtanh.f32 %v4853_v10  ;;  %2258 = vmatpush1.bf16.msra.mxu0 %v4632_v56  ;;  %2299 = vmatpush1.bf16.msra.mxu1 %v4635_v24 }
 0x5c2   :  { %2259 = vmatprep.subr.bf16.mxu0 %v4638_v41  ;;  %2300 = vmatprep.subr.bf16.mxu1 %v4641_v57 }
 0x5c5   :  { %2260 = vmatpush1.bf16.msra.mxu0 %v4644_v58  ;;  %2301 = vmatpush1.bf16.msra.mxu1 %v4647_v59 }
 0x5c6   :  { %2261 = vmatprep.subr.bf16.mxu0 %v4650_v60  ;;  %2302 = vmatprep.subr.bf16.mxu1 %v4653_v61 }
 0x5c9   :  { %2262 = vmatpush1.bf16.msra.mxu0 %v4656_v32  ;;  %2303 = vmatpush1.bf16.msra.mxu1 %v4659_v47 }
 0x5ca   :  { %2263 = vmatprep.subr.bf16.mxu0 %v5278_v17  ;;  %2304 = vmatprep.subr.bf16.mxu1 %v4665_v27 }
 0x5cb   :  { %v3471_v45 = vpop.eup %3470 }
 0x5cc   :  { %v2158_v11 = vmul.f32 %v3471_v45, %v3469_v21  ;;  %v5335_v45 = vld [vmem:[#allocation64_spill] sm:$0xff] }
 0x5cd   :  { %2264 = vmatpush1.bf16.msra.mxu0 %v4668_v52  ;;  %2305 = vmatpush1.bf16.msra.mxu1 %v4671_v54 }
 0x5ce   :  { %v2163_v53 = vpack.c.bf16 %v2158_v11, %v2158_v11  ;;  %2265 = vmatprep.subr.bf16.mxu0 %v5279_v14  ;;  %2306 = vmatprep.subr.bf16.mxu1 %v5280_v34 }
 0x5d0   :  { %2997 = vst [vmem:[%s5023_s4 + $0x1c] sm:$0xf] %v2163_v53  ;;  %2164 = vst [vmem:[#allocation5] sm:$0xf] %v2163_v53 }
 0x5d1   :  { %2266 = vmatpush1.bf16.msra.mxu0 %v4683_v29  ;;  %2307 = vmatpush1.bf16.msra.mxu1 %v5281_v44 }
 0x5d2   :  { %2267 = vmatprep.subr.bf16.mxu0 %v4689_v38  ;;  %2308 = vmatprep.subr.bf16.mxu1 %v4692_v40 }
 0x5d5   :  { %2268 = vmatpush1.bf16.msra.mxu0 %v4695_v48  ;;  %2309 = vmatpush1.bf16.msra.mxu1 %v4698_v51 }
 0x5d6   :  { %2416 = vmatprep.subr.bf16.mxu0 %v4881_v26  ;;  %2457 = vmatprep.subr.bf16.mxu1 %v4884_v18 }
 0x5d7   :  { %v2252_v25 = vld [vmem:[#allocation5] sm:$0xf] }
 0x5d8   :  { %2286 = vmatmul.mubr.bf16.vlgmr.msra.gmra.mrb[76].mxu0 %v2252_v25  ;;  %2327 = vmatmul.mubr.bf16.vlgmr.msra.gmra.mrb[76].mxu1 %v2252_v25 }
 0x5d9   :  { %2417 = vmatpush1.bf16.msra.mxu0 %v4489_v62  ;;  %2458 = vmatpush1.bf16.msra.mxu1 %v4492_v63  ;;  %v5312_v62 = vld [vmem:[#allocation45_spill] sm:$0xff]  ;;  %v5313_v63 = vld [vmem:[#allocation46_spill] sm:$0xff] }
 0x5da   :  { %2418 = vmatprep.subr.bf16.mxu0 %v4495_v1  ;;  %2459 = vmatprep.subr.bf16.mxu1 %v4498_v0  ;;  %v5314_v1 = vld [vmem:[#allocation17_spill] sm:$0xff]  ;;  %v5315_v0 = vld [vmem:[#allocation18_spill] sm:$0xff] }
 0x5db   :  { %2448 = vmatprep.mubr.bf16.mxu0 %v5140_v22  ;;  %2489 = vmatprep.mubr.bf16.mxu1 %v5140_v22 }
 0x5dd   :  { %2419 = vmatpush1.bf16.msra.mxu0 %v4503_v2  ;;  %2460 = vmatpush1.bf16.msra.mxu1 %v4506_v3  ;;  %v5317_v2 = vld [vmem:[#allocation20_spill] sm:$0xff]  ;;  %v5318_v3 = vld [vmem:[#allocation21_spill] sm:$0xff] }
 0x5de   :  { %2420 = vmatprep.subr.bf16.mxu0 %v4509_v4  ;;  %2461 = vmatprep.subr.bf16.mxu1 %v4512_v5  ;;  %v5319_v4 = vld [vmem:[#allocation22_spill] sm:$0xff]  ;;  %v5320_v5 = vld [vmem:[#allocation23_spill] sm:$0xff] }
 0x5e1   :  { %2421 = vmatpush1.bf16.msra.mxu0 %v4515_v6  ;;  %2462 = vmatpush1.bf16.msra.mxu1 %v4518_v7  ;;  %v5321_v6 = vld [vmem:[#allocation24_spill] sm:$0xff]  ;;  %v5322_v7 = vld [vmem:[#allocation25_spill] sm:$0xff] }
 0x5e2   :  { %2422 = vmatprep.subr.bf16.mxu0 %v5312_v62  ;;  %2463 = vmatprep.subr.bf16.mxu1 %v5313_v63  ;;  %v5336_v62 = vld [vmem:[#allocation65_spill] sm:$0xff] }
 0x5e5   :  { %2423 = vmatpush1.bf16.msra.mxu0 %v5314_v1  ;;  %2464 = vmatpush1.bf16.msra.mxu1 %v5315_v0  ;;  %v5337_v1 = vld [vmem:[#allocation66_spill] sm:$0xff] }
 0x5e6   :  { %2424 = vmatprep.subr.bf16.mxu0 %v5316_v39  ;;  %2465 = vmatprep.subr.bf16.mxu1 %v5317_v2 }
 0x5e9   :  { %2425 = vmatpush1.bf16.msra.mxu0 %v5318_v3  ;;  %2466 = vmatpush1.bf16.msra.mxu1 %v5319_v4 }
 0x5ea   :  { %2426 = vmatprep.subr.bf16.mxu0 %v5320_v5  ;;  %2467 = vmatprep.subr.bf16.mxu1 %v5321_v6 }
 0x5ed   :  { %2427 = vmatpush1.bf16.msra.mxu0 %v5322_v7  ;;  %2468 = vmatpush1.bf16.msra.mxu1 %v5323_v42 }
 0x5ee   :  { %2428 = vmatprep.subr.bf16.mxu0 %v5324_v13  ;;  %2469 = vmatprep.subr.bf16.mxu1 %v5325_v55 }
 0x5f1   :  { %2429 = vmatpush1.bf16.msra.mxu0 %v5326_v23  ;;  %2470 = vmatpush1.bf16.msra.mxu1 %v5327_v28 }
 0x5f2   :  { %2430 = vmatprep.subr.bf16.mxu0 %v5328_v37  ;;  %2471 = vmatprep.subr.bf16.mxu1 %v5329_v9 }
 0x5f5   :  { %2431 = vmatpush1.bf16.msra.mxu0 %v5330_v20  ;;  %2472 = vmatpush1.bf16.msra.mxu1 %v5331_v15 }
 0x5f6   :  { %2499 = vmatprep.subr.bf16.mxu0 %v5332_v12  ;;  %2540 = vmatprep.subr.bf16.mxu1 %v5333_v8  ;;  %v5338_v8 = vld [vmem:[#allocation42_spill] sm:$0xff] }
 0x68b   :  { %v2204_v36 = vpop.f32.mrb[72].mxu0  ;;  %v2245_v46 = vpop.f32.mrb[72].mxu1 }
 0x68c   :  { %v2341_v21 = vadd.f32 %v2204_v36, %v5334_v33  ;;  %v2343_v11 = vadd.f32 %v2245_v46, %v5335_v45  ;;  %v2206_v53 = vpop.f32.mrb[73].mxu0  ;;  %v2247_v25 = vpop.f32.mrb[73].mxu1  ;;  %v5339_v45 = vld [vmem:[#allocation83_spill] sm:$0xff] }
 0x68d   :  { %v2342_v63 = vadd.f32 %v2206_v53, %v5336_v62  ;;  %v2344_v0 = vadd.f32 %v2247_v25, %v5337_v1  ;;  %v2208_v39 = vpop.f32.mrb[74].mxu0  ;;  %v2249_v2 = vpop.f32.mrb[74].mxu1  ;;  %v5340_v25 = vld [vmem:[#allocation84_spill] sm:$0xff]  ;;  %v5341_v1 = vld [vmem:[#allocation85_spill] sm:$0xff] }
 0x68e   :  { %v3148_v3 = vmul.f32 -1.442695, %v2341_v21  ;;  %v2209_v4 = vpop.f32.mrb[75].mxu0  ;;  %v2250_v5 = vpop.f32.mrb[75].mxu1  ;;  %v5342_v39 = vld [vmem:[#allocation86_spill] sm:$0xff] }
 0x68f   :  { %v3149_v6 = vmul.f32 -1.442695, %v2342_v63  ;;  %v3150_v7 = vmul.f32 -1.442695, %v2344_v0 }
 0x690   :  { %3472 = vpow2.f32 %v3148_v3 }
 0x691   :  { %3474 = vpow2.f32 %v3149_v6 }
 0x692   :  { %3476 = vpow2.f32 %v3150_v7 }
 0x693   :  { %3478 = vtanh.f32 %v2343_v11 }
 0x69a   :  { %v3473_v42 = vpop.eup %3472 }
 0x69b   :  { %v3475_v13 = vpop.eup %3474  ;;  %v2359_v55 = vadd.f32 1.0, %v3473_v42 }
 0x69c   :  { %v2365_v23 = vadd.f32 1.0, %v3475_v13  ;;  %v3477_v28 = vpop.eup %3476 }
 0x69d   :  { %3480 = vrcp.f32 %v2359_v55  ;;  %v3479_v37 = vpop.eup %3478  ;;  %v2372_v12 = vadd.f32 1.0, %v3477_v28 }
 0x69e   :  { %3482 = vrcp.f32 %v2365_v23 }
 0x69f   :  { %3484 = vrcp.f32 %v2372_v12 }
 0x6a7   :  { %v3481_v9 = vpop.eup %3480 }
 0x6a8   :  { %v3483_v20 = vpop.eup %3482  ;;  %v2376_v15 = vmul.f32 %v3481_v9, %v3479_v37 }
 0x6a9   :  { %v2375_v36 = vmul.f32 %v3483_v20, %v5338_v8  ;;  %v3485_v13 = vpop.eup %3484 }
 0x6ab   :  { %v4926_v46 = vadd.f32 %v2376_v15, %v2375_v36  ;;  %v2287_v33 = vpop.f32.mrb[76].mxu0  ;;  %v2328_v21 = vpop.f32.mrb[76].mxu1 }
 0x6ac   :  { %v2351_v53 = vadd.f32 %v2287_v33, %v5339_v45  ;;  %v2353_v11 = vadd.f32 %v2328_v21, %v5340_v25  ;;  %v2289_v62 = vpop.f32.mrb[77].mxu0  ;;  %v2330_v63 = vpop.f32.mrb[77].mxu1 }
 0x6ad   :  { %3486 = vtanh.f32 %v4926_v46  ;;  %v2352_v0 = vadd.f32 %v2289_v62, %v5341_v1  ;;  %v2354_v2 = vadd.f32 %v2330_v63, %v5342_v39  ;;  %v2291_v3 = vpop.f32.mrb[78].mxu0  ;;  %v2332_v4 = vpop.f32.mrb[78].mxu1  ;;  %v3661_v62 = vld [vmem:[#allocation12 + $0xec] ss:$16 sps:$4 sm:$0xff]   ;;  %v3662_v63 = vld [vmem:[#allocation12 + $0xe0] ss:$16 sps:$4 sm:$0xff]  }
 0x6ae   :  { %v3151_v5 = vmul.f32 -1.442695, %v2351_v53  ;;  %v2292_v6 = vpop.f32.mrb[79].mxu0  ;;  %v2333_v7 = vpop.f32.mrb[79].mxu1  ;;  %v3663_v1 = vld [vmem:[#allocation12 + $0xe8] ss:$16 sps:$4 sm:$0xff]  }
 0x6af   :  { %v3152_v42 = vmul.f32 -1.442695, %v2352_v0  ;;  %v3153_v23 = vmul.f32 -1.442695, %v2354_v2  ;;  %v3664_v0 = vld [vmem:[#allocation12 + $0x104] ss:$16 sps:$4 sm:$0xff]  }
 0x6b0   :  { %3488 = vpow2.f32 %v3151_v5  ;;  %v3665_v39 = vld [vmem:[#allocation12 + $0x10c] ss:$16 sps:$4 sm:$0xff]   ;;  %v5344_v6 = vld [vmem:[#allocation68_spill] sm:$0xff] }
 0x6b1   :  { %3490 = vpow2.f32 %v3152_v42  ;;  %v5343_v4 = vld [vmem:[#allocation67_spill] sm:$0xff] }
 0x6b2   :  { %3492 = vpow2.f32 %v3153_v23 }
 0x6b3   :  { %3494 = vtanh.f32 %v2353_v11 }
 0x6b7   :  { %v3487_v55 = vpop.eup %3486 }
 0x6b8   :  { %v2379_v28 = vmul.f32 %v3487_v55, %v3485_v13  ;;  %v5345_v55 = vld [vmem:[#allocation69_spill] sm:$0xff] }
 0x6ba   :  { %v3489_v37 = vpop.eup %3488  ;;  %v2407_v9 = vpack.c.bf16 %v2379_v28, %v2379_v28  ;;  %v5346_v28 = vld [vmem:[#allocation70_spill] sm:$0xff] }
 0x6bb   :  { %v3491_v20 = vpop.eup %3490  ;;  %v2384_v15 = vadd.f32 1.0, %v3489_v37 }
 0x6bc   :  { %2951 = vst [vmem:[%s5023_s4 + $0x28] sm:$0xf] %v2407_v9  ;;  %2408 = vst [vmem:[#allocation4] sm:$0xf] %v2407_v9  ;;  %v2390_v12 = vadd.f32 1.0, %v3491_v20  ;;  %v3493_v36 = vpop.eup %3492 }
 0x6bd   :  { %3496 = vrcp.f32 %v2384_v15  ;;  %v3495_v33 = vpop.eup %3494  ;;  %v2397_v25 = vadd.f32 1.0, %v3493_v36 }
 0x6be   :  { %3498 = vrcp.f32 %v2390_v12 }
 0x6bf   :  { %3500 = vrcp.f32 %v2397_v25 }
 0x6c3   :  { %v2415_v8 = vld [vmem:[#allocation4] sm:$0xf] }
 0x6c4   :  { %2449 = vmatmul.mubr.bf16.vlgmr.msra.gmra.mrb[80].mxu0 %v2415_v8  ;;  %2490 = vmatmul.mubr.bf16.vlgmr.msra.gmra.mrb[80].mxu1 %v2415_v8 }
 0x6c5   :  { %2500 = vmatpush1.bf16.msra.mxu0 %v4602_v31  ;;  %2541 = vmatpush1.bf16.msra.mxu1 %v4605_v30 }
 0x6c6   :  { %2501 = vmatprep.subr.bf16.mxu0 %v4608_v50  ;;  %2542 = vmatprep.subr.bf16.mxu1 %v4611_v43 }
 0x6c7   :  { %v3497_v21 = vpop.eup %3496  ;;  %2531 = vmatprep.mubr.bf16.mxu0 %v5140_v22  ;;  %2572 = vmatprep.mubr.bf16.mxu1 %v5140_v22 }
 0x6c8   :  { %v3499_v45 = vpop.eup %3498  ;;  %v2401_v53 = vmul.f32 %v3497_v21, %v3495_v33 }
 0x6c9   :  { %v2400_v11 = vmul.f32 %v3499_v45, %v4853_v10  ;;  %2502 = vmatpush1.bf16.msra.mxu0 %v4617_v19  ;;  %2543 = vmatpush1.bf16.msra.mxu1 %v4620_v49  ;;  %v3501_v30 = vpop.eup %3500  ;;  %v3658_v10 = vld [vmem:[#allocation12 + $0xc0] ss:$16 sps:$4 sm:$0xff]  }
 0x6ca   :  { %2503 = vmatprep.subr.bf16.mxu0 %v4623_v35  ;;  %2544 = vmatprep.subr.bf16.mxu1 %v4626_v16  ;;  %v3634_v35 = vld [vmem:[#allocation12] ss:$16 sps:$4 sm:$0xff]   ;;  %v3635_v16 = vld [vmem:[#allocation12 + $0x8] ss:$16 sps:$4 sm:$0xff]  }
 0x6cb   :  { %v4947_v31 = vadd.f32 %v2401_v53, %v2400_v11 }
 0x6cd   :  { %3502 = vtanh.f32 %v4947_v31  ;;  %2504 = vmatpush1.bf16.msra.mxu0 %v4632_v56  ;;  %2545 = vmatpush1.bf16.msra.mxu1 %v4635_v24  ;;  %v3636_v56 = vld [vmem:[#allocation12 + $0x24] ss:$16 sps:$4 sm:$0xff]   ;;  %v3637_v24 = vld [vmem:[#allocation12 + $0x2c] ss:$16 sps:$4 sm:$0xff]  }
 0x6ce   :  { %2505 = vmatprep.subr.bf16.mxu0 %v4638_v41  ;;  %2546 = vmatprep.subr.bf16.mxu1 %v4641_v57  ;;  %v3638_v41 = vld [vmem:[#allocation12 + $0x20] ss:$16 sps:$4 sm:$0xff]   ;;  %v3639_v57 = vld [vmem:[#allocation12 + $0x28] ss:$16 sps:$4 sm:$0xff]  }
 0x6d1   :  { %2506 = vmatpush1.bf16.msra.mxu0 %v4644_v58  ;;  %2547 = vmatpush1.bf16.msra.mxu1 %v4647_v59  ;;  %v3640_v58 = vld [vmem:[#allocation12 + $0x44] ss:$16 sps:$4 sm:$0xff]   ;;  %v3641_v59 = vld [vmem:[#allocation12 + $0x4c] ss:$16 sps:$4 sm:$0xff]  }
 0x6d2   :  { %2507 = vmatprep.subr.bf16.mxu0 %v4650_v60  ;;  %2548 = vmatprep.subr.bf16.mxu1 %v4653_v61  ;;  %v3642_v60 = vld [vmem:[#allocation12 + $0x40] ss:$16 sps:$4 sm:$0xff]   ;;  %v3643_v61 = vld [vmem:[#allocation12 + $0x48] ss:$16 sps:$4 sm:$0xff]  }
 0x6d5   :  { %2508 = vmatpush1.bf16.msra.mxu0 %v4656_v32  ;;  %2549 = vmatpush1.bf16.msra.mxu1 %v4659_v47  ;;  %v3644_v32 = vld [vmem:[#allocation12 + $0x64] ss:$16 sps:$4 sm:$0xff]   ;;  %v3645_v47 = vld [vmem:[#allocation12 + $0x6c] ss:$16 sps:$4 sm:$0xff]  }
 0x6d6   :  { %2509 = vmatprep.subr.bf16.mxu0 %v5278_v17  ;;  %2550 = vmatprep.subr.bf16.mxu1 %v4665_v27  ;;  %v3647_v27 = vld [vmem:[#allocation12 + $0x68] ss:$16 sps:$4 sm:$0xff]   ;;  %v3654_v17 = vld [vmem:[#allocation12 + $0xa0] ss:$16 sps:$4 sm:$0xff]  }
 0x6d7   :  { %v3503_v50 = vpop.eup %3502 }
 0x6d8   :  { %v2404_v43 = vmul.f32 %v3503_v50, %v3501_v30 }
 0x6d9   :  { %2510 = vmatpush1.bf16.msra.mxu0 %v4668_v52  ;;  %2551 = vmatpush1.bf16.msra.mxu1 %v4671_v54  ;;  %v3648_v52 = vld [vmem:[#allocation12 + $0x84] ss:$16 sps:$4 sm:$0xff]   ;;  %v3649_v54 = vld [vmem:[#allocation12 + $0x8c] ss:$16 sps:$4 sm:$0xff]  }
 0x6da   :  { %v2409_v19 = vpack.c.bf16 %v2404_v43, %v2404_v43  ;;  %2511 = vmatprep.subr.bf16.mxu0 %v5279_v14  ;;  %2552 = vmatprep.subr.bf16.mxu1 %v5280_v34  ;;  %v3655_v14 = vld [vmem:[#allocation12 + $0xa8] ss:$16 sps:$4 sm:$0xff]   ;;  %v3656_v34 = vld [vmem:[#allocation12 + $0xc4] ss:$16 sps:$4 sm:$0xff]  }
 0x6dc   :  { %2996 = vst [vmem:[%s5023_s4 + $0x14] sm:$0xf] %v2409_v19  ;;  %2410 = vst [vmem:[#allocation5] sm:$0xf] %v2409_v19 }
 0x6dd   :  { %2512 = vmatpush1.bf16.msra.mxu0 %v4683_v29  ;;  %2553 = vmatpush1.bf16.msra.mxu1 %v5281_v44  ;;  %v3651_v29 = vld [vmem:[#allocation12 + $0x88] ss:$16 sps:$4 sm:$0xff]   ;;  %v3657_v44 = vld [vmem:[#allocation12 + $0xcc] ss:$16 sps:$4 sm:$0xff]  }
 0x6de   :  { %2513 = vmatprep.subr.bf16.mxu0 %v4689_v38  ;;  %2554 = vmatprep.subr.bf16.mxu1 %v4692_v40  ;;  %v3650_v40 = vld [vmem:[#allocation12 + $0x80] ss:$16 sps:$4 sm:$0xff]   ;;  %v3652_v38 = vld [vmem:[#allocation12 + $0xa4] ss:$16 sps:$4 sm:$0xff]  }
 0x6e1   :  { %2514 = vmatpush1.bf16.msra.mxu0 %v4695_v48  ;;  %2555 = vmatpush1.bf16.msra.mxu1 %v4698_v51  ;;  %v3646_v48 = vld [vmem:[#allocation12 + $0x60] ss:$16 sps:$4 sm:$0xff]   ;;  %v3653_v51 = vld [vmem:[#allocation12 + $0xac] ss:$16 sps:$4 sm:$0xff]  }
 0x6e2   :  { %2662 = vmatprep.subr.bf16.mxu0 %v4881_v26  ;;  %2703 = vmatprep.subr.bf16.mxu1 %v4884_v18  ;;  %v3659_v26 = vld [vmem:[#allocation12 + $0xc8] ss:$16 sps:$4 sm:$0xff]   ;;  %v3660_v18 = vld [vmem:[#allocation12 + $0xe4] ss:$16 sps:$4 sm:$0xff]  }
 0x6e3   :  { %v2498_v49 = vld [vmem:[#allocation5] sm:$0xf] }
 0x6e4   :  { %2532 = vmatmul.mubr.bf16.vlgmr.msra.gmra.mrb[84].mxu0 %v2498_v49  ;;  %2573 = vmatmul.mubr.bf16.vlgmr.msra.gmra.mrb[84].mxu1 %v2498_v49 }
 0x6e5   :  { %2663 = vmatpush1.bf16.msra.mxu0 %v3634_v35  ;;  %2704 = vmatpush1.bf16.msra.mxu1 %v3635_v16 }
 0x6e6   :  { %2664 = vmatprep.subr.bf16.mxu0 %v3636_v56  ;;  %2705 = vmatprep.subr.bf16.mxu1 %v3637_v24 }
 0x6e7   :  { %2694 = vmatprep.mubr.bf16.mxu0 %v5140_v22  ;;  %2735 = vmatprep.mubr.bf16.mxu1 %v5140_v22 }
 0x6e9   :  { %2665 = vmatpush1.bf16.msra.mxu0 %v3638_v41  ;;  %2706 = vmatpush1.bf16.msra.mxu1 %v3639_v57  ;;  %v5347_v41 = vld [vmem:[#allocation79_spill] sm:$0xff] }
 0x6ea   :  { %2666 = vmatprep.subr.bf16.mxu0 %v3640_v58  ;;  %2707 = vmatprep.subr.bf16.mxu1 %v3641_v59  ;;  %v5348_v58 = vld [vmem:[#allocation80_spill] sm:$0xff] }
 0x6ed   :  { %2667 = vmatpush1.bf16.msra.mxu0 %v3642_v60  ;;  %2708 = vmatpush1.bf16.msra.mxu1 %v3643_v61 }
 0x6ee   :  { %2668 = vmatprep.subr.bf16.mxu0 %v3644_v32  ;;  %2709 = vmatprep.subr.bf16.mxu1 %v3645_v47  ;;  %v5349_v32 = vld [vmem:[#allocation81_spill] sm:$0xff] }
 0x6f1   :  { %2669 = vmatpush1.bf16.msra.mxu0 %v3646_v48  ;;  %2710 = vmatpush1.bf16.msra.mxu1 %v3647_v27  ;;  %v5350_v48 = vld [vmem:[#allocation82_spill] sm:$0xff] }
 0x6f2   :  { %2670 = vmatprep.subr.bf16.mxu0 %v3648_v52  ;;  %2711 = vmatprep.subr.bf16.mxu1 %v3649_v54 }
 0x6f5   :  { %2671 = vmatpush1.bf16.msra.mxu0 %v3650_v40  ;;  %2712 = vmatpush1.bf16.msra.mxu1 %v3651_v29 }
 0x6f6   :  { %2672 = vmatprep.subr.bf16.mxu0 %v3652_v38  ;;  %2713 = vmatprep.subr.bf16.mxu1 %v3653_v51 }
 0x6f9   :  { %2673 = vmatpush1.bf16.msra.mxu0 %v3654_v17  ;;  %2714 = vmatpush1.bf16.msra.mxu1 %v3655_v14 }
 0x6fa   :  { %2674 = vmatprep.subr.bf16.mxu0 %v3656_v34  ;;  %2715 = vmatprep.subr.bf16.mxu1 %v3657_v44 }
 0x6fd   :  { %2675 = vmatpush1.bf16.msra.mxu0 %v3658_v10  ;;  %2716 = vmatpush1.bf16.msra.mxu1 %v3659_v26 }
 0x6fe   :  { %2676 = vmatprep.subr.bf16.mxu0 %v3660_v18  ;;  %2717 = vmatprep.subr.bf16.mxu1 %v3661_v62 }
 0x701   :  { %2677 = vmatpush1.bf16.msra.mxu0 %v3662_v63  ;;  %2718 = vmatpush1.bf16.msra.mxu1 %v3663_v1 }
 0x702   :  { %2745 = vmatprep.subr.bf16.mxu0 %v3664_v0  ;;  %2786 = vmatprep.subr.bf16.mxu1 %v3665_v39  ;;  %v3666_v0 = vld [vmem:[#allocation12 + $0x100] ss:$16 sps:$4 sm:$0xff]   ;;  %v3667_v39 = vld [vmem:[#allocation12 + $0x108] ss:$16 sps:$4 sm:$0xff]  }
 0x797   :  { %v2450_v2 = vpop.f32.mrb[80].mxu0  ;;  %v2491_v3 = vpop.f32.mrb[80].mxu1 }
 0x798   :  { %v2587_v5 = vadd.f32 %v2450_v2, %v5343_v4  ;;  %v2589_v7 = vadd.f32 %v2491_v3, %v5344_v6  ;;  %v2452_v42 = vpop.f32.mrb[81].mxu0  ;;  %v2493_v13 = vpop.f32.mrb[81].mxu1  ;;  %v3668_v3 = vld [vmem:[#allocation12 + $0x124] ss:$16 sps:$4 sm:$0xff]   ;;  %v3669_v4 = vld [vmem:[#allocation12 + $0x12c] ss:$16 sps:$4 sm:$0xff]  }
 0x799   :  { %v2588_v23 = vadd.f32 %v2452_v42, %v5345_v55  ;;  %v2590_v37 = vadd.f32 %v2493_v13, %v5346_v28  ;;  %v2454_v9 = vpop.f32.mrb[82].mxu0  ;;  %v2495_v20 = vpop.f32.mrb[82].mxu1  ;;  %v3670_v55 = vld [vmem:[#allocation12 + $0x120] ss:$16 sps:$4 sm:$0xff]   ;;  %v3672_v28 = vld [vmem:[#allocation12 + $0x144] ss:$16 sps:$4 sm:$0xff]  }
 0x79a   :  { %v3154_v15 = vmul.f32 -1.442695, %v2587_v5  ;;  %v2455_v12 = vpop.f32.mrb[83].mxu0  ;;  %v2496_v8 = vpop.f32.mrb[83].mxu1  ;;  %v3674_v20 = vld [vmem:[#allocation12 + $0x140] ss:$16 sps:$4 sm:$0xff]  }
 0x79b   :  { %v3155_v36 = vmul.f32 -1.442695, %v2588_v23  ;;  %v3156_v33 = vmul.f32 -1.442695, %v2590_v37  ;;  %v3671_v23 = vld [vmem:[#allocation12 + $0x128] ss:$16 sps:$4 sm:$0xff]  }
 0x79c   :  { %3504 = vpow2.f32 %v3154_v15  ;;  %v3673_v37 = vld [vmem:[#allocation12 + $0x14c] ss:$16 sps:$4 sm:$0xff]   ;;  %v3676_v15 = vld [vmem:[#allocation12 + $0x164] ss:$16 sps:$4 sm:$0xff]   ;;  %v3678_v12 = vld [vmem:[#allocation12 + $0x160] ss:$16 sps:$4 sm:$0xff]  }
 0x79d   :  { %3506 = vpow2.f32 %v3155_v36  ;;  %v3679_v8 = vld [vmem:[#allocation12 + $0x168] ss:$16 sps:$4 sm:$0xff]   ;;  %v3680_v36 = vld [vmem:[#allocation12 + $0x184] ss:$16 sps:$4 sm:$0xff]  }
 0x79e   :  { %3508 = vpow2.f32 %v3156_v33  ;;  %v3681_v33 = vld [vmem:[#allocation12 + $0x18c] ss:$16 sps:$4 sm:$0xff]  }
 0x79f   :  { %3510 = vtanh.f32 %v2589_v7 }
 0x7a6   :  { %v3505_v21 = vpop.eup %3504 }
 0x7a7   :  { %v3507_v45 = vpop.eup %3506  ;;  %v2605_v53 = vadd.f32 1.0, %v3505_v21  ;;  %v3682_v21 = vld [vmem:[#allocation12 + $0x180] ss:$16 sps:$4 sm:$0xff]  }
 0x7a8   :  { %v2611_v25 = vadd.f32 1.0, %v3507_v45  ;;  %v3509_v11 = vpop.eup %3508  ;;  %v3683_v45 = vld [vmem:[#allocation12 + $0x188] ss:$16 sps:$4 sm:$0xff]  }
 0x7a9   :  { %3512 = vrcp.f32 %v2605_v53  ;;  %v3511_v30 = vpop.eup %3510  ;;  %v2618_v49 = vadd.f32 1.0, %v3509_v11  ;;  %v3685_v11 = vld [vmem:[#allocation12 + $0x1ac] ss:$16 sps:$4 sm:$0xff]  }
 0x7aa   :  { %3514 = vrcp.f32 %v2611_v25  ;;  %v3684_v25 = vld [vmem:[#allocation12 + $0x1a4] ss:$16 sps:$4 sm:$0xff]  }
 0x7ab   :  { %3516 = vrcp.f32 %v2618_v49 }
 0x7b3   :  { %v3513_v50 = vpop.eup %3512 }
 0x7b4   :  { %v3515_v43 = vpop.eup %3514  ;;  %v2622_v19 = vmul.f32 %v3513_v50, %v3511_v30 }
 0x7b5   :  { %v2621_v35 = vmul.f32 %v3515_v43, %v4926_v46  ;;  %v3517_v51 = vpop.eup %3516  ;;  %v3686_v43 = vld [vmem:[#allocation12 + $0x1a0] ss:$16 sps:$4 sm:$0xff]  }
 0x7b7   :  { %v4984_v16 = vadd.f32 %v2622_v19, %v2621_v35  ;;  %v2533_v56 = vpop.f32.mrb[84].mxu0  ;;  %v2574_v24 = vpop.f32.mrb[84].mxu1  ;;  %v3687_v19 = vld [vmem:[#allocation12 + $0x1a8] ss:$16 sps:$4 sm:$0xff]   ;;  %v3688_v35 = vld [vmem:[#allocation12 + $0x1c4] ss:$16 sps:$4 sm:$0xff]  }
 0x7b8   :  { %v2597_v57 = vadd.f32 %v2533_v56, %v5347_v41  ;;  %v2599_v59 = vadd.f32 %v2574_v24, %v5348_v58  ;;  %v2535_v60 = vpop.f32.mrb[85].mxu0  ;;  %v2576_v61 = vpop.f32.mrb[85].mxu1  ;;  %v3689_v56 = vld [vmem:[#allocation12 + $0x1cc] ss:$16 sps:$4 sm:$0xff]   ;;  %v3690_v24 = vld [vmem:[#allocation12 + $0x1c0] ss:$16 sps:$4 sm:$0xff]  }
 0x7b9   :  { %3518 = vtanh.f32 %v4984_v16  ;;  %v2598_v47 = vadd.f32 %v2535_v60, %v5349_v32  ;;  %v2600_v27 = vadd.f32 %v2576_v61, %v5350_v48  ;;  %v2537_v52 = vpop.f32.mrb[86].mxu0  ;;  %v2578_v54 = vpop.f32.mrb[86].mxu1  ;;  %v3691_v41 = vld [vmem:[#allocation12 + $0x1c8] ss:$16 sps:$4 sm:$0xff]   ;;  %v3693_v58 = vld [vmem:[#allocation12 + $0x1ec] ss:$16 sps:$4 sm:$0xff]  }
 0x7ba   :  { %v3157_v46 = vmul.f32 -1.442695, %v2597_v57  ;;  %v2538_v40 = vpop.f32.mrb[87].mxu0  ;;  %v2579_v29 = vpop.f32.mrb[87].mxu1  ;;  %v3692_v57 = vld [vmem:[#allocation12 + $0x1e4] ss:$16 sps:$4 sm:$0xff]  }
 0x7bb   :  { %v3158_v38 = vmul.f32 -1.442695, %v2598_v47  ;;  %v3159_v14 = vmul.f32 -1.442695, %v2600_v27  ;;  %v3695_v60 = vld [vmem:[#allocation12 + $0x1e8] ss:$16 sps:$4 sm:$0xff]  }
 0x7bc   :  { %3520 = vpow2.f32 %v3157_v46  ;;  %v5351_v48 = vld [vmem:[#allocation71_spill] sm:$0xff]  ;;  %v5352_v52 = vld [vmem:[#allocation72_spill] sm:$0xff]  ;;  %v5353_v29 = vld [vmem:[#allocation73_spill] sm:$0xff] }
 0x7bd   :  { %3522 = vpow2.f32 %v3158_v38 }
 0x7be   :  { %3524 = vpow2.f32 %v3159_v14 }
 0x7bf   :  { %3526 = vtanh.f32 %v2599_v59  ;;  %v3694_v59 = vld [vmem:[#allocation12 + $0x1e0] ss:$16 sps:$4 sm:$0xff]  }
 0x7c3   :  { %v3519_v17 = vpop.eup %3518 }
 0x7c4   :  { %v2625_v34 = vmul.f32 %v3519_v17, %v3517_v51  ;;  %v5354_v51 = vld [vmem:[#allocation74_spill] sm:$0xff] }
 0x7c6   :  { %v3521_v44 = vpop.eup %3520  ;;  %v2653_v10 = vpack.c.bf16 %v2625_v34, %v2625_v34 }
 0x7c7   :  { %v3523_v26 = vpop.eup %3522  ;;  %v2630_v18 = vadd.f32 1.0, %v3521_v44 }
 0x7c8   :  { %2952 = vst [vmem:[%s5023_s4 + $0x30] sm:$0xf] %v2653_v10  ;;  %2654 = vst [vmem:[#allocation4] sm:$0xf] %v2653_v10  ;;  %v2636_v62 = vadd.f32 1.0, %v3523_v26  ;;  %v3525_v1 = vpop.eup %3524 }
 0x7c9   :  { %3528 = vrcp.f32 %v2630_v18  ;;  %v3527_v2 = vpop.eup %3526  ;;  %v2643_v42 = vadd.f32 1.0, %v3525_v1 }
 0x7ca   :  { %3530 = vrcp.f32 %v2636_v62 }
 0x7cb   :  { %3532 = vrcp.f32 %v2643_v42 }
 0x7cf   :  { %v2661_v63 = vld [vmem:[#allocation4] sm:$0xf] }
 0x7d0   :  { %2695 = vmatmul.mubr.bf16.vlgmr.msra.gmra.mrb[88].mxu0 %v2661_v63  ;;  %2736 = vmatmul.mubr.bf16.vlgmr.msra.gmra.mrb[88].mxu1 %v2661_v63 }
 0x7d1   :  { %2746 = vmatpush1.bf16.msra.mxu0 %v3666_v0  ;;  %2787 = vmatpush1.bf16.msra.mxu1 %v3667_v39 }
 0x7d2   :  { %2747 = vmatprep.subr.bf16.mxu0 %v3668_v3  ;;  %2788 = vmatprep.subr.bf16.mxu1 %v3669_v4 }
 0x7d3   :  { %v3529_v5 = vpop.eup %3528  ;;  %2777 = vmatprep.mubr.bf16.mxu0 %v5140_v22  ;;  %2818 = vmatprep.mubr.bf16.mxu1 %v5140_v22  ;;  %v3675_v22 = vld [vmem:[#allocation12 + $0x148] ss:$16 sps:$4 sm:$0xff]  }
 0x7d4   :  { %v3531_v6 = vpop.eup %3530  ;;  %v2647_v7 = vmul.f32 %v3529_v5, %v3527_v2 }
 0x7d5   :  { %v2646_v13 = vmul.f32 %v3531_v6, %v4947_v31  ;;  %2748 = vmatpush1.bf16.msra.mxu0 %v3670_v55  ;;  %2789 = vmatpush1.bf16.msra.mxu1 %v3671_v23  ;;  %v3677_v31 = vld [vmem:[#allocation12 + $0x16c] ss:$16 sps:$4 sm:$0xff]   ;;  %v3533_v53 = vpop.eup %3532 }
 0x7d6   :  { %2749 = vmatprep.subr.bf16.mxu0 %v3672_v28  ;;  %2790 = vmatprep.subr.bf16.mxu1 %v3673_v37  ;;  %v5355_v28 = vld [vmem:[#allocation75_spill] sm:$0xff] }
 0x7d7   :  { %v4997_v9 = vadd.f32 %v2647_v7, %v2646_v13 }
 0x7d9   :  { %3534 = vtanh.f32 %v4997_v9  ;;  %2750 = vmatpush1.bf16.msra.mxu0 %v3674_v20  ;;  %2791 = vmatpush1.bf16.msra.mxu1 %v3675_v22  ;;  %v5356_v20 = vld [vmem:[#allocation76_spill] sm:$0xff] }
 0x7da   :  { %2751 = vmatprep.subr.bf16.mxu0 %v3676_v15  ;;  %2792 = vmatprep.subr.bf16.mxu1 %v3677_v31 }
 0x7dd   :  { %2752 = vmatpush1.bf16.msra.mxu0 %v3678_v12  ;;  %2793 = vmatpush1.bf16.msra.mxu1 %v3679_v8  ;;  %v5357_v12 = vld [vmem:[#allocation77_spill] sm:$0xff] }
 0x7de   :  { %2753 = vmatprep.subr.bf16.mxu0 %v3680_v36  ;;  %2794 = vmatprep.subr.bf16.mxu1 %v3681_v33  ;;  %v5358_v36 = vld [vmem:[#allocation78_spill] sm:$0xff] }
 0x7e1   :  { %2754 = vmatpush1.bf16.msra.mxu0 %v3682_v21  ;;  %2795 = vmatpush1.bf16.msra.mxu1 %v3683_v45 }
 0x7e2   :  { %2755 = vmatprep.subr.bf16.mxu0 %v3684_v25  ;;  %2796 = vmatprep.subr.bf16.mxu1 %v3685_v11 }
 0x7e3   :  { %v3535_v30 = vpop.eup %3534 }
 0x7e4   :  { %v2650_v50 = vmul.f32 %v3535_v30, %v3533_v53 }
 0x7e5   :  { %2756 = vmatpush1.bf16.msra.mxu0 %v3686_v43  ;;  %2797 = vmatpush1.bf16.msra.mxu1 %v3687_v19 }
 0x7e6   :  { %v2655_v49 = vpack.c.bf16 %v2650_v50, %v2650_v50  ;;  %2757 = vmatprep.subr.bf16.mxu0 %v3688_v35  ;;  %2798 = vmatprep.subr.bf16.mxu1 %v3689_v56 }
 0x7e8   :  { %2995 = vst [vmem:[%s5023_s4 + $0xc] sm:$0xf] %v2655_v49  ;;  %2656 = vst [vmem:[#allocation5] sm:$0xf] %v2655_v49 }
 0x7e9   :  { %2758 = vmatpush1.bf16.msra.mxu0 %v3690_v24  ;;  %2799 = vmatpush1.bf16.msra.mxu1 %v3691_v41 }
 0x7ea   :  { %2759 = vmatprep.subr.bf16.mxu0 %v3692_v57  ;;  %2800 = vmatprep.subr.bf16.mxu1 %v3693_v58 }
 0x7ed   :  { %2760 = vmatpush1.bf16.msra.mxu0 %v3694_v59  ;;  %2801 = vmatpush1.bf16.msra.mxu1 %v3695_v60 }
 0x7ef   :  { %v2744_v61 = vld [vmem:[#allocation5] sm:$0xf] }
 0x7f0   :  { %2778 = vmatmul.mubr.bf16.vlgmr.msra.gmra.mrb[92].mxu0 %v2744_v61  ;;  %2819 = vmatmul.mubr.bf16.vlgmr.msra.gmra.mrb[92].mxu1 %v2744_v61 }
 0x8a3   :  { %v2696_v32 = vpop.f32.mrb[88].mxu0  ;;  %v2737_v47 = vpop.f32.mrb[88].mxu1 }
 0x8a4   :  { %v2833_v27 = vadd.f32 %v2696_v32, %v5351_v48  ;;  %v2835_v54 = vadd.f32 %v2737_v47, %v5352_v52  ;;  %v2698_v46 = vpop.f32.mrb[89].mxu0  ;;  %v2739_v40 = vpop.f32.mrb[89].mxu1 }
 0x8a5   :  { %v2834_v38 = vadd.f32 %v2698_v46, %v5353_v29  ;;  %v2836_v17 = vadd.f32 %v2739_v40, %v5354_v51  ;;  %v2700_v14 = vpop.f32.mrb[90].mxu0  ;;  %v2741_v34 = vpop.f32.mrb[90].mxu1 }
 0x8a6   :  { %v3160_v44 = vmul.f32 -1.442695, %v2833_v27  ;;  %v2701_v10 = vpop.f32.mrb[91].mxu0  ;;  %v2742_v26 = vpop.f32.mrb[91].mxu1 }
 0x8a7   :  { %v3161_v18 = vmul.f32 -1.442695, %v2834_v38  ;;  %v3162_v62 = vmul.f32 -1.442695, %v2836_v17 }
 0x8a8   :  { %3536 = vpow2.f32 %v3160_v44 }
 0x8a9   :  { %3538 = vpow2.f32 %v3161_v18 }
 0x8aa   :  { %3540 = vpow2.f32 %v3162_v62 }
 0x8ab   :  { %3542 = vtanh.f32 %v2835_v54 }
 0x8b2   :  { %v3537_v63 = vpop.eup %3536 }
 0x8b3   :  { %v3539_v1 = vpop.eup %3538  ;;  %v2851_v0 = vadd.f32 1.0, %v3537_v63 }
 0x8b4   :  { %v2857_v39 = vadd.f32 1.0, %v3539_v1  ;;  %v3541_v2 = vpop.eup %3540 }
 0x8b5   :  { %3544 = vrcp.f32 %v2851_v0  ;;  %v3543_v3 = vpop.eup %3542  ;;  %v2864_v7 = vadd.f32 1.0, %v3541_v2 }
 0x8b6   :  { %3546 = vrcp.f32 %v2857_v39 }
 0x8b7   :  { %3548 = vrcp.f32 %v2864_v7 }
 0x8bf   :  { %v3545_v4 = vpop.eup %3544 }
 0x8c0   :  { %v3547_v5 = vpop.eup %3546  ;;  %v2868_v6 = vmul.f32 %v3545_v4, %v3543_v3 }
 0x8c1   :  { %v2867_v42 = vmul.f32 %v3547_v5, %v4984_v16  ;;  %v3549_v30 = vpop.eup %3548 }
 0x8c3   :  { %v2869_v13 = vadd.f32 %v2868_v6, %v2867_v42  ;;  %v2779_v55 = vpop.f32.mrb[92].mxu0  ;;  %v2820_v23 = vpop.f32.mrb[92].mxu1 }
 0x8c4   :  { %v2843_v37 = vadd.f32 %v2779_v55, %v5355_v28  ;;  %v2845_v22 = vadd.f32 %v2820_v23, %v5356_v20  ;;  %v2781_v15 = vpop.f32.mrb[93].mxu0  ;;  %v2822_v31 = vpop.f32.mrb[93].mxu1 }
 0x8c5   :  { %3550 = vtanh.f32 %v2869_v13  ;;  %v2844_v8 = vadd.f32 %v2781_v15, %v5357_v12  ;;  %v2846_v33 = vadd.f32 %v2822_v31, %v5358_v36  ;;  %v2783_v21 = vpop.f32.mrb[94].mxu0  ;;  %v2824_v45 = vpop.f32.mrb[94].mxu1 }
 0x8c6   :  { %v3163_v53 = vmul.f32 -1.442695, %v2843_v37  ;;  %v2784_v25 = vpop.f32.mrb[95].mxu0  ;;  %v2825_v16 = vpop.f32.mrb[95].mxu1 }
 0x8c7   :  { %v3164_v11 = vmul.f32 -1.442695, %v2844_v8  ;;  %v3165_v43 = vmul.f32 -1.442695, %v2846_v33 }
 0x8c8   :  { %3552 = vpow2.f32 %v3163_v53 }
 0x8c9   :  { %3554 = vpow2.f32 %v3164_v11 }
 0x8ca   :  { %3556 = vpow2.f32 %v3165_v43 }
 0x8cb   :  { %3558 = vtanh.f32 %v2845_v22 }
 0x8cf   :  { %v3551_v50 = vpop.eup %3550 }
 0x8d0   :  { %v2871_v19 = vmul.f32 %v3551_v50, %v3549_v30 }
 0x8d2   :  { %v3553_v49 = vpop.eup %3552  ;;  %v2899_v35 = vpack.c.bf16 %v2871_v19, %v2871_v19 }
 0x8d3   :  { %v3555_v56 = vpop.eup %3554  ;;  %v2876_v24 = vadd.f32 1.0, %v3553_v49 }
 0x8d4   :  { %2900 = vst [vmem:[#allocation4] sm:$0xf] %v2899_v35  ;;  %2953 = vst [vmem:[%s5023_s4 + $0x38] sm:$0xf] %v2899_v35  ;;  %v2882_v41 = vadd.f32 1.0, %v3555_v56  ;;  %v3557_v57 = vpop.eup %3556 }
 0x8d5   :  { %3560 = vrcp.f32 %v2876_v24  ;;  %v3559_v58 = vpop.eup %3558  ;;  %v2889_v32 = vadd.f32 1.0, %v3557_v57 }
 0x8d6   :  { %3562 = vrcp.f32 %v2882_v41 }
 0x8d7   :  { %3564 = vrcp.f32 %v2889_v32 }
 0x8df   :  { %v3561_v59 = vpop.eup %3560 }
 0x8e0   :  { %v3563_v60 = vpop.eup %3562  ;;  %v2893_v61 = vmul.f32 %v3561_v59, %v3559_v58 }
 0x8e1   :  { %v2892_v47 = vmul.f32 %v3563_v60, %v4997_v9  ;;  %v3565_v27 = vpop.eup %3564 }
 0x8e3   :  { %v2894_v48 = vadd.f32 %v2893_v61, %v2892_v47 }
 0x8e5   :  { %3566 = vtanh.f32 %v2894_v48 }
 0x8ef   :  { %v3567_v52 = vpop.eup %3566 }
 0x8f0   :  { %v2896_v54 = vmul.f32 %v3567_v52, %v3565_v27 }
 0x8f2   :  { %v2901_v46 = vpack.c.bf16 %v2896_v54, %v2896_v54 }
 0x8f4   :  { %2902 = vst [vmem:[#allocation5] sm:$0xf] %v2901_v46  ;;  %2994 = vst [vmem:[%s5023_s4 + $0x4] sm:$0xf] %v2901_v46 }
 0x8f5   :  { %3006 = vsyncpa [#allocation11], 1 }
 0x8f6   :  { %3007 = vsyncpa [#allocation13], 1 }

// kernel: encoder_forward.3
= control target key start
LH: loop header
LB: loop body
LE: loop exit
PB: predicated region body
PF: predicated region fallthrough
CT: control target
= control target key end

     0   :  { %9 = vsyncpa [#allocation11], 0  ;;  %s4556_s15 = smov [#allocation10]   ;;  %s6370_s0 = inlined_call_operand.vmem [shape: bf16[64,256], index: 0, kind: input, shape index: {}]   ;;  %s6371_s1 = inlined_call_operand.hbm [shape: bf16[256,1024], index: 1, kind: input, shape index: {}]   ;;  %s6372_s2 = inlined_call_operand.vmem [shape: bf16[2,128,512], index: 2, kind: input, shape index: {}]   ;;  %s6373_s3 = inlined_call_operand.vmem [shape: f32[1,1024], index: 3, kind: input, shape index: {}]   ;;  %s6374_s4 = inlined_call_operand.vmem [shape: bf16[64,256], index: 4, kind: output, shape index: {}]  }
   0x1   :  { %s17_s16 = sshll.u32 %s4556_s15, 4  ;;  %s4532_s19 = scalar_lea.hbm %s6371_s1, 16384  ;;  %s18_s16 = int_to_ptr.vmem [resolvable:$true] %s17_s16 }
   0x2   :  { %p4533_p0 = scmp.ne.s32.totalorder %s6371_s1, %s4532_s19  ;;  %p4536_p1 = scmp.lt.u32.totalorder %s4532_s19, %s6371_s1 }
   0x4   :  { %p4538_p2 = pnand %p4536_p1, %p4533_p0 }
   0x6   :  { %4541 = shalt.err (!%p4538_p2)
}
   0x7   :  { %s4542_s24 = scalar_lea.vmem %s18_s16, 16384  ;;  %p4547_p4 = scmp.lt.s32.totalorder %s18_s16, %s18_s16 }
   0x8   :  { %p4543_p3 = scmp.ne.s32.totalorder %s18_s16, %s4542_s24  ;;  %p4548_p5 = scmp.lt.s32.totalorder %s4542_s24, %s4542_s24 }
   0xa   :  { %p4549_p6 = por %p4548_p5, %p4547_p4 }
   0xc   :  { %p4550_p7 = pnand %p4549_p6, %p4543_p3 }
   0xe   :  { %4553 = shalt.err (!%p4550_p7)
}
   0xf   :  { %s4557_s25 = smov 512   ;;  %s4558_s26 = smov 32  }
  0x10   :  { %23 = dma.hbm_to_vmem [thread:$0]  %s6371_s1, 16384, %s18_s16, [#allocation11], %s4557_s25, %s4557_s25, %s4558_s26  }
  0x11   :  { %4554 = dma.done.wait [#allocation11], 16384  }
  0x12   :  { %4555 = vsyncadd [#allocation11], 4294950912  ;;  %v40_v0 = vld [vmem:[#allocation10] sm:$0xff]  ;;  %v41_v2 = vld [vmem:[#allocation10 + $0x8] sm:$0xff] }
  0x13   :  { %v44_v1 = vld [vmem:[#allocation10 + $0x20] sm:$0xff]  ;;  %v45_v4 = vld [vmem:[#allocation10 + $0x28] sm:$0xff] }
  0x14   :  { %v3733_v3 = vcombine.high %v40_v0, %v44_v1  ;;  %v3732_v5 = vcombine.low %v40_v0, %v44_v1  ;;  %v48_v6 = vld [vmem:[#allocation10 + $0x40] sm:$0xff]  ;;  %v3735_v8 = vcombine.high %v41_v2, %v45_v4  ;;  %v3734_v9 = vcombine.low %v41_v2, %v45_v4  ;;  %v49_v11 = vld [vmem:[#allocation10 + $0x48] sm:$0xff] }
  0x15   :  { %v52_v7 = vld [vmem:[#allocation10 + $0x60] sm:$0xff]  ;;  %v53_v12 = vld [vmem:[#allocation10 + $0x68] sm:$0xff]  ;;  %v6375_v4 = vmov 0  }
  0x16   :  { %v3741_v10 = vcombine.high %v48_v6, %v52_v7  ;;  %v56_v13 = vld [vmem:[#allocation10 + $0x80] sm:$0xff]  ;;  %890 = vmatprep.subr.bf16.mxu0 %v3733_v3  ;;  %v3743_v14 = vcombine.high %v49_v11, %v53_v12  ;;  %v57_v16 = vld [vmem:[#allocation10 + $0x88] sm:$0xff]  ;;  %963 = vmatprep.subr.bf16.mxu1 %v3735_v8  ;;  %v3740_v18 = vcombine.low %v48_v6, %v52_v7 }
  0x17   :  { %v60_v15 = vld [vmem:[#allocation10 + $0xa0] sm:$0xff]  ;;  %v61_v17 = vld [vmem:[#allocation10 + $0xa8] sm:$0xff]  ;;  %891 = vmatpush1.bf16.msra.mxu0 %v3732_v5  ;;  %964 = vmatpush1.bf16.msra.mxu1 %v3734_v9  ;;  %v3742_v19 = vcombine.low %v49_v11, %v53_v12  ;;  %1246 = vst [vmem:[#allocation4] sm:$0xf] %v6375_v4  ;;  %1247 = vst [vmem:[#allocation5] sm:$0xf] %v6375_v4 }
  0x18   :  { %892 = vmatprep.subr.bf16.mxu0 %v3741_v10  ;;  %v3749_v20 = vcombine.high %v56_v13, %v60_v15  ;;  %965 = vmatprep.subr.bf16.mxu1 %v3743_v14  ;;  %v3751_v21 = vcombine.high %v57_v16, %v61_v17  ;;  %v64_v22 = vld [vmem:[#allocation10 + $0xc0] sm:$0xff]  ;;  %v65_v24 = vld [vmem:[#allocation10 + $0xc8] sm:$0xff]  ;;  %v3748_v26 = vcombine.low %v56_v13, %v60_v15 }
  0x19   :  { %v68_v23 = vld [vmem:[#allocation10 + $0xe0] sm:$0xff]  ;;  %v69_v25 = vld [vmem:[#allocation10 + $0xe8] sm:$0xff]  ;;  %v3750_v27 = vcombine.low %v57_v16, %v61_v17 }
  0x1a   :  { %v3757_v28 = vcombine.high %v64_v22, %v68_v23  ;;  %v3759_v29 = vcombine.high %v65_v24, %v69_v25  ;;  %v72_v30 = vld [vmem:[#allocation10 + $0x100] sm:$0xff]  ;;  %v73_v32 = vld [vmem:[#allocation10 + $0x108] sm:$0xff]  ;;  %v3756_v34 = vcombine.low %v64_v22, %v68_v23  ;;  %v3758_v35 = vcombine.low %v65_v24, %v69_v25 }
  0x1b   :  { %893 = vmatpush1.bf16.msra.mxu0 %v3740_v18  ;;  %966 = vmatpush1.bf16.msra.mxu1 %v3742_v19  ;;  %v76_v31 = vld [vmem:[#allocation10 + $0x120] sm:$0xff]  ;;  %v77_v33 = vld [vmem:[#allocation10 + $0x128] sm:$0xff] }
  0x1c   :  { %894 = vmatprep.subr.bf16.mxu0 %v3749_v20  ;;  %967 = vmatprep.subr.bf16.mxu1 %v3751_v21  ;;  %v3765_v36 = vcombine.high %v72_v30, %v76_v31  ;;  %v3767_v37 = vcombine.high %v73_v32, %v77_v33  ;;  %v80_v38 = vld [vmem:[#allocation10 + $0x140] sm:$0xff]  ;;  %v81_v40 = vld [vmem:[#allocation10 + $0x148] sm:$0xff]  ;;  %v3764_v42 = vcombine.low %v72_v30, %v76_v31 }
  0x1d   :  { %v84_v39 = vld [vmem:[#allocation10 + $0x160] sm:$0xff]  ;;  %v85_v41 = vld [vmem:[#allocation10 + $0x168] sm:$0xff]  ;;  %v3766_v43 = vcombine.low %v73_v32, %v77_v33 }
  0x1e   :  { %v3773_v44 = vcombine.high %v80_v38, %v84_v39  ;;  %v3775_v45 = vcombine.high %v81_v40, %v85_v41  ;;  %v88_v46 = vld [vmem:[#allocation10 + $0x180] sm:$0xff]  ;;  %v89_v48 = vld [vmem:[#allocation10 + $0x188] sm:$0xff]  ;;  %v3772_v50 = vcombine.low %v80_v38, %v84_v39  ;;  %v3774_v51 = vcombine.low %v81_v40, %v85_v41 }
  0x1f   :  { %895 = vmatpush1.bf16.msra.mxu0 %v3748_v26  ;;  %968 = vmatpush1.bf16.msra.mxu1 %v3750_v27  ;;  %v92_v47 = vld [vmem:[#allocation10 + $0x1a0] sm:$0xff]  ;;  %v93_v49 = vld [vmem:[#allocation10 + $0x1a8] sm:$0xff] }
  0x20   :  { %896 = vmatprep.subr.bf16.mxu0 %v3757_v28  ;;  %969 = vmatprep.subr.bf16.mxu1 %v3759_v29  ;;  %v3781_v52 = vcombine.high %v88_v46, %v92_v47  ;;  %v3783_v53 = vcombine.high %v89_v48, %v93_v49  ;;  %v96_v54 = vld [vmem:[#allocation10 + $0x1c0] sm:$0xff]  ;;  %v97_v57 = vld [vmem:[#allocation10 + $0x1c8] sm:$0xff]  ;;  %v3780_v59 = vcombine.low %v88_v46, %v92_v47 }
  0x21   :  { %v100_v55 = vld [vmem:[#allocation10 + $0x1e0] sm:$0xff]  ;;  %v101_v58 = vld [vmem:[#allocation10 + $0x1e8] sm:$0xff]  ;;  %v3782_v60 = vcombine.low %v89_v48, %v93_v49 }
  0x22   :  { %v4600_v56 = vld [vmem:[%s6370_s0 + $0x4] ss:$8 sps:$4 sm:$0xff]   ;;  %v3789_v61 = vcombine.high %v96_v54, %v100_v55  ;;  %v3791_v62 = vcombine.high %v97_v57, %v101_v58  ;;  %v105_v1 = vld [vmem:[#allocation10 + $0x208] sm:$0xff]  ;;  %v3788_v3 = vcombine.low %v96_v54, %v100_v55  ;;  %v3790_v5 = vcombine.low %v97_v57, %v101_v58 }
  0x23   :  { %897 = vmatpush1.bf16.msra.mxu0 %v3756_v34  ;;  %970 = vmatpush1.bf16.msra.mxu1 %v3758_v35  ;;  %v104_v63 = vld [vmem:[#allocation10 + $0x200] sm:$0xff]  ;;  %v109_v2 = vld [vmem:[#allocation10 + $0x228] sm:$0xff] }
  0x24   :  { %898 = vmatprep.subr.bf16.mxu0 %v3765_v36  ;;  %971 = vmatprep.subr.bf16.mxu1 %v3767_v37  ;;  %v108_v0 = vld [vmem:[#allocation10 + $0x220] sm:$0xff]  ;;  %v3799_v7 = vcombine.high %v105_v1, %v109_v2  ;;  %v113_v10 = vld [vmem:[#allocation10 + $0x248] sm:$0xff]  ;;  %v3798_v13 = vcombine.low %v105_v1, %v109_v2  ;;  %v46_v2 = vld [vmem:[#allocation10 + $0x30] sm:$0xff] }
  0x25   :  { %922 = vmatprep.mubr.bf16.mxu0 %v4600_v56  ;;  %995 = vmatprep.mubr.bf16.mxu1 %v4600_v56  ;;  %v3797_v6 = vcombine.high %v104_v63, %v108_v0  ;;  %v112_v8 = vld [vmem:[#allocation10 + $0x240] sm:$0xff]  ;;  %v117_v11 = vld [vmem:[#allocation10 + $0x268] sm:$0xff]  ;;  %v3796_v12 = vcombine.low %v104_v63, %v108_v0  ;;  %v42_v0 = vld [vmem:[#allocation10 + $0x10] sm:$0xff] }
  0x26   :  { %v116_v9 = vld [vmem:[#allocation10 + $0x260] sm:$0xff]  ;;  %v3807_v15 = vcombine.high %v113_v10, %v117_v11  ;;  %v121_v18 = vld [vmem:[#allocation10 + $0x288] sm:$0xff]  ;;  %v3806_v21 = vcombine.low %v113_v10, %v117_v11  ;;  %v54_v11 = vld [vmem:[#allocation10 + $0x70] sm:$0xff] }
  0x27   :  { %899 = vmatpush1.bf16.msra.mxu0 %v3764_v42  ;;  %972 = vmatpush1.bf16.msra.mxu1 %v3766_v43  ;;  %v3805_v14 = vcombine.high %v112_v8, %v116_v9  ;;  %v120_v16 = vld [vmem:[#allocation10 + $0x280] sm:$0xff]  ;;  %v125_v19 = vld [vmem:[#allocation10 + $0x2a8] sm:$0xff]  ;;  %v3804_v20 = vcombine.low %v112_v8, %v116_v9  ;;  %v3737_v8 = vcombine.high %v42_v0, %v46_v2  ;;  %v50_v9 = vld [vmem:[#allocation10 + $0x50] sm:$0xff] }
  0x28   :  { %900 = vmatprep.subr.bf16.mxu0 %v3773_v44  ;;  %973 = vmatprep.subr.bf16.mxu1 %v3775_v45  ;;  %v124_v17 = vld [vmem:[#allocation10 + $0x2a0] sm:$0xff]  ;;  %v3815_v23 = vcombine.high %v121_v18, %v125_v19  ;;  %v129_v26 = vld [vmem:[#allocation10 + $0x2c8] sm:$0xff]  ;;  %v3814_v29 = vcombine.low %v121_v18, %v125_v19  ;;  %v3745_v18 = vcombine.high %v50_v9, %v54_v11  ;;  %v62_v19 = vld [vmem:[#allocation10 + $0xb0] sm:$0xff] }
  0x29   :  { %v3813_v22 = vcombine.high %v120_v16, %v124_v17  ;;  %v128_v24 = vld [vmem:[#allocation10 + $0x2c0] sm:$0xff]  ;;  %v133_v27 = vld [vmem:[#allocation10 + $0x2e8] sm:$0xff]  ;;  %v3812_v28 = vcombine.low %v120_v16, %v124_v17  ;;  %v58_v16 = vld [vmem:[#allocation10 + $0x90] sm:$0xff] }
  0x2a   :  { %v132_v25 = vld [vmem:[#allocation10 + $0x2e0] sm:$0xff]  ;;  %v3823_v31 = vcombine.high %v129_v26, %v133_v27  ;;  %v137_v34 = vld [vmem:[#allocation10 + $0x308] sm:$0xff]  ;;  %v3822_v37 = vcombine.low %v129_v26, %v133_v27  ;;  %v3753_v26 = vcombine.high %v58_v16, %v62_v19  ;;  %v66_v27 = vld [vmem:[#allocation10 + $0xd0] sm:$0xff] }
  0x2b   :  { %901 = vmatpush1.bf16.msra.mxu0 %v3772_v50  ;;  %974 = vmatpush1.bf16.msra.mxu1 %v3774_v51  ;;  %v3821_v30 = vcombine.high %v128_v24, %v132_v25  ;;  %v136_v32 = vld [vmem:[#allocation10 + $0x300] sm:$0xff]  ;;  %v141_v35 = vld [vmem:[#allocation10 + $0x328] sm:$0xff]  ;;  %v3820_v36 = vcombine.low %v128_v24, %v132_v25  ;;  %v3744_v24 = vcombine.low %v50_v9, %v54_v11  ;;  %v106_v11 = vld [vmem:[#allocation10 + $0x210] sm:$0xff] }
  0x2c   :  { %902 = vmatprep.subr.bf16.mxu0 %v3781_v52  ;;  %975 = vmatprep.subr.bf16.mxu1 %v3783_v53  ;;  %v140_v33 = vld [vmem:[#allocation10 + $0x320] sm:$0xff]  ;;  %v3831_v39 = vcombine.high %v137_v34, %v141_v35  ;;  %v145_v42 = vld [vmem:[#allocation10 + $0x348] sm:$0xff]  ;;  %v3830_v45 = vcombine.low %v137_v34, %v141_v35 }
  0x2d   :  { %v3829_v38 = vcombine.high %v136_v32, %v140_v33  ;;  %v144_v40 = vld [vmem:[#allocation10 + $0x340] sm:$0xff]  ;;  %v149_v43 = vld [vmem:[#allocation10 + $0x368] sm:$0xff]  ;;  %v3828_v44 = vcombine.low %v136_v32, %v140_v33  ;;  %v3752_v33 = vcombine.low %v58_v16, %v62_v19 }
  0x2e   :  { %v148_v41 = vld [vmem:[#allocation10 + $0x360] sm:$0xff]  ;;  %v3839_v48 = vcombine.high %v145_v42, %v149_v43  ;;  %v153_v50 = vld [vmem:[#allocation10 + $0x388] sm:$0xff]  ;;  %v3838_v53 = vcombine.low %v145_v42, %v149_v43 }
  0x2f   :  { %903 = vmatpush1.bf16.msra.mxu0 %v3780_v59  ;;  %976 = vmatpush1.bf16.msra.mxu1 %v3782_v60  ;;  %v3837_v46 = vcombine.high %v144_v40, %v148_v41  ;;  %v152_v47 = vld [vmem:[#allocation10 + $0x380] sm:$0xff]  ;;  %v157_v51 = vld [vmem:[#allocation10 + $0x3a8] sm:$0xff]  ;;  %v3836_v52 = vcombine.low %v144_v40, %v148_v41  ;;  %v79_v41 = vld [vmem:[#allocation10 + $0x138] sm:$0xff] }
  0x30   :  { %904 = vmatprep.subr.bf16.mxu0 %v3789_v61  ;;  %977 = vmatprep.subr.bf16.mxu1 %v3791_v62  ;;  %v156_v49 = vld [vmem:[#allocation10 + $0x3a0] sm:$0xff]  ;;  %v3847_v57 = vcombine.high %v153_v50, %v157_v51  ;;  %v161_v59 = vld [vmem:[#allocation10 + $0x3c8] sm:$0xff]  ;;  %v3846_v62 = vcombine.low %v153_v50, %v157_v51 }
  0x31   :  { %v3845_v54 = vcombine.high %v152_v47, %v156_v49  ;;  %v160_v55 = vld [vmem:[#allocation10 + $0x3c0] sm:$0xff]  ;;  %v165_v60 = vld [vmem:[#allocation10 + $0x3e8] sm:$0xff]  ;;  %v3844_v61 = vcombine.low %v152_v47, %v156_v49  ;;  %v87_v49 = vld [vmem:[#allocation10 + $0x178] sm:$0xff] }
  0x32   :  { %v164_v58 = vld [vmem:[#allocation10 + $0x3e0] sm:$0xff]  ;;  %v3855_v1 = vcombine.high %v161_v59, %v165_v60  ;;  %v4622_v32 = vld [vmem:[%s6370_s0 + $0x10] ss:$8 sps:$4 sm:$0xff]  }
  0x33   :  { %905 = vmatpush1.bf16.msra.mxu0 %v3788_v3  ;;  %978 = vmatpush1.bf16.msra.mxu1 %v3790_v5  ;;  %v3853_v63 = vcombine.high %v160_v55, %v164_v58  ;;  %v43_v3 = vld [vmem:[#allocation10 + $0x18] sm:$0xff] }
  0x34   :  { %906 = vmatprep.subr.bf16.mxu0 %v3797_v6  ;;  %979 = vmatprep.subr.bf16.mxu1 %v3799_v7  ;;  %v47_v5 = vld [vmem:[#allocation10 + $0x38] sm:$0xff]  ;;  %v3852_v6 = vcombine.low %v160_v55, %v164_v58  ;;  %v3854_v7 = vcombine.low %v161_v59, %v165_v60  ;;  %v4642_v59 = vld [vmem:[%s6370_s0 + $0x34] ss:$8 sps:$4 sm:$0xff]  }
  0x35   :  { %v3739_v10 = vcombine.high %v43_v3, %v47_v5  ;;  %v3738_v17 = vcombine.low %v43_v3, %v47_v5  ;;  %v4628_v40 = vld [vmem:[%s6370_s0 + $0x24] ss:$8 sps:$4 sm:$0xff]   ;;  %v4636_v50 = vld [vmem:[%s6370_s0 + $0x20] ss:$8 sps:$4 sm:$0xff]  }
  0x36   :  { %v91_v58 = vld [vmem:[#allocation10 + $0x198] sm:$0xff] }
  0x37   :  { %907 = vmatpush1.bf16.msra.mxu0 %v3796_v12  ;;  %980 = vmatpush1.bf16.msra.mxu1 %v3798_v13  ;;  %v4609_v12 = vld [vmem:[%s6370_s0] ss:$8 sps:$4 sm:$0xff]  }
  0x38   :  { %908 = vmatprep.subr.bf16.mxu0 %v3805_v14  ;;  %981 = vmatprep.subr.bf16.mxu1 %v3807_v15  ;;  %v51_v13 = vld [vmem:[#allocation10 + $0x58] sm:$0xff]  ;;  %v3736_v15 = vcombine.low %v42_v0, %v46_v2  ;;  %v98_v0 = vld [vmem:[#allocation10 + $0x1d0] sm:$0xff] }
  0x39   :  { %v55_v14 = vld [vmem:[#allocation10 + $0x78] sm:$0xff] }
  0x3a   :  { %v3746_v25 = vcombine.low %v51_v13, %v55_v14  ;;  %v95_v60 = vld [vmem:[#allocation10 + $0x1b8] sm:$0xff] }
  0x3b   :  { %909 = vmatpush1.bf16.msra.mxu0 %v3804_v20  ;;  %982 = vmatpush1.bf16.msra.mxu1 %v3806_v21  ;;  %v3747_v20 = vcombine.high %v51_v13, %v55_v14  ;;  %v59_v21 = vld [vmem:[#allocation10 + $0x98] sm:$0xff]  ;;  %v3787_v2 = vcombine.high %v91_v58, %v95_v60  ;;  %v110_v13 = vld [vmem:[#allocation10 + $0x230] sm:$0xff] }
  0x3c   :  { %910 = vmatprep.subr.bf16.mxu0 %v3813_v22  ;;  %983 = vmatprep.subr.bf16.mxu1 %v3815_v23  ;;  %v4614_v22 = vld [vmem:[%s6370_s0 + $0x14] ss:$8 sps:$4 sm:$0xff]   ;;  %v63_v23 = vld [vmem:[#allocation10 + $0xb8] sm:$0xff] }
  0x3d   :  { %v3754_v34 = vcombine.low %v59_v21, %v63_v23  ;;  %v99_v3 = vld [vmem:[#allocation10 + $0x1d8] sm:$0xff] }
  0x3e   :  { %v103_v5 = vld [vmem:[#allocation10 + $0x1f8] sm:$0xff] }
  0x3f   :  { %911 = vmatpush1.bf16.msra.mxu0 %v3812_v28  ;;  %984 = vmatpush1.bf16.msra.mxu1 %v3814_v29  ;;  %v70_v28 = vld [vmem:[#allocation10 + $0xf0] sm:$0xff]  ;;  %v3755_v29 = vcombine.high %v59_v21, %v63_v23  ;;  %v107_v14 = vld [vmem:[#allocation10 + $0x218] sm:$0xff] }
  0x40   :  { %912 = vmatprep.subr.bf16.mxu0 %v3821_v30  ;;  %985 = vmatprep.subr.bf16.mxu1 %v3823_v31  ;;  %v67_v30 = vld [vmem:[#allocation10 + $0xd8] sm:$0xff]  ;;  %v3761_v35 = vcombine.high %v66_v27, %v70_v28  ;;  %v3760_v42 = vcombine.low %v66_v27, %v70_v28  ;;  %v118_v21 = vld [vmem:[#allocation10 + $0x270] sm:$0xff] }
  0x41   :  { %v71_v31 = vld [vmem:[#allocation10 + $0xf8] sm:$0xff] }
  0x42   :  { %v3762_v43 = vcombine.low %v67_v30, %v71_v31  ;;  %v115_v23 = vld [vmem:[#allocation10 + $0x258] sm:$0xff] }
  0x43   :  { %913 = vmatpush1.bf16.msra.mxu0 %v3820_v36  ;;  %986 = vmatpush1.bf16.msra.mxu1 %v3822_v37  ;;  %v74_v36 = vld [vmem:[#allocation10 + $0x110] sm:$0xff]  ;;  %v3763_v37 = vcombine.high %v67_v30, %v71_v31  ;;  %v123_v31 = vld [vmem:[#allocation10 + $0x298] sm:$0xff] }
  0x44   :  { %914 = vmatprep.subr.bf16.mxu0 %v3829_v38  ;;  %987 = vmatprep.subr.bf16.mxu1 %v3831_v39  ;;  %v78_v38 = vld [vmem:[#allocation10 + $0x130] sm:$0xff]  ;;  %v75_v39 = vld [vmem:[#allocation10 + $0x118] sm:$0xff] }
  0x45   :  { %v3771_v47 = vcombine.high %v75_v39, %v79_v41  ;;  %v3768_v51 = vcombine.low %v74_v36, %v78_v38  ;;  %v126_v30 = vld [vmem:[#allocation10 + $0x2b0] sm:$0xff] }
  0x47   :  { %915 = vmatpush1.bf16.msra.mxu0 %v3828_v44  ;;  %988 = vmatpush1.bf16.msra.mxu1 %v3830_v45  ;;  %v3769_v44 = vcombine.high %v74_v36, %v78_v38  ;;  %v82_v45 = vld [vmem:[#allocation10 + $0x150] sm:$0xff] }
  0x48   :  { %916 = vmatprep.subr.bf16.mxu0 %v3837_v46  ;;  %989 = vmatprep.subr.bf16.mxu1 %v3839_v48  ;;  %v86_v46 = vld [vmem:[#allocation10 + $0x170] sm:$0xff]  ;;  %v83_v48 = vld [vmem:[#allocation10 + $0x158] sm:$0xff] }
  0x49   :  { %v3779_v55 = vcombine.high %v83_v48, %v87_v49  ;;  %v134_v38 = vld [vmem:[#allocation10 + $0x2f0] sm:$0xff] }
  0x4b   :  { %917 = vmatpush1.bf16.msra.mxu0 %v3836_v52  ;;  %990 = vmatpush1.bf16.msra.mxu1 %v3838_v53  ;;  %v3770_v52 = vcombine.low %v75_v39, %v79_v41  ;;  %v3777_v53 = vcombine.high %v82_v45, %v86_v46  ;;  %v131_v39 = vld [vmem:[#allocation10 + $0x2d8] sm:$0xff] }
  0x4c   :  { %918 = vmatprep.subr.bf16.mxu0 %v3845_v54  ;;  %991 = vmatprep.subr.bf16.mxu1 %v3847_v57  ;;  %v90_v54 = vld [vmem:[#allocation10 + $0x190] sm:$0xff]  ;;  %v135_v41 = vld [vmem:[#allocation10 + $0x2f8] sm:$0xff] }
  0x4d   :  { %v94_v57 = vld [vmem:[#allocation10 + $0x1b0] sm:$0xff] }
  0x4f   :  { %919 = vmatpush1.bf16.msra.mxu0 %v3844_v61  ;;  %992 = vmatpush1.bf16.msra.mxu1 %v3846_v62  ;;  %v3776_v61 = vcombine.low %v82_v45, %v86_v46  ;;  %v3778_v62 = vcombine.low %v83_v48, %v87_v49  ;;  %v3827_v45 = vcombine.high %v131_v39, %v135_v41  ;;  %v138_v46 = vld [vmem:[#allocation10 + $0x310] sm:$0xff]  ;;  %v139_v48 = vld [vmem:[#allocation10 + $0x318] sm:$0xff] }
  0x50   :  { %920 = vmatprep.subr.bf16.mxu0 %v3853_v63  ;;  %993 = vmatprep.subr.bf16.mxu1 %v3855_v1  ;;  %v3785_v63 = vcombine.high %v90_v54, %v94_v57  ;;  %v102_v1 = vld [vmem:[#allocation10 + $0x1f0] sm:$0xff]  ;;  %v143_v49 = vld [vmem:[#allocation10 + $0x338] sm:$0xff] }
  0x51   :  { %v3793_v9 = vcombine.high %v98_v0, %v102_v1  ;;  %v3792_v16 = vcombine.low %v98_v0, %v102_v1  ;;  %v154_v1 = vld [vmem:[#allocation10 + $0x390] sm:$0xff] }
  0x53   :  { %921 = vmatpush1.bf16.msra.mxu0 %v3852_v6  ;;  %994 = vmatpush1.bf16.msra.mxu1 %v3854_v7  ;;  %v4650_v6 = vld [vmem:[%s6370_s0 + $0x30] ss:$8 sps:$4 sm:$0xff]   ;;  %v3784_v7 = vcombine.low %v90_v54, %v94_v57  ;;  %v3835_v54 = vcombine.high %v139_v48, %v143_v49 }
  0x54   :  { %1036 = vmatprep.subr.bf16.mxu0 %v3737_v8  ;;  %1109 = vmatprep.subr.bf16.mxu1 %v3739_v10  ;;  %v3786_v8 = vcombine.low %v91_v58, %v95_v60  ;;  %v3795_v10 = vcombine.high %v99_v3, %v103_v5  ;;  %v150_v57 = vld [vmem:[#allocation10 + $0x370] sm:$0xff]  ;;  %v147_v58 = vld [vmem:[#allocation10 + $0x358] sm:$0xff] }
  0x55   :  { %v151_v60 = vld [vmem:[#allocation10 + $0x378] sm:$0xff] }
  0x56   :  { %923 = vmatmul.mubr.bf16.vlgmr.msra.gmra.mrb[0].mxu0 %v4609_v12  ;;  %996 = vmatmul.mubr.bf16.vlgmr.msra.gmra.mrb[0].mxu1 %v4609_v12  ;;  %v3843_v0 = vcombine.high %v147_v58, %v151_v60 }
  0x57   :  { %1037 = vmatpush1.bf16.msra.mxu0 %v3736_v15  ;;  %1110 = vmatpush1.bf16.msra.mxu1 %v3738_v17  ;;  %v111_v15 = vld [vmem:[#allocation10 + $0x238] sm:$0xff]  ;;  %v3794_v17 = vcombine.low %v99_v3, %v103_v5 }
  0x58   :  { %1038 = vmatprep.subr.bf16.mxu0 %v3745_v18  ;;  %1111 = vmatprep.subr.bf16.mxu1 %v3747_v20  ;;  %v3801_v18 = vcombine.high %v106_v11, %v110_v13  ;;  %v3803_v19 = vcombine.high %v107_v14, %v111_v15  ;;  %v114_v20 = vld [vmem:[#allocation10 + $0x250] sm:$0xff]  ;;  %v155_v3 = vld [vmem:[#allocation10 + $0x398] sm:$0xff] }
  0x59   :  { %932 = vmatprep.mubr.bf16.mxu0 %v4614_v22  ;;  %1005 = vmatprep.mubr.bf16.mxu1 %v4614_v22  ;;  %v3809_v27 = vcombine.high %v114_v20, %v118_v21  ;;  %v159_v5 = vld [vmem:[#allocation10 + $0x3b8] sm:$0xff] }
  0x5b   :  { %1039 = vmatpush1.bf16.msra.mxu0 %v3744_v24  ;;  %1112 = vmatpush1.bf16.msra.mxu1 %v3746_v25  ;;  %v119_v24 = vld [vmem:[#allocation10 + $0x278] sm:$0xff]  ;;  %v3800_v25 = vcombine.low %v106_v11, %v110_v13  ;;  %v162_v11 = vld [vmem:[#allocation10 + $0x3d0] sm:$0xff] }
  0x5c   :  { %1040 = vmatprep.subr.bf16.mxu0 %v3753_v26  ;;  %1113 = vmatprep.subr.bf16.mxu1 %v3755_v29  ;;  %v3802_v26 = vcombine.low %v107_v14, %v111_v15  ;;  %v3811_v28 = vcombine.high %v115_v23, %v119_v24  ;;  %v122_v29 = vld [vmem:[#allocation10 + $0x290] sm:$0xff]  ;;  %v163_v14 = vld [vmem:[#allocation10 + $0x3d8] sm:$0xff] }
  0x5d   :  { %v3817_v36 = vcombine.high %v122_v29, %v126_v30  ;;  %v166_v13 = vld [vmem:[#allocation10 + $0x3f0] sm:$0xff]  ;;  %v167_v15 = vld [vmem:[#allocation10 + $0x3f8] sm:$0xff] }
  0x5e   :  { %933 = vmatmul.mubr.bf16.gmra.mrb[4].mxu0 %v4622_v32  ;;  %1006 = vmatmul.mubr.bf16.gmra.mrb[4].mxu1 %v4622_v32 }
  0x5f   :  { %1041 = vmatpush1.bf16.msra.mxu0 %v3752_v33  ;;  %1114 = vmatpush1.bf16.msra.mxu1 %v3754_v34  ;;  %v127_v33 = vld [vmem:[#allocation10 + $0x2b8] sm:$0xff]  ;;  %v3808_v34 = vcombine.low %v114_v20, %v118_v21  ;;  %v3856_v20 = vcombine.low %v162_v11, %v166_v13  ;;  %v3858_v21 = vcombine.low %v163_v14, %v167_v15 }
  0x60   :  { %1042 = vmatprep.subr.bf16.mxu0 %v3761_v35  ;;  %1115 = vmatprep.subr.bf16.mxu1 %v3763_v37  ;;  %v3810_v35 = vcombine.low %v115_v23, %v119_v24  ;;  %v130_v37 = vld [vmem:[#allocation10 + $0x2d0] sm:$0xff]  ;;  %v4660_v23 = vld [vmem:[%s6372_s2 + $0x4] ss:$16 sps:$4 sm:$0xff]  }
  0x61   :  { %942 = vmatprep.mubr.bf16.mxu0 %v4628_v40  ;;  %1015 = vmatprep.mubr.bf16.mxu1 %v4628_v40  ;;  %v4665_v24 = vld [vmem:[%s6372_s2 + $0xc] ss:$16 sps:$4 sm:$0xff]  }
  0x63   :  { %1043 = vmatpush1.bf16.msra.mxu0 %v3760_v42  ;;  %1116 = vmatpush1.bf16.msra.mxu1 %v3762_v43  ;;  %v3816_v42 = vcombine.low %v122_v29, %v126_v30  ;;  %v3818_v43 = vcombine.low %v123_v31, %v127_v33  ;;  %v4695_v29 = vld [vmem:[%s6372_s2 + $0x20] ss:$16 sps:$4 sm:$0xff]   ;;  %v4702_v30 = vld [vmem:[%s6372_s2 + $0x28] ss:$16 sps:$4 sm:$0xff]  }
  0x64   :  { %1044 = vmatprep.subr.bf16.mxu0 %v3769_v44  ;;  %1117 = vmatprep.subr.bf16.mxu1 %v3771_v47  ;;  %v3825_v44 = vcombine.high %v130_v37, %v134_v38  ;;  %v142_v47 = vld [vmem:[#allocation10 + $0x330] sm:$0xff]  ;;  %6469 = vst [vmem:[#allocation16_spill] sm:$0xff] %v4695_v29  ;;  %6470 = vst [vmem:[#allocation17_spill] sm:$0xff] %v4702_v30 }
  0x66   :  { %943 = vmatmul.mubr.bf16.gmra.mrb[8].mxu0 %v4636_v50  ;;  %1016 = vmatmul.mubr.bf16.gmra.mrb[8].mxu1 %v4636_v50 }
  0x67   :  { %1045 = vmatpush1.bf16.msra.mxu0 %v3768_v51  ;;  %1118 = vmatpush1.bf16.msra.mxu1 %v3770_v52  ;;  %v3824_v51 = vcombine.low %v130_v37, %v134_v38  ;;  %v3826_v52 = vcombine.low %v131_v39, %v135_v41  ;;  %v4766_v37 = vld [vmem:[%s6372_s2 + $0x8c] ss:$16 sps:$4 sm:$0xff]   ;;  %v4773_v38 = vld [vmem:[%s6372_s2 + $0x80] ss:$16 sps:$4 sm:$0xff]   ;;  %v4780_v39 = vld [vmem:[%s6372_s2 + $0x88] ss:$16 sps:$4 sm:$0xff]  }
  0x68   :  { %1046 = vmatprep.subr.bf16.mxu0 %v3777_v53  ;;  %1119 = vmatprep.subr.bf16.mxu1 %v3779_v55  ;;  %v3833_v53 = vcombine.high %v138_v46, %v142_v47  ;;  %v146_v55 = vld [vmem:[#allocation10 + $0x350] sm:$0xff]  ;;  %6480 = vst [vmem:[#allocation27_spill] sm:$0xff] %v4766_v37  ;;  %6481 = vst [vmem:[#allocation28_spill] sm:$0xff] %v4773_v38 }
  0x69   :  { %952 = vmatprep.mubr.bf16.mxu0 %v4642_v59  ;;  %1025 = vmatprep.mubr.bf16.mxu1 %v4642_v59  ;;  %6482 = vst [vmem:[#allocation29_spill] sm:$0xff] %v4780_v39  ;;  %v4791_v41 = vld [vmem:[%s6372_s2 + $0xac] ss:$16 sps:$4 sm:$0xff]  }
  0x6a   :  { %6484 = vst [vmem:[#allocation31_spill] sm:$0xff] %v4791_v41 }
  0x6b   :  { %1047 = vmatpush1.bf16.msra.mxu0 %v3776_v61  ;;  %1120 = vmatpush1.bf16.msra.mxu1 %v3778_v62  ;;  %v3832_v61 = vcombine.low %v138_v46, %v142_v47  ;;  %v3834_v62 = vcombine.low %v139_v48, %v143_v49  ;;  %v4832_v46 = vld [vmem:[%s6372_s2 + $0xc8] ss:$16 sps:$4 sm:$0xff]   ;;  %v4843_v47 = vld [vmem:[%s6372_s2 + $0xec] ss:$16 sps:$4 sm:$0xff]   ;;  %v4851_v48 = vld [vmem:[%s6372_s2 + $0xe0] ss:$16 sps:$4 sm:$0xff]  }
  0x6c   :  { %1048 = vmatprep.subr.bf16.mxu0 %v3785_v63  ;;  %1121 = vmatprep.subr.bf16.mxu1 %v3787_v2  ;;  %v3841_v63 = vcombine.high %v146_v55, %v150_v57  ;;  %v158_v2 = vld [vmem:[#allocation10 + $0x3b0] sm:$0xff]  ;;  %6490 = vst [vmem:[#allocation37_spill] sm:$0xff] %v4832_v46  ;;  %6492 = vst [vmem:[#allocation39_spill] sm:$0xff] %v4843_v47 }
  0x6d   :  { %6493 = vst [vmem:[#allocation40_spill] sm:$0xff] %v4851_v48  ;;  %v4858_v49 = vld [vmem:[%s6372_s2 + $0xe8] ss:$16 sps:$4 sm:$0xff]  }
  0x6e   :  { %953 = vmatmul.mubr.bf16.gmra.mrb[12].mxu0 %v4650_v6  ;;  %1026 = vmatmul.mubr.bf16.gmra.mrb[12].mxu1 %v4650_v6  ;;  %6494 = vst [vmem:[#allocation41_spill] sm:$0xff] %v4858_v49 }
  0x6f   :  { %1049 = vmatpush1.bf16.msra.mxu0 %v3784_v7  ;;  %1122 = vmatpush1.bf16.msra.mxu1 %v3786_v8  ;;  %v3840_v7 = vcombine.low %v146_v55, %v150_v57  ;;  %v3842_v8 = vcombine.low %v147_v58, %v151_v60  ;;  %v4889_v55 = vld [vmem:[%s6372_s2 + $0x124] ss:$16 sps:$4 sm:$0xff]   ;;  %v4895_v57 = vld [vmem:[%s6372_s2 + $0x12c] ss:$16 sps:$4 sm:$0xff]   ;;  %v4901_v58 = vld [vmem:[%s6372_s2 + $0x120] ss:$16 sps:$4 sm:$0xff]  }
  0x70   :  { %1050 = vmatprep.subr.bf16.mxu0 %v3793_v9  ;;  %1123 = vmatprep.subr.bf16.mxu1 %v3795_v10  ;;  %v3849_v9 = vcombine.high %v154_v1, %v158_v2  ;;  %v3851_v10 = vcombine.high %v155_v3, %v159_v5  ;;  %v4908_v60 = vld [vmem:[%s6372_s2 + $0x128] ss:$16 sps:$4 sm:$0xff]  }
  0x71   :  { %1068 = vmatprep.mubr.bf16.mxu0 %v4600_v56  ;;  %1141 = vmatprep.mubr.bf16.mxu1 %v4600_v56  ;;  %v3819_v56 = vcombine.high %v123_v31, %v127_v33  ;;  %v4714_v31 = vld [vmem:[%s6372_s2 + $0x4c] ss:$16 sps:$4 sm:$0xff]   ;;  %v4721_v33 = vld [vmem:[%s6372_s2 + $0x40] ss:$16 sps:$4 sm:$0xff]  }
  0x72   :  { %6472 = vst [vmem:[#allocation19_spill] sm:$0xff] %v4714_v31  ;;  %6473 = vst [vmem:[#allocation20_spill] sm:$0xff] %v4721_v33 }
  0x73   :  { %1051 = vmatpush1.bf16.msra.mxu0 %v3792_v16  ;;  %1124 = vmatpush1.bf16.msra.mxu1 %v3794_v17  ;;  %v3848_v16 = vcombine.low %v154_v1, %v158_v2  ;;  %v3850_v17 = vcombine.low %v155_v3, %v159_v5  ;;  %v4939_v1 = vld [vmem:[%s6372_s2 + $0x164] ss:$16 sps:$4 sm:$0xff]   ;;  %v4945_v2 = vld [vmem:[%s6372_s2 + $0x16c] ss:$16 sps:$4 sm:$0xff]   ;;  %v4951_v3 = vld [vmem:[%s6372_s2 + $0x160] ss:$16 sps:$4 sm:$0xff]  }
  0x74   :  { %1052 = vmatprep.subr.bf16.mxu0 %v3801_v18  ;;  %1125 = vmatprep.subr.bf16.mxu1 %v3803_v19  ;;  %v3857_v18 = vcombine.high %v162_v11, %v166_v13  ;;  %v3859_v19 = vcombine.high %v163_v14, %v167_v15  ;;  %v4958_v5 = vld [vmem:[%s6372_s2 + $0x168] ss:$16 sps:$4 sm:$0xff]   ;;  %v4987_v11 = vld [vmem:[%s6372_s2 + $0x1a4] ss:$16 sps:$4 sm:$0xff]   ;;  %v4993_v13 = vld [vmem:[%s6372_s2 + $0x1ac] ss:$16 sps:$4 sm:$0xff]  }
  0x75   :  { %v4999_v14 = vld [vmem:[%s6372_s2 + $0x1a0] ss:$16 sps:$4 sm:$0xff]   ;;  %v5006_v15 = vld [vmem:[%s6372_s2 + $0x1a8] ss:$16 sps:$4 sm:$0xff]  }
  0x77   :  { %1053 = vmatpush1.bf16.msra.mxu0 %v3800_v25  ;;  %1126 = vmatpush1.bf16.msra.mxu1 %v3802_v26  ;;  %v4670_v25 = vld [vmem:[%s6372_s2] ss:$16 sps:$4 sm:$0xff]   ;;  %v4676_v26 = vld [vmem:[%s6372_s2 + $0x8] ss:$16 sps:$4 sm:$0xff]  }
  0x78   :  { %1054 = vmatprep.subr.bf16.mxu0 %v3809_v27  ;;  %1127 = vmatprep.subr.bf16.mxu1 %v3811_v28  ;;  %6466 = vst [vmem:[#allocation13_spill] sm:$0xff] %v4676_v26  ;;  %v4681_v27 = vld [vmem:[%s6372_s2 + $0x24] ss:$16 sps:$4 sm:$0xff]   ;;  %v4687_v28 = vld [vmem:[%s6372_s2 + $0x2c] ss:$16 sps:$4 sm:$0xff]  }
  0x79   :  { %6467 = vst [vmem:[#allocation14_spill] sm:$0xff] %v4681_v27  ;;  %6468 = vst [vmem:[#allocation15_spill] sm:$0xff] %v4687_v28 }
  0x7b   :  { %1055 = vmatpush1.bf16.msra.mxu0 %v3808_v34  ;;  %1128 = vmatpush1.bf16.msra.mxu1 %v3810_v35  ;;  %v4728_v34 = vld [vmem:[%s6372_s2 + $0x48] ss:$16 sps:$4 sm:$0xff]   ;;  %v4739_v35 = vld [vmem:[%s6372_s2 + $0x6c] ss:$16 sps:$4 sm:$0xff]  }
  0x7c   :  { %1056 = vmatprep.subr.bf16.mxu0 %v3817_v36  ;;  %1129 = vmatprep.subr.bf16.mxu1 %v3819_v56  ;;  %6474 = vst [vmem:[#allocation21_spill] sm:$0xff] %v4728_v34  ;;  %6476 = vst [vmem:[#allocation23_spill] sm:$0xff] %v4739_v35  ;;  %v4747_v36 = vld [vmem:[%s6372_s2 + $0x60] ss:$16 sps:$4 sm:$0xff]   ;;  %v4754_v56 = vld [vmem:[%s6372_s2 + $0x68] ss:$16 sps:$4 sm:$0xff]  }
  0x7d   :  { %6477 = vst [vmem:[#allocation24_spill] sm:$0xff] %v4747_v36  ;;  %6478 = vst [vmem:[#allocation25_spill] sm:$0xff] %v4754_v56 }
  0x7f   :  { %1057 = vmatpush1.bf16.msra.mxu0 %v3816_v42  ;;  %1130 = vmatpush1.bf16.msra.mxu1 %v3818_v43  ;;  %v4799_v42 = vld [vmem:[%s6372_s2 + $0xa0] ss:$16 sps:$4 sm:$0xff]   ;;  %v4806_v43 = vld [vmem:[%s6372_s2 + $0xa8] ss:$16 sps:$4 sm:$0xff]  }
  0x80   :  { %1058 = vmatprep.subr.bf16.mxu0 %v3825_v44  ;;  %1131 = vmatprep.subr.bf16.mxu1 %v3827_v45  ;;  %6485 = vst [vmem:[#allocation32_spill] sm:$0xff] %v4799_v42  ;;  %6486 = vst [vmem:[#allocation33_spill] sm:$0xff] %v4806_v43  ;;  %v4818_v44 = vld [vmem:[%s6372_s2 + $0xcc] ss:$16 sps:$4 sm:$0xff]   ;;  %v4825_v45 = vld [vmem:[%s6372_s2 + $0xc0] ss:$16 sps:$4 sm:$0xff]  }
  0x81   :  { %6488 = vst [vmem:[#allocation35_spill] sm:$0xff] %v4818_v44  ;;  %6489 = vst [vmem:[#allocation36_spill] sm:$0xff] %v4825_v45 }
  0x83   :  { %1059 = vmatpush1.bf16.msra.mxu0 %v3824_v51  ;;  %1132 = vmatpush1.bf16.msra.mxu1 %v3826_v52  ;;  %v4870_v51 = vld [vmem:[%s6372_s2 + $0x10c] ss:$16 sps:$4 sm:$0xff]   ;;  %v1315_v52 = vld [vmem:[#allocation4] sm:$0xf] }
  0x84   :  { %1060 = vmatprep.subr.bf16.mxu0 %v3833_v53  ;;  %1133 = vmatprep.subr.bf16.mxu1 %v3835_v54  ;;  %6496 = vst [vmem:[#allocation43_spill] sm:$0xff] %v4870_v51  ;;  %v4877_v53 = vld [vmem:[%s6372_s2 + $0x100] ss:$16 sps:$4 sm:$0xff]   ;;  %v4884_v54 = vld [vmem:[%s6372_s2 + $0x108] ss:$16 sps:$4 sm:$0xff]  }
  0x87   :  { %1061 = vmatpush1.bf16.msra.mxu0 %v3832_v61  ;;  %1134 = vmatpush1.bf16.msra.mxu1 %v3834_v62  ;;  %v4913_v61 = vld [vmem:[%s6372_s2 + $0x144] ss:$16 sps:$4 sm:$0xff]   ;;  %v4919_v62 = vld [vmem:[%s6372_s2 + $0x14c] ss:$16 sps:$4 sm:$0xff]  }
  0x88   :  { %1062 = vmatprep.subr.bf16.mxu0 %v3841_v63  ;;  %1135 = vmatprep.subr.bf16.mxu1 %v3843_v0  ;;  %v4927_v63 = vld [vmem:[%s6372_s2 + $0x140] ss:$16 sps:$4 sm:$0xff]   ;;  %v4934_v0 = vld [vmem:[%s6372_s2 + $0x148] ss:$16 sps:$4 sm:$0xff]  }
  0x8b   :  { %1063 = vmatpush1.bf16.msra.mxu0 %v3840_v7  ;;  %1136 = vmatpush1.bf16.msra.mxu1 %v3842_v8  ;;  %v4963_v7 = vld [vmem:[%s6372_s2 + $0x184] ss:$16 sps:$4 sm:$0xff]   ;;  %v4969_v8 = vld [vmem:[%s6372_s2 + $0x18c] ss:$16 sps:$4 sm:$0xff]  }
  0x8c   :  { %1064 = vmatprep.subr.bf16.mxu0 %v3849_v9  ;;  %1137 = vmatprep.subr.bf16.mxu1 %v3851_v10  ;;  %v4975_v9 = vld [vmem:[%s6372_s2 + $0x180] ss:$16 sps:$4 sm:$0xff]   ;;  %v4982_v10 = vld [vmem:[%s6372_s2 + $0x188] ss:$16 sps:$4 sm:$0xff]  }
  0x8f   :  { %1065 = vmatpush1.bf16.msra.mxu0 %v3848_v16  ;;  %1138 = vmatpush1.bf16.msra.mxu1 %v3850_v17  ;;  %v5011_v16 = vld [vmem:[%s6372_s2 + $0x1c4] ss:$16 sps:$4 sm:$0xff]   ;;  %v5017_v17 = vld [vmem:[%s6372_s2 + $0x1cc] ss:$16 sps:$4 sm:$0xff]  }
  0x90   :  { %1066 = vmatprep.subr.bf16.mxu0 %v3857_v18  ;;  %1139 = vmatprep.subr.bf16.mxu1 %v3859_v19  ;;  %6497 = vst [vmem:[#allocation44_spill] sm:$0xff] %v5017_v17  ;;  %v5023_v18 = vld [vmem:[%s6372_s2 + $0x1c0] ss:$16 sps:$4 sm:$0xff]   ;;  %v5030_v19 = vld [vmem:[%s6372_s2 + $0x1c8] ss:$16 sps:$4 sm:$0xff]  }
  0x93   :  { %1067 = vmatpush1.bf16.msra.mxu0 %v3856_v20  ;;  %1140 = vmatpush1.bf16.msra.mxu1 %v3858_v21  ;;  %v5035_v20 = vld [vmem:[%s6372_s2 + $0x1e4] ss:$16 sps:$4 sm:$0xff]   ;;  %v5041_v21 = vld [vmem:[%s6372_s2 + $0x1ec] ss:$16 sps:$4 sm:$0xff]  }
  0x94   :  { %1476 = vmatprep.subr.bf16.mxu0 %v4660_v23  ;;  %1517 = vmatprep.subr.bf16.mxu1 %v4665_v24  ;;  %6498 = vst [vmem:[#allocation45_spill] sm:$0xff] %v5041_v21 }
  0x96   :  { %1069 = vmatmul.mubr.bf16.vlgmr.msra.gmra.mrb[16].mxu0 %v4609_v12  ;;  %1142 = vmatmul.mubr.bf16.vlgmr.msra.gmra.mrb[16].mxu1 %v4609_v12  ;;  %v4707_v12 = vld [vmem:[%s6372_s2 + $0x44] ss:$16 sps:$4 sm:$0xff]  }
  0x97   :  { %1477 = vmatpush1.bf16.msra.mxu0 %v4670_v25  ;;  %1518 = vmatpush1.bf16.msra.mxu1 %v4676_v26  ;;  %6471 = vst [vmem:[#allocation18_spill] sm:$0xff] %v4707_v12 }
  0x98   :  { %1478 = vmatprep.subr.bf16.mxu0 %v4681_v27  ;;  %1519 = vmatprep.subr.bf16.mxu1 %v4687_v28 }
  0x99   :  { %1078 = vmatprep.mubr.bf16.mxu0 %v4614_v22  ;;  %1151 = vmatprep.mubr.bf16.mxu1 %v4614_v22  ;;  %v4733_v22 = vld [vmem:[%s6372_s2 + $0x64] ss:$16 sps:$4 sm:$0xff]  }
  0x9a   :  { %6475 = vst [vmem:[#allocation22_spill] sm:$0xff] %v4733_v22 }
  0x9b   :  { %1479 = vmatpush1.bf16.msra.mxu0 %v4695_v29  ;;  %1520 = vmatpush1.bf16.msra.mxu1 %v4702_v30 }
  0x9c   :  { %1480 = vmatprep.subr.bf16.mxu0 %v4707_v12  ;;  %1521 = vmatprep.subr.bf16.mxu1 %v4714_v31 }
  0x9e   :  { %1079 = vmatmul.mubr.bf16.gmra.mrb[20].mxu0 %v4622_v32  ;;  %1152 = vmatmul.mubr.bf16.gmra.mrb[20].mxu1 %v4622_v32  ;;  %v4759_v32 = vld [vmem:[%s6372_s2 + $0x84] ss:$16 sps:$4 sm:$0xff]  }
  0x9f   :  { %1481 = vmatpush1.bf16.msra.mxu0 %v4721_v33  ;;  %1522 = vmatpush1.bf16.msra.mxu1 %v4728_v34  ;;  %6479 = vst [vmem:[#allocation26_spill] sm:$0xff] %v4759_v32 }
  0xa0   :  { %1482 = vmatprep.subr.bf16.mxu0 %v4733_v22  ;;  %1523 = vmatprep.subr.bf16.mxu1 %v4739_v35 }
  0xa1   :  { %1088 = vmatprep.mubr.bf16.mxu0 %v4628_v40  ;;  %1161 = vmatprep.mubr.bf16.mxu1 %v4628_v40  ;;  %v4785_v40 = vld [vmem:[%s6372_s2 + $0xa4] ss:$16 sps:$4 sm:$0xff]  }
  0xa2   :  { %6483 = vst [vmem:[#allocation30_spill] sm:$0xff] %v4785_v40 }
  0xa3   :  { %1483 = vmatpush1.bf16.msra.mxu0 %v4747_v36  ;;  %1524 = vmatpush1.bf16.msra.mxu1 %v4754_v56 }
  0xa4   :  { %1484 = vmatprep.subr.bf16.mxu0 %v4759_v32  ;;  %1525 = vmatprep.subr.bf16.mxu1 %v4766_v37 }
  0xa6   :  { %1089 = vmatmul.mubr.bf16.gmra.mrb[24].mxu0 %v4636_v50  ;;  %1162 = vmatmul.mubr.bf16.gmra.mrb[24].mxu1 %v4636_v50  ;;  %v4811_v50 = vld [vmem:[%s6372_s2 + $0xc4] ss:$16 sps:$4 sm:$0xff]  }
  0xa7   :  { %1485 = vmatpush1.bf16.msra.mxu0 %v4773_v38  ;;  %1526 = vmatpush1.bf16.msra.mxu1 %v4780_v39  ;;  %6487 = vst [vmem:[#allocation34_spill] sm:$0xff] %v4811_v50 }
  0xa8   :  { %1486 = vmatprep.subr.bf16.mxu0 %v4785_v40  ;;  %1527 = vmatprep.subr.bf16.mxu1 %v4791_v41 }
  0xa9   :  { %1098 = vmatprep.mubr.bf16.mxu0 %v4642_v59  ;;  %1171 = vmatprep.mubr.bf16.mxu1 %v4642_v59  ;;  %v4837_v59 = vld [vmem:[%s6372_s2 + $0xe4] ss:$16 sps:$4 sm:$0xff]  }
  0xaa   :  { %6491 = vst [vmem:[#allocation38_spill] sm:$0xff] %v4837_v59 }
  0xab   :  { %1487 = vmatpush1.bf16.msra.mxu0 %v4799_v42  ;;  %1528 = vmatpush1.bf16.msra.mxu1 %v4806_v43 }
  0xac   :  { %1488 = vmatprep.subr.bf16.mxu0 %v4811_v50  ;;  %1529 = vmatprep.subr.bf16.mxu1 %v4818_v44 }
  0xae   :  { %1099 = vmatmul.mubr.bf16.gmra.mrb[28].mxu0 %v4650_v6  ;;  %1172 = vmatmul.mubr.bf16.gmra.mrb[28].mxu1 %v4650_v6  ;;  %v4863_v6 = vld [vmem:[%s6372_s2 + $0x104] ss:$16 sps:$4 sm:$0xff]  }
  0xaf   :  { %1489 = vmatpush1.bf16.msra.mxu0 %v4825_v45  ;;  %1530 = vmatpush1.bf16.msra.mxu1 %v4832_v46  ;;  %6495 = vst [vmem:[#allocation42_spill] sm:$0xff] %v4863_v6 }
  0xb0   :  { %1490 = vmatprep.subr.bf16.mxu0 %v4837_v59  ;;  %1531 = vmatprep.subr.bf16.mxu1 %v4843_v47 }
  0xb1   :  { %1508 = vmatprep.mubr.bf16.mxu0 %v6375_v4  ;;  %1549 = vmatprep.mubr.bf16.mxu1 %v6375_v4 }
  0xb3   :  { %1491 = vmatpush1.bf16.msra.mxu0 %v4851_v48  ;;  %1532 = vmatpush1.bf16.msra.mxu1 %v4858_v49 }
  0xb4   :  { %1719 = vmatprep.subr.bf16.mxu0 %v4863_v6  ;;  %1760 = vmatprep.subr.bf16.mxu1 %v4870_v51 }
  0xb6   :  { %1509 = vmatmul.mubr.bf16.vlgmr.msra.gmra.mrb[32].mxu0 %v1315_v52  ;;  %1550 = vmatmul.mubr.bf16.vlgmr.msra.gmra.mrb[32].mxu1 %v1315_v52  ;;  %v5047_v52 = vld [vmem:[%s6372_s2 + $0x1e0] ss:$16 sps:$4 sm:$0xff]  }
  0xb7   :  { %1720 = vmatpush1.bf16.msra.mxu0 %v4877_v53  ;;  %1761 = vmatpush1.bf16.msra.mxu1 %v4884_v54 }
  0xb8   :  { %1721 = vmatprep.subr.bf16.mxu0 %v4889_v55  ;;  %1762 = vmatprep.subr.bf16.mxu1 %v4895_v57 }
  0xb9   :  { %1751 = vmatprep.mubr.bf16.mxu0 %v6375_v4  ;;  %1792 = vmatprep.mubr.bf16.mxu1 %v6375_v4  ;;  %v5054_v4 = vld [vmem:[%s6372_s2 + $0x1e8] ss:$16 sps:$4 sm:$0xff]  }
  0xbb   :  { %1722 = vmatpush1.bf16.msra.mxu0 %v4901_v58  ;;  %1763 = vmatpush1.bf16.msra.mxu1 %v4908_v60 }
  0xbc   :  { %1723 = vmatprep.subr.bf16.mxu0 %v4913_v61  ;;  %1764 = vmatprep.subr.bf16.mxu1 %v4919_v62 }
  0xbf   :  { %1724 = vmatpush1.bf16.msra.mxu0 %v4927_v63  ;;  %1765 = vmatpush1.bf16.msra.mxu1 %v4934_v0 }
  0xc0   :  { %1725 = vmatprep.subr.bf16.mxu0 %v4939_v1  ;;  %1766 = vmatprep.subr.bf16.mxu1 %v4945_v2 }
  0xc3   :  { %1726 = vmatpush1.bf16.msra.mxu0 %v4951_v3  ;;  %1767 = vmatpush1.bf16.msra.mxu1 %v4958_v5 }
  0xc4   :  { %1727 = vmatprep.subr.bf16.mxu0 %v4963_v7  ;;  %1768 = vmatprep.subr.bf16.mxu1 %v4969_v8 }
  0xc7   :  { %1728 = vmatpush1.bf16.msra.mxu0 %v4975_v9  ;;  %1769 = vmatpush1.bf16.msra.mxu1 %v4982_v10 }
  0xc8   :  { %1729 = vmatprep.subr.bf16.mxu0 %v4987_v11  ;;  %1770 = vmatprep.subr.bf16.mxu1 %v4993_v13 }
  0xcb   :  { %1730 = vmatpush1.bf16.msra.mxu0 %v4999_v14  ;;  %1771 = vmatpush1.bf16.msra.mxu1 %v5006_v15 }
  0xcc   :  { %1731 = vmatprep.subr.bf16.mxu0 %v5011_v16  ;;  %1772 = vmatprep.subr.bf16.mxu1 %v5017_v17  ;;  %v1558_v17 = vld [vmem:[#allocation5] sm:$0xf] }
  0xcf   :  { %1732 = vmatpush1.bf16.msra.mxu0 %v5023_v18  ;;  %1773 = vmatpush1.bf16.msra.mxu1 %v5030_v19 }
  0xd0   :  { %1733 = vmatprep.subr.bf16.mxu0 %v5035_v20  ;;  %1774 = vmatprep.subr.bf16.mxu1 %v5041_v21  ;;  %v6499_v21 = vmov 0  }
  0xd3   :  { %1734 = vmatpush1.bf16.msra.mxu0 %v5047_v52  ;;  %1775 = vmatpush1.bf16.msra.mxu1 %v5054_v4 }
  0xd4   :  { %1883 = vmatprep.subr.bf16.mxu0 %v4660_v23  ;;  %1924 = vmatprep.subr.bf16.mxu1 %v4665_v24 }
  0xd6   :  { %1752 = vmatmul.mubr.bf16.vlgmr.msra.gmra.mrb[36].mxu0 %v1558_v17  ;;  %1793 = vmatmul.mubr.bf16.vlgmr.msra.gmra.mrb[36].mxu1 %v1558_v17  ;;  %v170_v17 = vlaneseq }
  0xd7   :  { %1884 = vmatpush1.bf16.msra.mxu0 %v4670_v25  ;;  %1925 = vmatpush1.bf16.msra.mxu1 %v4676_v26 }
  0xd8   :  { %1885 = vmatprep.subr.bf16.mxu0 %v4681_v27  ;;  %1926 = vmatprep.subr.bf16.mxu1 %v4687_v28 }
  0xd9   :  { %1915 = vmatprep.mubr.bf16.mxu0 %v6499_v21  ;;  %1956 = vmatprep.mubr.bf16.mxu1 %v6499_v21 }
  0xdb   :  { %1886 = vmatpush1.bf16.msra.mxu0 %v4695_v29  ;;  %1927 = vmatpush1.bf16.msra.mxu1 %v4702_v30 }
  0xdc   :  { %1887 = vmatprep.subr.bf16.mxu0 %v4707_v12  ;;  %1928 = vmatprep.subr.bf16.mxu1 %v4714_v31 }
  0xdf   :  { %1888 = vmatpush1.bf16.msra.mxu0 %v4721_v33  ;;  %1929 = vmatpush1.bf16.msra.mxu1 %v4728_v34 }
  0xe0   :  { %1889 = vmatprep.subr.bf16.mxu0 %v4733_v22  ;;  %1930 = vmatprep.subr.bf16.mxu1 %v4739_v35 }
  0xe3   :  { %1890 = vmatpush1.bf16.msra.mxu0 %v4747_v36  ;;  %1931 = vmatpush1.bf16.msra.mxu1 %v4754_v56 }
  0xe4   :  { %1891 = vmatprep.subr.bf16.mxu0 %v4759_v32  ;;  %1932 = vmatprep.subr.bf16.mxu1 %v4766_v37 }
  0xe7   :  { %1892 = vmatpush1.bf16.msra.mxu0 %v4773_v38  ;;  %1933 = vmatpush1.bf16.msra.mxu1 %v4780_v39 }
  0xe8   :  { %1893 = vmatprep.subr.bf16.mxu0 %v4785_v40  ;;  %1934 = vmatprep.subr.bf16.mxu1 %v4791_v41 }
  0xeb   :  { %1894 = vmatpush1.bf16.msra.mxu0 %v4799_v42  ;;  %1935 = vmatpush1.bf16.msra.mxu1 %v4806_v43 }
  0xec   :  { %1895 = vmatprep.subr.bf16.mxu0 %v4811_v50  ;;  %1936 = vmatprep.subr.bf16.mxu1 %v4818_v44  ;;  %v5095_v50 = vshrl.u32 %v170_v17, 7 }
  0xee   :  { %v172_v44 = vsub.s32 0, %v5095_v50 }
  0xef   :  { %1896 = vmatpush1.bf16.msra.mxu0 %v4825_v45  ;;  %1937 = vmatpush1.bf16.msra.mxu1 %v4832_v46  ;;  %v5101_v46 = vld [vmem:[%s6373_s3] sm:$0xff] }
  0xf0   :  { %1897 = vmatprep.subr.bf16.mxu0 %v4837_v59  ;;  %1938 = vmatprep.subr.bf16.mxu1 %v4843_v47  ;;  %v180_v47 = vsub.s32 2, %v5095_v50 }
  0xf2   :  { %v5112_v17 = vrot.slane %v5101_v46, %v180_v47 }
  0xf3   :  { %1898 = vmatpush1.bf16.msra.mxu0 %v4851_v48  ;;  %1939 = vmatpush1.bf16.msra.mxu1 %v4858_v49  ;;  %v184_v48 = vsub.s32 3, %v5095_v50  ;;  %v176_v49 = vsub.s32 1, %v5095_v50 }
  0xf4   :  { %1966 = vmatprep.subr.bf16.mxu0 %v4863_v6  ;;  %2007 = vmatprep.subr.bf16.mxu1 %v4870_v51  ;;  %v5107_v6 = vrot.slane %v5101_v46, %v172_v44 }
  0xf5   :  { %v5119_v43 = vrot.slane %v5101_v46, %v184_v48  ;;  %v5122_v42 = vrot.slane %v5101_v46, %v176_v49 }
 0x129   :  { %v5109_v51 = vpop.f32.mrb[0].mxu0  ;;  %v5116_v45 = vpop.f32.mrb[0].mxu1 }
 0x12a   :  { %v5114_v59 = vpop.f32.mrb[1].mxu0  ;;  %v5124_v40 = vpop.f32.mrb[1].mxu1 }
 0x12b   :  { %v928_v41 = vpop.f32.mrb[2].mxu0  ;;  %v1001_v38 = vpop.f32.mrb[2].mxu1 }
 0x12c   :  { %v5127_v44 = vadd.f32 %v928_v41, %v5107_v6  ;;  %v930_v39 = vpop.f32.mrb[3].mxu0  ;;  %v5133_v37 = vadd.f32 %v1001_v38, %v5112_v17  ;;  %v1003_v32 = vpop.f32.mrb[3].mxu1 }
 0x12d   :  { %v5130_v47 = vadd.f32 %v930_v39, %v5122_v42  ;;  %v5136_v48 = vadd.f32 %v1003_v32, %v5119_v43 }
 0x12e   :  { %6500 = vst [vmem:[#allocation46_spill] sm:$0xff] %v5127_v44  ;;  %6502 = vst [vmem:[#allocation48_spill] sm:$0xff] %v5133_v37 }
 0x12f   :  { %6501 = vst [vmem:[#allocation47_spill] sm:$0xff] %v5130_v47  ;;  %6503 = vst [vmem:[#allocation49_spill] sm:$0xff] %v5136_v48 }
 0x131   :  { %v934_v49 = vpop.f32.mrb[4].mxu0  ;;  %v1007_v35 = vpop.f32.mrb[4].mxu1 }
 0x132   :  { %v5139_v56 = vadd.f32 %v934_v49, %v5107_v6  ;;  %v936_v36 = vpop.f32.mrb[5].mxu0  ;;  %v5145_v39 = vadd.f32 %v1007_v35, %v5112_v17  ;;  %v1009_v47 = vpop.f32.mrb[5].mxu1 }
 0x133   :  { %v5142_v41 = vadd.f32 %v936_v36, %v5122_v42  ;;  %v938_v44 = vpop.f32.mrb[6].mxu0  ;;  %v5151_v32 = vadd.f32 %v1009_v47, %v5119_v43  ;;  %v1011_v48 = vpop.f32.mrb[6].mxu1 }
 0x134   :  { %6504 = vst [vmem:[#allocation50_spill] sm:$0xff] %v5139_v56  ;;  %6506 = vst [vmem:[#allocation52_spill] sm:$0xff] %v5145_v39  ;;  %v5148_v38 = vadd.f32 %v938_v44, %v5107_v6  ;;  %v940_v37 = vpop.f32.mrb[7].mxu0  ;;  %v5157_v56 = vadd.f32 %v1011_v48, %v5112_v17  ;;  %v1013_v36 = vpop.f32.mrb[7].mxu1 }
 0x135   :  { %6505 = vst [vmem:[#allocation51_spill] sm:$0xff] %v5142_v41  ;;  %6508 = vst [vmem:[#allocation54_spill] sm:$0xff] %v5151_v32  ;;  %v5154_v49 = vadd.f32 %v940_v37, %v5122_v42  ;;  %v5160_v41 = vadd.f32 %v1013_v36, %v5119_v43 }
 0x136   :  { %6507 = vst [vmem:[#allocation53_spill] sm:$0xff] %v5148_v38  ;;  %6510 = vst [vmem:[#allocation56_spill] sm:$0xff] %v5157_v56 }
 0x137   :  { %6509 = vst [vmem:[#allocation55_spill] sm:$0xff] %v5154_v49  ;;  %6511 = vst [vmem:[#allocation57_spill] sm:$0xff] %v5160_v41 }
 0x139   :  { %v944_v35 = vpop.f32.mrb[8].mxu0  ;;  %v1017_v38 = vpop.f32.mrb[8].mxu1 }
 0x13a   :  { %v5163_v39 = vadd.f32 %v944_v35, %v5107_v6  ;;  %v946_v44 = vpop.f32.mrb[9].mxu0  ;;  %v5169_v37 = vadd.f32 %v1017_v38, %v5112_v17  ;;  %v1019_v49 = vpop.f32.mrb[9].mxu1 }
 0x13b   :  { %v5166_v47 = vadd.f32 %v946_v44, %v5122_v42  ;;  %v948_v32 = vpop.f32.mrb[10].mxu0  ;;  %v5175_v36 = vadd.f32 %v1019_v49, %v5119_v43  ;;  %v1021_v41 = vpop.f32.mrb[10].mxu1 }
 0x13c   :  { %6512 = vst [vmem:[#allocation58_spill] sm:$0xff] %v5163_v39  ;;  %6514 = vst [vmem:[#allocation60_spill] sm:$0xff] %v5169_v37  ;;  %v5172_v48 = vadd.f32 %v948_v32, %v5107_v6  ;;  %v950_v56 = vpop.f32.mrb[11].mxu0  ;;  %v5181_v39 = vadd.f32 %v1021_v41, %v5112_v17  ;;  %v1023_v44 = vpop.f32.mrb[11].mxu1 }
 0x13d   :  { %6513 = vst [vmem:[#allocation59_spill] sm:$0xff] %v5166_v47  ;;  %6516 = vst [vmem:[#allocation62_spill] sm:$0xff] %v5175_v36  ;;  %v5178_v35 = vadd.f32 %v950_v56, %v5122_v42  ;;  %v5184_v47 = vadd.f32 %v1023_v44, %v5119_v43 }
 0x13e   :  { %6515 = vst [vmem:[#allocation61_spill] sm:$0xff] %v5172_v48  ;;  %6518 = vst [vmem:[#allocation64_spill] sm:$0xff] %v5181_v39 }
 0x13f   :  { %6517 = vst [vmem:[#allocation63_spill] sm:$0xff] %v5178_v35  ;;  %6519 = vst [vmem:[#allocation65_spill] sm:$0xff] %v5184_v47 }
 0x141   :  { %v954_v38 = vpop.f32.mrb[12].mxu0  ;;  %v1027_v48 = vpop.f32.mrb[12].mxu1 }
 0x142   :  { %v5187_v37 = vadd.f32 %v954_v38, %v5107_v6  ;;  %v956_v32 = vpop.f32.mrb[13].mxu0  ;;  %v5193_v56 = vadd.f32 %v1027_v48, %v5112_v17  ;;  %v1029_v35 = vpop.f32.mrb[13].mxu1  ;;  %v188_v48 = vsub.s32 4, %v5095_v50 }
 0x143   :  { %v5190_v49 = vadd.f32 %v956_v32, %v5122_v42  ;;  %v958_v36 = vpop.f32.mrb[14].mxu0  ;;  %v5199_v44 = vadd.f32 %v1029_v35, %v5119_v43  ;;  %v1031_v47 = vpop.f32.mrb[14].mxu1  ;;  %v200_v35 = vsub.s32 7, %v5095_v50 }
 0x144   :  { %6520 = vst [vmem:[#allocation66_spill] sm:$0xff] %v5187_v37  ;;  %6522 = vst [vmem:[#allocation68_spill] sm:$0xff] %v5193_v56  ;;  %v5196_v41 = vadd.f32 %v958_v36, %v5107_v6  ;;  %v960_v39 = vpop.f32.mrb[15].mxu0  ;;  %v5205_v37 = vadd.f32 %v1031_v47, %v5112_v17  ;;  %v1033_v32 = vpop.f32.mrb[15].mxu1  ;;  %v192_v36 = vsub.s32 5, %v5095_v50 }
 0x145   :  { %6521 = vst [vmem:[#allocation67_spill] sm:$0xff] %v5190_v49  ;;  %6524 = vst [vmem:[#allocation70_spill] sm:$0xff] %v5199_v44  ;;  %v5202_v38 = vadd.f32 %v960_v39, %v5122_v42  ;;  %v5208_v49 = vadd.f32 %v1033_v32, %v5119_v43  ;;  %v5215_v44 = vrot.slane %v5101_v46, %v188_v48 }
 0x146   :  { %6523 = vst [vmem:[#allocation69_spill] sm:$0xff] %v5196_v41  ;;  %6526 = vst [vmem:[#allocation72_spill] sm:$0xff] %v5205_v37  ;;  %v196_v41 = vsub.s32 6, %v5095_v50  ;;  %v5218_v39 = vrot.slane %v5101_v46, %v192_v36  ;;  %v5224_v32 = vrot.slane %v5101_v46, %v200_v35 }
 0x147   :  { %6525 = vst [vmem:[#allocation71_spill] sm:$0xff] %v5202_v38  ;;  %6527 = vst [vmem:[#allocation73_spill] sm:$0xff] %v5208_v49 }
 0x148   :  { %v5221_v47 = vrot.slane %v5101_v46, %v196_v41 }
 0x169   :  { %v1070_v49 = vpop.f32.mrb[16].mxu0  ;;  %v1143_v56 = vpop.f32.mrb[16].mxu1 }
 0x16a   :  { %v5227_v38 = vadd.f32 %v1070_v49, %v5215_v44  ;;  %v1072_v37 = vpop.f32.mrb[17].mxu0  ;;  %v5233_v22 = vadd.f32 %v1143_v56, %v5221_v47  ;;  %v1145_v36 = vpop.f32.mrb[17].mxu1 }
 0x16b   :  { %v5230_v50 = vadd.f32 %v1072_v37, %v5218_v39  ;;  %v1074_v48 = vpop.f32.mrb[18].mxu0  ;;  %v5239_v46 = vadd.f32 %v1145_v36, %v5224_v32  ;;  %v1147_v35 = vpop.f32.mrb[18].mxu1 }
 0x16c   :  { %6528 = vst [vmem:[#allocation74_spill] sm:$0xff] %v5227_v38  ;;  %6530 = vst [vmem:[#allocation76_spill] sm:$0xff] %v5233_v22  ;;  %v5236_v41 = vadd.f32 %v1074_v48, %v5215_v44  ;;  %v1076_v34 = vpop.f32.mrb[19].mxu0  ;;  %v5245_v38 = vadd.f32 %v1147_v35, %v5221_v47  ;;  %v1149_v37 = vpop.f32.mrb[19].mxu1 }
 0x16d   :  { %6529 = vst [vmem:[#allocation75_spill] sm:$0xff] %v5230_v50  ;;  %6532 = vst [vmem:[#allocation78_spill] sm:$0xff] %v5239_v46  ;;  %v5242_v49 = vadd.f32 %v1076_v34, %v5218_v39  ;;  %v5248_v50 = vadd.f32 %v1149_v37, %v5224_v32 }
 0x16e   :  { %6531 = vst [vmem:[#allocation77_spill] sm:$0xff] %v5236_v41  ;;  %6534 = vst [vmem:[#allocation80_spill] sm:$0xff] %v5245_v38 }
 0x16f   :  { %6533 = vst [vmem:[#allocation79_spill] sm:$0xff] %v5242_v49  ;;  %6535 = vst [vmem:[#allocation81_spill] sm:$0xff] %v5248_v50 }
 0x171   :  { %v1080_v56 = vpop.f32.mrb[20].mxu0  ;;  %v1153_v41 = vpop.f32.mrb[20].mxu1 }
 0x172   :  { %v5251_v22 = vadd.f32 %v1080_v56, %v5215_v44  ;;  %v1082_v48 = vpop.f32.mrb[21].mxu0  ;;  %v5257_v34 = vadd.f32 %v1153_v41, %v5221_v47  ;;  %v1155_v49 = vpop.f32.mrb[21].mxu1 }
 0x173   :  { %v5254_v36 = vadd.f32 %v1082_v48, %v5218_v39  ;;  %v1084_v46 = vpop.f32.mrb[22].mxu0  ;;  %v5263_v37 = vadd.f32 %v1155_v49, %v5224_v32  ;;  %v1157_v50 = vpop.f32.mrb[22].mxu1 }
 0x174   :  { %6536 = vst [vmem:[#allocation82_spill] sm:$0xff] %v5251_v22  ;;  %6538 = vst [vmem:[#allocation84_spill] sm:$0xff] %v5257_v34  ;;  %v5260_v35 = vadd.f32 %v1084_v46, %v5215_v44  ;;  %v1086_v38 = vpop.f32.mrb[23].mxu0  ;;  %v5269_v22 = vadd.f32 %v1157_v50, %v5221_v47  ;;  %v1159_v48 = vpop.f32.mrb[23].mxu1 }
 0x175   :  { %6537 = vst [vmem:[#allocation83_spill] sm:$0xff] %v5254_v36  ;;  %6540 = vst [vmem:[#allocation86_spill] sm:$0xff] %v5263_v37  ;;  %v5266_v56 = vadd.f32 %v1086_v38, %v5218_v39  ;;  %v5272_v36 = vadd.f32 %v1159_v48, %v5224_v32 }
 0x176   :  { %6539 = vst [vmem:[#allocation85_spill] sm:$0xff] %v5260_v35  ;;  %6542 = vst [vmem:[#allocation88_spill] sm:$0xff] %v5269_v22 }
 0x177   :  { %6541 = vst [vmem:[#allocation87_spill] sm:$0xff] %v5266_v56  ;;  %6543 = vst [vmem:[#allocation89_spill] sm:$0xff] %v5272_v36 }
 0x179   :  { %v1090_v41 = vpop.f32.mrb[24].mxu0  ;;  %v1163_v35 = vpop.f32.mrb[24].mxu1 }
 0x17a   :  { %v5275_v34 = vadd.f32 %v1090_v41, %v5215_v44  ;;  %v1092_v46 = vpop.f32.mrb[25].mxu0  ;;  %v5281_v38 = vadd.f32 %v1163_v35, %v5221_v47  ;;  %v1165_v56 = vpop.f32.mrb[25].mxu1 }
 0x17b   :  { %v5278_v49 = vadd.f32 %v1092_v46, %v5218_v39  ;;  %v1094_v37 = vpop.f32.mrb[26].mxu0  ;;  %v5287_v48 = vadd.f32 %v1165_v56, %v5224_v32  ;;  %v1167_v36 = vpop.f32.mrb[26].mxu1 }
 0x17c   :  { %6544 = vst [vmem:[#allocation90_spill] sm:$0xff] %v5275_v34  ;;  %6546 = vst [vmem:[#allocation92_spill] sm:$0xff] %v5281_v38  ;;  %v5284_v50 = vadd.f32 %v1094_v37, %v5215_v44  ;;  %v1096_v22 = vpop.f32.mrb[27].mxu0  ;;  %v5293_v34 = vadd.f32 %v1167_v36, %v5221_v47  ;;  %v1169_v46 = vpop.f32.mrb[27].mxu1 }
 0x17d   :  { %6545 = vst [vmem:[#allocation91_spill] sm:$0xff] %v5278_v49  ;;  %6548 = vst [vmem:[#allocation94_spill] sm:$0xff] %v5287_v48  ;;  %v5290_v41 = vadd.f32 %v1096_v22, %v5218_v39  ;;  %v5296_v49 = vadd.f32 %v1169_v46, %v5224_v32 }
 0x17e   :  { %6547 = vst [vmem:[#allocation93_spill] sm:$0xff] %v5284_v50  ;;  %6550 = vst [vmem:[#allocation96_spill] sm:$0xff] %v5293_v34 }
 0x17f   :  { %6549 = vst [vmem:[#allocation95_spill] sm:$0xff] %v5290_v41  ;;  %6551 = vst [vmem:[#allocation97_spill] sm:$0xff] %v5296_v49 }
 0x181   :  { %v1100_v35 = vpop.f32.mrb[28].mxu0  ;;  %v1173_v50 = vpop.f32.mrb[28].mxu1 }
 0x182   :  { %v5299_v38 = vadd.f32 %v1100_v35, %v5215_v44  ;;  %v1102_v37 = vpop.f32.mrb[29].mxu0  ;;  %v5305_v22 = vadd.f32 %v1173_v50, %v5221_v47  ;;  %v1175_v41 = vpop.f32.mrb[29].mxu1  ;;  %v925_v35 = vadd.f32 %v5109_v51, %v5107_v6  ;;  %v1000_v50 = vadd.f32 %v5124_v40, %v5119_v43 }
 0x183   :  { %v5302_v56 = vadd.f32 %v1102_v37, %v5218_v39  ;;  %v1104_v48 = vpop.f32.mrb[30].mxu0  ;;  %v5308_v34 = vadd.f32 %v1175_v41, %v5224_v32  ;;  %v1177_v46 = vpop.f32.mrb[30].mxu1  ;;  %v998_v37 = vadd.f32 %v5116_v45, %v5112_v17 }
 0x184   :  { %6552 = vst [vmem:[#allocation98_spill] sm:$0xff] %v5299_v38  ;;  %6554 = vst [vmem:[#allocation100_spill] sm:$0xff] %v5305_v22  ;;  %v1106_v36 = vpop.f32.mrb[31].mxu0  ;;  %v1179_v49 = vpop.f32.mrb[31].mxu1  ;;  %v927_v38 = vadd.f32 %v5114_v59, %v5122_v42 }
 0x185   :  { %6553 = vst [vmem:[#allocation99_spill] sm:$0xff] %v5302_v56  ;;  %6555 = vst [vmem:[#allocation101_spill] sm:$0xff] %v5308_v34 }
 0x189   :  { %v1510_v56 = vpop.f32.mrb[32].mxu0  ;;  %v1551_v33 = vpop.f32.mrb[32].mxu1 }
 0x18a   :  { %v1808_v22 = vadd.f32 %v1510_v56, %v925_v35  ;;  %v1512_v31 = vpop.f32.mrb[33].mxu0  ;;  %v1810_v41 = vadd.f32 %v1551_v33, %v998_v37  ;;  %v1553_v12 = vpop.f32.mrb[33].mxu1  ;;  %v1180_v35 = vadd.f32 %v1179_v49, %v5224_v32 }
 0x18b   :  { %v1809_v34 = vadd.f32 %v1512_v31, %v927_v38  ;;  %v1514_v30 = vpop.f32.mrb[34].mxu0  ;;  %v1811_v28 = vadd.f32 %v1553_v12, %v1000_v50  ;;  %v1555_v51 = vpop.f32.mrb[34].mxu1 }
 0x18c   :  { %v3956_v29 = vmul.f32 -1.442695, %v1808_v22  ;;  %v1515_v6 = vpop.f32.mrb[35].mxu0  ;;  %v1556_v42 = vpop.f32.mrb[35].mxu1 }
 0x18d   :  { %v3957_v27 = vmul.f32 -1.442695, %v1809_v34  ;;  %v3958_v45 = vmul.f32 -1.442695, %v1811_v28  ;;  %v1105_v34 = vadd.f32 %v1104_v48, %v5215_v44  ;;  %v1178_v28 = vadd.f32 %v1177_v46, %v5221_v47 }
 0x18e   :  { %4148 = vpow2.f32 %v3956_v29 }
 0x18f   :  { %4150 = vpow2.f32 %v3957_v27  ;;  %v1107_v27 = vadd.f32 %v1106_v36, %v5218_v39 }
 0x190   :  { %4152 = vpow2.f32 %v3958_v45 }
 0x191   :  { %4154 = vtanh.f32 %v1810_v41 }
 0x198   :  { %v4149_v59 = vpop.eup %4148 }
 0x199   :  { %v4151_v17 = vpop.eup %4150  ;;  %v1827_v26 = vadd.f32 1.0, %v4149_v59 }
 0x19a   :  { %v1833_v40 = vadd.f32 1.0, %v4151_v17  ;;  %v4153_v31 = vpop.eup %4152 }
 0x19b   :  { %4156 = vrcp.f32 %v1827_v26  ;;  %v4155_v33 = vpop.eup %4154  ;;  %v1840_v38 = vadd.f32 1.0, %v4153_v31 }
 0x19c   :  { %4158 = vrcp.f32 %v1833_v40 }
 0x19d   :  { %4160 = vrcp.f32 %v1840_v38 }
 0x1a5   :  { %v4157_v30 = vpop.eup %4156 }
 0x1a6   :  { %v4159_v43 = vpop.eup %4158  ;;  %v1844_v12 = vmul.f32 %v4157_v30, %v4155_v33 }
 0x1a7   :  { %v1843_v56 = vmul.f32 0.0, %v4159_v43  ;;  %v4161_v45 = vpop.eup %4160 }
 0x1a9   :  { %v5321_v29 = vadd.f32 %v1844_v12, %v1843_v56  ;;  %v1753_v22 = vpop.f32.mrb[36].mxu0  ;;  %v1794_v37 = vpop.f32.mrb[36].mxu1 }
 0x1aa   :  { %v1819_v26 = vadd.f32 %v1753_v22, %v1105_v34  ;;  %v1755_v50 = vpop.f32.mrb[37].mxu0  ;;  %v1821_v41 = vadd.f32 %v1794_v37, %v1178_v28  ;;  %v1796_v51 = vpop.f32.mrb[37].mxu1 }
 0x1ab   :  { %4162 = vtanh.f32 %v5321_v29  ;;  %v1820_v6 = vadd.f32 %v1755_v50, %v1107_v27  ;;  %v1757_v42 = vpop.f32.mrb[38].mxu0  ;;  %v1822_v48 = vadd.f32 %v1796_v51, %v1180_v35  ;;  %v1798_v36 = vpop.f32.mrb[38].mxu1  ;;  %v6557_v51 = vld [vmem:[#allocation45_spill] sm:$0xff] }
 0x1ac   :  { %v3959_v44 = vmul.f32 -1.442695, %v1819_v26  ;;  %v1758_v39 = vpop.f32.mrb[39].mxu0  ;;  %v1799_v46 = vpop.f32.mrb[39].mxu1  ;;  %v6561_v36 = vld [vmem:[#allocation16_spill] sm:$0xff] }
 0x1ad   :  { %v3960_v47 = vmul.f32 -1.442695, %v1820_v6  ;;  %v3961_v49 = vmul.f32 -1.442695, %v1822_v48  ;;  %v6556_v6 = vld [vmem:[#allocation44_spill] sm:$0xff]  ;;  %v6559_v48 = vld [vmem:[#allocation14_spill] sm:$0xff] }
 0x1ae   :  { %4164 = vpow2.f32 %v3959_v44  ;;  %v6558_v44 = vld [vmem:[#allocation13_spill] sm:$0xff]  ;;  %v6560_v39 = vld [vmem:[#allocation15_spill] sm:$0xff]  ;;  %v6565_v46 = vld [vmem:[#allocation20_spill] sm:$0xff] }
 0x1af   :  { %4166 = vpow2.f32 %v3960_v47  ;;  %v6564_v47 = vld [vmem:[#allocation19_spill] sm:$0xff] }
 0x1b0   :  { %4168 = vpow2.f32 %v3961_v49  ;;  %v6569_v49 = vld [vmem:[#allocation24_spill] sm:$0xff] }
 0x1b1   :  { %4170 = vtanh.f32 %v1821_v41 }
 0x1b5   :  { %v4163_v32 = vpop.eup %4162 }
 0x1b6   :  { %v1847_v59 = vmul.f32 %v4163_v32, %v4161_v45  ;;  %v6567_v45 = vld [vmem:[#allocation22_spill] sm:$0xff]  ;;  %v6568_v32 = vld [vmem:[#allocation23_spill] sm:$0xff] }
 0x1b8   :  { %v4165_v17 = vpop.eup %4164  ;;  %v1875_v40 = vpack.c.bf16 %v1847_v59, %v1847_v59  ;;  %v6570_v59 = vld [vmem:[#allocation25_spill] sm:$0xff] }
 0x1b9   :  { %v4167_v31 = vpop.eup %4166  ;;  %v1852_v33 = vadd.f32 1.0, %v4165_v17  ;;  %v6571_v17 = vld [vmem:[#allocation26_spill] sm:$0xff] }
 0x1ba   :  { %1876 = vst [vmem:[#allocation4] sm:$0xf] %v1875_v40  ;;  %3649 = vst [vmem:[%s6374_s4] sm:$0xf] %v1875_v40  ;;  %v1858_v30 = vadd.f32 1.0, %v4167_v31  ;;  %v4169_v12 = vpop.eup %4168  ;;  %v6572_v40 = vld [vmem:[#allocation27_spill] sm:$0xff]  ;;  %v6573_v31 = vld [vmem:[#allocation28_spill] sm:$0xff] }
 0x1bb   :  { %4172 = vrcp.f32 %v1852_v33  ;;  %v4171_v38 = vpop.eup %4170  ;;  %v1865_v28 = vadd.f32 1.0, %v4169_v12  ;;  %v6574_v33 = vld [vmem:[#allocation29_spill] sm:$0xff]  ;;  %v6577_v12 = vld [vmem:[#allocation32_spill] sm:$0xff] }
 0x1bc   :  { %4174 = vrcp.f32 %v1858_v30  ;;  %v6575_v30 = vld [vmem:[#allocation30_spill] sm:$0xff] }
 0x1bd   :  { %4176 = vrcp.f32 %v1865_v28  ;;  %v6582_v28 = vld [vmem:[#allocation37_spill] sm:$0xff] }
 0x1c1   :  { %v1882_v43 = vld [vmem:[#allocation4] sm:$0xf] }
 0x1c2   :  { %1916 = vmatmul.mubr.bf16.vlgmr.msra.gmra.mrb[40].mxu0 %v1882_v43  ;;  %1957 = vmatmul.mubr.bf16.vlgmr.msra.gmra.mrb[40].mxu1 %v1882_v43  ;;  %v6576_v43 = vld [vmem:[#allocation31_spill] sm:$0xff] }
 0x1c3   :  { %1967 = vmatpush1.bf16.msra.mxu0 %v4877_v53  ;;  %2008 = vmatpush1.bf16.msra.mxu1 %v4884_v54 }
 0x1c4   :  { %1968 = vmatprep.subr.bf16.mxu0 %v4889_v55  ;;  %2009 = vmatprep.subr.bf16.mxu1 %v4895_v57 }
 0x1c5   :  { %v4173_v56 = vpop.eup %4172  ;;  %1998 = vmatprep.mubr.bf16.mxu0 %v6499_v21  ;;  %2039 = vmatprep.mubr.bf16.mxu1 %v6499_v21 }
 0x1c6   :  { %v4175_v34 = vpop.eup %4174  ;;  %v1869_v27 = vmul.f32 %v4173_v56, %v4171_v38  ;;  %v6578_v38 = vld [vmem:[#allocation33_spill] sm:$0xff]  ;;  %v6579_v56 = vld [vmem:[#allocation34_spill] sm:$0xff] }
 0x1c7   :  { %v1868_v22 = vmul.f32 0.0, %v4175_v34  ;;  %1969 = vmatpush1.bf16.msra.mxu0 %v4901_v58  ;;  %2010 = vmatpush1.bf16.msra.mxu1 %v4908_v60  ;;  %v4177_v26 = vpop.eup %4176  ;;  %v6580_v34 = vld [vmem:[#allocation35_spill] sm:$0xff] }
 0x1c8   :  { %1970 = vmatprep.subr.bf16.mxu0 %v4913_v61  ;;  %2011 = vmatprep.subr.bf16.mxu1 %v4919_v62 }
 0x1c9   :  { %v5338_v35 = vadd.f32 %v1869_v27, %v1868_v22  ;;  %v6581_v27 = vld [vmem:[#allocation36_spill] sm:$0xff]  ;;  %v6583_v22 = vld [vmem:[#allocation38_spill] sm:$0xff] }
 0x1cb   :  { %4178 = vtanh.f32 %v5338_v35  ;;  %1971 = vmatpush1.bf16.msra.mxu0 %v4927_v63  ;;  %2012 = vmatpush1.bf16.msra.mxu1 %v4934_v0 }
 0x1cc   :  { %1972 = vmatprep.subr.bf16.mxu0 %v4939_v1  ;;  %2013 = vmatprep.subr.bf16.mxu1 %v4945_v2 }
 0x1cf   :  { %1973 = vmatpush1.bf16.msra.mxu0 %v4951_v3  ;;  %2014 = vmatpush1.bf16.msra.mxu1 %v4958_v5 }
 0x1d0   :  { %1974 = vmatprep.subr.bf16.mxu0 %v4963_v7  ;;  %2015 = vmatprep.subr.bf16.mxu1 %v4969_v8 }
 0x1d3   :  { %1975 = vmatpush1.bf16.msra.mxu0 %v4975_v9  ;;  %2016 = vmatpush1.bf16.msra.mxu1 %v4982_v10 }
 0x1d4   :  { %1976 = vmatprep.subr.bf16.mxu0 %v4987_v11  ;;  %2017 = vmatprep.subr.bf16.mxu1 %v4993_v13 }
 0x1d5   :  { %v4179_v37 = vpop.eup %4178 }
 0x1d6   :  { %v1872_v50 = vmul.f32 %v4179_v37, %v4177_v26  ;;  %v6584_v26 = vld [vmem:[#allocation39_spill] sm:$0xff]  ;;  %v6585_v37 = vld [vmem:[#allocation40_spill] sm:$0xff] }
 0x1d7   :  { %1977 = vmatpush1.bf16.msra.mxu0 %v4999_v14  ;;  %2018 = vmatpush1.bf16.msra.mxu1 %v5006_v15 }
 0x1d8   :  { %v1877_v41 = vpack.c.bf16 %v1872_v50, %v1872_v50  ;;  %1978 = vmatprep.subr.bf16.mxu0 %v5011_v16  ;;  %2019 = vmatprep.subr.bf16.mxu1 %v6556_v6  ;;  %v6586_v50 = vld [vmem:[#allocation41_spill] sm:$0xff] }
 0x1da   :  { %1878 = vst [vmem:[#allocation5] sm:$0xf] %v1877_v41  ;;  %3704 = vst [vmem:[%s6374_s4 + $0x3c] sm:$0xf] %v1877_v41  ;;  %v6587_v41 = vld [vmem:[#allocation42_spill] sm:$0xff] }
 0x1db   :  { %1979 = vmatpush1.bf16.msra.mxu0 %v5023_v18  ;;  %2020 = vmatpush1.bf16.msra.mxu1 %v5030_v19 }
 0x1dc   :  { %1980 = vmatprep.subr.bf16.mxu0 %v5035_v20  ;;  %2021 = vmatprep.subr.bf16.mxu1 %v6557_v51 }
 0x1df   :  { %1981 = vmatpush1.bf16.msra.mxu0 %v5047_v52  ;;  %2022 = vmatpush1.bf16.msra.mxu1 %v5054_v4 }
 0x1e0   :  { %2131 = vmatprep.subr.bf16.mxu0 %v4660_v23  ;;  %2172 = vmatprep.subr.bf16.mxu1 %v4665_v24  ;;  %v6562_v23 = vld [vmem:[#allocation17_spill] sm:$0xff]  ;;  %v6563_v24 = vld [vmem:[#allocation18_spill] sm:$0xff] }
 0x1e1   :  { %v1965_v42 = vld [vmem:[#allocation5] sm:$0xf] }
 0x1e2   :  { %1999 = vmatmul.mubr.bf16.vlgmr.msra.gmra.mrb[44].mxu0 %v1965_v42  ;;  %2040 = vmatmul.mubr.bf16.vlgmr.msra.gmra.mrb[44].mxu1 %v1965_v42  ;;  %v6588_v42 = vld [vmem:[#allocation43_spill] sm:$0xff] }
 0x1e3   :  { %2132 = vmatpush1.bf16.msra.mxu0 %v4670_v25  ;;  %2173 = vmatpush1.bf16.msra.mxu1 %v6558_v44  ;;  %v6566_v25 = vld [vmem:[#allocation21_spill] sm:$0xff] }
 0x1e4   :  { %2133 = vmatprep.subr.bf16.mxu0 %v6559_v48  ;;  %2174 = vmatprep.subr.bf16.mxu1 %v6560_v39  ;;  %v6589_v39 = vld [vmem:[#allocation46_spill] sm:$0xff] }
 0x1e5   :  { %2163 = vmatprep.mubr.bf16.mxu0 %v6499_v21  ;;  %2204 = vmatprep.mubr.bf16.mxu1 %v6499_v21 }
 0x1e7   :  { %2134 = vmatpush1.bf16.msra.mxu0 %v6561_v36  ;;  %2175 = vmatpush1.bf16.msra.mxu1 %v6562_v23  ;;  %v6590_v23 = vld [vmem:[#allocation48_spill] sm:$0xff] }
 0x1e8   :  { %2135 = vmatprep.subr.bf16.mxu0 %v6563_v24  ;;  %2176 = vmatprep.subr.bf16.mxu1 %v6564_v47 }
 0x1eb   :  { %2136 = vmatpush1.bf16.msra.mxu0 %v6565_v46  ;;  %2177 = vmatpush1.bf16.msra.mxu1 %v6566_v25  ;;  %v6591_v25 = vld [vmem:[#allocation47_spill] sm:$0xff] }
 0x1ec   :  { %2137 = vmatprep.subr.bf16.mxu0 %v6567_v45  ;;  %2178 = vmatprep.subr.bf16.mxu1 %v6568_v32  ;;  %v6592_v32 = vld [vmem:[#allocation49_spill] sm:$0xff] }
 0x1ef   :  { %2138 = vmatpush1.bf16.msra.mxu0 %v6569_v49  ;;  %2179 = vmatpush1.bf16.msra.mxu1 %v6570_v59 }
 0x1f0   :  { %2139 = vmatprep.subr.bf16.mxu0 %v6571_v17  ;;  %2180 = vmatprep.subr.bf16.mxu1 %v6572_v40 }
 0x1f3   :  { %2140 = vmatpush1.bf16.msra.mxu0 %v6573_v31  ;;  %2181 = vmatpush1.bf16.msra.mxu1 %v6574_v33 }
 0x1f4   :  { %2141 = vmatprep.subr.bf16.mxu0 %v6575_v30  ;;  %2182 = vmatprep.subr.bf16.mxu1 %v6576_v43 }
 0x1f7   :  { %2142 = vmatpush1.bf16.msra.mxu0 %v6577_v12  ;;  %2183 = vmatpush1.bf16.msra.mxu1 %v6578_v38 }
 0x1f8   :  { %2143 = vmatprep.subr.bf16.mxu0 %v6579_v56  ;;  %2184 = vmatprep.subr.bf16.mxu1 %v6580_v34 }
 0x1fb   :  { %2144 = vmatpush1.bf16.msra.mxu0 %v6581_v27  ;;  %2185 = vmatpush1.bf16.msra.mxu1 %v6582_v28 }
 0x1fc   :  { %2145 = vmatprep.subr.bf16.mxu0 %v6583_v22  ;;  %2186 = vmatprep.subr.bf16.mxu1 %v6584_v26 }
 0x1ff   :  { %2146 = vmatpush1.bf16.msra.mxu0 %v6585_v37  ;;  %2187 = vmatpush1.bf16.msra.mxu1 %v6586_v50 }
 0x200   :  { %2214 = vmatprep.subr.bf16.mxu0 %v6587_v41  ;;  %2255 = vmatprep.subr.bf16.mxu1 %v6588_v42 }
 0x295   :  { %v1917_v44 = vpop.f32.mrb[40].mxu0  ;;  %v1958_v48 = vpop.f32.mrb[40].mxu1 }
 0x296   :  { %v2055_v36 = vadd.f32 %v1917_v44, %v6589_v39  ;;  %v2057_v24 = vadd.f32 %v1958_v48, %v6590_v23  ;;  %v1919_v47 = vpop.f32.mrb[41].mxu0  ;;  %v1960_v46 = vpop.f32.mrb[41].mxu1  ;;  %v6593_v39 = vld [vmem:[#allocation98_spill] sm:$0xff]  ;;  %v6594_v23 = vld [vmem:[#allocation100_spill] sm:$0xff] }
 0x297   :  { %v2056_v45 = vadd.f32 %v1919_v47, %v6591_v25  ;;  %v2058_v49 = vadd.f32 %v1960_v46, %v6592_v32  ;;  %v1921_v59 = vpop.f32.mrb[42].mxu0  ;;  %v1962_v17 = vpop.f32.mrb[42].mxu1  ;;  %v6595_v25 = vld [vmem:[#allocation99_spill] sm:$0xff]  ;;  %v6596_v32 = vld [vmem:[#allocation101_spill] sm:$0xff] }
 0x298   :  { %v3962_v40 = vmul.f32 -1.442695, %v2055_v36  ;;  %v1922_v31 = vpop.f32.mrb[43].mxu0  ;;  %v1963_v33 = vpop.f32.mrb[43].mxu1 }
 0x299   :  { %v3963_v30 = vmul.f32 -1.442695, %v2056_v45  ;;  %v3964_v43 = vmul.f32 -1.442695, %v2058_v49 }
 0x29a   :  { %4180 = vpow2.f32 %v3962_v40 }
 0x29b   :  { %4182 = vpow2.f32 %v3963_v30 }
 0x29c   :  { %4184 = vpow2.f32 %v3964_v43 }
 0x29d   :  { %4186 = vtanh.f32 %v2057_v24 }
 0x2a4   :  { %v4181_v12 = vpop.eup %4180 }
 0x2a5   :  { %v4183_v38 = vpop.eup %4182  ;;  %v2074_v56 = vadd.f32 1.0, %v4181_v12 }
 0x2a6   :  { %v2080_v34 = vadd.f32 1.0, %v4183_v38  ;;  %v4185_v27 = vpop.eup %4184 }
 0x2a7   :  { %4188 = vrcp.f32 %v2074_v56  ;;  %v4187_v28 = vpop.eup %4186  ;;  %v2087_v50 = vadd.f32 1.0, %v4185_v27 }
 0x2a8   :  { %4190 = vrcp.f32 %v2080_v34 }
 0x2a9   :  { %4192 = vrcp.f32 %v2087_v50 }
 0x2b1   :  { %v4189_v22 = vpop.eup %4188 }
 0x2b2   :  { %v4191_v26 = vpop.eup %4190  ;;  %v2091_v37 = vmul.f32 %v4189_v22, %v4187_v28 }
 0x2b3   :  { %v2090_v41 = vmul.f32 %v4191_v26, %v5321_v29  ;;  %v4193_v30 = vpop.eup %4192 }
 0x2b5   :  { %v5407_v42 = vadd.f32 %v2091_v37, %v2090_v41  ;;  %v2000_v44 = vpop.f32.mrb[44].mxu0  ;;  %v2041_v48 = vpop.f32.mrb[44].mxu1 }
 0x2b6   :  { %v2066_v36 = vadd.f32 %v2000_v44, %v6593_v39  ;;  %v2068_v24 = vadd.f32 %v2041_v48, %v6594_v23  ;;  %v2002_v47 = vpop.f32.mrb[45].mxu0  ;;  %v2043_v46 = vpop.f32.mrb[45].mxu1  ;;  %v5611_v23 = vld [vmem:[%s6372_s2 + $0xcc] ss:$16 sps:$4 sm:$0xff]  }
 0x2b7   :  { %4194 = vtanh.f32 %v5407_v42  ;;  %v2067_v45 = vadd.f32 %v2002_v47, %v6595_v25  ;;  %v2069_v49 = vadd.f32 %v2043_v46, %v6596_v32  ;;  %v2004_v59 = vpop.f32.mrb[46].mxu0  ;;  %v2045_v17 = vpop.f32.mrb[46].mxu1  ;;  %6612 = vst [vmem:[#allocation26_spill] sm:$0xff] %v5611_v23  ;;  %v5623_v47 = vld [vmem:[%s6372_s2 + $0xc8] ss:$16 sps:$4 sm:$0xff]  }
 0x2b8   :  { %v3965_v29 = vmul.f32 -1.442695, %v2066_v36  ;;  %v2005_v40 = vpop.f32.mrb[47].mxu0  ;;  %v2046_v31 = vpop.f32.mrb[47].mxu1  ;;  %6614 = vst [vmem:[#allocation28_spill] sm:$0xff] %v5623_v47 }
 0x2b9   :  { %v3966_v33 = vmul.f32 -1.442695, %v2067_v45  ;;  %v3967_v12 = vmul.f32 -1.442695, %v2069_v49  ;;  %v5629_v46 = vld [vmem:[%s6372_s2 + $0xe4] ss:$16 sps:$4 sm:$0xff]  }
 0x2ba   :  { %4196 = vpow2.f32 %v3965_v29  ;;  %6615 = vst [vmem:[#allocation29_spill] sm:$0xff] %v5629_v46  ;;  %v5635_v25 = vld [vmem:[%s6372_s2 + $0xec] ss:$16 sps:$4 sm:$0xff]   ;;  %v5641_v45 = vld [vmem:[%s6372_s2 + $0xe0] ss:$16 sps:$4 sm:$0xff]  }
 0x2bb   :  { %4198 = vpow2.f32 %v3966_v33  ;;  %6616 = vst [vmem:[#allocation30_spill] sm:$0xff] %v5635_v25  ;;  %6617 = vst [vmem:[#allocation31_spill] sm:$0xff] %v5641_v45  ;;  %v5647_v32 = vld [vmem:[%s6372_s2 + $0xe8] ss:$16 sps:$4 sm:$0xff]   ;;  %v5653_v49 = vld [vmem:[%s6372_s2 + $0x104] ss:$16 sps:$4 sm:$0xff]  }
 0x2bc   :  { %4200 = vpow2.f32 %v3967_v12  ;;  %6618 = vst [vmem:[#allocation32_spill] sm:$0xff] %v5647_v32  ;;  %6619 = vst [vmem:[#allocation33_spill] sm:$0xff] %v5653_v49  ;;  %v5659_v59 = vld [vmem:[%s6372_s2 + $0x10c] ss:$16 sps:$4 sm:$0xff]   ;;  %v6621_v40 = vld [vmem:[#allocation50_spill] sm:$0xff] }
 0x2bd   :  { %4202 = vtanh.f32 %v2068_v24  ;;  %v5617_v24 = vld [vmem:[%s6372_s2 + $0xc0] ss:$16 sps:$4 sm:$0xff]   ;;  %6620 = vst [vmem:[#allocation34_spill] sm:$0xff] %v5659_v59 }
 0x2be   :  { %6613 = vst [vmem:[#allocation27_spill] sm:$0xff] %v5617_v24  ;;  %v6622_v33 = vld [vmem:[#allocation52_spill] sm:$0xff] }
 0x2c1   :  { %v4195_v43 = vpop.eup %4194 }
 0x2c2   :  { %v2094_v38 = vmul.f32 %v4195_v43, %v4193_v30 }
 0x2c4   :  { %v4197_v56 = vpop.eup %4196  ;;  %v2122_v34 = vpack.c.bf16 %v2094_v38, %v2094_v38  ;;  %v6623_v38 = vld [vmem:[#allocation51_spill] sm:$0xff] }
 0x2c5   :  { %v4199_v27 = vpop.eup %4198  ;;  %v2099_v28 = vadd.f32 1.0, %v4197_v56 }
 0x2c6   :  { %2123 = vst [vmem:[#allocation4] sm:$0xf] %v2122_v34  ;;  %3650 = vst [vmem:[%s6374_s4 + $0x8] sm:$0xf] %v2122_v34  ;;  %v2105_v22 = vadd.f32 1.0, %v4199_v27  ;;  %v4201_v37 = vpop.eup %4200  ;;  %v6624_v34 = vld [vmem:[#allocation54_spill] sm:$0xff] }
 0x2c7   :  { %4204 = vrcp.f32 %v2099_v28  ;;  %v4203_v50 = vpop.eup %4202  ;;  %v2112_v39 = vadd.f32 1.0, %v4201_v37 }
 0x2c8   :  { %4206 = vrcp.f32 %v2105_v22 }
 0x2c9   :  { %4208 = vrcp.f32 %v2112_v39 }
 0x2cd   :  { %v2130_v26 = vld [vmem:[#allocation4] sm:$0xf] }
 0x2ce   :  { %2164 = vmatmul.mubr.bf16.vlgmr.msra.gmra.mrb[48].mxu0 %v2130_v26  ;;  %2205 = vmatmul.mubr.bf16.vlgmr.msra.gmra.mrb[48].mxu1 %v2130_v26 }
 0x2cf   :  { %2215 = vmatpush1.bf16.msra.mxu0 %v4877_v53  ;;  %2256 = vmatpush1.bf16.msra.mxu1 %v4884_v54 }
 0x2d0   :  { %2216 = vmatprep.subr.bf16.mxu0 %v4889_v55  ;;  %2257 = vmatprep.subr.bf16.mxu1 %v4895_v57 }
 0x2d1   :  { %v4205_v41 = vpop.eup %4204  ;;  %2246 = vmatprep.mubr.bf16.mxu0 %v6499_v21  ;;  %2287 = vmatprep.mubr.bf16.mxu1 %v6499_v21 }
 0x2d2   :  { %v4207_v44 = vpop.eup %4206  ;;  %v2116_v48 = vmul.f32 %v4205_v41, %v4203_v50 }
 0x2d3   :  { %v2115_v36 = vmul.f32 %v4207_v44, %v5338_v35  ;;  %2217 = vmatpush1.bf16.msra.mxu0 %v4901_v58  ;;  %2258 = vmatpush1.bf16.msra.mxu1 %v4908_v60  ;;  %v4209_v54 = vpop.eup %4208  ;;  %v5459_v60 = vld [vmem:[%s6372_s2 + $0x4] ss:$16 sps:$4 sm:$0xff]   ;;  %v5593_v35 = vld [vmem:[%s6372_s2 + $0xa0] ss:$16 sps:$4 sm:$0xff]  }
 0x2d4   :  { %2218 = vmatprep.subr.bf16.mxu0 %v4913_v61  ;;  %2259 = vmatprep.subr.bf16.mxu1 %v4919_v62  ;;  %v5465_v61 = vld [vmem:[%s6372_s2 + $0xc] ss:$16 sps:$4 sm:$0xff]   ;;  %6609 = vst [vmem:[#allocation23_spill] sm:$0xff] %v5593_v35 }
 0x2d5   :  { %v5428_v53 = vadd.f32 %v2116_v48, %v2115_v36 }
 0x2d7   :  { %4210 = vtanh.f32 %v5428_v53  ;;  %2219 = vmatpush1.bf16.msra.mxu0 %v4927_v63  ;;  %2260 = vmatpush1.bf16.msra.mxu1 %v4934_v0  ;;  %v5477_v63 = vld [vmem:[%s6372_s2 + $0x8] ss:$16 sps:$4 sm:$0xff]   ;;  %v5483_v0 = vld [vmem:[%s6372_s2 + $0x24] ss:$16 sps:$4 sm:$0xff]  }
 0x2d8   :  { %2220 = vmatprep.subr.bf16.mxu0 %v4939_v1  ;;  %2261 = vmatprep.subr.bf16.mxu1 %v4945_v2  ;;  %v5489_v1 = vld [vmem:[%s6372_s2 + $0x2c] ss:$16 sps:$4 sm:$0xff]   ;;  %v5497_v2 = vld [vmem:[%s6372_s2 + $0x20] ss:$16 sps:$4 sm:$0xff]  }
 0x2db   :  { %2221 = vmatpush1.bf16.msra.mxu0 %v4951_v3  ;;  %2262 = vmatpush1.bf16.msra.mxu1 %v4958_v5  ;;  %v5503_v3 = vld [vmem:[%s6372_s2 + $0x28] ss:$16 sps:$4 sm:$0xff]   ;;  %v5509_v5 = vld [vmem:[%s6372_s2 + $0x44] ss:$16 sps:$4 sm:$0xff]  }
 0x2dc   :  { %2222 = vmatprep.subr.bf16.mxu0 %v4963_v7  ;;  %2263 = vmatprep.subr.bf16.mxu1 %v4969_v8  ;;  %v5515_v7 = vld [vmem:[%s6372_s2 + $0x4c] ss:$16 sps:$4 sm:$0xff]   ;;  %v5521_v8 = vld [vmem:[%s6372_s2 + $0x40] ss:$16 sps:$4 sm:$0xff]  }
 0x2dd   :  { %6597 = vst [vmem:[#allocation44_spill] sm:$0xff] %v5521_v8 }
 0x2df   :  { %2223 = vmatpush1.bf16.msra.mxu0 %v4975_v9  ;;  %2264 = vmatpush1.bf16.msra.mxu1 %v4982_v10  ;;  %v5527_v9 = vld [vmem:[%s6372_s2 + $0x48] ss:$16 sps:$4 sm:$0xff]   ;;  %v5533_v10 = vld [vmem:[%s6372_s2 + $0x64] ss:$16 sps:$4 sm:$0xff]  }
 0x2e0   :  { %2224 = vmatprep.subr.bf16.mxu0 %v4987_v11  ;;  %2265 = vmatprep.subr.bf16.mxu1 %v4993_v13  ;;  %6598 = vst [vmem:[#allocation45_spill] sm:$0xff] %v5527_v9  ;;  %6599 = vst [vmem:[#allocation13_spill] sm:$0xff] %v5533_v10  ;;  %v5539_v11 = vld [vmem:[%s6372_s2 + $0x6c] ss:$16 sps:$4 sm:$0xff]   ;;  %v5545_v13 = vld [vmem:[%s6372_s2 + $0x60] ss:$16 sps:$4 sm:$0xff]  }
 0x2e1   :  { %v4211_v55 = vpop.eup %4210  ;;  %6600 = vst [vmem:[#allocation14_spill] sm:$0xff] %v5539_v11  ;;  %6601 = vst [vmem:[#allocation15_spill] sm:$0xff] %v5545_v13 }
 0x2e2   :  { %v2119_v57 = vmul.f32 %v4211_v55, %v4209_v54 }
 0x2e3   :  { %2225 = vmatpush1.bf16.msra.mxu0 %v4999_v14  ;;  %2266 = vmatpush1.bf16.msra.mxu1 %v5006_v15  ;;  %v5551_v14 = vld [vmem:[%s6372_s2 + $0x68] ss:$16 sps:$4 sm:$0xff]   ;;  %v5557_v15 = vld [vmem:[%s6372_s2 + $0x84] ss:$16 sps:$4 sm:$0xff]  }
 0x2e4   :  { %v2124_v58 = vpack.c.bf16 %v2119_v57, %v2119_v57  ;;  %2226 = vmatprep.subr.bf16.mxu0 %v5011_v16  ;;  %2267 = vmatprep.subr.bf16.mxu1 %v6556_v6  ;;  %6602 = vst [vmem:[#allocation16_spill] sm:$0xff] %v5551_v14  ;;  %6603 = vst [vmem:[#allocation17_spill] sm:$0xff] %v5557_v15  ;;  %v5563_v16 = vld [vmem:[%s6372_s2 + $0x8c] ss:$16 sps:$4 sm:$0xff]   ;;  %v5599_v6 = vld [vmem:[%s6372_s2 + $0xa8] ss:$16 sps:$4 sm:$0xff]  }
 0x2e5   :  { %6604 = vst [vmem:[#allocation18_spill] sm:$0xff] %v5563_v16  ;;  %6610 = vst [vmem:[#allocation24_spill] sm:$0xff] %v5599_v6 }
 0x2e6   :  { %2125 = vst [vmem:[#allocation5] sm:$0xf] %v2124_v58  ;;  %3703 = vst [vmem:[%s6374_s4 + $0x34] sm:$0xf] %v2124_v58 }
 0x2e7   :  { %2227 = vmatpush1.bf16.msra.mxu0 %v5023_v18  ;;  %2268 = vmatpush1.bf16.msra.mxu1 %v5030_v19  ;;  %v5569_v18 = vld [vmem:[%s6372_s2 + $0x80] ss:$16 sps:$4 sm:$0xff]   ;;  %v5575_v19 = vld [vmem:[%s6372_s2 + $0x88] ss:$16 sps:$4 sm:$0xff]  }
 0x2e8   :  { %2228 = vmatprep.subr.bf16.mxu0 %v5035_v20  ;;  %2269 = vmatprep.subr.bf16.mxu1 %v6557_v51  ;;  %6605 = vst [vmem:[#allocation19_spill] sm:$0xff] %v5569_v18  ;;  %6606 = vst [vmem:[#allocation20_spill] sm:$0xff] %v5575_v19  ;;  %v5581_v20 = vld [vmem:[%s6372_s2 + $0xa4] ss:$16 sps:$4 sm:$0xff]  }
 0x2e9   :  { %6607 = vst [vmem:[#allocation21_spill] sm:$0xff] %v5581_v20  ;;  %v5605_v51 = vld [vmem:[%s6372_s2 + $0xc4] ss:$16 sps:$4 sm:$0xff]  }
 0x2ea   :  { %6611 = vst [vmem:[#allocation25_spill] sm:$0xff] %v5605_v51 }
 0x2eb   :  { %2229 = vmatpush1.bf16.msra.mxu0 %v5047_v52  ;;  %2270 = vmatpush1.bf16.msra.mxu1 %v5054_v4  ;;  %v5471_v4 = vld [vmem:[%s6372_s2] ss:$16 sps:$4 sm:$0xff]   ;;  %v5587_v52 = vld [vmem:[%s6372_s2 + $0xac] ss:$16 sps:$4 sm:$0xff]  }
 0x2ec   :  { %2379 = vmatprep.subr.bf16.mxu0 %v5459_v60  ;;  %2420 = vmatprep.subr.bf16.mxu1 %v5465_v61  ;;  %6608 = vst [vmem:[#allocation22_spill] sm:$0xff] %v5587_v52 }
 0x2ed   :  { %v2213_v62 = vld [vmem:[#allocation5] sm:$0xf] }
 0x2ee   :  { %2247 = vmatmul.mubr.bf16.vlgmr.msra.gmra.mrb[52].mxu0 %v2213_v62  ;;  %2288 = vmatmul.mubr.bf16.vlgmr.msra.gmra.mrb[52].mxu1 %v2213_v62 }
 0x2ef   :  { %2380 = vmatpush1.bf16.msra.mxu0 %v5471_v4  ;;  %2421 = vmatpush1.bf16.msra.mxu1 %v5477_v63 }
 0x2f0   :  { %2381 = vmatprep.subr.bf16.mxu0 %v5483_v0  ;;  %2422 = vmatprep.subr.bf16.mxu1 %v5489_v1 }
 0x2f1   :  { %2411 = vmatprep.mubr.bf16.mxu0 %v6499_v21  ;;  %2452 = vmatprep.mubr.bf16.mxu1 %v6499_v21 }
 0x2f3   :  { %2382 = vmatpush1.bf16.msra.mxu0 %v5497_v2  ;;  %2423 = vmatpush1.bf16.msra.mxu1 %v5503_v3 }
 0x2f4   :  { %2383 = vmatprep.subr.bf16.mxu0 %v5509_v5  ;;  %2424 = vmatprep.subr.bf16.mxu1 %v5515_v7 }
 0x2f7   :  { %2384 = vmatpush1.bf16.msra.mxu0 %v5521_v8  ;;  %2425 = vmatpush1.bf16.msra.mxu1 %v5527_v9 }
 0x2f8   :  { %2385 = vmatprep.subr.bf16.mxu0 %v5533_v10  ;;  %2426 = vmatprep.subr.bf16.mxu1 %v5539_v11 }
 0x2fb   :  { %2386 = vmatpush1.bf16.msra.mxu0 %v5545_v13  ;;  %2427 = vmatpush1.bf16.msra.mxu1 %v5551_v14 }
 0x2fc   :  { %2387 = vmatprep.subr.bf16.mxu0 %v5557_v15  ;;  %2428 = vmatprep.subr.bf16.mxu1 %v5563_v16 }
 0x2ff   :  { %2388 = vmatpush1.bf16.msra.mxu0 %v5569_v18  ;;  %2429 = vmatpush1.bf16.msra.mxu1 %v5575_v19 }
 0x300   :  { %2389 = vmatprep.subr.bf16.mxu0 %v5581_v20  ;;  %2430 = vmatprep.subr.bf16.mxu1 %v5587_v52 }
 0x303   :  { %2390 = vmatpush1.bf16.msra.mxu0 %v5593_v35  ;;  %2431 = vmatpush1.bf16.msra.mxu1 %v5599_v6 }
 0x304   :  { %2391 = vmatprep.subr.bf16.mxu0 %v5605_v51  ;;  %2432 = vmatprep.subr.bf16.mxu1 %v5611_v23 }
 0x307   :  { %2392 = vmatpush1.bf16.msra.mxu0 %v5617_v24  ;;  %2433 = vmatpush1.bf16.msra.mxu1 %v5623_v47 }
 0x308   :  { %2393 = vmatprep.subr.bf16.mxu0 %v5629_v46  ;;  %2434 = vmatprep.subr.bf16.mxu1 %v5635_v25 }
 0x30b   :  { %2394 = vmatpush1.bf16.msra.mxu0 %v5641_v45  ;;  %2435 = vmatpush1.bf16.msra.mxu1 %v5647_v32 }
 0x30c   :  { %2462 = vmatprep.subr.bf16.mxu0 %v5653_v49  ;;  %2503 = vmatprep.subr.bf16.mxu1 %v5659_v59 }
 0x3a1   :  { %v2165_v17 = vpop.f32.mrb[48].mxu0  ;;  %v2206_v29 = vpop.f32.mrb[48].mxu1 }
 0x3a2   :  { %v2303_v31 = vadd.f32 %v2165_v17, %v6621_v40  ;;  %v2305_v30 = vadd.f32 %v2206_v29, %v6622_v33  ;;  %v2167_v43 = vpop.f32.mrb[49].mxu0  ;;  %v2208_v12 = vpop.f32.mrb[49].mxu1 }
 0x3a3   :  { %v2304_v56 = vadd.f32 %v2167_v43, %v6623_v38  ;;  %v2306_v27 = vadd.f32 %v2208_v12, %v6624_v34  ;;  %v2169_v28 = vpop.f32.mrb[50].mxu0  ;;  %v2210_v22 = vpop.f32.mrb[50].mxu1  ;;  %v6625_v12 = vld [vmem:[#allocation93_spill] sm:$0xff] }
 0x3a4   :  { %v3968_v26 = vmul.f32 -1.442695, %v2303_v31  ;;  %v2170_v37 = vpop.f32.mrb[51].mxu0  ;;  %v2211_v50 = vpop.f32.mrb[51].mxu1  ;;  %v6627_v28 = vld [vmem:[#allocation95_spill] sm:$0xff] }
 0x3a5   :  { %v3969_v41 = vmul.f32 -1.442695, %v2304_v56  ;;  %v3970_v44 = vmul.f32 -1.442695, %v2306_v27  ;;  %v6626_v56 = vld [vmem:[#allocation96_spill] sm:$0xff] }
 0x3a6   :  { %4212 = vpow2.f32 %v3968_v26  ;;  %v6628_v26 = vld [vmem:[#allocation97_spill] sm:$0xff] }
 0x3a7   :  { %4214 = vpow2.f32 %v3969_v41 }
 0x3a8   :  { %4216 = vpow2.f32 %v3970_v44 }
 0x3a9   :  { %4218 = vtanh.f32 %v2305_v30 }
 0x3b0   :  { %v4213_v48 = vpop.eup %4212 }
 0x3b1   :  { %v4215_v39 = vpop.eup %4214  ;;  %v2322_v36 = vadd.f32 1.0, %v4213_v48 }
 0x3b2   :  { %v2328_v54 = vadd.f32 1.0, %v4215_v39  ;;  %v4217_v55 = vpop.eup %4216 }
 0x3b3   :  { %4220 = vrcp.f32 %v2322_v36  ;;  %v4219_v57 = vpop.eup %4218  ;;  %v2335_v29 = vadd.f32 1.0, %v4217_v55 }
 0x3b4   :  { %4222 = vrcp.f32 %v2328_v54 }
 0x3b5   :  { %4224 = vrcp.f32 %v2335_v29 }
 0x3bd   :  { %v4221_v58 = vpop.eup %4220 }
 0x3be   :  { %v4223_v62 = vpop.eup %4222  ;;  %v2339_v17 = vmul.f32 %v4221_v58, %v4219_v57 }
 0x3bf   :  { %v2338_v40 = vmul.f32 %v4223_v62, %v5407_v42  ;;  %v4225_v36 = vpop.eup %4224 }
 0x3c1   :  { %v5667_v31 = vadd.f32 %v2339_v17, %v2338_v40  ;;  %v2248_v33 = vpop.f32.mrb[52].mxu0  ;;  %v2289_v43 = vpop.f32.mrb[52].mxu1 }
 0x3c2   :  { %v2314_v38 = vadd.f32 %v2248_v33, %v6625_v12  ;;  %v2316_v30 = vadd.f32 %v2289_v43, %v6626_v56  ;;  %v2250_v34 = vpop.f32.mrb[53].mxu0  ;;  %v2291_v27 = vpop.f32.mrb[53].mxu1  ;;  %v5680_v12 = vld [vmem:[%s6372_s2 + $0x100] ss:$16 sps:$4 sm:$0xff]  }
 0x3c3   :  { %4226 = vtanh.f32 %v5667_v31  ;;  %v2315_v22 = vadd.f32 %v2250_v34, %v6627_v28  ;;  %v2317_v37 = vadd.f32 %v2291_v27, %v6628_v26  ;;  %v2252_v50 = vpop.f32.mrb[54].mxu0  ;;  %v2293_v41 = vpop.f32.mrb[54].mxu1  ;;  %v5698_v34 = vld [vmem:[%s6372_s2 + $0x12c] ss:$16 sps:$4 sm:$0xff]  }
 0x3c4   :  { %v3971_v42 = vmul.f32 -1.442695, %v2314_v38  ;;  %v2253_v44 = vpop.f32.mrb[55].mxu0  ;;  %v2294_v48 = vpop.f32.mrb[55].mxu1  ;;  %v5686_v38 = vld [vmem:[%s6372_s2 + $0x108] ss:$16 sps:$4 sm:$0xff]  }
 0x3c5   :  { %v3972_v39 = vmul.f32 -1.442695, %v2315_v22  ;;  %v3973_v55 = vmul.f32 -1.442695, %v2317_v37  ;;  %v5707_v50 = vld [vmem:[%s6372_s2 + $0x120] ss:$16 sps:$4 sm:$0xff]  }
 0x3c6   :  { %4228 = vpow2.f32 %v3971_v42  ;;  %v5713_v41 = vld [vmem:[%s6372_s2 + $0x128] ss:$16 sps:$4 sm:$0xff]   ;;  %v5719_v42 = vld [vmem:[%s6372_s2 + $0x144] ss:$16 sps:$4 sm:$0xff]   ;;  %v5734_v48 = vld [vmem:[%s6372_s2 + $0x140] ss:$16 sps:$4 sm:$0xff]  }
 0x3c7   :  { %4230 = vpow2.f32 %v3972_v39  ;;  %v5740_v39 = vld [vmem:[%s6372_s2 + $0x148] ss:$16 sps:$4 sm:$0xff]  }
 0x3c8   :  { %4232 = vpow2.f32 %v3973_v55  ;;  %v5758_v55 = vld [vmem:[%s6372_s2 + $0x160] ss:$16 sps:$4 sm:$0xff]  }
 0x3c9   :  { %4234 = vtanh.f32 %v2316_v30  ;;  %v5692_v30 = vld [vmem:[%s6372_s2 + $0x124] ss:$16 sps:$4 sm:$0xff]  }
 0x3cd   :  { %v4227_v54 = vpop.eup %4226 }
 0x3ce   :  { %v2342_v57 = vmul.f32 %v4227_v54, %v4225_v36  ;;  %v5746_v36 = vld [vmem:[%s6372_s2 + $0x164] ss:$16 sps:$4 sm:$0xff]   ;;  %v5752_v54 = vld [vmem:[%s6372_s2 + $0x16c] ss:$16 sps:$4 sm:$0xff]  }
 0x3d0   :  { %v4229_v58 = vpop.eup %4228  ;;  %v2370_v62 = vpack.c.bf16 %v2342_v57, %v2342_v57  ;;  %v5764_v57 = vld [vmem:[%s6372_s2 + $0x168] ss:$16 sps:$4 sm:$0xff]  }
 0x3d1   :  { %v4231_v17 = vpop.eup %4230  ;;  %v2347_v29 = vadd.f32 1.0, %v4229_v58  ;;  %v5770_v58 = vld [vmem:[%s6372_s2 + $0x184] ss:$16 sps:$4 sm:$0xff]  }
 0x3d2   :  { %2371 = vst [vmem:[#allocation4] sm:$0xf] %v2370_v62  ;;  %3651 = vst [vmem:[%s6374_s4 + $0x10] sm:$0xf] %v2370_v62  ;;  %v2353_v40 = vadd.f32 1.0, %v4231_v17  ;;  %v4233_v43 = vpop.eup %4232 }
 0x3d3   :  { %4236 = vrcp.f32 %v2347_v29  ;;  %v4235_v56 = vpop.eup %4234  ;;  %v2360_v26 = vadd.f32 1.0, %v4233_v43  ;;  %v5776_v62 = vld [vmem:[%s6372_s2 + $0x18c] ss:$16 sps:$4 sm:$0xff]   ;;  %v5782_v17 = vld [vmem:[%s6372_s2 + $0x180] ss:$16 sps:$4 sm:$0xff]  }
 0x3d4   :  { %4238 = vrcp.f32 %v2353_v40  ;;  %v5788_v29 = vld [vmem:[%s6372_s2 + $0x188] ss:$16 sps:$4 sm:$0xff]   ;;  %v5800_v43 = vld [vmem:[%s6372_s2 + $0x1ac] ss:$16 sps:$4 sm:$0xff]  }
 0x3d5   :  { %4240 = vrcp.f32 %v2360_v26 }
 0x3d9   :  { %v2378_v33 = vld [vmem:[#allocation4] sm:$0xf] }
 0x3da   :  { %2412 = vmatmul.mubr.bf16.vlgmr.msra.gmra.mrb[56].mxu0 %v2378_v33  ;;  %2453 = vmatmul.mubr.bf16.vlgmr.msra.gmra.mrb[56].mxu1 %v2378_v33  ;;  %v5794_v33 = vld [vmem:[%s6372_s2 + $0x1a4] ss:$16 sps:$4 sm:$0xff]  }
 0x3db   :  { %2463 = vmatpush1.bf16.msra.mxu0 %v5680_v12  ;;  %2504 = vmatpush1.bf16.msra.mxu1 %v5686_v38 }
 0x3dc   :  { %2464 = vmatprep.subr.bf16.mxu0 %v5692_v30  ;;  %2505 = vmatprep.subr.bf16.mxu1 %v5698_v34 }
 0x3dd   :  { %v4237_v27 = vpop.eup %4236  ;;  %2494 = vmatprep.mubr.bf16.mxu0 %v6499_v21  ;;  %2535 = vmatprep.mubr.bf16.mxu1 %v6499_v21 }
 0x3de   :  { %v4239_v28 = vpop.eup %4238  ;;  %v2364_v22 = vmul.f32 %v4237_v27, %v4235_v56 }
 0x3df   :  { %v2363_v37 = vmul.f32 %v4239_v28, %v5428_v53  ;;  %2465 = vmatpush1.bf16.msra.mxu0 %v5707_v50  ;;  %2506 = vmatpush1.bf16.msra.mxu1 %v5713_v41  ;;  %v5725_v53 = vld [vmem:[%s6372_s2 + $0x14c] ss:$16 sps:$4 sm:$0xff]   ;;  %v4241_v40 = vpop.eup %4240  ;;  %v5806_v28 = vld [vmem:[%s6372_s2 + $0x1a0] ss:$16 sps:$4 sm:$0xff]  }
 0x3e0   :  { %2466 = vmatprep.subr.bf16.mxu0 %v5719_v42  ;;  %2507 = vmatprep.subr.bf16.mxu1 %v5725_v53 }
 0x3e1   :  { %v5728_v44 = vadd.f32 %v2364_v22, %v2363_v37  ;;  %v5812_v22 = vld [vmem:[%s6372_s2 + $0x1a8] ss:$16 sps:$4 sm:$0xff]   ;;  %v5818_v37 = vld [vmem:[%s6372_s2 + $0x1c4] ss:$16 sps:$4 sm:$0xff]  }
 0x3e3   :  { %4242 = vtanh.f32 %v5728_v44  ;;  %2467 = vmatpush1.bf16.msra.mxu0 %v5734_v48  ;;  %2508 = vmatpush1.bf16.msra.mxu1 %v5740_v39 }
 0x3e4   :  { %2468 = vmatprep.subr.bf16.mxu0 %v5746_v36  ;;  %2509 = vmatprep.subr.bf16.mxu1 %v5752_v54 }
 0x3e7   :  { %2469 = vmatpush1.bf16.msra.mxu0 %v5758_v55  ;;  %2510 = vmatpush1.bf16.msra.mxu1 %v5764_v57 }
 0x3e8   :  { %2470 = vmatprep.subr.bf16.mxu0 %v5770_v58  ;;  %2511 = vmatprep.subr.bf16.mxu1 %v5776_v62 }
 0x3eb   :  { %2471 = vmatpush1.bf16.msra.mxu0 %v5782_v17  ;;  %2512 = vmatpush1.bf16.msra.mxu1 %v5788_v29 }
 0x3ec   :  { %2472 = vmatprep.subr.bf16.mxu0 %v5794_v33  ;;  %2513 = vmatprep.subr.bf16.mxu1 %v5800_v43 }
 0x3ed   :  { %v4243_v56 = vpop.eup %4242 }
 0x3ee   :  { %v2367_v27 = vmul.f32 %v4243_v56, %v4241_v40  ;;  %v5824_v40 = vld [vmem:[%s6372_s2 + $0x1cc] ss:$16 sps:$4 sm:$0xff]   ;;  %v5833_v56 = vld [vmem:[%s6372_s2 + $0x1c0] ss:$16 sps:$4 sm:$0xff]  }
 0x3ef   :  { %2473 = vmatpush1.bf16.msra.mxu0 %v5806_v28  ;;  %2514 = vmatpush1.bf16.msra.mxu1 %v5812_v22  ;;  %6629 = vst [vmem:[#allocation35_spill] sm:$0xff] %v5824_v40  ;;  %6630 = vst [vmem:[#allocation36_spill] sm:$0xff] %v5833_v56 }
 0x3f0   :  { %v2372_v26 = vpack.c.bf16 %v2367_v27, %v2367_v27  ;;  %2474 = vmatprep.subr.bf16.mxu0 %v5818_v37  ;;  %2515 = vmatprep.subr.bf16.mxu1 %v5824_v40  ;;  %v5839_v27 = vld [vmem:[%s6372_s2 + $0x1c8] ss:$16 sps:$4 sm:$0xff]   ;;  %v5845_v40 = vld [vmem:[%s6372_s2 + $0x1e4] ss:$16 sps:$4 sm:$0xff]  }
 0x3f1   :  { %6631 = vst [vmem:[#allocation37_spill] sm:$0xff] %v5839_v27  ;;  %6632 = vst [vmem:[#allocation38_spill] sm:$0xff] %v5845_v40 }
 0x3f2   :  { %2373 = vst [vmem:[#allocation5] sm:$0xf] %v2372_v26  ;;  %3702 = vst [vmem:[%s6374_s4 + $0x2c] sm:$0xf] %v2372_v26  ;;  %v5851_v26 = vld [vmem:[%s6372_s2 + $0x1ec] ss:$16 sps:$4 sm:$0xff]  }
 0x3f3   :  { %2475 = vmatpush1.bf16.msra.mxu0 %v5833_v56  ;;  %2516 = vmatpush1.bf16.msra.mxu1 %v5839_v27  ;;  %v5857_v56 = vld [vmem:[%s6372_s2 + $0x1e0] ss:$16 sps:$4 sm:$0xff]   ;;  %v5863_v27 = vld [vmem:[%s6372_s2 + $0x1e8] ss:$16 sps:$4 sm:$0xff]  }
 0x3f4   :  { %2476 = vmatprep.subr.bf16.mxu0 %v5845_v40  ;;  %2517 = vmatprep.subr.bf16.mxu1 %v5851_v26 }
 0x3f7   :  { %2477 = vmatpush1.bf16.msra.mxu0 %v5857_v56  ;;  %2518 = vmatpush1.bf16.msra.mxu1 %v5863_v27 }
 0x3f8   :  { %2627 = vmatprep.subr.bf16.mxu0 %v5459_v60  ;;  %2668 = vmatprep.subr.bf16.mxu1 %v5465_v61 }
 0x3f9   :  { %v2461_v40 = vld [vmem:[#allocation5] sm:$0xf] }
 0x3fa   :  { %2495 = vmatmul.mubr.bf16.vlgmr.msra.gmra.mrb[60].mxu0 %v2461_v40  ;;  %2536 = vmatmul.mubr.bf16.vlgmr.msra.gmra.mrb[60].mxu1 %v2461_v40 }
 0x3fb   :  { %2628 = vmatpush1.bf16.msra.mxu0 %v5471_v4  ;;  %2669 = vmatpush1.bf16.msra.mxu1 %v5477_v63 }
 0x3fc   :  { %2629 = vmatprep.subr.bf16.mxu0 %v5483_v0  ;;  %2670 = vmatprep.subr.bf16.mxu1 %v5489_v1 }
 0x3fd   :  { %2659 = vmatprep.mubr.bf16.mxu0 %v6499_v21  ;;  %2700 = vmatprep.mubr.bf16.mxu1 %v6499_v21 }
 0x3ff   :  { %2630 = vmatpush1.bf16.msra.mxu0 %v5497_v2  ;;  %2671 = vmatpush1.bf16.msra.mxu1 %v5503_v3 }
 0x400   :  { %2631 = vmatprep.subr.bf16.mxu0 %v5509_v5  ;;  %2672 = vmatprep.subr.bf16.mxu1 %v5515_v7 }
 0x403   :  { %2632 = vmatpush1.bf16.msra.mxu0 %v5521_v8  ;;  %2673 = vmatpush1.bf16.msra.mxu1 %v5527_v9 }
 0x404   :  { %2633 = vmatprep.subr.bf16.mxu0 %v5533_v10  ;;  %2674 = vmatprep.subr.bf16.mxu1 %v5539_v11 }
 0x407   :  { %2634 = vmatpush1.bf16.msra.mxu0 %v5545_v13  ;;  %2675 = vmatpush1.bf16.msra.mxu1 %v5551_v14 }
 0x408   :  { %2635 = vmatprep.subr.bf16.mxu0 %v5557_v15  ;;  %2676 = vmatprep.subr.bf16.mxu1 %v5563_v16 }
 0x40b   :  { %2636 = vmatpush1.bf16.msra.mxu0 %v5569_v18  ;;  %2677 = vmatpush1.bf16.msra.mxu1 %v5575_v19  ;;  %v6636_v19 = vld [vmem:[#allocation57_spill] sm:$0xff] }
 0x40c   :  { %2637 = vmatprep.subr.bf16.mxu0 %v5581_v20  ;;  %2678 = vmatprep.subr.bf16.mxu1 %v5587_v52  ;;  %v6635_v20 = vld [vmem:[#allocation55_spill] sm:$0xff] }
 0x40f   :  { %2638 = vmatpush1.bf16.msra.mxu0 %v5593_v35  ;;  %2679 = vmatpush1.bf16.msra.mxu1 %v5599_v6  ;;  %v6633_v6 = vld [vmem:[#allocation53_spill] sm:$0xff]  ;;  %v6634_v35 = vld [vmem:[#allocation56_spill] sm:$0xff] }
 0x410   :  { %2639 = vmatprep.subr.bf16.mxu0 %v5605_v51  ;;  %2680 = vmatprep.subr.bf16.mxu1 %v5611_v23 }
 0x413   :  { %2640 = vmatpush1.bf16.msra.mxu0 %v5617_v24  ;;  %2681 = vmatpush1.bf16.msra.mxu1 %v5623_v47 }
 0x414   :  { %2641 = vmatprep.subr.bf16.mxu0 %v5629_v46  ;;  %2682 = vmatprep.subr.bf16.mxu1 %v5635_v25 }
 0x417   :  { %2642 = vmatpush1.bf16.msra.mxu0 %v5641_v45  ;;  %2683 = vmatpush1.bf16.msra.mxu1 %v5647_v32 }
 0x418   :  { %2710 = vmatprep.subr.bf16.mxu0 %v5653_v49  ;;  %2751 = vmatprep.subr.bf16.mxu1 %v5659_v59 }
 0x4ad   :  { %v2413_v40 = vpop.f32.mrb[56].mxu0  ;;  %v2454_v51 = vpop.f32.mrb[56].mxu1 }
 0x4ae   :  { %v2551_v23 = vadd.f32 %v2413_v40, %v6633_v6  ;;  %v2553_v24 = vadd.f32 %v2454_v51, %v6634_v35  ;;  %v2415_v52 = vpop.f32.mrb[57].mxu0  ;;  %v2456_v47 = vpop.f32.mrb[57].mxu1  ;;  %v6641_v40 = vld [vmem:[#allocation94_spill] sm:$0xff] }
 0x4af   :  { %v2552_v46 = vadd.f32 %v2415_v52, %v6635_v20  ;;  %v2554_v25 = vadd.f32 %v2456_v47, %v6636_v19  ;;  %v2417_v18 = vpop.f32.mrb[58].mxu0  ;;  %v2458_v45 = vpop.f32.mrb[58].mxu1 }
 0x4b0   :  { %v3974_v16 = vmul.f32 -1.442695, %v2551_v23  ;;  %v2418_v32 = vpop.f32.mrb[59].mxu0  ;;  %v2459_v15 = vpop.f32.mrb[59].mxu1  ;;  %v6639_v45 = vld [vmem:[#allocation92_spill] sm:$0xff] }
 0x4b1   :  { %v3975_v49 = vmul.f32 -1.442695, %v2552_v46  ;;  %v3976_v59 = vmul.f32 -1.442695, %v2554_v25  ;;  %v6638_v25 = vld [vmem:[#allocation90_spill] sm:$0xff] }
 0x4b2   :  { %4244 = vpow2.f32 %v3974_v16 }
 0x4b3   :  { %4246 = vpow2.f32 %v3975_v49  ;;  %v6640_v49 = vld [vmem:[#allocation91_spill] sm:$0xff] }
 0x4b4   :  { %4248 = vpow2.f32 %v3976_v59 }
 0x4b5   :  { %4250 = vtanh.f32 %v2553_v24 }
 0x4bc   :  { %v4245_v14 = vpop.eup %4244 }
 0x4bd   :  { %v4247_v13 = vpop.eup %4246  ;;  %v2570_v6 = vadd.f32 1.0, %v4245_v14 }
 0x4be   :  { %v2576_v35 = vadd.f32 1.0, %v4247_v13  ;;  %v4249_v20 = vpop.eup %4248 }
 0x4bf   :  { %4252 = vrcp.f32 %v2570_v6  ;;  %v4251_v52 = vpop.eup %4250  ;;  %v2583_v23 = vadd.f32 1.0, %v4249_v20 }
 0x4c0   :  { %4254 = vrcp.f32 %v2576_v35 }
 0x4c1   :  { %4256 = vrcp.f32 %v2583_v23 }
 0x4c9   :  { %v4253_v19 = vpop.eup %4252 }
 0x4ca   :  { %v4255_v18 = vpop.eup %4254  ;;  %v2587_v51 = vmul.f32 %v4253_v19, %v4251_v52 }
 0x4cb   :  { %v2586_v15 = vmul.f32 %v4255_v18, %v5667_v31 }
 0x4cd   :  { %v5907_v47 = vadd.f32 %v2587_v51, %v2586_v15  ;;  %v2496_v16 = vpop.f32.mrb[60].mxu0  ;;  %v2537_v46 = vpop.f32.mrb[60].mxu1 }
 0x4ce   :  { %v2562_v14 = vadd.f32 %v2496_v16, %v6638_v25  ;;  %v2564_v24 = vadd.f32 %v2537_v46, %v6639_v45  ;;  %v2498_v13 = vpop.f32.mrb[61].mxu0  ;;  %v2539_v32 = vpop.f32.mrb[61].mxu1 }
 0x4cf   :  { %6637 = vst [vmem:[#allocation39_spill] sm:$0xff] %v5907_v47  ;;  %4258 = vtanh.f32 %v5907_v47  ;;  %v2563_v59 = vadd.f32 %v2498_v13, %v6640_v49  ;;  %v2565_v6 = vadd.f32 %v2539_v32, %v6641_v40  ;;  %v2500_v35 = vpop.f32.mrb[62].mxu0  ;;  %v2541_v20 = vpop.f32.mrb[62].mxu1 }
 0x4d0   :  { %v3977_v31 = vmul.f32 -1.442695, %v2562_v14  ;;  %v2501_v52 = vpop.f32.mrb[63].mxu0  ;;  %v2542_v19 = vpop.f32.mrb[63].mxu1 }
 0x4d1   :  { %v3978_v18 = vmul.f32 -1.442695, %v2563_v59  ;;  %v4257_v51 = vpop.eup %4256  ;;  %v3979_v15 = vmul.f32 -1.442695, %v2565_v6  ;;  %v6642_v19 = vld [vmem:[#allocation35_spill] sm:$0xff] }
 0x4d2   :  { %4260 = vpow2.f32 %v3977_v31 }
 0x4d3   :  { %4262 = vpow2.f32 %v3978_v18  ;;  %v6643_v18 = vld [vmem:[#allocation36_spill] sm:$0xff] }
 0x4d4   :  { %4264 = vpow2.f32 %v3979_v15 }
 0x4d5   :  { %4266 = vtanh.f32 %v2564_v24 }
 0x4d9   :  { %v4259_v23 = vpop.eup %4258 }
 0x4da   :  { %v2590_v16 = vmul.f32 %v4259_v23, %v4257_v51  ;;  %v6644_v51 = vld [vmem:[#allocation37_spill] sm:$0xff]  ;;  %v6645_v23 = vld [vmem:[#allocation38_spill] sm:$0xff] }
 0x4dc   :  { %v4261_v46 = vpop.eup %4260  ;;  %v2618_v25 = vpack.c.bf16 %v2590_v16, %v2590_v16  ;;  %v6646_v16 = vld [vmem:[#allocation15_spill] sm:$0xff] }
 0x4dd   :  { %v4263_v45 = vpop.eup %4262  ;;  %v2595_v47 = vadd.f32 1.0, %v4261_v46  ;;  %v6647_v46 = vld [vmem:[#allocation16_spill] sm:$0xff] }
 0x4de   :  { %3652 = vst [vmem:[%s6374_s4 + $0x18] sm:$0xf] %v2618_v25  ;;  %2619 = vst [vmem:[#allocation4] sm:$0xf] %v2618_v25  ;;  %v2601_v14 = vadd.f32 1.0, %v4263_v45  ;;  %v4265_v32 = vpop.eup %4264  ;;  %v6648_v25 = vld [vmem:[#allocation17_spill] sm:$0xff] }
 0x4df   :  { %4268 = vrcp.f32 %v2595_v47  ;;  %v4267_v49 = vpop.eup %4266  ;;  %v2608_v40 = vadd.f32 1.0, %v4265_v32  ;;  %v6649_v45 = vld [vmem:[#allocation18_spill] sm:$0xff]  ;;  %v6652_v32 = vld [vmem:[#allocation21_spill] sm:$0xff] }
 0x4e0   :  { %4270 = vrcp.f32 %v2601_v14  ;;  %v6650_v14 = vld [vmem:[#allocation19_spill] sm:$0xff] }
 0x4e1   :  { %4272 = vrcp.f32 %v2608_v40  ;;  %v6657_v40 = vld [vmem:[#allocation26_spill] sm:$0xff] }
 0x4e5   :  { %v2626_v13 = vld [vmem:[#allocation4] sm:$0xf] }
 0x4e6   :  { %2660 = vmatmul.mubr.bf16.vlgmr.msra.gmra.mrb[64].mxu0 %v2626_v13  ;;  %2701 = vmatmul.mubr.bf16.vlgmr.msra.gmra.mrb[64].mxu1 %v2626_v13  ;;  %v6651_v13 = vld [vmem:[#allocation20_spill] sm:$0xff] }
 0x4e7   :  { %2711 = vmatpush1.bf16.msra.mxu0 %v5680_v12  ;;  %2752 = vmatpush1.bf16.msra.mxu1 %v5686_v38 }
 0x4e8   :  { %2712 = vmatprep.subr.bf16.mxu0 %v5692_v30  ;;  %2753 = vmatprep.subr.bf16.mxu1 %v5698_v34 }
 0x4e9   :  { %v4269_v59 = vpop.eup %4268  ;;  %2742 = vmatprep.mubr.bf16.mxu0 %v6499_v21  ;;  %2783 = vmatprep.mubr.bf16.mxu1 %v6499_v21 }
 0x4ea   :  { %v4271_v47 = vpop.eup %4270  ;;  %v2612_v24 = vmul.f32 %v4269_v59, %v4267_v49  ;;  %v6653_v49 = vld [vmem:[#allocation22_spill] sm:$0xff]  ;;  %v6654_v59 = vld [vmem:[#allocation23_spill] sm:$0xff] }
 0x4eb   :  { %v2611_v6 = vmul.f32 %v4271_v47, %v5728_v44  ;;  %2713 = vmatpush1.bf16.msra.mxu0 %v5707_v50  ;;  %2754 = vmatpush1.bf16.msra.mxu1 %v5713_v41  ;;  %v4273_v44 = vpop.eup %4272  ;;  %v6655_v47 = vld [vmem:[#allocation24_spill] sm:$0xff] }
 0x4ec   :  { %2714 = vmatprep.subr.bf16.mxu0 %v5719_v42  ;;  %2755 = vmatprep.subr.bf16.mxu1 %v5725_v53 }
 0x4ed   :  { %v5928_v35 = vadd.f32 %v2612_v24, %v2611_v6  ;;  %v6656_v24 = vld [vmem:[#allocation25_spill] sm:$0xff]  ;;  %v6658_v6 = vld [vmem:[#allocation27_spill] sm:$0xff] }
 0x4ef   :  { %4274 = vtanh.f32 %v5928_v35  ;;  %2715 = vmatpush1.bf16.msra.mxu0 %v5734_v48  ;;  %2756 = vmatpush1.bf16.msra.mxu1 %v5740_v39 }
 0x4f0   :  { %2716 = vmatprep.subr.bf16.mxu0 %v5746_v36  ;;  %2757 = vmatprep.subr.bf16.mxu1 %v5752_v54 }
 0x4f3   :  { %2717 = vmatpush1.bf16.msra.mxu0 %v5758_v55  ;;  %2758 = vmatpush1.bf16.msra.mxu1 %v5764_v57 }
 0x4f4   :  { %2718 = vmatprep.subr.bf16.mxu0 %v5770_v58  ;;  %2759 = vmatprep.subr.bf16.mxu1 %v5776_v62 }
 0x4f7   :  { %2719 = vmatpush1.bf16.msra.mxu0 %v5782_v17  ;;  %2760 = vmatpush1.bf16.msra.mxu1 %v5788_v29 }
 0x4f8   :  { %2720 = vmatprep.subr.bf16.mxu0 %v5794_v33  ;;  %2761 = vmatprep.subr.bf16.mxu1 %v5800_v43 }
 0x4f9   :  { %v4275_v20 = vpop.eup %4274 }
 0x4fa   :  { %v2615_v31 = vmul.f32 %v4275_v20, %v4273_v44  ;;  %v6659_v44 = vld [vmem:[#allocation28_spill] sm:$0xff]  ;;  %v6660_v20 = vld [vmem:[#allocation29_spill] sm:$0xff] }
 0x4fb   :  { %2721 = vmatpush1.bf16.msra.mxu0 %v5806_v28  ;;  %2762 = vmatpush1.bf16.msra.mxu1 %v5812_v22 }
 0x4fc   :  { %v2620_v52 = vpack.c.bf16 %v2615_v31, %v2615_v31  ;;  %2722 = vmatprep.subr.bf16.mxu0 %v5818_v37  ;;  %2763 = vmatprep.subr.bf16.mxu1 %v6642_v19  ;;  %v6661_v31 = vld [vmem:[#allocation30_spill] sm:$0xff] }
 0x4fe   :  { %3701 = vst [vmem:[%s6374_s4 + $0x24] sm:$0xf] %v2620_v52  ;;  %2621 = vst [vmem:[#allocation5] sm:$0xf] %v2620_v52  ;;  %v6662_v52 = vld [vmem:[#allocation31_spill] sm:$0xff] }
 0x4ff   :  { %2723 = vmatpush1.bf16.msra.mxu0 %v6643_v18  ;;  %2764 = vmatpush1.bf16.msra.mxu1 %v6644_v51 }
 0x500   :  { %2724 = vmatprep.subr.bf16.mxu0 %v6645_v23  ;;  %2765 = vmatprep.subr.bf16.mxu1 %v5851_v26 }
 0x503   :  { %2725 = vmatpush1.bf16.msra.mxu0 %v5857_v56  ;;  %2766 = vmatpush1.bf16.msra.mxu1 %v5863_v27 }
 0x504   :  { %2873 = vmatprep.subr.bf16.mxu0 %v5459_v60  ;;  %2914 = vmatprep.subr.bf16.mxu1 %v5465_v61 }
 0x505   :  { %v2709_v15 = vld [vmem:[#allocation5] sm:$0xf] }
 0x506   :  { %2743 = vmatmul.mubr.bf16.vlgmr.msra.gmra.mrb[68].mxu0 %v2709_v15  ;;  %2784 = vmatmul.mubr.bf16.vlgmr.msra.gmra.mrb[68].mxu1 %v2709_v15  ;;  %v6663_v15 = vld [vmem:[#allocation32_spill] sm:$0xff] }
 0x507   :  { %2874 = vmatpush1.bf16.msra.mxu0 %v5471_v4  ;;  %2915 = vmatpush1.bf16.msra.mxu1 %v5477_v63 }
 0x508   :  { %2875 = vmatprep.subr.bf16.mxu0 %v5483_v0  ;;  %2916 = vmatprep.subr.bf16.mxu1 %v5489_v1 }
 0x509   :  { %2905 = vmatprep.mubr.bf16.mxu0 %v6499_v21  ;;  %2946 = vmatprep.mubr.bf16.mxu1 %v6499_v21 }
 0x50b   :  { %2876 = vmatpush1.bf16.msra.mxu0 %v5497_v2  ;;  %2917 = vmatpush1.bf16.msra.mxu1 %v5503_v3 }
 0x50c   :  { %2877 = vmatprep.subr.bf16.mxu0 %v5509_v5  ;;  %2918 = vmatprep.subr.bf16.mxu1 %v5515_v7 }
 0x50f   :  { %2878 = vmatpush1.bf16.msra.mxu0 %v5521_v8  ;;  %2919 = vmatpush1.bf16.msra.mxu1 %v5527_v9 }
 0x510   :  { %2879 = vmatprep.subr.bf16.mxu0 %v5533_v10  ;;  %2920 = vmatprep.subr.bf16.mxu1 %v5539_v11 }
 0x513   :  { %2880 = vmatpush1.bf16.msra.mxu0 %v6646_v16  ;;  %2921 = vmatpush1.bf16.msra.mxu1 %v6647_v46 }
 0x514   :  { %2881 = vmatprep.subr.bf16.mxu0 %v6648_v25  ;;  %2922 = vmatprep.subr.bf16.mxu1 %v6649_v45  ;;  %v6668_v45 = vld [vmem:[#allocation59_spill] sm:$0xff]  ;;  %v6669_v25 = vld [vmem:[#allocation62_spill] sm:$0xff] }
 0x517   :  { %2882 = vmatpush1.bf16.msra.mxu0 %v6650_v14  ;;  %2923 = vmatpush1.bf16.msra.mxu1 %v6651_v13  ;;  %v6667_v13 = vld [vmem:[#allocation60_spill] sm:$0xff] }
 0x518   :  { %2883 = vmatprep.subr.bf16.mxu0 %v6652_v32  ;;  %2924 = vmatprep.subr.bf16.mxu1 %v6653_v49  ;;  %v6664_v49 = vld [vmem:[#allocation33_spill] sm:$0xff]  ;;  %v6666_v32 = vld [vmem:[#allocation58_spill] sm:$0xff] }
 0x51b   :  { %2884 = vmatpush1.bf16.msra.mxu0 %v6654_v59  ;;  %2925 = vmatpush1.bf16.msra.mxu1 %v6655_v47  ;;  %v6665_v59 = vld [vmem:[#allocation34_spill] sm:$0xff] }
 0x51c   :  { %2885 = vmatprep.subr.bf16.mxu0 %v6656_v24  ;;  %2926 = vmatprep.subr.bf16.mxu1 %v6657_v40 }
 0x51f   :  { %2886 = vmatpush1.bf16.msra.mxu0 %v6658_v6  ;;  %2927 = vmatpush1.bf16.msra.mxu1 %v6659_v44 }
 0x520   :  { %2887 = vmatprep.subr.bf16.mxu0 %v6660_v20  ;;  %2928 = vmatprep.subr.bf16.mxu1 %v6661_v31 }
 0x523   :  { %2888 = vmatpush1.bf16.msra.mxu0 %v6662_v52  ;;  %2929 = vmatpush1.bf16.msra.mxu1 %v6663_v15 }
 0x524   :  { %2956 = vmatprep.subr.bf16.mxu0 %v6664_v49  ;;  %2997 = vmatprep.subr.bf16.mxu1 %v6665_v59 }
 0x5b9   :  { %v2661_v47 = vpop.f32.mrb[64].mxu0  ;;  %v2702_v24 = vpop.f32.mrb[64].mxu1 }
 0x5ba   :  { %v2798_v40 = vadd.f32 %v2661_v47, %v6666_v32  ;;  %v2800_v6 = vadd.f32 %v2702_v24, %v6667_v13  ;;  %v2663_v14 = vpop.f32.mrb[65].mxu0  ;;  %v2704_v44 = vpop.f32.mrb[65].mxu1 }
 0x5bb   :  { %v2799_v20 = vadd.f32 %v2663_v14, %v6668_v45  ;;  %v2801_v31 = vadd.f32 %v2704_v44, %v6669_v25  ;;  %v2665_v46 = vpop.f32.mrb[66].mxu0  ;;  %v2706_v52 = vpop.f32.mrb[66].mxu1 }
 0x5bc   :  { %v3980_v16 = vmul.f32 -1.442695, %v2798_v40  ;;  %v2666_v15 = vpop.f32.mrb[67].mxu0  ;;  %v2707_v11 = vpop.f32.mrb[67].mxu1  ;;  %v6670_v40 = vld [vmem:[#allocation39_spill] sm:$0xff] }
 0x5bd   :  { %v3981_v49 = vmul.f32 -1.442695, %v2799_v20  ;;  %v3982_v59 = vmul.f32 -1.442695, %v2801_v31  ;;  %v6672_v20 = vld [vmem:[#allocation85_spill] sm:$0xff]  ;;  %v6674_v52 = vld [vmem:[#allocation87_spill] sm:$0xff] }
 0x5be   :  { %4276 = vpow2.f32 %v3980_v16 }
 0x5bf   :  { %4278 = vpow2.f32 %v3981_v49 }
 0x5c0   :  { %4280 = vpow2.f32 %v3982_v59  ;;  %v6673_v59 = vld [vmem:[#allocation88_spill] sm:$0xff] }
 0x5c1   :  { %4282 = vtanh.f32 %v2800_v6 }
 0x5c8   :  { %v4277_v10 = vpop.eup %4276 }
 0x5c9   :  { %v4279_v9 = vpop.eup %4278  ;;  %v2816_v32 = vadd.f32 1.0, %v4277_v10 }
 0x5ca   :  { %v2822_v13 = vadd.f32 1.0, %v4279_v9  ;;  %v4281_v45 = vpop.eup %4280 }
 0x5cb   :  { %4284 = vrcp.f32 %v2816_v32  ;;  %v4283_v14 = vpop.eup %4282  ;;  %v2829_v24 = vadd.f32 1.0, %v4281_v45  ;;  %v6675_v32 = vld [vmem:[#allocation89_spill] sm:$0xff] }
 0x5cc   :  { %4286 = vrcp.f32 %v2822_v13 }
 0x5cd   :  { %4288 = vrcp.f32 %v2829_v24 }
 0x5d5   :  { %v4285_v25 = vpop.eup %4284 }
 0x5d6   :  { %v4287_v46 = vpop.eup %4286  ;;  %v2833_v47 = vmul.f32 %v4285_v25, %v4283_v14 }
 0x5d7   :  { %v2832_v11 = vmul.f32 %v4287_v46, %v6670_v40  ;;  %v4289_v24 = vpop.eup %4288 }
 0x5d9   :  { %v5997_v44 = vadd.f32 %v2833_v47, %v2832_v11  ;;  %v2744_v16 = vpop.f32.mrb[68].mxu0  ;;  %v2785_v49 = vpop.f32.mrb[68].mxu1 }
 0x5da   :  { %v2808_v10 = vadd.f32 %v2744_v16, %v6672_v20  ;;  %v2810_v6 = vadd.f32 %v2785_v49, %v6673_v59  ;;  %v2746_v9 = vpop.f32.mrb[69].mxu0  ;;  %v2787_v31 = vpop.f32.mrb[69].mxu1 }
 0x5db   :  { %6671 = vst [vmem:[#allocation40_spill] sm:$0xff] %v5997_v44  ;;  %4290 = vtanh.f32 %v5997_v44  ;;  %v2809_v15 = vadd.f32 %v2746_v9, %v6674_v52  ;;  %v2811_v13 = vadd.f32 %v2787_v31, %v6675_v32  ;;  %v2748_v45 = vpop.f32.mrb[70].mxu0  ;;  %v2789_v14 = vpop.f32.mrb[70].mxu1 }
 0x5dc   :  { %v3983_v25 = vmul.f32 -1.442695, %v2808_v10  ;;  %v2749_v46 = vpop.f32.mrb[71].mxu0  ;;  %v2790_v47 = vpop.f32.mrb[71].mxu1 }
 0x5dd   :  { %v3984_v40 = vmul.f32 -1.442695, %v2809_v15  ;;  %v3985_v16 = vmul.f32 -1.442695, %v2811_v13  ;;  %v6682_v47 = vld [vmem:[#allocation17_spill] sm:$0xff] }
 0x5de   :  { %4292 = vpow2.f32 %v3983_v25 }
 0x5df   :  { %4294 = vpow2.f32 %v3984_v40  ;;  %v6687_v40 = vld [vmem:[#allocation22_spill] sm:$0xff] }
 0x5e0   :  { %4296 = vpow2.f32 %v3985_v16  ;;  %v6690_v16 = vld [vmem:[#allocation25_spill] sm:$0xff] }
 0x5e1   :  { %4298 = vtanh.f32 %v2810_v6 }
 0x5e5   :  { %v4291_v11 = vpop.eup %4290 }
 0x5e6   :  { %v2836_v49 = vmul.f32 %v4291_v11, %v4289_v24  ;;  %v6688_v24 = vld [vmem:[#allocation23_spill] sm:$0xff]  ;;  %v6689_v11 = vld [vmem:[#allocation24_spill] sm:$0xff] }
 0x5e8   :  { %v4293_v20 = vpop.eup %4292  ;;  %v2864_v59 = vpack.c.bf16 %v2836_v49, %v2836_v49  ;;  %v6691_v49 = vld [vmem:[#allocation26_spill] sm:$0xff] }
 0x5e9   :  { %v4295_v8 = vpop.eup %4294  ;;  %v2841_v44 = vadd.f32 1.0, %v4293_v20  ;;  %v6692_v20 = vld [vmem:[#allocation27_spill] sm:$0xff] }
 0x5ea   :  { %3653 = vst [vmem:[%s6374_s4 + $0x20] sm:$0xf] %v2864_v59  ;;  %2865 = vst [vmem:[#allocation4] sm:$0xf] %v2864_v59  ;;  %v2847_v10 = vadd.f32 1.0, %v4295_v8  ;;  %v4297_v31 = vpop.eup %4296  ;;  %v6693_v59 = vld [vmem:[#allocation28_spill] sm:$0xff] }
 0x5eb   :  { %4300 = vrcp.f32 %v2841_v44  ;;  %v4299_v52 = vpop.eup %4298  ;;  %v2854_v6 = vadd.f32 1.0, %v4297_v31  ;;  %v6696_v31 = vld [vmem:[#allocation31_spill] sm:$0xff] }
 0x5ec   :  { %4302 = vrcp.f32 %v2847_v10  ;;  %v6694_v10 = vld [vmem:[#allocation29_spill] sm:$0xff] }
 0x5ed   :  { %4304 = vrcp.f32 %v2854_v6 }
 0x5f1   :  { %v2872_v9 = vld [vmem:[#allocation4] sm:$0xf] }
 0x5f2   :  { %2906 = vmatmul.mubr.bf16.vlgmr.msra.gmra.mrb[72].mxu0 %v2872_v9  ;;  %2947 = vmatmul.mubr.bf16.vlgmr.msra.gmra.mrb[72].mxu1 %v2872_v9  ;;  %v6695_v9 = vld [vmem:[#allocation30_spill] sm:$0xff] }
 0x5f3   :  { %2957 = vmatpush1.bf16.msra.mxu0 %v5680_v12  ;;  %2998 = vmatpush1.bf16.msra.mxu1 %v5686_v38 }
 0x5f4   :  { %2958 = vmatprep.subr.bf16.mxu0 %v5692_v30  ;;  %2999 = vmatprep.subr.bf16.mxu1 %v5698_v34 }
 0x5f5   :  { %v4301_v15 = vpop.eup %4300  ;;  %2988 = vmatprep.mubr.bf16.mxu0 %v6499_v21  ;;  %3029 = vmatprep.mubr.bf16.mxu1 %v6499_v21 }
 0x5f6   :  { %v4303_v8 = vpop.eup %4302  ;;  %v2858_v44 = vmul.f32 %v4301_v15, %v4299_v52  ;;  %v6697_v52 = vld [vmem:[#allocation32_spill] sm:$0xff]  ;;  %v6698_v15 = vld [vmem:[#allocation33_spill] sm:$0xff] }
 0x5f7   :  { %v2857_v32 = vmul.f32 %v4303_v8, %v5928_v35  ;;  %2959 = vmatpush1.bf16.msra.mxu0 %v5707_v50  ;;  %3000 = vmatpush1.bf16.msra.mxu1 %v5713_v41  ;;  %v4305_v35 = vpop.eup %4304  ;;  %v6699_v8 = vld [vmem:[#allocation34_spill] sm:$0xff] }
 0x5f8   :  { %2960 = vmatprep.subr.bf16.mxu0 %v5719_v42  ;;  %3001 = vmatprep.subr.bf16.mxu1 %v5725_v53 }
 0x5f9   :  { %v6018_v13 = vadd.f32 %v2858_v44, %v2857_v32  ;;  %v6700_v32 = vld [vmem:[#allocation61_spill] sm:$0xff] }
 0x5fb   :  { %4306 = vtanh.f32 %v6018_v13  ;;  %2961 = vmatpush1.bf16.msra.mxu0 %v5734_v48  ;;  %3002 = vmatpush1.bf16.msra.mxu1 %v5740_v39 }
 0x5fc   :  { %2962 = vmatprep.subr.bf16.mxu0 %v5746_v36  ;;  %3003 = vmatprep.subr.bf16.mxu1 %v5752_v54 }
 0x5ff   :  { %2963 = vmatpush1.bf16.msra.mxu0 %v5758_v55  ;;  %3004 = vmatpush1.bf16.msra.mxu1 %v5764_v57 }
 0x600   :  { %2964 = vmatprep.subr.bf16.mxu0 %v5770_v58  ;;  %3005 = vmatprep.subr.bf16.mxu1 %v5776_v62 }
 0x603   :  { %2965 = vmatpush1.bf16.msra.mxu0 %v5782_v17  ;;  %3006 = vmatpush1.bf16.msra.mxu1 %v5788_v29 }
 0x604   :  { %2966 = vmatprep.subr.bf16.mxu0 %v5794_v33  ;;  %3007 = vmatprep.subr.bf16.mxu1 %v5800_v43 }
 0x605   :  { %v4307_v45 = vpop.eup %4306 }
 0x606   :  { %v2861_v14 = vmul.f32 %v4307_v45, %v4305_v35  ;;  %v6701_v45 = vld [vmem:[#allocation64_spill] sm:$0xff] }
 0x607   :  { %2967 = vmatpush1.bf16.msra.mxu0 %v5806_v28  ;;  %3008 = vmatpush1.bf16.msra.mxu1 %v5812_v22 }
 0x608   :  { %v2866_v25 = vpack.c.bf16 %v2861_v14, %v2861_v14  ;;  %2968 = vmatprep.subr.bf16.mxu0 %v5818_v37  ;;  %3009 = vmatprep.subr.bf16.mxu1 %v6642_v19 }
 0x60a   :  { %3700 = vst [vmem:[%s6374_s4 + $0x1c] sm:$0xf] %v2866_v25  ;;  %2867 = vst [vmem:[#allocation5] sm:$0xf] %v2866_v25 }
 0x60b   :  { %2969 = vmatpush1.bf16.msra.mxu0 %v6643_v18  ;;  %3010 = vmatpush1.bf16.msra.mxu1 %v6644_v51 }
 0x60c   :  { %2970 = vmatprep.subr.bf16.mxu0 %v6645_v23  ;;  %3011 = vmatprep.subr.bf16.mxu1 %v5851_v26 }
 0x60f   :  { %2971 = vmatpush1.bf16.msra.mxu0 %v5857_v56  ;;  %3012 = vmatpush1.bf16.msra.mxu1 %v5863_v27 }
 0x610   :  { %3119 = vmatprep.subr.bf16.mxu0 %v5459_v60  ;;  %3160 = vmatprep.subr.bf16.mxu1 %v5465_v61  ;;  %v6676_v60 = vld [vmem:[#allocation44_spill] sm:$0xff]  ;;  %v6677_v61 = vld [vmem:[#allocation45_spill] sm:$0xff] }
 0x611   :  { %v2955_v46 = vld [vmem:[#allocation5] sm:$0xf] }
 0x612   :  { %2989 = vmatmul.mubr.bf16.vlgmr.msra.gmra.mrb[76].mxu0 %v2955_v46  ;;  %3030 = vmatmul.mubr.bf16.vlgmr.msra.gmra.mrb[76].mxu1 %v2955_v46 }
 0x613   :  { %3120 = vmatpush1.bf16.msra.mxu0 %v5471_v4  ;;  %3161 = vmatpush1.bf16.msra.mxu1 %v5477_v63  ;;  %v6678_v4 = vld [vmem:[#allocation13_spill] sm:$0xff]  ;;  %v6679_v63 = vld [vmem:[#allocation14_spill] sm:$0xff] }
 0x614   :  { %3121 = vmatprep.subr.bf16.mxu0 %v5483_v0  ;;  %3162 = vmatprep.subr.bf16.mxu1 %v5489_v1  ;;  %v6680_v0 = vld [vmem:[#allocation15_spill] sm:$0xff]  ;;  %v6681_v1 = vld [vmem:[#allocation16_spill] sm:$0xff] }
 0x615   :  { %3151 = vmatprep.mubr.bf16.mxu0 %v6499_v21  ;;  %3192 = vmatprep.mubr.bf16.mxu1 %v6499_v21 }
 0x617   :  { %3122 = vmatpush1.bf16.msra.mxu0 %v5497_v2  ;;  %3163 = vmatpush1.bf16.msra.mxu1 %v5503_v3  ;;  %v6683_v2 = vld [vmem:[#allocation18_spill] sm:$0xff]  ;;  %v6684_v3 = vld [vmem:[#allocation19_spill] sm:$0xff] }
 0x618   :  { %3123 = vmatprep.subr.bf16.mxu0 %v5509_v5  ;;  %3164 = vmatprep.subr.bf16.mxu1 %v5515_v7  ;;  %v6685_v5 = vld [vmem:[#allocation20_spill] sm:$0xff]  ;;  %v6686_v7 = vld [vmem:[#allocation21_spill] sm:$0xff] }
 0x61b   :  { %3124 = vmatpush1.bf16.msra.mxu0 %v6676_v60  ;;  %3165 = vmatpush1.bf16.msra.mxu1 %v6677_v61  ;;  %v6702_v60 = vld [vmem:[#allocation63_spill] sm:$0xff] }
 0x61c   :  { %3125 = vmatprep.subr.bf16.mxu0 %v6678_v4  ;;  %3166 = vmatprep.subr.bf16.mxu1 %v6679_v63  ;;  %v6703_v4 = vld [vmem:[#allocation65_spill] sm:$0xff] }
 0x61f   :  { %3126 = vmatpush1.bf16.msra.mxu0 %v6680_v0  ;;  %3167 = vmatpush1.bf16.msra.mxu1 %v6681_v1 }
 0x620   :  { %3127 = vmatprep.subr.bf16.mxu0 %v6682_v47  ;;  %3168 = vmatprep.subr.bf16.mxu1 %v6683_v2 }
 0x623   :  { %3128 = vmatpush1.bf16.msra.mxu0 %v6684_v3  ;;  %3169 = vmatpush1.bf16.msra.mxu1 %v6685_v5 }
 0x624   :  { %3129 = vmatprep.subr.bf16.mxu0 %v6686_v7  ;;  %3170 = vmatprep.subr.bf16.mxu1 %v6687_v40 }
 0x627   :  { %3130 = vmatpush1.bf16.msra.mxu0 %v6688_v24  ;;  %3171 = vmatpush1.bf16.msra.mxu1 %v6689_v11 }
 0x628   :  { %3131 = vmatprep.subr.bf16.mxu0 %v6690_v16  ;;  %3172 = vmatprep.subr.bf16.mxu1 %v6691_v49 }
 0x62b   :  { %3132 = vmatpush1.bf16.msra.mxu0 %v6692_v20  ;;  %3173 = vmatpush1.bf16.msra.mxu1 %v6693_v59 }
 0x62c   :  { %3133 = vmatprep.subr.bf16.mxu0 %v6694_v10  ;;  %3174 = vmatprep.subr.bf16.mxu1 %v6695_v9 }
 0x62f   :  { %3134 = vmatpush1.bf16.msra.mxu0 %v6696_v31  ;;  %3175 = vmatpush1.bf16.msra.mxu1 %v6697_v52  ;;  %v6704_v52 = vld [vmem:[#allocation40_spill] sm:$0xff] }
 0x630   :  { %3202 = vmatprep.subr.bf16.mxu0 %v6698_v15  ;;  %3243 = vmatprep.subr.bf16.mxu1 %v6699_v8 }
 0x6c5   :  { %v2907_v44 = vpop.f32.mrb[72].mxu0  ;;  %v2948_v6 = vpop.f32.mrb[72].mxu1 }
 0x6c6   :  { %v3044_v35 = vadd.f32 %v2907_v44, %v6700_v32  ;;  %v3046_v14 = vadd.f32 %v2948_v6, %v6701_v45  ;;  %v2909_v25 = vpop.f32.mrb[73].mxu0  ;;  %v2950_v46 = vpop.f32.mrb[73].mxu1  ;;  %v6705_v32 = vld [vmem:[#allocation82_spill] sm:$0xff]  ;;  %v6706_v45 = vld [vmem:[#allocation84_spill] sm:$0xff] }
 0x6c7   :  { %v3045_v61 = vadd.f32 %v2909_v25, %v6702_v60  ;;  %v3047_v63 = vadd.f32 %v2950_v46, %v6703_v4  ;;  %v2911_v0 = vpop.f32.mrb[74].mxu0  ;;  %v2952_v1 = vpop.f32.mrb[74].mxu1  ;;  %v6707_v60 = vld [vmem:[#allocation83_spill] sm:$0xff]  ;;  %v6708_v4 = vld [vmem:[#allocation86_spill] sm:$0xff] }
 0x6c8   :  { %v3986_v47 = vmul.f32 -1.442695, %v3044_v35  ;;  %v2912_v2 = vpop.f32.mrb[75].mxu0  ;;  %v2953_v3 = vpop.f32.mrb[75].mxu1 }
 0x6c9   :  { %v3987_v5 = vmul.f32 -1.442695, %v3045_v61  ;;  %v3988_v7 = vmul.f32 -1.442695, %v3047_v63 }
 0x6ca   :  { %4308 = vpow2.f32 %v3986_v47 }
 0x6cb   :  { %4310 = vpow2.f32 %v3987_v5 }
 0x6cc   :  { %4312 = vpow2.f32 %v3988_v7 }
 0x6cd   :  { %4314 = vtanh.f32 %v3046_v14 }
 0x6d4   :  { %v4309_v40 = vpop.eup %4308 }
 0x6d5   :  { %v4311_v24 = vpop.eup %4310  ;;  %v3062_v11 = vadd.f32 1.0, %v4309_v40 }
 0x6d6   :  { %v3068_v16 = vadd.f32 1.0, %v4311_v24  ;;  %v4313_v49 = vpop.eup %4312 }
 0x6d7   :  { %4316 = vrcp.f32 %v3062_v11  ;;  %v4315_v20 = vpop.eup %4314  ;;  %v3075_v31 = vadd.f32 1.0, %v4313_v49 }
 0x6d8   :  { %4318 = vrcp.f32 %v3068_v16 }
 0x6d9   :  { %4320 = vrcp.f32 %v3075_v31 }
 0x6e1   :  { %v4317_v59 = vpop.eup %4316 }
 0x6e2   :  { %v4319_v10 = vpop.eup %4318  ;;  %v3079_v9 = vmul.f32 %v4317_v59, %v4315_v20 }
 0x6e3   :  { %v3078_v15 = vmul.f32 %v4319_v10, %v6704_v52  ;;  %v4321_v7 = vpop.eup %4320 }
 0x6e5   :  { %v6087_v8 = vadd.f32 %v3079_v9, %v3078_v15  ;;  %v2990_v44 = vpop.f32.mrb[76].mxu0  ;;  %v3031_v6 = vpop.f32.mrb[76].mxu1 }
 0x6e6   :  { %v3054_v35 = vadd.f32 %v2990_v44, %v6705_v32  ;;  %v3056_v14 = vadd.f32 %v3031_v6, %v6706_v45  ;;  %v2992_v25 = vpop.f32.mrb[77].mxu0  ;;  %v3033_v46 = vpop.f32.mrb[77].mxu1  ;;  %v4493_v45 = vld [vmem:[%s6372_s2 + $0xcc] ss:$16 sps:$4 sm:$0xff]  }
 0x6e7   :  { %4322 = vtanh.f32 %v6087_v8  ;;  %v3055_v61 = vadd.f32 %v2992_v25, %v6707_v60  ;;  %v3057_v63 = vadd.f32 %v3033_v46, %v6708_v4  ;;  %v2994_v0 = vpop.f32.mrb[78].mxu0  ;;  %v3035_v1 = vpop.f32.mrb[78].mxu1  ;;  %v4495_v25 = vld [vmem:[%s6372_s2 + $0xc8] ss:$16 sps:$4 sm:$0xff]   ;;  %v4496_v46 = vld [vmem:[%s6372_s2 + $0xe4] ss:$16 sps:$4 sm:$0xff]  }
 0x6e8   :  { %v3989_v47 = vmul.f32 -1.442695, %v3054_v35  ;;  %v2995_v2 = vpop.f32.mrb[79].mxu0  ;;  %v3036_v3 = vpop.f32.mrb[79].mxu1  ;;  %v4497_v60 = vld [vmem:[%s6372_s2 + $0xec] ss:$16 sps:$4 sm:$0xff]  }
 0x6e9   :  { %v3990_v5 = vmul.f32 -1.442695, %v3055_v61  ;;  %v3991_v24 = vmul.f32 -1.442695, %v3057_v63  ;;  %v4498_v61 = vld [vmem:[%s6372_s2 + $0xe0] ss:$16 sps:$4 sm:$0xff]  }
 0x6ea   :  { %4324 = vpow2.f32 %v3989_v47  ;;  %v4499_v4 = vld [vmem:[%s6372_s2 + $0xe8] ss:$16 sps:$4 sm:$0xff]   ;;  %v4500_v63 = vld [vmem:[%s6372_s2 + $0x104] ss:$16 sps:$4 sm:$0xff]   ;;  %v4501_v0 = vld [vmem:[%s6372_s2 + $0x10c] ss:$16 sps:$4 sm:$0xff]  }
 0x6eb   :  { %4326 = vpow2.f32 %v3990_v5  ;;  %v6709_v2 = vld [vmem:[#allocation66_spill] sm:$0xff]  ;;  %v6710_v5 = vld [vmem:[#allocation68_spill] sm:$0xff] }
 0x6ec   :  { %4328 = vpow2.f32 %v3991_v24 }
 0x6ed   :  { %4330 = vtanh.f32 %v3056_v14  ;;  %v4494_v14 = vld [vmem:[%s6372_s2 + $0xc0] ss:$16 sps:$4 sm:$0xff]  }
 0x6f1   :  { %v4323_v40 = vpop.eup %4322 }
 0x6f2   :  { %v3082_v11 = vmul.f32 %v4323_v40, %v4321_v7 }
 0x6f4   :  { %v4325_v16 = vpop.eup %4324  ;;  %v3110_v49 = vpack.c.bf16 %v3082_v11, %v3082_v11  ;;  %v6711_v11 = vld [vmem:[#allocation67_spill] sm:$0xff] }
 0x6f5   :  { %v4327_v20 = vpop.eup %4326  ;;  %v3087_v59 = vadd.f32 1.0, %v4325_v16 }
 0x6f6   :  { %3654 = vst [vmem:[%s6374_s4 + $0x28] sm:$0xf] %v3110_v49  ;;  %3111 = vst [vmem:[#allocation4] sm:$0xf] %v3110_v49  ;;  %v3093_v10 = vadd.f32 1.0, %v4327_v20  ;;  %v4329_v31 = vpop.eup %4328  ;;  %v6712_v49 = vld [vmem:[#allocation70_spill] sm:$0xff] }
 0x6f7   :  { %4332 = vrcp.f32 %v3087_v59  ;;  %v4331_v52 = vpop.eup %4330  ;;  %v3100_v32 = vadd.f32 1.0, %v4329_v31 }
 0x6f8   :  { %4334 = vrcp.f32 %v3093_v10 }
 0x6f9   :  { %4336 = vrcp.f32 %v3100_v32 }
 0x6fd   :  { %v3118_v9 = vld [vmem:[#allocation4] sm:$0xf] }
 0x6fe   :  { %3152 = vmatmul.mubr.bf16.vlgmr.msra.gmra.mrb[80].mxu0 %v3118_v9  ;;  %3193 = vmatmul.mubr.bf16.vlgmr.msra.gmra.mrb[80].mxu1 %v3118_v9 }
 0x6ff   :  { %3203 = vmatpush1.bf16.msra.mxu0 %v5680_v12  ;;  %3244 = vmatpush1.bf16.msra.mxu1 %v5686_v38 }
 0x700   :  { %3204 = vmatprep.subr.bf16.mxu0 %v5692_v30  ;;  %3245 = vmatprep.subr.bf16.mxu1 %v5698_v34 }
 0x701   :  { %v4333_v15 = vpop.eup %4332  ;;  %3234 = vmatprep.mubr.bf16.mxu0 %v6499_v21  ;;  %3275 = vmatprep.mubr.bf16.mxu1 %v6499_v21 }
 0x702   :  { %v4335_v44 = vpop.eup %4334  ;;  %v3104_v6 = vmul.f32 %v4333_v15, %v4331_v52 }
 0x703   :  { %v3103_v35 = vmul.f32 %v4335_v44, %v6018_v13  ;;  %3205 = vmatpush1.bf16.msra.mxu0 %v5707_v50  ;;  %3246 = vmatpush1.bf16.msra.mxu1 %v5713_v41  ;;  %v4337_v38 = vpop.eup %4336  ;;  %v4468_v41 = vld [vmem:[%s6372_s2 + $0x4] ss:$16 sps:$4 sm:$0xff]  }
 0x704   :  { %3206 = vmatprep.subr.bf16.mxu0 %v5719_v42  ;;  %3247 = vmatprep.subr.bf16.mxu1 %v5725_v53  ;;  %v4469_v42 = vld [vmem:[%s6372_s2 + $0xc] ss:$16 sps:$4 sm:$0xff]   ;;  %v4492_v13 = vld [vmem:[%s6372_s2 + $0xc4] ss:$16 sps:$4 sm:$0xff]  }
 0x705   :  { %v6108_v12 = vadd.f32 %v3104_v6, %v3103_v35 }
 0x707   :  { %4338 = vtanh.f32 %v6108_v12  ;;  %3207 = vmatpush1.bf16.msra.mxu0 %v5734_v48  ;;  %3248 = vmatpush1.bf16.msra.mxu1 %v5740_v39  ;;  %v4470_v48 = vld [vmem:[%s6372_s2] ss:$16 sps:$4 sm:$0xff]   ;;  %v4471_v39 = vld [vmem:[%s6372_s2 + $0x8] ss:$16 sps:$4 sm:$0xff]  }
 0x708   :  { %3208 = vmatprep.subr.bf16.mxu0 %v5746_v36  ;;  %3249 = vmatprep.subr.bf16.mxu1 %v5752_v54  ;;  %v4472_v36 = vld [vmem:[%s6372_s2 + $0x24] ss:$16 sps:$4 sm:$0xff]   ;;  %v4473_v54 = vld [vmem:[%s6372_s2 + $0x2c] ss:$16 sps:$4 sm:$0xff]  }
 0x70b   :  { %3209 = vmatpush1.bf16.msra.mxu0 %v5758_v55  ;;  %3250 = vmatpush1.bf16.msra.mxu1 %v5764_v57  ;;  %v4474_v55 = vld [vmem:[%s6372_s2 + $0x20] ss:$16 sps:$4 sm:$0xff]   ;;  %v4475_v57 = vld [vmem:[%s6372_s2 + $0x28] ss:$16 sps:$4 sm:$0xff]  }
 0x70c   :  { %3210 = vmatprep.subr.bf16.mxu0 %v5770_v58  ;;  %3251 = vmatprep.subr.bf16.mxu1 %v5776_v62  ;;  %v4476_v58 = vld [vmem:[%s6372_s2 + $0x44] ss:$16 sps:$4 sm:$0xff]   ;;  %v4477_v62 = vld [vmem:[%s6372_s2 + $0x4c] ss:$16 sps:$4 sm:$0xff]  }
 0x70f   :  { %3211 = vmatpush1.bf16.msra.mxu0 %v5782_v17  ;;  %3252 = vmatpush1.bf16.msra.mxu1 %v5788_v29  ;;  %v4478_v17 = vld [vmem:[%s6372_s2 + $0x40] ss:$16 sps:$4 sm:$0xff]   ;;  %v4479_v29 = vld [vmem:[%s6372_s2 + $0x48] ss:$16 sps:$4 sm:$0xff]  }
 0x710   :  { %3212 = vmatprep.subr.bf16.mxu0 %v5794_v33  ;;  %3253 = vmatprep.subr.bf16.mxu1 %v5800_v43  ;;  %v4480_v33 = vld [vmem:[%s6372_s2 + $0x64] ss:$16 sps:$4 sm:$0xff]   ;;  %v4481_v43 = vld [vmem:[%s6372_s2 + $0x6c] ss:$16 sps:$4 sm:$0xff]  }
 0x711   :  { %v4339_v30 = vpop.eup %4338 }
 0x712   :  { %v3107_v34 = vmul.f32 %v4339_v30, %v4337_v38 }
 0x713   :  { %3213 = vmatpush1.bf16.msra.mxu0 %v5806_v28  ;;  %3254 = vmatpush1.bf16.msra.mxu1 %v5812_v22  ;;  %v4482_v28 = vld [vmem:[%s6372_s2 + $0x60] ss:$16 sps:$4 sm:$0xff]   ;;  %v4483_v22 = vld [vmem:[%s6372_s2 + $0x68] ss:$16 sps:$4 sm:$0xff]  }
 0x714   :  { %v3112_v50 = vpack.c.bf16 %v3107_v34, %v3107_v34  ;;  %3214 = vmatprep.subr.bf16.mxu0 %v5818_v37  ;;  %3255 = vmatprep.subr.bf16.mxu1 %v6642_v19  ;;  %v4484_v37 = vld [vmem:[%s6372_s2 + $0x84] ss:$16 sps:$4 sm:$0xff]  }
 0x715   :  { %v4488_v19 = vld [vmem:[%s6372_s2 + $0xa4] ss:$16 sps:$4 sm:$0xff]  }
 0x716   :  { %3699 = vst [vmem:[%s6374_s4 + $0x14] sm:$0xf] %v3112_v50  ;;  %3113 = vst [vmem:[#allocation5] sm:$0xf] %v3112_v50 }
 0x717   :  { %3215 = vmatpush1.bf16.msra.mxu0 %v6643_v18  ;;  %3256 = vmatpush1.bf16.msra.mxu1 %v6644_v51  ;;  %v4489_v18 = vld [vmem:[%s6372_s2 + $0xac] ss:$16 sps:$4 sm:$0xff]   ;;  %v4490_v51 = vld [vmem:[%s6372_s2 + $0xa0] ss:$16 sps:$4 sm:$0xff]  }
 0x718   :  { %3216 = vmatprep.subr.bf16.mxu0 %v6645_v23  ;;  %3257 = vmatprep.subr.bf16.mxu1 %v5851_v26  ;;  %v4487_v26 = vld [vmem:[%s6372_s2 + $0x88] ss:$16 sps:$4 sm:$0xff]  }
 0x719   :  { %v4491_v23 = vld [vmem:[%s6372_s2 + $0xa8] ss:$16 sps:$4 sm:$0xff]  }
 0x71b   :  { %3217 = vmatpush1.bf16.msra.mxu0 %v5857_v56  ;;  %3258 = vmatpush1.bf16.msra.mxu1 %v5863_v27  ;;  %v4485_v56 = vld [vmem:[%s6372_s2 + $0x8c] ss:$16 sps:$4 sm:$0xff]   ;;  %v4486_v27 = vld [vmem:[%s6372_s2 + $0x80] ss:$16 sps:$4 sm:$0xff]  }
 0x71c   :  { %3365 = vmatprep.subr.bf16.mxu0 %v4468_v41  ;;  %3406 = vmatprep.subr.bf16.mxu1 %v4469_v42 }
 0x71d   :  { %v3201_v53 = vld [vmem:[#allocation5] sm:$0xf] }
 0x71e   :  { %3235 = vmatmul.mubr.bf16.vlgmr.msra.gmra.mrb[84].mxu0 %v3201_v53  ;;  %3276 = vmatmul.mubr.bf16.vlgmr.msra.gmra.mrb[84].mxu1 %v3201_v53 }
 0x71f   :  { %3366 = vmatpush1.bf16.msra.mxu0 %v4470_v48  ;;  %3407 = vmatpush1.bf16.msra.mxu1 %v4471_v39 }
 0x720   :  { %3367 = vmatprep.subr.bf16.mxu0 %v4472_v36  ;;  %3408 = vmatprep.subr.bf16.mxu1 %v4473_v54 }
 0x721   :  { %3397 = vmatprep.mubr.bf16.mxu0 %v6499_v21  ;;  %3438 = vmatprep.mubr.bf16.mxu1 %v6499_v21 }
 0x723   :  { %3368 = vmatpush1.bf16.msra.mxu0 %v4474_v55  ;;  %3409 = vmatpush1.bf16.msra.mxu1 %v4475_v57  ;;  %v6713_v55 = vld [vmem:[#allocation77_spill] sm:$0xff] }
 0x724   :  { %3369 = vmatprep.subr.bf16.mxu0 %v4476_v58  ;;  %3410 = vmatprep.subr.bf16.mxu1 %v4477_v62  ;;  %v6714_v58 = vld [vmem:[#allocation80_spill] sm:$0xff] }
 0x727   :  { %3370 = vmatpush1.bf16.msra.mxu0 %v4478_v17  ;;  %3411 = vmatpush1.bf16.msra.mxu1 %v4479_v29 }
 0x728   :  { %3371 = vmatprep.subr.bf16.mxu0 %v4480_v33  ;;  %3412 = vmatprep.subr.bf16.mxu1 %v4481_v43  ;;  %v6715_v33 = vld [vmem:[#allocation79_spill] sm:$0xff] }
 0x72b   :  { %3372 = vmatpush1.bf16.msra.mxu0 %v4482_v28  ;;  %3413 = vmatpush1.bf16.msra.mxu1 %v4483_v22  ;;  %v6716_v28 = vld [vmem:[#allocation81_spill] sm:$0xff] }
 0x72c   :  { %3373 = vmatprep.subr.bf16.mxu0 %v4484_v37  ;;  %3414 = vmatprep.subr.bf16.mxu1 %v4485_v56 }
 0x72f   :  { %3374 = vmatpush1.bf16.msra.mxu0 %v4486_v27  ;;  %3415 = vmatpush1.bf16.msra.mxu1 %v4487_v26 }
 0x730   :  { %3375 = vmatprep.subr.bf16.mxu0 %v4488_v19  ;;  %3416 = vmatprep.subr.bf16.mxu1 %v4489_v18 }
 0x733   :  { %3376 = vmatpush1.bf16.msra.mxu0 %v4490_v51  ;;  %3417 = vmatpush1.bf16.msra.mxu1 %v4491_v23 }
 0x734   :  { %3377 = vmatprep.subr.bf16.mxu0 %v4492_v13  ;;  %3418 = vmatprep.subr.bf16.mxu1 %v4493_v45 }
 0x737   :  { %3378 = vmatpush1.bf16.msra.mxu0 %v4494_v14  ;;  %3419 = vmatpush1.bf16.msra.mxu1 %v4495_v25 }
 0x738   :  { %3379 = vmatprep.subr.bf16.mxu0 %v4496_v46  ;;  %3420 = vmatprep.subr.bf16.mxu1 %v4497_v60 }
 0x73b   :  { %3380 = vmatpush1.bf16.msra.mxu0 %v4498_v61  ;;  %3421 = vmatpush1.bf16.msra.mxu1 %v4499_v4 }
 0x73c   :  { %3448 = vmatprep.subr.bf16.mxu0 %v4500_v63  ;;  %3489 = vmatprep.subr.bf16.mxu1 %v4501_v0  ;;  %v4502_v63 = vld [vmem:[%s6372_s2 + $0x100] ss:$16 sps:$4 sm:$0xff]   ;;  %v4503_v0 = vld [vmem:[%s6372_s2 + $0x108] ss:$16 sps:$4 sm:$0xff]  }
 0x7d1   :  { %v3153_v1 = vpop.f32.mrb[80].mxu0  ;;  %v3194_v47 = vpop.f32.mrb[80].mxu1 }
 0x7d2   :  { %v3290_v3 = vadd.f32 %v3153_v1, %v6709_v2  ;;  %v3292_v7 = vadd.f32 %v3194_v47, %v6710_v5  ;;  %v3155_v40 = vpop.f32.mrb[81].mxu0  ;;  %v3196_v24 = vpop.f32.mrb[81].mxu1  ;;  %v4504_v47 = vld [vmem:[%s6372_s2 + $0x124] ss:$16 sps:$4 sm:$0xff]   ;;  %v4505_v2 = vld [vmem:[%s6372_s2 + $0x12c] ss:$16 sps:$4 sm:$0xff]  }
 0x7d3   :  { %v3291_v16 = vadd.f32 %v3155_v40, %v6711_v11  ;;  %v3293_v20 = vadd.f32 %v3196_v24, %v6712_v49  ;;  %v3157_v59 = vpop.f32.mrb[82].mxu0  ;;  %v3198_v10 = vpop.f32.mrb[82].mxu1  ;;  %v4506_v11 = vld [vmem:[%s6372_s2 + $0x120] ss:$16 sps:$4 sm:$0xff]   ;;  %v4508_v49 = vld [vmem:[%s6372_s2 + $0x144] ss:$16 sps:$4 sm:$0xff]  }
 0x7d4   :  { %v3992_v9 = vmul.f32 -1.442695, %v3290_v3  ;;  %v3158_v31 = vpop.f32.mrb[83].mxu0  ;;  %v3199_v52 = vpop.f32.mrb[83].mxu1  ;;  %v4511_v59 = vld [vmem:[%s6372_s2 + $0x148] ss:$16 sps:$4 sm:$0xff]  }
 0x7d5   :  { %v3993_v15 = vmul.f32 -1.442695, %v3291_v16  ;;  %v3994_v44 = vmul.f32 -1.442695, %v3293_v20  ;;  %v4507_v16 = vld [vmem:[%s6372_s2 + $0x128] ss:$16 sps:$4 sm:$0xff]  }
 0x7d6   :  { %4340 = vpow2.f32 %v3992_v9  ;;  %v4510_v20 = vld [vmem:[%s6372_s2 + $0x140] ss:$16 sps:$4 sm:$0xff]   ;;  %v4512_v10 = vld [vmem:[%s6372_s2 + $0x164] ss:$16 sps:$4 sm:$0xff]   ;;  %v4513_v9 = vld [vmem:[%s6372_s2 + $0x16c] ss:$16 sps:$4 sm:$0xff]  }
 0x7d7   :  { %4342 = vpow2.f32 %v3993_v15  ;;  %v4514_v31 = vld [vmem:[%s6372_s2 + $0x160] ss:$16 sps:$4 sm:$0xff]   ;;  %v4515_v52 = vld [vmem:[%s6372_s2 + $0x168] ss:$16 sps:$4 sm:$0xff]   ;;  %v4516_v15 = vld [vmem:[%s6372_s2 + $0x184] ss:$16 sps:$4 sm:$0xff]  }
 0x7d8   :  { %4344 = vpow2.f32 %v3994_v44  ;;  %v4517_v44 = vld [vmem:[%s6372_s2 + $0x18c] ss:$16 sps:$4 sm:$0xff]  }
 0x7d9   :  { %4346 = vtanh.f32 %v3292_v7 }
 0x7e0   :  { %v4341_v6 = vpop.eup %4340 }
 0x7e1   :  { %v4343_v32 = vpop.eup %4342  ;;  %v3308_v35 = vadd.f32 1.0, %v4341_v6  ;;  %v4518_v6 = vld [vmem:[%s6372_s2 + $0x180] ss:$16 sps:$4 sm:$0xff]  }
 0x7e2   :  { %v3314_v38 = vadd.f32 1.0, %v4343_v32  ;;  %v4345_v30 = vpop.eup %4344  ;;  %v4519_v32 = vld [vmem:[%s6372_s2 + $0x188] ss:$16 sps:$4 sm:$0xff]  }
 0x7e3   :  { %4348 = vrcp.f32 %v3308_v35  ;;  %v4347_v34 = vpop.eup %4346  ;;  %v3321_v53 = vadd.f32 1.0, %v4345_v30  ;;  %v4521_v30 = vld [vmem:[%s6372_s2 + $0x1ac] ss:$16 sps:$4 sm:$0xff]  }
 0x7e4   :  { %4350 = vrcp.f32 %v3314_v38  ;;  %v4520_v38 = vld [vmem:[%s6372_s2 + $0x1a4] ss:$16 sps:$4 sm:$0xff]  }
 0x7e5   :  { %4352 = vrcp.f32 %v3321_v53 }
 0x7ed   :  { %v4349_v50 = vpop.eup %4348 }
 0x7ee   :  { %v4351_v41 = vpop.eup %4350  ;;  %v3325_v42 = vmul.f32 %v4349_v50, %v4347_v34 }
 0x7ef   :  { %v3324_v48 = vmul.f32 %v4351_v41, %v6087_v8  ;;  %v4353_v18 = vpop.eup %4352  ;;  %v4522_v41 = vld [vmem:[%s6372_s2 + $0x1a0] ss:$16 sps:$4 sm:$0xff]  }
 0x7f1   :  { %v6245_v39 = vadd.f32 %v3325_v42, %v3324_v48  ;;  %v3236_v36 = vpop.f32.mrb[84].mxu0  ;;  %v3277_v54 = vpop.f32.mrb[84].mxu1  ;;  %v4523_v42 = vld [vmem:[%s6372_s2 + $0x1a8] ss:$16 sps:$4 sm:$0xff]   ;;  %v4524_v48 = vld [vmem:[%s6372_s2 + $0x1c4] ss:$16 sps:$4 sm:$0xff]  }
 0x7f2   :  { %v3300_v57 = vadd.f32 %v3236_v36, %v6713_v55  ;;  %v3302_v62 = vadd.f32 %v3277_v54, %v6714_v58  ;;  %v3238_v17 = vpop.f32.mrb[85].mxu0  ;;  %v3279_v29 = vpop.f32.mrb[85].mxu1  ;;  %v4525_v36 = vld [vmem:[%s6372_s2 + $0x1cc] ss:$16 sps:$4 sm:$0xff]   ;;  %v4526_v54 = vld [vmem:[%s6372_s2 + $0x1c0] ss:$16 sps:$4 sm:$0xff]  }
 0x7f3   :  { %4354 = vtanh.f32 %v6245_v39  ;;  %v3301_v43 = vadd.f32 %v3238_v17, %v6715_v33  ;;  %v3303_v22 = vadd.f32 %v3279_v29, %v6716_v28  ;;  %v3240_v37 = vpop.f32.mrb[86].mxu0  ;;  %v3281_v56 = vpop.f32.mrb[86].mxu1  ;;  %v4527_v55 = vld [vmem:[%s6372_s2 + $0x1c8] ss:$16 sps:$4 sm:$0xff]   ;;  %v4529_v58 = vld [vmem:[%s6372_s2 + $0x1ec] ss:$16 sps:$4 sm:$0xff]  }
 0x7f4   :  { %v3995_v8 = vmul.f32 -1.442695, %v3300_v57  ;;  %v3241_v27 = vpop.f32.mrb[87].mxu0  ;;  %v3282_v26 = vpop.f32.mrb[87].mxu1  ;;  %v4528_v57 = vld [vmem:[%s6372_s2 + $0x1e4] ss:$16 sps:$4 sm:$0xff]  }
 0x7f5   :  { %v3996_v19 = vmul.f32 -1.442695, %v3301_v43  ;;  %v3997_v23 = vmul.f32 -1.442695, %v3303_v22  ;;  %v4531_v17 = vld [vmem:[%s6372_s2 + $0x1e8] ss:$16 sps:$4 sm:$0xff]  }
 0x7f6   :  { %4356 = vpow2.f32 %v3995_v8  ;;  %v6717_v28 = vld [vmem:[#allocation69_spill] sm:$0xff]  ;;  %v6718_v37 = vld [vmem:[#allocation72_spill] sm:$0xff]  ;;  %v6719_v26 = vld [vmem:[#allocation71_spill] sm:$0xff] }
 0x7f7   :  { %4358 = vpow2.f32 %v3996_v19 }
 0x7f8   :  { %4360 = vpow2.f32 %v3997_v23 }
 0x7f9   :  { %4362 = vtanh.f32 %v3302_v62  ;;  %v4530_v62 = vld [vmem:[%s6372_s2 + $0x1e0] ss:$16 sps:$4 sm:$0xff]  }
 0x7fd   :  { %v4355_v51 = vpop.eup %4354 }
 0x7fe   :  { %v3328_v13 = vmul.f32 %v4355_v51, %v4353_v18  ;;  %v6720_v18 = vld [vmem:[#allocation73_spill] sm:$0xff] }
 0x800   :  { %v4357_v45 = vpop.eup %4356  ;;  %v3356_v14 = vpack.c.bf16 %v3328_v13, %v3328_v13 }
 0x801   :  { %v4359_v25 = vpop.eup %4358  ;;  %v3333_v46 = vadd.f32 1.0, %v4357_v45 }
 0x802   :  { %3655 = vst [vmem:[%s6374_s4 + $0x30] sm:$0xf] %v3356_v14  ;;  %3357 = vst [vmem:[#allocation4] sm:$0xf] %v3356_v14  ;;  %v3339_v60 = vadd.f32 1.0, %v4359_v25  ;;  %v4361_v4 = vpop.eup %4360 }
 0x803   :  { %4364 = vrcp.f32 %v3333_v46  ;;  %v4363_v1 = vpop.eup %4362  ;;  %v3346_v40 = vadd.f32 1.0, %v4361_v4 }
 0x804   :  { %4366 = vrcp.f32 %v3339_v60 }
 0x805   :  { %4368 = vrcp.f32 %v3346_v40 }
 0x809   :  { %v3364_v61 = vld [vmem:[#allocation4] sm:$0xf] }
 0x80a   :  { %3398 = vmatmul.mubr.bf16.vlgmr.msra.gmra.mrb[88].mxu0 %v3364_v61  ;;  %3439 = vmatmul.mubr.bf16.vlgmr.msra.gmra.mrb[88].mxu1 %v3364_v61 }
 0x80b   :  { %3449 = vmatpush1.bf16.msra.mxu0 %v4502_v63  ;;  %3490 = vmatpush1.bf16.msra.mxu1 %v4503_v0 }
 0x80c   :  { %3450 = vmatprep.subr.bf16.mxu0 %v4504_v47  ;;  %3491 = vmatprep.subr.bf16.mxu1 %v4505_v2 }
 0x80d   :  { %v4365_v3 = vpop.eup %4364  ;;  %3480 = vmatprep.mubr.bf16.mxu0 %v6499_v21  ;;  %3521 = vmatprep.mubr.bf16.mxu1 %v6499_v21  ;;  %v4509_v21 = vld [vmem:[%s6372_s2 + $0x14c] ss:$16 sps:$4 sm:$0xff]  }
 0x80e   :  { %v4367_v5 = vpop.eup %4366  ;;  %v3350_v7 = vmul.f32 %v4365_v3, %v4363_v1 }
 0x80f   :  { %v3349_v24 = vmul.f32 %v4367_v5, %v6108_v12  ;;  %3451 = vmatpush1.bf16.msra.mxu0 %v4506_v11  ;;  %3492 = vmatpush1.bf16.msra.mxu1 %v4507_v16  ;;  %v4369_v35 = vpop.eup %4368 }
 0x810   :  { %3452 = vmatprep.subr.bf16.mxu0 %v4508_v49  ;;  %3493 = vmatprep.subr.bf16.mxu1 %v4509_v21  ;;  %v6721_v49 = vld [vmem:[#allocation74_spill] sm:$0xff] }
 0x811   :  { %v6282_v12 = vadd.f32 %v3350_v7, %v3349_v24 }
 0x813   :  { %4370 = vtanh.f32 %v6282_v12  ;;  %3453 = vmatpush1.bf16.msra.mxu0 %v4510_v20  ;;  %3494 = vmatpush1.bf16.msra.mxu1 %v4511_v59  ;;  %v6722_v20 = vld [vmem:[#allocation76_spill] sm:$0xff] }
 0x814   :  { %3454 = vmatprep.subr.bf16.mxu0 %v4512_v10  ;;  %3495 = vmatprep.subr.bf16.mxu1 %v4513_v9 }
 0x817   :  { %3455 = vmatpush1.bf16.msra.mxu0 %v4514_v31  ;;  %3496 = vmatpush1.bf16.msra.mxu1 %v4515_v52  ;;  %v6723_v31 = vld [vmem:[#allocation75_spill] sm:$0xff] }
 0x818   :  { %3456 = vmatprep.subr.bf16.mxu0 %v4516_v15  ;;  %3497 = vmatprep.subr.bf16.mxu1 %v4517_v44  ;;  %v6724_v15 = vld [vmem:[#allocation78_spill] sm:$0xff] }
 0x81b   :  { %3457 = vmatpush1.bf16.msra.mxu0 %v4518_v6  ;;  %3498 = vmatpush1.bf16.msra.mxu1 %v4519_v32 }
 0x81c   :  { %3458 = vmatprep.subr.bf16.mxu0 %v4520_v38  ;;  %3499 = vmatprep.subr.bf16.mxu1 %v4521_v30 }
 0x81d   :  { %v4371_v34 = vpop.eup %4370 }
 0x81e   :  { %v3353_v50 = vmul.f32 %v4371_v34, %v4369_v35 }
 0x81f   :  { %3459 = vmatpush1.bf16.msra.mxu0 %v4522_v41  ;;  %3500 = vmatpush1.bf16.msra.mxu1 %v4523_v42 }
 0x820   :  { %v3358_v53 = vpack.c.bf16 %v3353_v50, %v3353_v50  ;;  %3460 = vmatprep.subr.bf16.mxu0 %v4524_v48  ;;  %3501 = vmatprep.subr.bf16.mxu1 %v4525_v36 }
 0x822   :  { %3698 = vst [vmem:[%s6374_s4 + $0xc] sm:$0xf] %v3358_v53  ;;  %3359 = vst [vmem:[#allocation5] sm:$0xf] %v3358_v53 }
 0x823   :  { %3461 = vmatpush1.bf16.msra.mxu0 %v4526_v54  ;;  %3502 = vmatpush1.bf16.msra.mxu1 %v4527_v55 }
 0x824   :  { %3462 = vmatprep.subr.bf16.mxu0 %v4528_v57  ;;  %3503 = vmatprep.subr.bf16.mxu1 %v4529_v58 }
 0x827   :  { %3463 = vmatpush1.bf16.msra.mxu0 %v4530_v62  ;;  %3504 = vmatpush1.bf16.msra.mxu1 %v4531_v17 }
 0x829   :  { %v3447_v29 = vld [vmem:[#allocation5] sm:$0xf] }
 0x82a   :  { %3481 = vmatmul.mubr.bf16.vlgmr.msra.gmra.mrb[92].mxu0 %v3447_v29  ;;  %3522 = vmatmul.mubr.bf16.vlgmr.msra.gmra.mrb[92].mxu1 %v3447_v29 }
 0x8dd   :  { %v3399_v33 = vpop.f32.mrb[88].mxu0  ;;  %v3440_v43 = vpop.f32.mrb[88].mxu1 }
 0x8de   :  { %v3536_v22 = vadd.f32 %v3399_v33, %v6717_v28  ;;  %v3538_v56 = vadd.f32 %v3440_v43, %v6718_v37  ;;  %v3401_v8 = vpop.f32.mrb[89].mxu0  ;;  %v3442_v27 = vpop.f32.mrb[89].mxu1 }
 0x8df   :  { %v3537_v19 = vadd.f32 %v3401_v8, %v6719_v26  ;;  %v3539_v51 = vadd.f32 %v3442_v27, %v6720_v18  ;;  %v3403_v23 = vpop.f32.mrb[90].mxu0  ;;  %v3444_v13 = vpop.f32.mrb[90].mxu1 }
 0x8e0   :  { %v3998_v45 = vmul.f32 -1.442695, %v3536_v22  ;;  %v3404_v14 = vpop.f32.mrb[91].mxu0  ;;  %v3445_v25 = vpop.f32.mrb[91].mxu1 }
 0x8e1   :  { %v3999_v46 = vmul.f32 -1.442695, %v3537_v19  ;;  %v4000_v60 = vmul.f32 -1.442695, %v3539_v51 }
 0x8e2   :  { %4372 = vpow2.f32 %v3998_v45 }
 0x8e3   :  { %4374 = vpow2.f32 %v3999_v46 }
 0x8e4   :  { %4376 = vpow2.f32 %v4000_v60 }
 0x8e5   :  { %4378 = vtanh.f32 %v3538_v56 }
 0x8ec   :  { %v4373_v61 = vpop.eup %4372 }
 0x8ed   :  { %v4375_v4 = vpop.eup %4374  ;;  %v3554_v63 = vadd.f32 1.0, %v4373_v61 }
 0x8ee   :  { %v3560_v0 = vadd.f32 1.0, %v4375_v4  ;;  %v4377_v1 = vpop.eup %4376 }
 0x8ef   :  { %4380 = vrcp.f32 %v3554_v63  ;;  %v4379_v47 = vpop.eup %4378  ;;  %v3567_v7 = vadd.f32 1.0, %v4377_v1 }
 0x8f0   :  { %4382 = vrcp.f32 %v3560_v0 }
 0x8f1   :  { %4384 = vrcp.f32 %v3567_v7 }
 0x8f9   :  { %v4381_v2 = vpop.eup %4380 }
 0x8fa   :  { %v4383_v3 = vpop.eup %4382  ;;  %v3571_v5 = vmul.f32 %v4381_v2, %v4379_v47 }
 0x8fb   :  { %v3570_v40 = vmul.f32 %v4383_v3, %v6245_v39  ;;  %v4385_v34 = vpop.eup %4384 }
 0x8fd   :  { %v3572_v24 = vadd.f32 %v3571_v5, %v3570_v40  ;;  %v3482_v11 = vpop.f32.mrb[92].mxu0  ;;  %v3523_v16 = vpop.f32.mrb[92].mxu1 }
 0x8fe   :  { %v3546_v21 = vadd.f32 %v3482_v11, %v6721_v49  ;;  %v3548_v59 = vadd.f32 %v3523_v16, %v6722_v20  ;;  %v3484_v10 = vpop.f32.mrb[93].mxu0  ;;  %v3525_v9 = vpop.f32.mrb[93].mxu1 }
 0x8ff   :  { %4386 = vtanh.f32 %v3572_v24  ;;  %v3547_v52 = vadd.f32 %v3484_v10, %v6723_v31  ;;  %v3549_v44 = vadd.f32 %v3525_v9, %v6724_v15  ;;  %v3486_v6 = vpop.f32.mrb[94].mxu0  ;;  %v3527_v32 = vpop.f32.mrb[94].mxu1 }
 0x900   :  { %v4001_v35 = vmul.f32 -1.442695, %v3546_v21  ;;  %v3487_v38 = vpop.f32.mrb[95].mxu0  ;;  %v3528_v39 = vpop.f32.mrb[95].mxu1 }
 0x901   :  { %v4002_v30 = vmul.f32 -1.442695, %v3547_v52  ;;  %v4003_v41 = vmul.f32 -1.442695, %v3549_v44 }
 0x902   :  { %4388 = vpow2.f32 %v4001_v35 }
 0x903   :  { %4390 = vpow2.f32 %v4002_v30 }
 0x904   :  { %4392 = vpow2.f32 %v4003_v41 }
 0x905   :  { %4394 = vtanh.f32 %v3548_v59 }
 0x909   :  { %v4387_v50 = vpop.eup %4386 }
 0x90a   :  { %v3574_v42 = vmul.f32 %v4387_v50, %v4385_v34 }
 0x90c   :  { %v4389_v53 = vpop.eup %4388  ;;  %v3602_v48 = vpack.c.bf16 %v3574_v42, %v3574_v42 }
 0x90d   :  { %v4391_v36 = vpop.eup %4390  ;;  %v3579_v54 = vadd.f32 1.0, %v4389_v53 }
 0x90e   :  { %3603 = vst [vmem:[#allocation4] sm:$0xf] %v3602_v48  ;;  %3656 = vst [vmem:[%s6374_s4 + $0x38] sm:$0xf] %v3602_v48  ;;  %v3585_v55 = vadd.f32 1.0, %v4391_v36  ;;  %v4393_v57 = vpop.eup %4392 }
 0x90f   :  { %4396 = vrcp.f32 %v3579_v54  ;;  %v4395_v58 = vpop.eup %4394  ;;  %v3592_v33 = vadd.f32 1.0, %v4393_v57 }
 0x910   :  { %4398 = vrcp.f32 %v3585_v55 }
 0x911   :  { %4400 = vrcp.f32 %v3592_v33 }
 0x919   :  { %v4397_v62 = vpop.eup %4396 }
 0x91a   :  { %v4399_v17 = vpop.eup %4398  ;;  %v3596_v29 = vmul.f32 %v4397_v62, %v4395_v58 }
 0x91b   :  { %v3595_v43 = vmul.f32 %v4399_v17, %v6282_v12  ;;  %v4401_v22 = vpop.eup %4400 }
 0x91d   :  { %v3597_v28 = vadd.f32 %v3596_v29, %v3595_v43 }
 0x91f   :  { %4402 = vtanh.f32 %v3597_v28 }
 0x929   :  { %v4403_v37 = vpop.eup %4402 }
 0x92a   :  { %v3599_v56 = vmul.f32 %v4403_v37, %v4401_v22 }
 0x92c   :  { %v3604_v8 = vpack.c.bf16 %v3599_v56, %v3599_v56 }
 0x92e   :  { %3605 = vst [vmem:[#allocation5] sm:$0xf] %v3604_v8  ;;  %3697 = vst [vmem:[%s6374_s4 + $0x4] sm:$0xf] %v3604_v8 }
 0x92f   :  { %3709 = vsyncpa [#allocation11], 1 }

</bundles_post_ra>
